<compile_context>
chip_gen: v7x
topology: tpu7x:2x2x1
jax: 0.10.0
libtpu: 0.0.40
codegen_flags: <defaults>
</compile_context>

<pallas_src>
import numpy as np
import jax
import jax.numpy as jnp
from jax.experimental import pallas as pl
from jax.experimental.pallas import tpu as pltpu

EMB = 40
NUM_HEADS = 8
HEAD_DIM = EMB // NUM_HEADS           # 5
NUM_CH = 62
NUM_FREQ = 5
SEQ = NUM_CH + 1                      # 63 (cls token + 62 channels)
SEQP = 64                             # padded per-sample sequence (alignment)
N_CLASSES = 4
DEPTH = 6                             # module default
FF_EXP = 4
FF_DIM = FF_EXP * EMB                 # 160
P_DIM = EMB // 4                      # 10  (FAN p_ratio = 0.25)
G_DIM = EMB - 2 * P_DIM               # 20
QKV_W = 128                           # 3*EMB = 120, padded to full lane width
BN_EPS = 1e-5
LN_EPS = 1e-5
HSTK = NUM_HEADS * SEQP               # 512 rows in the head-stacked energies


# --------------------------------------------------------------------------- #
# Fused forward kernel
# --------------------------------------------------------------------------- #
def _fat_fwd_kernel(
        x_ref,                                    # (b_blk*64, 5)
        pw1_ref, pb1_ref, pw2_ref, pb2_ref,       # patch embed (BN + pos folded)
        addpe_ref,                                # (b_blk*64, 40) cls+PE rows
        astack_ref,                               # (512, 64)  [a1 x4 ; a2 x4], scaled
        hms_ref,                                  # (512, 40)  head column masks
        wqkv_ref, bqkv_ref,                       # (D,40,128) bf16, (D,1,128) f32
        dgw_ref,                                  # (D,2,128)  gate rows (f32)
        projw_ref,                                # (D,40,40)  bf16
        ff1w_ref, ff1b_ref,                       # (D,40,160) bf16, (D,1,160) f32
        ff2w_ref,                                 # (D,160,40) bf16
        vec_ref,                                  # (D,8,40)   packed small vectors
        hvec_ref, hw_ref, hb_ref,                 # head: (2,40), (40,4) bf16, (1,4)
        o_ref):                                   # (b_blk, 1, 4)
    f32 = jnp.float32
    bf16 = jnp.bfloat16
    n_rows = x_ref.shape[0]                       # b_blk * SEQP
    b_blk = n_rows // SEQP

    # ---- constants built once per grid step ------------------------------- #
    # FAN lane masks over the fused q|k|v slab (cols [0:10)=cos, [10:20)=sin,
    # [20:40)=linear, repeated per q/k/v block; dead lanes fall through to z=0).
    col = jax.lax.broadcasted_iota(jnp.int32, (1, QKV_W), 1)
    r = (col
         - EMB * (col >= EMB).astype(jnp.int32)
         - EMB * (col >= 2 * EMB).astype(jnp.int32))
    live = col < 3 * EMB
    m_cos = live & (r < P_DIM)
    m_sin = live & (r >= P_DIM) & (r < 2 * P_DIM)

    # key lane 63 of each sample block is padding -> masked inside softmax.
    key_valid = jax.lax.broadcasted_iota(jnp.int32, (1, SEQP), 1) < SEQ

    # row-within-sample index, used only for the cls/PE assembly.
    jrow = jax.lax.broadcasted_iota(jnp.int32, (n_rows, 1), 0)
    jmod = jnp.bitwise_and(jrow, SEQP - 1)
    is_chan = (jmod >= 1) & (jmod <= NUM_CH)

    hms = hms_ref[...]                            # (512, 40) f32
    astack = astack_ref[...]                      # (512, 64) f32, 1/sqrt(EMB) folded
    inv_scale = f32(1.0 / (EMB ** 0.5))

    def layer_norm(v, g, b):
        mu = jnp.mean(v, axis=-1, keepdims=True)
        var = jnp.mean((v - mu) ** 2, axis=-1, keepdims=True)
        return (v - mu) * jax.lax.rsqrt(var + LN_EPS) * g + b

    # ---- patch embedding (batched over all rows; pad rows are ignored) ----- #
    xb = x_ref[...]                                                     # (N, 5)
    e = jnp.dot(xb.astype(bf16), pw1_ref[...],
                preferred_element_type=f32) + pb1_ref[...]              # pos folded
    e = jnp.maximum(e, 0.0)
    e = jnp.dot(e.astype(bf16), pw2_ref[...],
                preferred_element_type=f32) + pb2_ref[...]
    e = jnp.maximum(e, 0.0)                                             # (N, 40)

    # prepend cls token + add PE: shift channel rows down by one inside each
    # 64-row sample block via the XLU (pltpu.roll) instead of a layout matmul;
    # row 0 = cls+pe0, rows 1..62 = e + pe, row 63 = 0 (pad).
    h0 = addpe_ref[...] + jnp.where(is_chan, pltpu.roll(e, shift=1, axis=0), 0.0)

    # ---- transformer encoder: fori_loop over DEPTH (stacked weights) -------- #
    def layer_fn(l, h):
        wqkv = wqkv_ref[l]; bqkv = bqkv_ref[l]
        dgw = dgw_ref[l]
        projw = projw_ref[l]
        ff1w = ff1w_ref[l]; ff1b = ff1b_ref[l]
        ff2w = ff2w_ref[l]
        vec = vec_ref[l]
        ln1_g = vec[0:1, :]; ln1_b = vec[1:2, :]
        ln2_g = vec[2:3, :]; ln2_b = vec[3:4, :]
        proj_b = vec[4:5, :]; ff2_b = vec[5:6, :]
        dg_b1 = vec[6:7, 0:1]; dg_b2 = vec[6:7, 1:2]

        # ---------- attention (row-batched except the per-sample energies) --
        xn = layer_norm(h, ln1_g, ln1_b)
        z = jnp.dot(xn.astype(bf16), wqkv, preferred_element_type=f32) + bqkv
        fan = jnp.where(m_cos, jnp.cos(z), jnp.where(m_sin, jnp.sin(z), z))
        q = fan[:, 0:EMB]
        k = fan[:, EMB:2 * EMB]
        v = fan[:, 2 * EMB:3 * EMB]

        # dynamic-graph gates: Linear(20,1) over q[:, :20] / q[:, 20:40]
        # (dgw rows are zero outside those columns) -> lane reduction, no MXU.
        wf = jax.nn.sigmoid(
            jnp.sum(fan * dgw[0:1, :], axis=-1, keepdims=True) + dg_b1)  # (N,1)
        wb = jax.nn.sigmoid(
            jnp.sum(fan * dgw[1:2, :], axis=-1, keepdims=True) + dg_b2)
        q_s = q * inv_scale     # softmax 1/sqrt(EMB); same scale folded in astack

        att_parts = []
        for b in range(b_blk):                     # only q@kT needs per-sample
            base = b * SEQP
            q_b = q_s[base:base + SEQP]            # (64, 40), aligned slices
            k_b = k[base:base + SEQP]
            v_b = v[base:base + SEQP]
            wf_b = wf[base:base + SEQP]
            wb_b = wb[base:base + SEQP]

            # head-stacked Q: 8 aligned copies masked per head -> (512, 40)
            qstk = jnp.concatenate([q_b] * NUM_HEADS, axis=0) * hms
            wstk = jnp.concatenate([wf_b] * (NUM_HEADS // 2)
                                   + [wb_b] * (NUM_HEADS // 2), axis=0)  # (512,1)

            energy = jnp.dot(qstk.astype(bf16), k_b.T.astype(bf16),
                             preferred_element_type=f32)                # (512,64)
            energy = energy + wstk * astack
            energy = jnp.where(key_valid, energy, -1e30)
            energy = energy - jnp.max(energy, axis=-1, keepdims=True)
            pmat = jnp.exp(energy)
            pmat = pmat * pl.reciprocal(jnp.sum(pmat, axis=-1, keepdims=True),
                                        approx=True)

            y = jnp.dot(pmat.astype(bf16), v_b.astype(bf16),
                        preferred_element_type=f32)                     # (512,40)
            y = y * hms           # head h keeps its own column block of v
            out_b = y[0:SEQP]
            for hh in range(1, NUM_HEADS):          # aligned 64-row slabs
                out_b = out_b + y[hh * SEQP:(hh + 1) * SEQP]
            att_parts.append(out_b)

        att = att_parts[0] if b_blk == 1 else jnp.concatenate(att_parts, axis=0)

        h = h + jnp.dot(att.astype(bf16), projw,
                        preferred_element_type=f32) + proj_b

        # ---------- feed forward --------------------------------------------
        xn2 = layer_norm(h, ln2_g, ln2_b)
        t = jnp.dot(xn2.astype(bf16), ff1w, preferred_element_type=f32) + ff1b
        # TODO(synk): PyTorch nn.GELU is erf-exact; tanh approximation used for
        # guaranteed Mosaic lowering (~1e-3 abs difference).
        t = jax.nn.gelu(t, approximate=True)
        return h + jnp.dot(t.astype(bf16), ff2w, preferred_element_type=f32) + ff2_b

    h = jax.lax.fori_loop(0, DEPTH, layer_fn, h0)

    # ---- classification head on the cls rows (row 0 of each sample block) -- #
    cls_parts = [h[b * SEQP:b * SEQP + 1, :] for b in range(b_blk)]
    cls = cls_parts[0] if b_blk == 1 else jnp.concatenate(cls_parts, axis=0)
    cls = layer_norm(cls, hvec_ref[0:1, :], hvec_ref[1:2, :])
    logits = jnp.dot(cls.astype(bf16), hw_ref[...],
                     preferred_element_type=f32) + hb_ref[...]          # (b_blk,4)
    o_ref[...] = logits[:, None, :]                 # one store per grid step


# --------------------------------------------------------------------------- #
# Wrapper (single pallas_call for the whole network)
# --------------------------------------------------------------------------- #
def _const_spec(a):
    nd = a.ndim
    return pl.BlockSpec(a.shape, lambda g, _nd=nd: (0,) * _nd)


def _pick_b_blk(B):
    # Chunk the batch: big enough that the row-batched matmuls fill the MXU
    # (>=256 rows once b_blk>=4) but keep >=2 grid steps when possible so both
    # v7x TensorCores get work; on 1-TC parts the extra ~0.35us/step is noise.
    for cand in (8, 4, 2, 1):
        if B % cand == 0 and B // cand >= 2:
            return cand
    for cand in (8, 4, 2, 1):
        if B % cand == 0:
            return cand
    return 1


@jax.jit
def fat_forward(x, p):
    # x: (B, 1, num_channels, num_freq_bands), like the PyTorch forward.
    B = x.shape[0]
    b_blk = _pick_b_blk(B)

    # pad 62 -> 64 channel rows per sample and flatten to a 2D slab so every
    # block / slice in the kernel is sublane-aligned.
    xe = x[:, 0]                                                     # (B, 62, 5)
    xpad = jnp.concatenate(
        [xe, jnp.zeros((B, SEQP - NUM_CH, NUM_FREQ), xe.dtype)], axis=1)
    x2d = xpad.reshape(B * SEQP, NUM_FREQ)

    # per-block tiled row constants (position encodings folded into biases).
    pb1rows_t = jnp.tile(p['pb1rows'], (b_blk, 1))                   # (b_blk*64, 20)
    addpe_t = jnp.tile(p['addpe'], (b_blk, 1))                       # (b_blk*64, 40)

    consts = [p['pw1'], pb1rows_t, p['pw2'], p['pb2'], addpe_t,
              p['astack'], p['hms'],
              p['wqkv'], p['bqkv'], p['dgw'], p['projw'],
              p['ff1w'], p['ff1b'], p['ff2w'], p['vec'],
              p['hvec'], p['hw'], p['hb']]

    out = pl.pallas_call(
        _fat_fwd_kernel,
        out_shape=jax.ShapeDtypeStruct((B, 1, N_CLASSES), jnp.float32),
        grid=(B // b_blk,),
        in_specs=[pl.BlockSpec((b_blk * SEQP, NUM_FREQ), lambda g: (g, 0))]
                 + [_const_spec(a) for a in consts],
        out_specs=pl.BlockSpec((b_blk, 1, N_CLASSES), lambda g: (g, 0, 0)),
        compiler_params=pltpu.CompilerParams(dimension_semantics=("parallel",)),
    )(x2d, *consts)
    return out[:, 0, :]


# --------------------------------------------------------------------------- #
# Parameter init (deterministic, synthetic), packed for the fused kernel
# --------------------------------------------------------------------------- #
def normalize_A(adj):
    # TODO(synk): `normalize_A` is undefined in the provided source; standard
    # DGCNN/EEG convention used: relu -> D^{-1/2} A D^{-1/2}.
    a = jnp.maximum(adj, 0.0)
    d = jnp.sum(a, axis=1)
    dinv = 1.0 / jnp.sqrt(d + 1e-10)
    return dinv[:, None] * a * dinv[None, :]


def init_params(key):
    keys = iter(jax.random.split(key, 256))
    nk = lambda: next(keys)
    nrm = lambda k, shp, sc: sc * jax.random.normal(k, shp, jnp.float32)
    bf16 = jnp.bfloat16
    p = {}

    # --- patch embedding: BatchNorm (eval, fresh-init running stats) folded --
    # TODO(synk): matches a freshly-initialised (untrained) BatchNorm; a loaded
    # checkpoint would need its running stats folded the same way.
    bn_scale = np.float32(1.0 / np.sqrt(1.0 + BN_EPS))
    pos = nrm(nk(), (NUM_CH, NUM_FREQ), 1.0)
    pw1 = nrm(nk(), (NUM_FREQ, EMB // 2), 1.0 / np.sqrt(NUM_FREQ)) * bn_scale
    pb1 = nrm(nk(), (1, EMB // 2), 0.02) * bn_scale
    pw2 = nrm(nk(), (EMB // 2, EMB), 1.0 / np.sqrt(EMB // 2)) * bn_scale
    pb2 = nrm(nk(), (1, EMB), 0.02) * bn_scale
    # fold the position-encoding add into a per-row stage-1 bias: W1(x+pos)+b1.
    pb1rows = pos @ pw1 + pb1                                        # (62, 20)
    pb1rows = jnp.concatenate(
        [pb1rows, jnp.zeros((SEQP - NUM_CH, EMB // 2), jnp.float32)], axis=0)
    p['pw1'] = pw1.astype(bf16)
    p['pb1rows'] = pb1rows
    p['pw2'] = pw2.astype(bf16)
    p['pb2'] = pb2

    # --- cls token + sinusoidal positional encoding, pre-combined, padded ----
    cls = nrm(nk(), (1, EMB), 1.0)
    posn = jnp.arange(SEQ, dtype=jnp.float32)[:, None]
    div = jnp.exp(jnp.arange(0, EMB, 2, dtype=jnp.float32)
                  * (-np.log(10000.0) / EMB))
    pe = jnp.zeros((SEQ, EMB), jnp.float32)
    pe = pe.at[:, 0::2].set(jnp.sin(posn * div)).at[:, 1::2].set(jnp.cos(posn * div))
    p['addpe'] = jnp.concatenate(
        [cls + pe[0:1], pe[1:], jnp.zeros((SEQP - SEQ, EMB), jnp.float32)], axis=0)

    # --- shared dynamic graphs, head-stacked, 1/sqrt(EMB) folded in ----------
    inv_scale = np.float32(1.0 / np.sqrt(EMB))
    xav = float(np.sqrt(2.0 / (SEQ + SEQ)))
    a1 = normalize_A(nrm(nk(), (SEQ, SEQ), xav)) * inv_scale
    a2 = normalize_A(nrm(nk(), (SEQ, SEQ), xav)) * inv_scale
    a1p = jnp.zeros((SEQP, SEQP), jnp.float32).at[:SEQ, :SEQ].set(a1)
    a2p = jnp.zeros((SEQP, SEQP), jnp.float32).at[:SEQ, :SEQ].set(a2)
    p['astack'] = jnp.concatenate([a1p] * (NUM_HEADS // 2)
                                  + [a2p] * (NUM_HEADS // 2), axis=0)  # (512, 64)

    # --- head column masks, stacked to match the (8*64, *) energy layout -----
    hms = np.zeros((HSTK, EMB), np.float32)
    for h in range(NUM_HEADS):
        hms[h * SEQP:(h + 1) * SEQP, h * HEAD_DIM:(h + 1) * HEAD_DIM] = 1.0
    p['hms'] = jnp.asarray(hms)

    # --- transformer layers (stacked on a leading DEPTH axis) ----------------
    wqkv, bqkv, dgw, projw, ff1w, ff1b, ff2w, vec = ([] for _ in range(8))
    for _ in range(DEPTH):
        wblk, bblk = [], []
        for _name in ('q', 'k', 'v'):
            wp = nrm(nk(), (EMB, P_DIM), 1.0 / np.sqrt(EMB))
            bp = nrm(nk(), (1, P_DIM), 0.02)
            wg = nrm(nk(), (EMB, G_DIM), 1.0 / np.sqrt(EMB))
            bg = nrm(nk(), (1, G_DIM), 0.02)
            # TODO(synk): FANLayer undefined in source; assumed output
            # [cos(Wp x + bp), sin(Wp x + bp), Wg x + bg]; Wp duplicated so one
            # matmul yields [p, p, g] and trig is applied via lane masks.
            wblk.append(jnp.concatenate([wp, wp, wg], axis=1))
            bblk.append(jnp.concatenate([bp, bp, bg], axis=1))
        wblk.append(jnp.zeros((EMB, QKV_W - 3 * EMB), jnp.float32))
        bblk.append(jnp.zeros((1, QKV_W - 3 * EMB), jnp.float32))
        wqkv.append(jnp.concatenate(wblk, axis=1).astype(bf16))
        bqkv.append(jnp.concatenate(bblk, axis=1))

        dg1 = nrm(nk(), (1, G_DIM), 1.0 / np.sqrt(G_DIM))
        dg2 = nrm(nk(), (1, G_DIM), 1.0 / np.sqrt(G_DIM))
        row0 = jnp.concatenate(
            [dg1, jnp.zeros((1, QKV_W - G_DIM), jnp.float32)], axis=1)
        row1 = jnp.concatenate(
            [jnp.zeros((1, G_DIM), jnp.float32), dg2,
             jnp.zeros((1, QKV_W - 2 * G_DIM), jnp.float32)], axis=1)
        dgw.append(jnp.concatenate([row0, row1], axis=0))

        projw.append(nrm(nk(), (EMB, EMB), 1.0 / np.sqrt(EMB)).astype(bf16))
        proj_b = nrm(nk(), (1, EMB), 0.02)
        ff1w.append(nrm(nk(), (EMB, FF_DIM), 1.0 / np.sqrt(EMB)).astype(bf16))
        ff1b.append(nrm(nk(), (1, FF_DIM), 0.02))
        ff2w.append(nrm(nk(), (FF_DIM, EMB), 1.0 / np.sqrt(FF_DIM)).astype(bf16))
        ff2_b = nrm(nk(), (1, EMB), 0.02)

        vec.append(jnp.concatenate([
            jnp.ones((1, EMB), jnp.float32),    # ln1 gamma
            jnp.zeros((1, EMB), jnp.float32),   # ln1 beta
            jnp.ones((1, EMB), jnp.float32),    # ln2 gamma
            jnp.zeros((1, EMB), jnp.float32),   # ln2 beta
            proj_b,                             # attention projection bias
            ff2_b,                              # ff2 bias
            jnp.zeros((1, EMB), jnp.float32),   # [dg1_bias, dg2_bias, 0, ...]
            jnp.zeros((1, EMB), jnp.float32),   # pad to 8 rows
        ], axis=0))

    p['wqkv'] = jnp.stack(wqkv); p['bqkv'] = jnp.stack(bqkv)
    p['dgw'] = jnp.stack(dgw);   p['projw'] = jnp.stack(projw)
    p['ff1w'] = jnp.stack(ff1w); p['ff1b'] = jnp.stack(ff1b)
    p['ff2w'] = jnp.stack(ff2w); p['vec'] = jnp.stack(vec)

    # --- classification head -------------------------------------------------
    p['hvec'] = jnp.concatenate([jnp.ones((1, EMB), jnp.float32),
                                 jnp.zeros((1, EMB), jnp.float32)], axis=0)
    p['hw'] = nrm(nk(), (EMB, N_CLASSES), 1.0 / np.sqrt(EMB)).astype(bf16)
    p['hb'] = jnp.zeros((1, N_CLASSES), jnp.float32)
    return p


if __name__ == "__main__":
    key = jax.random.PRNGKey(0)
    kp, kx = jax.random.split(key)
    params = init_params(kp)
    # input matches the PyTorch forward: (B, 1, num_channels, num_freq_bands)
    x = jax.random.normal(kx, (2, 1, NUM_CH, NUM_FREQ), jnp.float32)
    logits = fat_forward(x, params)
    logits = jax.block_until_ready(logits)
    assert logits.shape == (2, N_CLASSES)
    assert bool(jnp.all(jnp.isfinite(logits)))
    print("KERNEL_OK")
</pallas_src>

<mosaic_0001>
module attributes {stable_mosaic.version = 11 : i64} {
  func.func @_fat_fwd_kernel(%arg0: i32, %arg1: memref<64x5xf32, #tpu.memory_space<vmem>>, %arg2: memref<5x20xbf16, #tpu.memory_space<vmem>>, %arg3: memref<64x20xf32, #tpu.memory_space<vmem>>, %arg4: memref<20x40xbf16, #tpu.memory_space<vmem>>, %arg5: memref<1x40xf32, #tpu.memory_space<vmem>>, %arg6: memref<64x40xf32, #tpu.memory_space<vmem>>, %arg7: memref<512x64xf32, #tpu.memory_space<vmem>>, %arg8: memref<512x40xf32, #tpu.memory_space<vmem>>, %arg9: memref<6x40x128xbf16, #tpu.memory_space<vmem>>, %arg10: memref<6x1x128xf32, #tpu.memory_space<vmem>>, %arg11: memref<6x2x128xf32, #tpu.memory_space<vmem>>, %arg12: memref<6x40x40xbf16, #tpu.memory_space<vmem>>, %arg13: memref<6x40x160xbf16, #tpu.memory_space<vmem>>, %arg14: memref<6x1x160xf32, #tpu.memory_space<vmem>>, %arg15: memref<6x160x40xbf16, #tpu.memory_space<vmem>>, %arg16: memref<6x8x40xf32, #tpu.memory_space<vmem>>, %arg17: memref<2x40xf32, #tpu.memory_space<vmem>>, %arg18: memref<40x4xbf16, #tpu.memory_space<vmem>>, %arg19: memref<1x4xf32, #tpu.memory_space<vmem>>, %arg20: memref<1x1x4xf32, #tpu.memory_space<vmem>>) attributes {dimension_semantics = [#tpu.dimension_semantics<parallel>], iteration_bounds = array<i64: 2>, scalar_prefetch = 0 : i64, scratch_operands = 0 : i64, tpu.core_type = #tpu.core_type<tc>, window_params = [{transform_indices = @transform_0, window_bounds = array<i64: 64, 5>}, {pipeline_mode = #tpu.pipeline_mode<synchronous>, transform_indices = @transform_1, window_bounds = array<i64: 5, 20>}, {pipeline_mode = #tpu.pipeline_mode<synchronous>, transform_indices = @transform_2, window_bounds = array<i64: 64, 20>}, {pipeline_mode = #tpu.pipeline_mode<synchronous>, transform_indices = @transform_3, window_bounds = array<i64: 20, 40>}, {pipeline_mode = #tpu.pipeline_mode<synchronous>, transform_indices = @transform_4, window_bounds = array<i64: 1, 40>}, {pipeline_mode = #tpu.pipeline_mode<synchronous>, transform_indices = @transform_5, window_bounds = array<i64: 64, 40>}, {pipeline_mode = #tpu.pipeline_mode<synchronous>, transform_indices = @transform_6, window_bounds = array<i64: 512, 64>}, {pipeline_mode = #tpu.pipeline_mode<synchronous>, transform_indices = @transform_7, window_bounds = array<i64: 512, 40>}, {pipeline_mode = #tpu.pipeline_mode<synchronous>, transform_indices = @transform_8, window_bounds = array<i64: 6, 40, 128>}, {pipeline_mode = #tpu.pipeline_mode<synchronous>, transform_indices = @transform_9, window_bounds = array<i64: 6, 1, 128>}, {pipeline_mode = #tpu.pipeline_mode<synchronous>, transform_indices = @transform_10, window_bounds = array<i64: 6, 2, 128>}, {pipeline_mode = #tpu.pipeline_mode<synchronous>, transform_indices = @transform_11, window_bounds = array<i64: 6, 40, 40>}, {pipeline_mode = #tpu.pipeline_mode<synchronous>, transform_indices = @transform_12, window_bounds = array<i64: 6, 40, 160>}, {pipeline_mode = #tpu.pipeline_mode<synchronous>, transform_indices = @transform_13, window_bounds = array<i64: 6, 1, 160>}, {pipeline_mode = #tpu.pipeline_mode<synchronous>, transform_indices = @transform_14, window_bounds = array<i64: 6, 160, 40>}, {pipeline_mode = #tpu.pipeline_mode<synchronous>, transform_indices = @transform_15, window_bounds = array<i64: 6, 8, 40>}, {pipeline_mode = #tpu.pipeline_mode<synchronous>, transform_indices = @transform_16, window_bounds = array<i64: 2, 40>}, {pipeline_mode = #tpu.pipeline_mode<synchronous>, transform_indices = @transform_17, window_bounds = array<i64: 40, 4>}, {pipeline_mode = #tpu.pipeline_mode<synchronous>, transform_indices = @transform_18, window_bounds = array<i64: 1, 4>}, {transform_indices = @transform_19, window_bounds = array<i64: 1, 1, 4>}]} {
    %0 = tpu.iota {dimensions = array<i32: 1>} : vector<1x128xi32>
    %c40_i32 = arith.constant 40 : i32
    %1 = vector.broadcast %c40_i32 : i32 to vector<1x128xi32>
    %2 = arith.cmpi sge, %0, %1 : vector<1x128xi32>
    %3 = arith.extui %2 : vector<1x128xi1> to vector<1x128xi32>
    %c40_i32_0 = arith.constant 40 : i32
    %4 = vector.broadcast %c40_i32_0 : i32 to vector<1x128xi32>
    %5 = arith.muli %4, %3 : vector<1x128xi32>
    %6 = arith.subi %0, %5 : vector<1x128xi32>
    %c80_i32 = arith.constant 80 : i32
    %7 = vector.broadcast %c80_i32 : i32 to vector<1x128xi32>
    %8 = arith.cmpi sge, %0, %7 : vector<1x128xi32>
    %9 = arith.extui %8 : vector<1x128xi1> to vector<1x128xi32>
    %c40_i32_1 = arith.constant 40 : i32
    %10 = vector.broadcast %c40_i32_1 : i32 to vector<1x128xi32>
    %11 = arith.muli %10, %9 : vector<1x128xi32>
    %12 = arith.subi %6, %11 : vector<1x128xi32>
    %c120_i32 = arith.constant 120 : i32
    %13 = vector.broadcast %c120_i32 : i32 to vector<1x128xi32>
    %14 = arith.cmpi slt, %0, %13 : vector<1x128xi32>
    %c10_i32 = arith.constant 10 : i32
    %15 = vector.broadcast %c10_i32 : i32 to vector<1x128xi32>
    %16 = arith.cmpi slt, %12, %15 : vector<1x128xi32>
    %17 = arith.andi %14, %16 : vector<1x128xi1>
    %c10_i32_2 = arith.constant 10 : i32
    %18 = vector.broadcast %c10_i32_2 : i32 to vector<1x128xi32>
    %19 = arith.cmpi sge, %12, %18 : vector<1x128xi32>
    %20 = arith.andi %14, %19 : vector<1x128xi1>
    %c20_i32 = arith.constant 20 : i32
    %21 = vector.broadcast %c20_i32 : i32 to vector<1x128xi32>
    %22 = arith.cmpi slt, %12, %21 : vector<1x128xi32>
    %23 = arith.andi %20, %22 : vector<1x128xi1>
    %24 = tpu.iota {dimensions = array<i32: 1>} : vector<1x64xi32>
    %c63_i32 = arith.constant 63 : i32
    %25 = vector.broadcast %c63_i32 : i32 to vector<1x64xi32>
    %26 = arith.cmpi slt, %24, %25 : vector<1x64xi32>
    %27 = tpu.iota {dimensions = array<i32: 0>} : vector<64x1xi32>
    %c63_i32_3 = arith.constant 63 : i32
    %28 = vector.broadcast %c63_i32_3 : i32 to vector<64x1xi32>
    %29 = arith.andi %27, %28 : vector<64x1xi32>
    %c1_i32 = arith.constant 1 : i32
    %30 = vector.broadcast %c1_i32 : i32 to vector<64x1xi32>
    %31 = arith.cmpi sge, %29, %30 : vector<64x1xi32>
    %c62_i32 = arith.constant 62 : i32
    %32 = vector.broadcast %c62_i32 : i32 to vector<64x1xi32>
    %33 = arith.cmpi sle, %29, %32 : vector<64x1xi32>
    %34 = arith.andi %31, %33 : vector<64x1xi1>
    %c0 = arith.constant 0 : index
    %c0_4 = arith.constant 0 : index
    %35 = vector.load %arg8[%c0, %c0_4] : memref<512x40xf32, #tpu.memory_space<vmem>>, vector<512x40xf32>
    %c0_5 = arith.constant 0 : index
    %c0_6 = arith.constant 0 : index
    %36 = vector.load %arg7[%c0_5, %c0_6] : memref<512x64xf32, #tpu.memory_space<vmem>>, vector<512x64xf32>
    %c0_7 = arith.constant 0 : index
    %c0_8 = arith.constant 0 : index
    %37 = vector.load %arg1[%c0_7, %c0_8] : memref<64x5xf32, #tpu.memory_space<vmem>>, vector<64x5xf32>
    %38 = arith.truncf %37 : vector<64x5xf32> to vector<64x5xbf16>
    %c0_9 = arith.constant 0 : index
    %c0_10 = arith.constant 0 : index
    %39 = vector.load %arg2[%c0_9, %c0_10] : memref<5x20xbf16, #tpu.memory_space<vmem>>, vector<5x20xbf16>
    %cst = arith.constant dense<0.000000e+00> : vector<64x20xf32>
    %40 = tpu.matmul %38, %39, %cst {dimension_numbers = #tpu.dot_dimension_numbers<[1], [0], [0], [1], [0, 0, 1, 1], [], []>} : vector<64x5xbf16>, vector<5x20xbf16>, vector<64x20xf32> -> vector<64x20xf32>
    %c0_11 = arith.constant 0 : index
    %c0_12 = arith.constant 0 : index
    %41 = vector.load %arg3[%c0_11, %c0_12] : memref<64x20xf32, #tpu.memory_space<vmem>>, vector<64x20xf32>
    %42 = arith.addf %40, %41 : vector<64x20xf32>
    %cst_13 = arith.constant 0.000000e+00 : f32
    %43 = vector.broadcast %cst_13 : f32 to vector<64x20xf32>
    %44 = arith.maximumf %42, %43 : vector<64x20xf32>
    %45 = arith.truncf %44 : vector<64x20xf32> to vector<64x20xbf16>
    %c0_14 = arith.constant 0 : index
    %c0_15 = arith.constant 0 : index
    %46 = vector.load %arg4[%c0_14, %c0_15] : memref<20x40xbf16, #tpu.memory_space<vmem>>, vector<20x40xbf16>
    %cst_16 = arith.constant dense<0.000000e+00> : vector<64x40xf32>
    %47 = tpu.matmul %45, %46, %cst_16 {dimension_numbers = #tpu.dot_dimension_numbers<[1], [0], [0], [1], [0, 0, 1, 1], [], []>} : vector<64x20xbf16>, vector<20x40xbf16>, vector<64x40xf32> -> vector<64x40xf32>
    %c0_17 = arith.constant 0 : index
    %c0_18 = arith.constant 0 : index
    %48 = vector.load %arg5[%c0_17, %c0_18] : memref<1x40xf32, #tpu.memory_space<vmem>>, vector<1x40xf32>
    %49 = vector.broadcast %48 : vector<1x40xf32> to vector<64x40xf32>
    %50 = arith.addf %47, %49 : vector<64x40xf32>
    %cst_19 = arith.constant 0.000000e+00 : f32
    %51 = vector.broadcast %cst_19 : f32 to vector<64x40xf32>
    %52 = arith.maximumf %50, %51 : vector<64x40xf32>
    %c0_20 = arith.constant 0 : index
    %c0_21 = arith.constant 0 : index
    %53 = vector.load %arg6[%c0_20, %c0_21] : memref<64x40xf32, #tpu.memory_space<vmem>>, vector<64x40xf32>
    %c1_i32_22 = arith.constant 1 : i32
    %54 = tpu.dynamic_rotate %52 by %c1_i32_22 dim 0 : vector<64x40xf32>, i32 -> vector<64x40xf32>
    %cst_23 = arith.constant 0.000000e+00 : f32
    %55 = vector.shape_cast %34 : vector<64x1xi1> to vector<64x1xi1>
    %56 = vector.broadcast %55 : vector<64x1xi1> to vector<64x40xi1>
    %57 = vector.broadcast %cst_23 : f32 to vector<64x40xf32>
    %58 = arith.select %56, %54, %57 : vector<64x40xi1>, vector<64x40xf32>
    %59 = arith.addf %53, %58 : vector<64x40xf32>
    %cst_24 = arith.constant 0.158113882 : f32
    %c0_i32 = arith.constant 0 : i32
    %c6_i32 = arith.constant 6 : i32
    %60 = arith.addi %c0_i32, %c6_i32 : i32
    %c1_i32_25 = arith.constant 1 : i32
    %61 = scf.for %arg21 = %c0_i32 to %60 step %c1_i32_25 iter_args(%arg22 = %59) -> (vector<64x40xf32>)  : i32 {
      %92 = arith.index_cast %arg21 : i32 to index
      %c0_43 = arith.constant 0 : index
      %c0_44 = arith.constant 0 : index
      %93 = vector.load %arg9[%92, %c0_43, %c0_44] : memref<6x40x128xbf16, #tpu.memory_space<vmem>>, vector<1x40x128xbf16>
      %94 = vector.shape_cast %93 : vector<1x40x128xbf16> to vector<40x128xbf16>
      %95 = arith.index_cast %arg21 : i32 to index
      %c0_45 = arith.constant 0 : index
      %c0_46 = arith.constant 0 : index
      %96 = vector.load %arg10[%95, %c0_45, %c0_46] : memref<6x1x128xf32, #tpu.memory_space<vmem>>, vector<1x1x128xf32>
      %97 = vector.shape_cast %96 : vector<1x1x128xf32> to vector<1x128xf32>
      %98 = arith.index_cast %arg21 : i32 to index
      %c0_47 = arith.constant 0 : index
      %c0_48 = arith.constant 0 : index
      %99 = vector.load %arg11[%98, %c0_47, %c0_48] : memref<6x2x128xf32, #tpu.memory_space<vmem>>, vector<1x2x128xf32>
      %100 = vector.shape_cast %99 : vector<1x2x128xf32> to vector<2x128xf32>
      %101 = arith.index_cast %arg21 : i32 to index
      %c0_49 = arith.constant 0 : index
      %c0_50 = arith.constant 0 : index
      %102 = vector.load %arg12[%101, %c0_49, %c0_50] : memref<6x40x40xbf16, #tpu.memory_space<vmem>>, vector<1x40x40xbf16>
      %103 = vector.shape_cast %102 : vector<1x40x40xbf16> to vector<40x40xbf16>
      %104 = arith.index_cast %arg21 : i32 to index
      %c0_51 = arith.constant 0 : index
      %c0_52 = arith.constant 0 : index
      %105 = vector.load %arg13[%104, %c0_51, %c0_52] : memref<6x40x160xbf16, #tpu.memory_space<vmem>>, vector<1x40x160xbf16>
      %106 = vector.shape_cast %105 : vector<1x40x160xbf16> to vector<40x160xbf16>
      %107 = arith.index_cast %arg21 : i32 to index
      %c0_53 = arith.constant 0 : index
      %c0_54 = arith.constant 0 : index
      %108 = vector.load %arg14[%107, %c0_53, %c0_54] : memref<6x1x160xf32, #tpu.memory_space<vmem>>, vector<1x1x160xf32>
      %109 = vector.shape_cast %108 : vector<1x1x160xf32> to vector<1x160xf32>
      %110 = arith.index_cast %arg21 : i32 to index
      %c0_55 = arith.constant 0 : index
      %c0_56 = arith.constant 0 : index
      %111 = vector.load %arg15[%110, %c0_55, %c0_56] : memref<6x160x40xbf16, #tpu.memory_space<vmem>>, vector<1x160x40xbf16>
      %112 = vector.shape_cast %111 : vector<1x160x40xbf16> to vector<160x40xbf16>
      %113 = arith.index_cast %arg21 : i32 to index
      %c0_57 = arith.constant 0 : index
      %c0_58 = arith.constant 0 : index
      %114 = vector.load %arg16[%113, %c0_57, %c0_58] : memref<6x8x40xf32, #tpu.memory_space<vmem>>, vector<1x8x40xf32>
      %115 = vector.shape_cast %114 : vector<1x8x40xf32> to vector<8x40xf32>
      %116 = vector.extract_strided_slice %115 {offsets = [0, 0], sizes = [1, 40], strides = [1, 1]} : vector<8x40xf32> to vector<1x40xf32>
      %117 = vector.extract_strided_slice %115 {offsets = [1, 0], sizes = [1, 40], strides = [1, 1]} : vector<8x40xf32> to vector<1x40xf32>
      %118 = vector.extract_strided_slice %115 {offsets = [2, 0], sizes = [1, 40], strides = [1, 1]} : vector<8x40xf32> to vector<1x40xf32>
      %119 = vector.extract_strided_slice %115 {offsets = [3, 0], sizes = [1, 40], strides = [1, 1]} : vector<8x40xf32> to vector<1x40xf32>
      %120 = vector.extract_strided_slice %115 {offsets = [4, 0], sizes = [1, 40], strides = [1, 1]} : vector<8x40xf32> to vector<1x40xf32>
      %121 = vector.extract_strided_slice %115 {offsets = [5, 0], sizes = [1, 40], strides = [1, 1]} : vector<8x40xf32> to vector<1x40xf32>
      %122 = vector.extract_strided_slice %115 {offsets = [6, 0], sizes = [1, 1], strides = [1, 1]} : vector<8x40xf32> to vector<1x1xf32>
      %123 = vector.extract_strided_slice %115 {offsets = [6, 1], sizes = [1, 1], strides = [1, 1]} : vector<8x40xf32> to vector<1x1xf32>
      %cst_59 = arith.constant dense<0.000000e+00> : vector<64xf32>
      %124 = vector.multi_reduction <add>, %arg22, %cst_59 [1] : vector<64x40xf32> to vector<64xf32>
      %125 = vector.shape_cast %124 : vector<64xf32> to vector<64x1xf32>
      %cst_60 = arith.constant 4.000000e+01 : f32
      %126 = vector.broadcast %cst_60 : f32 to vector<64x1xf32>
      %127 = arith.divf %125, %126 : vector<64x1xf32>
      %128 = vector.broadcast %127 : vector<64x1xf32> to vector<64x40xf32>
      %129 = arith.subf %arg22, %128 : vector<64x40xf32>
      %130 = arith.mulf %129, %129 : vector<64x40xf32>
      %cst_61 = arith.constant dense<0.000000e+00> : vector<64xf32>
      %131 = vector.multi_reduction <add>, %130, %cst_61 [1] : vector<64x40xf32> to vector<64xf32>
      %132 = vector.shape_cast %131 : vector<64xf32> to vector<64x1xf32>
      %cst_62 = arith.constant 4.000000e+01 : f32
      %133 = vector.broadcast %cst_62 : f32 to vector<64x1xf32>
      %134 = arith.divf %132, %133 : vector<64x1xf32>
      %135 = vector.broadcast %127 : vector<64x1xf32> to vector<64x40xf32>
      %136 = arith.subf %arg22, %135 : vector<64x40xf32>
      %cst_63 = arith.constant 9.99999974E-6 : f32
      %137 = vector.broadcast %cst_63 : f32 to vector<64x1xf32>
      %138 = arith.addf %134, %137 : vector<64x1xf32>
      %139 = math.rsqrt %138 : vector<64x1xf32>
      %140 = vector.broadcast %139 : vector<64x1xf32> to vector<64x40xf32>
      %141 = arith.mulf %136, %140 : vector<64x40xf32>
      %142 = vector.broadcast %116 : vector<1x40xf32> to vector<64x40xf32>
      %143 = arith.mulf %141, %142 : vector<64x40xf32>
      %144 = vector.broadcast %117 : vector<1x40xf32> to vector<64x40xf32>
      %145 = arith.addf %143, %144 : vector<64x40xf32>
      %146 = arith.truncf %145 : vector<64x40xf32> to vector<64x40xbf16>
      %cst_64 = arith.constant dense<0.000000e+00> : vector<64x128xf32>
      %147 = tpu.matmul %146, %94, %cst_64 {dimension_numbers = #tpu.dot_dimension_numbers<[1], [0], [0], [1], [0, 0, 1, 1], [], []>} : vector<64x40xbf16>, vector<40x128xbf16>, vector<64x128xf32> -> vector<64x128xf32>
      %148 = vector.broadcast %97 : vector<1x128xf32> to vector<64x128xf32>
      %149 = arith.addf %147, %148 : vector<64x128xf32>
      %150 = math.cos %149 : vector<64x128xf32>
      %151 = math.sin %149 : vector<64x128xf32>
      %152 = vector.shape_cast %23 : vector<1x128xi1> to vector<1x128xi1>
      %153 = vector.broadcast %152 : vector<1x128xi1> to vector<64x128xi1>
      %154 = arith.select %153, %151, %149 : vector<64x128xi1>, vector<64x128xf32>
      %155 = vector.shape_cast %17 : vector<1x128xi1> to vector<1x128xi1>
      %156 = vector.broadcast %155 : vector<1x128xi1> to vector<64x128xi1>
      %157 = arith.select %156, %150, %154 : vector<64x128xi1>, vector<64x128xf32>
      %158 = vector.extract_strided_slice %157 {offsets = [0, 0], sizes = [64, 40], strides = [1, 1]} : vector<64x128xf32> to vector<64x40xf32>
      %159 = vector.extract_strided_slice %157 {offsets = [0, 40], sizes = [64, 40], strides = [1, 1]} : vector<64x128xf32> to vector<64x40xf32>
      %160 = vector.extract_strided_slice %157 {offsets = [0, 80], sizes = [64, 40], strides = [1, 1]} : vector<64x128xf32> to vector<64x40xf32>
      %161 = vector.extract_strided_slice %100 {offsets = [0, 0], sizes = [1, 128], strides = [1, 1]} : vector<2x128xf32> to vector<1x128xf32>
      %162 = vector.broadcast %161 : vector<1x128xf32> to vector<64x128xf32>
      %163 = arith.mulf %157, %162 : vector<64x128xf32>
      %cst_65 = arith.constant dense<0.000000e+00> : vector<64xf32>
      %164 = vector.multi_reduction <add>, %163, %cst_65 [1] : vector<64x128xf32> to vector<64xf32>
      %165 = vector.shape_cast %164 : vector<64xf32> to vector<64x1xf32>
      %166 = vector.broadcast %122 : vector<1x1xf32> to vector<64x1xf32>
      %167 = arith.addf %165, %166 : vector<64x1xf32>
      %168 = arith.negf %167 : vector<64x1xf32>
      %169 = math.exp %168 : vector<64x1xf32>
      %cst_66 = arith.constant 1.000000e+00 : f32
      %170 = vector.broadcast %cst_66 : f32 to vector<64x1xf32>
      %171 = arith.addf %170, %169 : vector<64x1xf32>
      %172 = arith.divf %170, %171 : vector<64x1xf32>
      %173 = vector.extract_strided_slice %100 {offsets = [1, 0], sizes = [1, 128], strides = [1, 1]} : vector<2x128xf32> to vector<1x128xf32>
      %174 = vector.broadcast %173 : vector<1x128xf32> to vector<64x128xf32>
      %175 = arith.mulf %157, %174 : vector<64x128xf32>
      %cst_67 = arith.constant dense<0.000000e+00> : vector<64xf32>
      %176 = vector.multi_reduction <add>, %175, %cst_67 [1] : vector<64x128xf32> to vector<64xf32>
      %177 = vector.shape_cast %176 : vector<64xf32> to vector<64x1xf32>
      %178 = vector.broadcast %123 : vector<1x1xf32> to vector<64x1xf32>
      %179 = arith.addf %177, %178 : vector<64x1xf32>
      %180 = arith.negf %179 : vector<64x1xf32>
      %181 = math.exp %180 : vector<64x1xf32>
      %cst_68 = arith.constant 1.000000e+00 : f32
      %182 = vector.broadcast %cst_68 : f32 to vector<64x1xf32>
      %183 = arith.addf %182, %181 : vector<64x1xf32>
      %184 = arith.divf %182, %183 : vector<64x1xf32>
      %185 = vector.broadcast %cst_24 : f32 to vector<64x40xf32>
      %186 = arith.mulf %158, %185 : vector<64x40xf32>
      %187 = tpu.concatenate %186, %186, %186, %186, %186, %186, %186, %186 in 0 : vector<64x40xf32>, vector<64x40xf32>, vector<64x40xf32>, vector<64x40xf32>, vector<64x40xf32>, vector<64x40xf32>, vector<64x40xf32>, vector<64x40xf32> -> vector<512x40xf32>
      %188 = arith.mulf %187, %35 : vector<512x40xf32>
      %189 = tpu.concatenate %172, %172, %172, %172, %184, %184, %184, %184 in 0 : vector<64x1xf32>, vector<64x1xf32>, vector<64x1xf32>, vector<64x1xf32>, vector<64x1xf32>, vector<64x1xf32>, vector<64x1xf32>, vector<64x1xf32> -> vector<512x1xf32>
      %190 = arith.truncf %188 : vector<512x40xf32> to vector<512x40xbf16>
      %191 = tpu.transpose %159, [1, 0] : vector<64x40xf32> -> vector<40x64xf32>
      %192 = arith.truncf %191 : vector<40x64xf32> to vector<40x64xbf16>
      %cst_69 = arith.constant dense<0.000000e+00> : vector<512x64xf32>
      %193 = tpu.matmul %190, %192, %cst_69 {dimension_numbers = #tpu.dot_dimension_numbers<[1], [0], [0], [1], [0, 0, 1, 1], [], []>} : vector<512x40xbf16>, vector<40x64xbf16>, vector<512x64xf32> -> vector<512x64xf32>
      %194 = vector.broadcast %189 : vector<512x1xf32> to vector<512x64xf32>
      %195 = arith.mulf %194, %36 : vector<512x64xf32>
      %196 = arith.addf %193, %195 : vector<512x64xf32>
      %cst_70 = arith.constant -1.000000e+30 : f32
      %197 = vector.shape_cast %26 : vector<1x64xi1> to vector<1x64xi1>
      %198 = vector.broadcast %197 : vector<1x64xi1> to vector<512x64xi1>
      %199 = vector.broadcast %cst_70 : f32 to vector<512x64xf32>
      %200 = arith.select %198, %196, %199 : vector<512x64xi1>, vector<512x64xf32>
      %cst_71 = arith.constant dense<0xFF800000> : vector<512xf32>
      %201 = vector.multi_reduction <maximumf>, %200, %cst_71 [1] : vector<512x64xf32> to vector<512xf32>
      %202 = vector.shape_cast %201 : vector<512xf32> to vector<512x1xf32>
      %203 = vector.broadcast %202 : vector<512x1xf32> to vector<512x64xf32>
      %204 = arith.subf %200, %203 : vector<512x64xf32>
      %205 = math.exp %204 : vector<512x64xf32>
      %cst_72 = arith.constant dense<0.000000e+00> : vector<512xf32>
      %206 = vector.multi_reduction <add>, %205, %cst_72 [1] : vector<512x64xf32> to vector<512xf32>
      %207 = vector.shape_cast %206 : vector<512xf32> to vector<512x1xf32>
      %208 = tpu.reciprocal %207 {approx = true} : vector<512x1xf32> -> vector<512x1xf32>
      %209 = vector.broadcast %208 : vector<512x1xf32> to vector<512x64xf32>
      %210 = arith.mulf %205, %209 : vector<512x64xf32>
      %211 = arith.truncf %210 : vector<512x64xf32> to vector<512x64xbf16>
      %212 = arith.truncf %160 : vector<64x40xf32> to vector<64x40xbf16>
      %cst_73 = arith.constant dense<0.000000e+00> : vector<512x40xf32>
      %213 = tpu.matmul %211, %212, %cst_73 {dimension_numbers = #tpu.dot_dimension_numbers<[1], [0], [0], [1], [0, 0, 1, 1], [], []>} : vector<512x64xbf16>, vector<64x40xbf16>, vector<512x40xf32> -> vector<512x40xf32>
      %214 = arith.mulf %213, %35 : vector<512x40xf32>
      %215 = vector.extract_strided_slice %214 {offsets = [0, 0], sizes = [64, 40], strides = [1, 1]} : vector<512x40xf32> to vector<64x40xf32>
      %216 = vector.extract_strided_slice %214 {offsets = [64, 0], sizes = [64, 40], strides = [1, 1]} : vector<512x40xf32> to vector<64x40xf32>
      %217 = arith.addf %215, %216 : vector<64x40xf32>
      %218 = vector.extract_strided_slice %214 {offsets = [128, 0], sizes = [64, 40], strides = [1, 1]} : vector<512x40xf32> to vector<64x40xf32>
      %219 = arith.addf %217, %218 : vector<64x40xf32>
      %220 = vector.extract_strided_slice %214 {offsets = [192, 0], sizes = [64, 40], strides = [1, 1]} : vector<512x40xf32> to vector<64x40xf32>
      %221 = arith.addf %219, %220 : vector<64x40xf32>
      %222 = vector.extract_strided_slice %214 {offsets = [256, 0], sizes = [64, 40], strides = [1, 1]} : vector<512x40xf32> to vector<64x40xf32>
      %223 = arith.addf %221, %222 : vector<64x40xf32>
      %224 = vector.extract_strided_slice %214 {offsets = [320, 0], sizes = [64, 40], strides = [1, 1]} : vector<512x40xf32> to vector<64x40xf32>
      %225 = arith.addf %223, %224 : vector<64x40xf32>
      %226 = vector.extract_strided_slice %214 {offsets = [384, 0], sizes = [64, 40], strides = [1, 1]} : vector<512x40xf32> to vector<64x40xf32>
      %227 = arith.addf %225, %226 : vector<64x40xf32>
      %228 = vector.extract_strided_slice %214 {offsets = [448, 0], sizes = [64, 40], strides = [1, 1]} : vector<512x40xf32> to vector<64x40xf32>
      %229 = arith.addf %227, %228 : vector<64x40xf32>
      %230 = arith.truncf %229 : vector<64x40xf32> to vector<64x40xbf16>
      %cst_74 = arith.constant dense<0.000000e+00> : vector<64x40xf32>
      %231 = tpu.matmul %230, %103, %cst_74 {dimension_numbers = #tpu.dot_dimension_numbers<[1], [0], [0], [1], [0, 0, 1, 1], [], []>} : vector<64x40xbf16>, vector<40x40xbf16>, vector<64x40xf32> -> vector<64x40xf32>
      %232 = arith.addf %arg22, %231 : vector<64x40xf32>
      %233 = vector.broadcast %120 : vector<1x40xf32> to vector<64x40xf32>
      %234 = arith.addf %232, %233 : vector<64x40xf32>
      %cst_75 = arith.constant dense<0.000000e+00> : vector<64xf32>
      %235 = vector.multi_reduction <add>, %234, %cst_75 [1] : vector<64x40xf32> to vector<64xf32>
      %236 = vector.shape_cast %235 : vector<64xf32> to vector<64x1xf32>
      %cst_76 = arith.constant 4.000000e+01 : f32
      %237 = vector.broadcast %cst_76 : f32 to vector<64x1xf32>
      %238 = arith.divf %236, %237 : vector<64x1xf32>
      %239 = vector.broadcast %238 : vector<64x1xf32> to vector<64x40xf32>
      %240 = arith.subf %234, %239 : vector<64x40xf32>
      %241 = arith.mulf %240, %240 : vector<64x40xf32>
      %cst_77 = arith.constant dense<0.000000e+00> : vector<64xf32>
      %242 = vector.multi_reduction <add>, %241, %cst_77 [1] : vector<64x40xf32> to vector<64xf32>
      %243 = vector.shape_cast %242 : vector<64xf32> to vector<64x1xf32>
      %cst_78 = arith.constant 4.000000e+01 : f32
      %244 = vector.broadcast %cst_78 : f32 to vector<64x1xf32>
      %245 = arith.divf %243, %244 : vector<64x1xf32>
      %246 = vector.broadcast %238 : vector<64x1xf32> to vector<64x40xf32>
      %247 = arith.subf %234, %246 : vector<64x40xf32>
      %cst_79 = arith.constant 9.99999974E-6 : f32
      %248 = vector.broadcast %cst_79 : f32 to vector<64x1xf32>
      %249 = arith.addf %245, %248 : vector<64x1xf32>
      %250 = math.rsqrt %249 : vector<64x1xf32>
      %251 = vector.broadcast %250 : vector<64x1xf32> to vector<64x40xf32>
      %252 = arith.mulf %247, %251 : vector<64x40xf32>
      %253 = vector.broadcast %118 : vector<1x40xf32> to vector<64x40xf32>
      %254 = arith.mulf %252, %253 : vector<64x40xf32>
      %255 = vector.broadcast %119 : vector<1x40xf32> to vector<64x40xf32>
      %256 = arith.addf %254, %255 : vector<64x40xf32>
      %257 = arith.truncf %256 : vector<64x40xf32> to vector<64x40xbf16>
      %cst_80 = arith.constant dense<0.000000e+00> : vector<64x160xf32>
      %258 = tpu.matmul %257, %106, %cst_80 {dimension_numbers = #tpu.dot_dimension_numbers<[1], [0], [0], [1], [0, 0, 1, 1], [], []>} : vector<64x40xbf16>, vector<40x160xbf16>, vector<64x160xf32> -> vector<64x160xf32>
      %259 = vector.broadcast %109 : vector<1x160xf32> to vector<64x160xf32>
      %260 = arith.addf %258, %259 : vector<64x160xf32>
      %261 = arith.mulf %260, %260 : vector<64x160xf32>
      %262 = arith.mulf %260, %261 : vector<64x160xf32>
      %cst_81 = arith.constant 4.471500e-02 : f32
      %263 = vector.broadcast %cst_81 : f32 to vector<64x160xf32>
      %264 = arith.mulf %263, %262 : vector<64x160xf32>
      %265 = arith.addf %260, %264 : vector<64x160xf32>
      %cst_82 = arith.constant 0.797884583 : f32
      %266 = vector.broadcast %cst_82 : f32 to vector<64x160xf32>
      %267 = arith.mulf %266, %265 : vector<64x160xf32>
      %268 = math.tanh %267 : vector<64x160xf32>
      %cst_83 = arith.constant 1.000000e+00 : f32
      %269 = vector.broadcast %cst_83 : f32 to vector<64x160xf32>
      %270 = arith.addf %269, %268 : vector<64x160xf32>
      %cst_84 = arith.constant 5.000000e-01 : f32
      %271 = vector.broadcast %cst_84 : f32 to vector<64x160xf32>
      %272 = arith.mulf %271, %270 : vector<64x160xf32>
      %273 = arith.mulf %260, %272 : vector<64x160xf32>
      %274 = arith.truncf %273 : vector<64x160xf32> to vector<64x160xbf16>
      %cst_85 = arith.constant dense<0.000000e+00> : vector<64x40xf32>
      %275 = tpu.matmul %274, %112, %cst_85 {dimension_numbers = #tpu.dot_dimension_numbers<[1], [0], [0], [1], [0, 0, 1, 1], [], []>} : vector<64x160xbf16>, vector<160x40xbf16>, vector<64x40xf32> -> vector<64x40xf32>
      %276 = arith.addf %234, %275 : vector<64x40xf32>
      %277 = vector.broadcast %121 : vector<1x40xf32> to vector<64x40xf32>
      %278 = arith.addf %276, %277 : vector<64x40xf32>
      scf.yield %278 : vector<64x40xf32>
    }
    %c6_i32_26 = arith.constant 6 : i32
    %62 = vector.extract_strided_slice %61 {offsets = [0, 0], sizes = [1, 40], strides = [1, 1]} : vector<64x40xf32> to vector<1x40xf32>
    %c0_27 = arith.constant 0 : index
    %c0_28 = arith.constant 0 : index
    %63 = vector.load %arg17[%c0_27, %c0_28] : memref<2x40xf32, #tpu.memory_space<vmem>>, vector<1x40xf32>
    %c1 = arith.constant 1 : index
    %c0_29 = arith.constant 0 : index
    %64 = vector.load %arg17[%c1, %c0_29] : memref<2x40xf32, #tpu.memory_space<vmem>>, vector<1x40xf32>
    %cst_30 = arith.constant dense<0.000000e+00> : vector<1xf32>
    %65 = vector.multi_reduction <add>, %62, %cst_30 [1] : vector<1x40xf32> to vector<1xf32>
    %66 = vector.shape_cast %65 : vector<1xf32> to vector<1x1xf32>
    %cst_31 = arith.constant 4.000000e+01 : f32
    %67 = vector.broadcast %cst_31 : f32 to vector<1x1xf32>
    %68 = arith.divf %66, %67 : vector<1x1xf32>
    %69 = vector.broadcast %68 : vector<1x1xf32> to vector<1x40xf32>
    %70 = arith.subf %62, %69 : vector<1x40xf32>
    %71 = arith.mulf %70, %70 : vector<1x40xf32>
    %cst_32 = arith.constant dense<0.000000e+00> : vector<1xf32>
    %72 = vector.multi_reduction <add>, %71, %cst_32 [1] : vector<1x40xf32> to vector<1xf32>
    %73 = vector.shape_cast %72 : vector<1xf32> to vector<1x1xf32>
    %cst_33 = arith.constant 4.000000e+01 : f32
    %74 = vector.broadcast %cst_33 : f32 to vector<1x1xf32>
    %75 = arith.divf %73, %74 : vector<1x1xf32>
    %76 = vector.broadcast %68 : vector<1x1xf32> to vector<1x40xf32>
    %77 = arith.subf %62, %76 : vector<1x40xf32>
    %cst_34 = arith.constant 9.99999974E-6 : f32
    %78 = vector.broadcast %cst_34 : f32 to vector<1x1xf32>
    %79 = arith.addf %75, %78 : vector<1x1xf32>
    %80 = math.rsqrt %79 : vector<1x1xf32>
    %81 = vector.broadcast %80 : vector<1x1xf32> to vector<1x40xf32>
    %82 = arith.mulf %77, %81 : vector<1x40xf32>
    %83 = arith.mulf %82, %63 : vector<1x40xf32>
    %84 = arith.addf %83, %64 : vector<1x40xf32>
    %85 = arith.truncf %84 : vector<1x40xf32> to vector<1x40xbf16>
    %c0_35 = arith.constant 0 : index
    %c0_36 = arith.constant 0 : index
    %86 = vector.load %arg18[%c0_35, %c0_36] : memref<40x4xbf16, #tpu.memory_space<vmem>>, vector<40x4xbf16>
    %cst_37 = arith.constant dense<0.000000e+00> : vector<1x4xf32>
    %87 = tpu.matmul %85, %86, %cst_37 {dimension_numbers = #tpu.dot_dimension_numbers<[1], [0], [0], [1], [0, 0, 1, 1], [], []>} : vector<1x40xbf16>, vector<40x4xbf16>, vector<1x4xf32> -> vector<1x4xf32>
    %c0_38 = arith.constant 0 : index
    %c0_39 = arith.constant 0 : index
    %88 = vector.load %arg19[%c0_38, %c0_39] : memref<1x4xf32, #tpu.memory_space<vmem>>, vector<1x4xf32>
    %89 = arith.addf %87, %88 : vector<1x4xf32>
    %90 = vector.shape_cast %89 : vector<1x4xf32> to vector<1x1x4xf32>
    %c0_40 = arith.constant 0 : index
    %c0_41 = arith.constant 0 : index
    %c0_42 = arith.constant 0 : index
    %91 = vector.load %arg20[%c0_40, %c0_41, %c0_42] : memref<1x1x4xf32, #tpu.memory_space<vmem>>, vector<1x1x4xf32>
    tpu.vector_store %arg20[%c0_40, %c0_41, %c0_42], %90 {strides = array<i32>} : memref<1x1x4xf32, #tpu.memory_space<vmem>>, vector<1x1x4xf32>,
    return
  }
  func.func @transform_0(%arg0: i32) -> (i32, i32) {
    %c0_i32 = arith.constant 0 : i32
    %c0_i32_0 = arith.constant 0 : i32
    return %arg0, %c0_i32 : i32, i32
  }
  func.func @transform_1(%arg0: i32) -> (i32, i32) {
    %c0_i32 = arith.constant 0 : i32
    %c0_i32_0 = arith.constant 0 : i32
    %c0_i32_1 = arith.constant 0 : i32
    return %c0_i32, %c0_i32_0 : i32, i32
  }
  func.func @transform_2(%arg0: i32) -> (i32, i32) {
    %c0_i32 = arith.constant 0 : i32
    %c0_i32_0 = arith.constant 0 : i32
    %c0_i32_1 = arith.constant 0 : i32
    return %c0_i32, %c0_i32_0 : i32, i32
  }
  func.func @transform_3(%arg0: i32) -> (i32, i32) {
    %c0_i32 = arith.constant 0 : i32
    %c0_i32_0 = arith.constant 0 : i32
    %c0_i32_1 = arith.constant 0 : i32
    return %c0_i32, %c0_i32_0 : i32, i32
  }
  func.func @transform_4(%arg0: i32) -> (i32, i32) {
    %c0_i32 = arith.constant 0 : i32
    %c0_i32_0 = arith.constant 0 : i32
    %c0_i32_1 = arith.constant 0 : i32
    return %c0_i32, %c0_i32_0 : i32, i32
  }
  func.func @transform_5(%arg0: i32) -> (i32, i32) {
    %c0_i32 = arith.constant 0 : i32
    %c0_i32_0 = arith.constant 0 : i32
    %c0_i32_1 = arith.constant 0 : i32
    return %c0_i32, %c0_i32_0 : i32, i32
  }
  func.func @transform_6(%arg0: i32) -> (i32, i32) {
    %c0_i32 = arith.constant 0 : i32
    %c0_i32_0 = arith.constant 0 : i32
    %c0_i32_1 = arith.constant 0 : i32
    return %c0_i32, %c0_i32_0 : i32, i32
  }
  func.func @transform_7(%arg0: i32) -> (i32, i32) {
    %c0_i32 = arith.constant 0 : i32
    %c0_i32_0 = arith.constant 0 : i32
    %c0_i32_1 = arith.constant 0 : i32
    return %c0_i32, %c0_i32_0 : i32, i32
  }
  func.func @transform_8(%arg0: i32) -> (i32, i32, i32) {
    %c0_i32 = arith.constant 0 : i32
    %c0_i32_0 = arith.constant 0 : i32
    %c0_i32_1 = arith.constant 0 : i32
    %c0_i32_2 = arith.constant 0 : i32
    return %c0_i32, %c0_i32_0, %c0_i32_1 : i32, i32, i32
  }
  func.func @transform_9(%arg0: i32) -> (i32, i32, i32) {
    %c0_i32 = arith.constant 0 : i32
    %c0_i32_0 = arith.constant 0 : i32
    %c0_i32_1 = arith.constant 0 : i32
    %c0_i32_2 = arith.constant 0 : i32
    return %c0_i32, %c0_i32_0, %c0_i32_1 : i32, i32, i32
  }
  func.func @transform_10(%arg0: i32) -> (i32, i32, i32) {
    %c0_i32 = arith.constant 0 : i32
    %c0_i32_0 = arith.constant 0 : i32
    %c0_i32_1 = arith.constant 0 : i32
    %c0_i32_2 = arith.constant 0 : i32
    return %c0_i32, %c0_i32_0, %c0_i32_1 : i32, i32, i32
  }
  func.func @transform_11(%arg0: i32) -> (i32, i32, i32) {
    %c0_i32 = arith.constant 0 : i32
    %c0_i32_0 = arith.constant 0 : i32
    %c0_i32_1 = arith.constant 0 : i32
    %c0_i32_2 = arith.constant 0 : i32
    return %c0_i32, %c0_i32_0, %c0_i32_1 : i32, i32, i32
  }
  func.func @transform_12(%arg0: i32) -> (i32, i32, i32) {
    %c0_i32 = arith.constant 0 : i32
    %c0_i32_0 = arith.constant 0 : i32
    %c0_i32_1 = arith.constant 0 : i32
    %c0_i32_2 = arith.constant 0 : i32
    return %c0_i32, %c0_i32_0, %c0_i32_1 : i32, i32, i32
  }
  func.func @transform_13(%arg0: i32) -> (i32, i32, i32) {
    %c0_i32 = arith.constant 0 : i32
    %c0_i32_0 = arith.constant 0 : i32
    %c0_i32_1 = arith.constant 0 : i32
    %c0_i32_2 = arith.constant 0 : i32
    return %c0_i32, %c0_i32_0, %c0_i32_1 : i32, i32, i32
  }
  func.func @transform_14(%arg0: i32) -> (i32, i32, i32) {
    %c0_i32 = arith.constant 0 : i32
    %c0_i32_0 = arith.constant 0 : i32
    %c0_i32_1 = arith.constant 0 : i32
    %c0_i32_2 = arith.constant 0 : i32
    return %c0_i32, %c0_i32_0, %c0_i32_1 : i32, i32, i32
  }
  func.func @transform_15(%arg0: i32) -> (i32, i32, i32) {
    %c0_i32 = arith.constant 0 : i32
    %c0_i32_0 = arith.constant 0 : i32
    %c0_i32_1 = arith.constant 0 : i32
    %c0_i32_2 = arith.constant 0 : i32
    return %c0_i32, %c0_i32_0, %c0_i32_1 : i32, i32, i32
  }
  func.func @transform_16(%arg0: i32) -> (i32, i32) {
    %c0_i32 = arith.constant 0 : i32
    %c0_i32_0 = arith.constant 0 : i32
    %c0_i32_1 = arith.constant 0 : i32
    return %c0_i32, %c0_i32_0 : i32, i32
  }
  func.func @transform_17(%arg0: i32) -> (i32, i32) {
    %c0_i32 = arith.constant 0 : i32
    %c0_i32_0 = arith.constant 0 : i32
    %c0_i32_1 = arith.constant 0 : i32
    return %c0_i32, %c0_i32_0 : i32, i32
  }
  func.func @transform_18(%arg0: i32) -> (i32, i32) {
    %c0_i32 = arith.constant 0 : i32
    %c0_i32_0 = arith.constant 0 : i32
    %c0_i32_1 = arith.constant 0 : i32
    return %c0_i32, %c0_i32_0 : i32, i32
  }
  func.func @transform_19(%arg0: i32) -> (i32, i32, i32) {
    %c0_i32 = arith.constant 0 : i32
    %c0_i32_0 = arith.constant 0 : i32
    %c0_i32_1 = arith.constant 0 : i32
    return %arg0, %c0_i32, %c0_i32_0 : i32, i32, i32
  }
}

</mosaic_0001>

<bundles_post_ra>
// kernel: fat_forward.1
= control target key start
LH: loop header
LB: loop body
LE: loop exit
PB: predicated region body
PF: predicated region fallthrough
CT: control target
= control target key end

     0   :  { %s11710_s0 = inlined_call_operand.vmem [shape: f32[128,5], index: 0, kind: input, shape index: {}]   ;;  %s11711_s1 = inlined_call_operand.vmem [shape: bf16[5,20], index: 1, kind: input, shape index: {}]   ;;  %s11712_s2 = inlined_call_operand.vmem [shape: f32[64,20], index: 2, kind: input, shape index: {}]   ;;  %s11713_s3 = inlined_call_operand.vmem [shape: bf16[20,40], index: 3, kind: input, shape index: {}]   ;;  %s11714_s4 = inlined_call_operand.vmem [shape: f32[1,40], index: 4, kind: input, shape index: {}]   ;;  %s11715_s5 = inlined_call_operand.vmem [shape: f32[64,40], index: 5, kind: input, shape index: {}]   ;;  %s11716_s6 = inlined_call_operand.vmem [shape: f32[512,64], index: 6, kind: input, shape index: {}]   ;;  %s11717_s7 = inlined_call_operand.vmem [shape: f32[512,40], index: 7, kind: input, shape index: {}]   ;;  %s11718_s8 = inlined_call_operand.vmem [shape: bf16[6,40,128], index: 8, kind: input, shape index: {}]   ;;  %s11719_s9 = inlined_call_operand.vmem [shape: f32[6,1,128], index: 9, kind: input, shape index: {}]   ;;  %s11720_s10 = inlined_call_operand.vmem [shape: f32[6,2,128], index: 10, kind: input, shape index: {}]   ;;  %s11721_s11 = inlined_call_operand.vmem [shape: bf16[6,40,40], index: 11, kind: input, shape index: {}]   ;;  %s11722_s12 = inlined_call_operand.vmem [shape: bf16[6,40,160], index: 12, kind: input, shape index: {}]   ;;  %s11723_s13 = inlined_call_operand.vmem [shape: f32[6,1,160], index: 13, kind: input, shape index: {}]   ;;  %s11724_s14 = inlined_call_operand.vmem [shape: bf16[6,160,40], index: 14, kind: input, shape index: {}]   ;;  %s11725_s15 = inlined_call_operand.vmem [shape: f32[6,8,40], index: 15, kind: input, shape index: {}]   ;;  %s11726_s16 = inlined_call_operand.vmem [shape: f32[2,40], index: 16, kind: input, shape index: {}]   ;;  %s11727_s17 = inlined_call_operand.vmem [shape: bf16[40,4], index: 17, kind: input, shape index: {}]   ;;  %s11728_s18 = inlined_call_operand.vmem [shape: f32[1,4], index: 18, kind: input, shape index: {}]   ;;  %s11729_s19 = inlined_call_operand.hbm [shape: f32[2,1,4], index: 19, kind: output, shape index: {}]  }
   0x1   :  { %11920 = sst [smem:[#allocation188_spill]] %s11710_s0 }
   0x2   :  { %11921 = sst [smem:[#allocation189_spill]] %s11711_s1 }
   0x3   :  { %11922 = sst [smem:[#allocation190_spill]] %s11712_s2 }
   0x4   :  { %11923 = sst [smem:[#allocation191_spill]] %s11713_s3 }
   0x5   :  { %11924 = sst [smem:[#allocation192_spill]] %s11717_s7 }
   0x6   :  { %24 = vsyncpa [#allocation3], 0 }
   0x7   :  { %26 = vsyncpa [#allocation3 + $0x1], 0  ;;  %s7569_s0 = smov 0   ;;  %s7571_s30 = smov 0  }
   0x8   :  { %s7573_s20 = smov 0   ;;  %s7575_s21 = smov 0  }
   0x9 LB: > { %11925 = sst [smem:[#allocation5_spill]] %s7404_s0  ;;  %s7590_s1 = sadd.s32 4294967295, %s7416_s21   ;;  %s7416_s21 = sphi %s7575_s21, %s12660_s21   ;;  %s7412_s20 = sphi %s7573_s20, %s12662_s20   ;;  %s7408_s30 = sphi %s7571_s30, %s12664_s30   ;;  %s7404_s0 = sphi %s7569_s0, %s12663_s0  }
   0xa   : > { %11926 = sst [smem:[#allocation6_spill]] %s7412_s20  ;;  %s6165_s22 = sadd.s32 4294967294, %s7416_s21  }
   0xb   : > { %11927 = sst [smem:[#allocation7_spill]] %s7416_s21  ;;  %s7594_s2 = sadd.s32 1, %s7416_s21  }
   0xc   : > { %11928 = sst [smem:[#allocation8_spill]] %s7594_s2  ;;  %s443_s23 = sadd.s32 1, %s7412_s20 }
   0xd   : > { %s440_s24 = ssub.s32 %s7416_s21, %s7594_s2  ;;  %p453_p0 = scmp.ne.s32.totalorder %s7412_s20, %s7408_s30 }
   0xe   : > { %p441_p1 = scmp.eq.s32.totalorder %s440_s24, 0  ;;  %p454_p2 = scmp.eq.s32.totalorder %s7590_s1, 1 }
   0xf   : > { %p459_p3 = scmp.ne.s32.totalorder %s7408_s30, %s7404_s0  ;;  %p460_p4 = scmp.eq.s32.totalorder %s6165_s22, 1 }
  0x10   : > { %s7605_s25 = scalar_select %p441_p1, %s7412_s20, %s443_s23  }
  0x11   : > { %p7607_p5 = por %p454_p2, %p453_p0  ;;  %p7611_p6 = por %p460_p4, %p459_p3 }
  0x12   : > { %11929 = sst [smem:[#allocation9_spill]] %s7605_s25  ;;  %p6168_p7 = scmp.ge.s32.totalorder %s7416_s21, 1 }
  0x13   : > { %s11931_s26 = scalar_select %p7611_p6, 1, 0 }
  0x14   : > { %p541_p8 = scmp.lt.s32.totalorder %s7416_s21, 3 }
  0x15   : > { %11932 = sst [smem:[#allocation10_spill]] %s11931_s26 }
  0x16   : > { %p542_p9 = pnand %p6168_p7, %p541_p8 }
  0x18   : > { %545 = sbr.rel (%p542_p9) target bundleno = 4193 (0x1061), region = 96 }
  0x1f   : > { %s11933_s7 = sld [smem:[#allocation192_spill]]  ;;  %s6169_s22 = sshll.u32 %s7590_s1, 3  ;;  %vm824_vm0 = vcmask 1041408   ;;  %vm825_vm1 = vcmask 1042432   ;;  %vm811_vm2 = vcmask 39936   ;;  %vm927_vm3 = vcmask 162816  }
  0x20   : > { %p597_p10 = scmp.lt.s32.totalorder %s6169_s22, 15  ;;  %s12057_s28 = sld [smem:[#allocation188_spill]] }
  0x21   : > { %s12063_s26 = sld [smem:[#allocation189_spill]]  ;;  %s12064_s23 = sld [smem:[#allocation191_spill]] }
  0x22   : > { %s12666_s22 = smov (!%p597_p10, %s6169_s22), 15  ;;  %s12065_s2 = sld [smem:[#allocation190_spill]] }
  0x23   : > { %s6170_s27 = sshll.u32 %s12666_s22, 3  ;;  %s8404_s22 = smov 0  }
  0x25   : > { %v7621_v0 = vld [vmem:[%s11933_s7] sm:$0xff]  ;;  %v7626_v1 = vld [vmem:[%s11933_s7 + $0x8] sm:$0xff]  ;;  %v7631_v2 = vld [vmem:[%s11933_s7 + $0x10] sm:$0xff] }
  0x26   : > { %11934 = vst [vmem:[#allocation11_spill] sm:$0xff] %v7621_v0  ;;  %11935 = vst [vmem:[#allocation12_spill] sm:$0xff] %v7626_v1  ;;  %v7636_v3 = vld [vmem:[%s11933_s7 + $0x18] sm:$0xff]  ;;  %v7641_v4 = vld [vmem:[%s11933_s7 + $0x20] sm:$0xff] }
  0x27   : > { %11936 = vst [vmem:[#allocation13_spill] sm:$0xff] %v7631_v2  ;;  %11937 = vst [vmem:[#allocation14_spill] sm:$0xff] %v7636_v3  ;;  %v7646_v5 = vld [vmem:[%s11933_s7 + $0x28] sm:$0xff]  ;;  %v7651_v6 = vld [vmem:[%s11933_s7 + $0x30] sm:$0xff] }
  0x28   : > { %11938 = vst [vmem:[#allocation15_spill] sm:$0xff] %v7641_v4  ;;  %11939 = vst [vmem:[#allocation16_spill] sm:$0xff] %v7646_v5  ;;  %v7656_v7 = vld [vmem:[%s11933_s7 + $0x38] sm:$0xff]  ;;  %v7661_v8 = vld [vmem:[%s11933_s7 + $0x40] sm:$0xff] }
  0x29   : > { %11940 = vst [vmem:[#allocation17_spill] sm:$0xff] %v7651_v6  ;;  %11941 = vst [vmem:[#allocation18_spill] sm:$0xff] %v7656_v7  ;;  %v7666_v9 = vld [vmem:[%s11933_s7 + $0x48] sm:$0xff]  ;;  %v7671_v10 = vld [vmem:[%s11933_s7 + $0x50] sm:$0xff] }
  0x2a   : > { %11942 = vst [vmem:[#allocation19_spill] sm:$0xff] %v7661_v8  ;;  %11943 = vst [vmem:[#allocation20_spill] sm:$0xff] %v7666_v9  ;;  %v7676_v11 = vld [vmem:[%s11933_s7 + $0x58] sm:$0xff]  ;;  %v7681_v12 = vld [vmem:[%s11933_s7 + $0x60] sm:$0xff] }
  0x2b   : > { %11944 = vst [vmem:[#allocation21_spill] sm:$0xff] %v7671_v10  ;;  %11945 = vst [vmem:[#allocation22_spill] sm:$0xff] %v7676_v11  ;;  %v7686_v13 = vld [vmem:[%s11933_s7 + $0x68] sm:$0xff]  ;;  %v7691_v14 = vld [vmem:[%s11933_s7 + $0x70] sm:$0xff] }
  0x2c   : > { %11946 = vst [vmem:[#allocation23_spill] sm:$0xff] %v7681_v12  ;;  %11947 = vst [vmem:[#allocation24_spill] sm:$0xff] %v7686_v13  ;;  %v7696_v15 = vld [vmem:[%s11933_s7 + $0x78] sm:$0xff]  ;;  %v7701_v16 = vld [vmem:[%s11933_s7 + $0x80] sm:$0xff] }
  0x2d   : > { %11948 = vst [vmem:[#allocation25_spill] sm:$0xff] %v7691_v14  ;;  %11949 = vst [vmem:[#allocation26_spill] sm:$0xff] %v7696_v15  ;;  %v7706_v17 = vld [vmem:[%s11933_s7 + $0x88] sm:$0xff]  ;;  %v7711_v18 = vld [vmem:[%s11933_s7 + $0x90] sm:$0xff] }
  0x2e   : > { %11950 = vst [vmem:[#allocation27_spill] sm:$0xff] %v7701_v16  ;;  %11951 = vst [vmem:[#allocation28_spill] sm:$0xff] %v7706_v17  ;;  %v7716_v19 = vld [vmem:[%s11933_s7 + $0x98] sm:$0xff]  ;;  %v7721_v20 = vld [vmem:[%s11933_s7 + $0xa0] sm:$0xff] }
  0x2f   : > { %11952 = vst [vmem:[#allocation29_spill] sm:$0xff] %v7711_v18  ;;  %11953 = vst [vmem:[#allocation30_spill] sm:$0xff] %v7716_v19  ;;  %v7726_v21 = vld [vmem:[%s11933_s7 + $0xa8] sm:$0xff]  ;;  %v7731_v22 = vld [vmem:[%s11933_s7 + $0xb0] sm:$0xff] }
  0x30   : > { %11954 = vst [vmem:[#allocation31_spill] sm:$0xff] %v7721_v20  ;;  %11955 = vst [vmem:[#allocation32_spill] sm:$0xff] %v7726_v21  ;;  %v7736_v23 = vld [vmem:[%s11933_s7 + $0xb8] sm:$0xff]  ;;  %v7741_v24 = vld [vmem:[%s11933_s7 + $0xc0] sm:$0xff] }
  0x31   : > { %11956 = vst [vmem:[#allocation33_spill] sm:$0xff] %v7731_v22  ;;  %11957 = vst [vmem:[#allocation34_spill] sm:$0xff] %v7736_v23  ;;  %v7746_v25 = vld [vmem:[%s11933_s7 + $0xc8] sm:$0xff]  ;;  %v7751_v26 = vld [vmem:[%s11933_s7 + $0xd0] sm:$0xff] }
  0x32   : > { %11958 = vst [vmem:[#allocation35_spill] sm:$0xff] %v7741_v24  ;;  %11959 = vst [vmem:[#allocation36_spill] sm:$0xff] %v7746_v25  ;;  %v7756_v27 = vld [vmem:[%s11933_s7 + $0xd8] sm:$0xff]  ;;  %v7761_v28 = vld [vmem:[%s11933_s7 + $0xe0] sm:$0xff] }
  0x33   : > { %11960 = vst [vmem:[#allocation37_spill] sm:$0xff] %v7751_v26  ;;  %11961 = vst [vmem:[#allocation38_spill] sm:$0xff] %v7756_v27  ;;  %v7766_v29 = vld [vmem:[%s11933_s7 + $0xe8] sm:$0xff]  ;;  %v7771_v30 = vld [vmem:[%s11933_s7 + $0xf0] sm:$0xff] }
  0x34   : > { %11962 = vst [vmem:[#allocation39_spill] sm:$0xff] %v7761_v28  ;;  %11963 = vst [vmem:[#allocation40_spill] sm:$0xff] %v7766_v29  ;;  %v7776_v31 = vld [vmem:[%s11933_s7 + $0xf8] sm:$0xff]  ;;  %v7781_v32 = vld [vmem:[%s11933_s7 + $0x100] sm:$0xff] }
  0x35   : > { %11964 = vst [vmem:[#allocation41_spill] sm:$0xff] %v7771_v30  ;;  %11965 = vst [vmem:[#allocation42_spill] sm:$0xff] %v7776_v31  ;;  %v7786_v33 = vld [vmem:[%s11933_s7 + $0x108] sm:$0xff]  ;;  %v7791_v34 = vld [vmem:[%s11933_s7 + $0x110] sm:$0xff] }
  0x36   : > { %11966 = vst [vmem:[#allocation43_spill] sm:$0xff] %v7781_v32  ;;  %11967 = vst [vmem:[#allocation44_spill] sm:$0xff] %v7786_v33  ;;  %v7796_v35 = vld [vmem:[%s11933_s7 + $0x118] sm:$0xff]  ;;  %v7801_v36 = vld [vmem:[%s11933_s7 + $0x120] sm:$0xff] }
  0x37   : > { %11968 = vst [vmem:[#allocation45_spill] sm:$0xff] %v7791_v34  ;;  %11969 = vst [vmem:[#allocation46_spill] sm:$0xff] %v7796_v35  ;;  %v7806_v37 = vld [vmem:[%s11933_s7 + $0x128] sm:$0xff]  ;;  %v7811_v38 = vld [vmem:[%s11933_s7 + $0x130] sm:$0xff] }
  0x38   : > { %11970 = vst [vmem:[#allocation47_spill] sm:$0xff] %v7801_v36  ;;  %11971 = vst [vmem:[#allocation48_spill] sm:$0xff] %v7806_v37  ;;  %v7816_v39 = vld [vmem:[%s11933_s7 + $0x138] sm:$0xff]  ;;  %v7821_v40 = vld [vmem:[%s11933_s7 + $0x140] sm:$0xff] }
  0x39   : > { %11972 = vst [vmem:[#allocation49_spill] sm:$0xff] %v7811_v38  ;;  %11973 = vst [vmem:[#allocation50_spill] sm:$0xff] %v7816_v39  ;;  %v7826_v41 = vld [vmem:[%s11933_s7 + $0x148] sm:$0xff]  ;;  %v7831_v42 = vld [vmem:[%s11933_s7 + $0x150] sm:$0xff] }
  0x3a   : > { %11974 = vst [vmem:[#allocation51_spill] sm:$0xff] %v7821_v40  ;;  %11975 = vst [vmem:[#allocation52_spill] sm:$0xff] %v7826_v41  ;;  %v7836_v43 = vld [vmem:[%s11933_s7 + $0x158] sm:$0xff]  ;;  %v7841_v44 = vld [vmem:[%s11933_s7 + $0x160] sm:$0xff] }
  0x3b   : > { %11976 = vst [vmem:[#allocation53_spill] sm:$0xff] %v7831_v42  ;;  %11977 = vst [vmem:[#allocation54_spill] sm:$0xff] %v7836_v43  ;;  %v7846_v45 = vld [vmem:[%s11933_s7 + $0x168] sm:$0xff]  ;;  %v7851_v46 = vld [vmem:[%s11933_s7 + $0x170] sm:$0xff] }
  0x3c   : > { %11978 = vst [vmem:[#allocation55_spill] sm:$0xff] %v7841_v44  ;;  %11979 = vst [vmem:[#allocation56_spill] sm:$0xff] %v7846_v45  ;;  %v7856_v47 = vld [vmem:[%s11933_s7 + $0x178] sm:$0xff]  ;;  %v7861_v48 = vld [vmem:[%s11933_s7 + $0x180] sm:$0xff] }
  0x3d   : > { %11980 = vst [vmem:[#allocation57_spill] sm:$0xff] %v7851_v46  ;;  %11981 = vst [vmem:[#allocation58_spill] sm:$0xff] %v7856_v47  ;;  %v7866_v49 = vld [vmem:[%s11933_s7 + $0x188] sm:$0xff]  ;;  %v7871_v50 = vld [vmem:[%s11933_s7 + $0x190] sm:$0xff] }
  0x3e   : > { %11982 = vst [vmem:[#allocation59_spill] sm:$0xff] %v7861_v48  ;;  %11983 = vst [vmem:[#allocation60_spill] sm:$0xff] %v7866_v49  ;;  %v7876_v51 = vld [vmem:[%s11933_s7 + $0x198] sm:$0xff]  ;;  %v7881_v52 = vld [vmem:[%s11933_s7 + $0x1a0] sm:$0xff] }
  0x3f   : > { %11984 = vst [vmem:[#allocation61_spill] sm:$0xff] %v7871_v50  ;;  %11985 = vst [vmem:[#allocation62_spill] sm:$0xff] %v7876_v51  ;;  %v7886_v53 = vld [vmem:[%s11933_s7 + $0x1a8] sm:$0xff]  ;;  %v7891_v54 = vld [vmem:[%s11933_s7 + $0x1b0] sm:$0xff] }
  0x40   : > { %11986 = vst [vmem:[#allocation63_spill] sm:$0xff] %v7881_v52  ;;  %11987 = vst [vmem:[#allocation64_spill] sm:$0xff] %v7886_v53  ;;  %v7896_v55 = vld [vmem:[%s11933_s7 + $0x1b8] sm:$0xff]  ;;  %v7901_v56 = vld [vmem:[%s11933_s7 + $0x1c0] sm:$0xff] }
  0x41   : > { %11988 = vst [vmem:[#allocation65_spill] sm:$0xff] %v7891_v54  ;;  %11989 = vst [vmem:[#allocation66_spill] sm:$0xff] %v7896_v55  ;;  %v7906_v57 = vld [vmem:[%s11933_s7 + $0x1c8] sm:$0xff]  ;;  %v7911_v58 = vld [vmem:[%s11933_s7 + $0x1d0] sm:$0xff] }
  0x42   : > { %11990 = vst [vmem:[#allocation67_spill] sm:$0xff] %v7901_v56  ;;  %11991 = vst [vmem:[#allocation68_spill] sm:$0xff] %v7906_v57  ;;  %v7916_v59 = vld [vmem:[%s11933_s7 + $0x1d8] sm:$0xff]  ;;  %v7921_v60 = vld [vmem:[%s11933_s7 + $0x1e0] sm:$0xff] }
  0x43   : > { %11992 = vst [vmem:[#allocation69_spill] sm:$0xff] %v7911_v58  ;;  %11993 = vst [vmem:[#allocation70_spill] sm:$0xff] %v7916_v59  ;;  %v7926_v61 = vld [vmem:[%s11933_s7 + $0x1e8] sm:$0xff]  ;;  %v7931_v62 = vld [vmem:[%s11933_s7 + $0x1f0] sm:$0xff] }
  0x44   : > { %11994 = vst [vmem:[#allocation71_spill] sm:$0xff] %v7921_v60  ;;  %11995 = vst [vmem:[#allocation72_spill] sm:$0xff] %v7926_v61  ;;  %v7936_v63 = vld [vmem:[%s11933_s7 + $0x1f8] sm:$0xff]  ;;  %v7941_v59 = vld [vmem:[%s11716_s6] sm:$0xff]  ;;  %s600_s7 = scalar_lea.vmem %s12057_s28, %s6170_s27 }
  0x45   : > { %11996 = vst [vmem:[#allocation73_spill] sm:$0xff] %v7931_v62  ;;  %11997 = vst [vmem:[#allocation74_spill] sm:$0xff] %v7936_v63  ;;  %v7946_v60 = vld [vmem:[%s11716_s6 + $0x8] sm:$0xff]  ;;  %v7951_v62 = vld [vmem:[%s11716_s6 + $0x10] sm:$0xff] }
  0x46   : > { %11998 = vst [vmem:[#allocation75_spill] sm:$0xff] %v7941_v59  ;;  %11999 = vst [vmem:[#allocation76_spill] sm:$0xff] %v7946_v60  ;;  %v7956_v63 = vld [vmem:[%s11716_s6 + $0x18] sm:$0xff]  ;;  %v7961_v59 = vld [vmem:[%s11716_s6 + $0x20] sm:$0xff] }
  0x47   : > { %12000 = vst [vmem:[#allocation77_spill] sm:$0xff] %v7951_v62  ;;  %12001 = vst [vmem:[#allocation78_spill] sm:$0xff] %v7956_v63  ;;  %v7966_v60 = vld [vmem:[%s11716_s6 + $0x28] sm:$0xff]  ;;  %v7971_v61 = vld [vmem:[%s11716_s6 + $0x30] sm:$0xff] }
  0x48   : > { %12002 = vst [vmem:[#allocation79_spill] sm:$0xff] %v7961_v59  ;;  %12003 = vst [vmem:[#allocation80_spill] sm:$0xff] %v7966_v60  ;;  %v7976_v62 = vld [vmem:[%s11716_s6 + $0x38] sm:$0xff]  ;;  %v7981_v63 = vld [vmem:[%s11716_s6 + $0x40] sm:$0xff] }
  0x49   : > { %12004 = vst [vmem:[#allocation81_spill] sm:$0xff] %v7971_v61  ;;  %12005 = vst [vmem:[#allocation82_spill] sm:$0xff] %v7976_v62  ;;  %v7986_v59 = vld [vmem:[%s11716_s6 + $0x48] sm:$0xff]  ;;  %v7991_v60 = vld [vmem:[%s11716_s6 + $0x50] sm:$0xff] }
  0x4a   : > { %12006 = vst [vmem:[#allocation83_spill] sm:$0xff] %v7981_v63  ;;  %12007 = vst [vmem:[#allocation84_spill] sm:$0xff] %v7986_v59  ;;  %v7996_v61 = vld [vmem:[%s11716_s6 + $0x58] sm:$0xff]  ;;  %v8001_v62 = vld [vmem:[%s11716_s6 + $0x60] sm:$0xff] }
  0x4b   : > { %12008 = vst [vmem:[#allocation85_spill] sm:$0xff] %v7991_v60  ;;  %12009 = vst [vmem:[#allocation86_spill] sm:$0xff] %v7996_v61  ;;  %v8006_v63 = vld [vmem:[%s11716_s6 + $0x68] sm:$0xff]  ;;  %v8011_v59 = vld [vmem:[%s11716_s6 + $0x70] sm:$0xff] }
  0x4c   : > { %12010 = vst [vmem:[#allocation87_spill] sm:$0xff] %v8001_v62  ;;  %12011 = vst [vmem:[#allocation88_spill] sm:$0xff] %v8006_v63  ;;  %v8016_v60 = vld [vmem:[%s11716_s6 + $0x78] sm:$0xff]  ;;  %v8021_v61 = vld [vmem:[%s11716_s6 + $0x80] sm:$0xff] }
  0x4d   : > { %12012 = vst [vmem:[#allocation89_spill] sm:$0xff] %v8011_v59  ;;  %12013 = vst [vmem:[#allocation90_spill] sm:$0xff] %v8016_v60  ;;  %v8027_v62 = vld [vmem:[%s11716_s6 + $0x88] sm:$0xff]  ;;  %v8032_v59 = vld [vmem:[%s11716_s6 + $0x90] sm:$0xff] }
  0x4e   : > { %12014 = vst [vmem:[#allocation91_spill] sm:$0xff] %v8021_v61  ;;  %12015 = vst [vmem:[#allocation92_spill] sm:$0xff] %v8027_v62  ;;  %v8037_v63 = vld [vmem:[%s11716_s6 + $0x98] sm:$0xff]  ;;  %v8042_v61 = vld [vmem:[%s11716_s6 + $0xa0] sm:$0xff] }
  0x4f   : > { %12016 = vst [vmem:[#allocation93_spill] sm:$0xff] %v8032_v59  ;;  %12017 = vst [vmem:[#allocation94_spill] sm:$0xff] %v8037_v63  ;;  %v8047_v60 = vld [vmem:[%s11716_s6 + $0xa8] sm:$0xff]  ;;  %v8052_v62 = vld [vmem:[%s11716_s6 + $0xb0] sm:$0xff] }
  0x50   : > { %12018 = vst [vmem:[#allocation95_spill] sm:$0xff] %v8042_v61  ;;  %12019 = vst [vmem:[#allocation96_spill] sm:$0xff] %v8047_v60  ;;  %v8057_v59 = vld [vmem:[%s11716_s6 + $0xb8] sm:$0xff]  ;;  %v8062_v63 = vld [vmem:[%s11716_s6 + $0xc0] sm:$0xff] }
  0x51   : > { %12020 = vst [vmem:[#allocation97_spill] sm:$0xff] %v8052_v62  ;;  %12021 = vst [vmem:[#allocation98_spill] sm:$0xff] %v8057_v59  ;;  %v8067_v61 = vld [vmem:[%s11716_s6 + $0xc8] sm:$0xff]  ;;  %v8072_v62 = vld [vmem:[%s11716_s6 + $0xd0] sm:$0xff] }
  0x52   : > { %12022 = vst [vmem:[#allocation99_spill] sm:$0xff] %v8062_v63  ;;  %12023 = vst [vmem:[#allocation100_spill] sm:$0xff] %v8067_v61  ;;  %v8077_v60 = vld [vmem:[%s11716_s6 + $0xd8] sm:$0xff]  ;;  %v8082_v63 = vld [vmem:[%s11716_s6 + $0xe0] sm:$0xff] }
  0x53   : > { %12024 = vst [vmem:[#allocation101_spill] sm:$0xff] %v8072_v62  ;;  %12025 = vst [vmem:[#allocation102_spill] sm:$0xff] %v8077_v60  ;;  %v8087_v61 = vld [vmem:[%s11716_s6 + $0xe8] sm:$0xff]  ;;  %v8092_v59 = vld [vmem:[%s11716_s6 + $0xf0] sm:$0xff] }
  0x54   : > { %12026 = vst [vmem:[#allocation103_spill] sm:$0xff] %v8082_v63  ;;  %12027 = vst [vmem:[#allocation104_spill] sm:$0xff] %v8087_v61  ;;  %v8097_v62 = vld [vmem:[%s11716_s6 + $0xf8] sm:$0xff]  ;;  %v8102_v60 = vld [vmem:[%s11716_s6 + $0x100] sm:$0xff] }
  0x55   : > { %12028 = vst [vmem:[#allocation105_spill] sm:$0xff] %v8092_v59  ;;  %12029 = vst [vmem:[#allocation106_spill] sm:$0xff] %v8097_v62  ;;  %v8107_v63 = vld [vmem:[%s11716_s6 + $0x108] sm:$0xff]  ;;  %v8112_v61 = vld [vmem:[%s11716_s6 + $0x110] sm:$0xff] }
  0x56   : > { %12030 = vst [vmem:[#allocation107_spill] sm:$0xff] %v8102_v60  ;;  %12031 = vst [vmem:[#allocation108_spill] sm:$0xff] %v8107_v63  ;;  %v8117_v59 = vld [vmem:[%s11716_s6 + $0x118] sm:$0xff]  ;;  %v8122_v62 = vld [vmem:[%s11716_s6 + $0x120] sm:$0xff] }
  0x57   : > { %12032 = vst [vmem:[#allocation109_spill] sm:$0xff] %v8112_v61  ;;  %12033 = vst [vmem:[#allocation110_spill] sm:$0xff] %v8117_v59  ;;  %v8127_v60 = vld [vmem:[%s11716_s6 + $0x128] sm:$0xff]  ;;  %v8134_v63 = vld [vmem:[%s11716_s6 + $0x130] sm:$0xff] }
  0x58   : > { %12034 = vst [vmem:[#allocation111_spill] sm:$0xff] %v8122_v62  ;;  %12035 = vst [vmem:[#allocation112_spill] sm:$0xff] %v8127_v60  ;;  %v8139_v59 = vld [vmem:[%s11716_s6 + $0x138] sm:$0xff]  ;;  %v8144_v62 = vld [vmem:[%s11716_s6 + $0x140] sm:$0xff] }
  0x59   : > { %12036 = vst [vmem:[#allocation113_spill] sm:$0xff] %v8134_v63  ;;  %12037 = vst [vmem:[#allocation114_spill] sm:$0xff] %v8139_v59  ;;  %v8149_v60 = vld [vmem:[%s11716_s6 + $0x148] sm:$0xff]  ;;  %v8154_v63 = vld [vmem:[%s11716_s6 + $0x150] sm:$0xff] }
  0x5a   : > { %12038 = vst [vmem:[#allocation115_spill] sm:$0xff] %v8144_v62  ;;  %12039 = vst [vmem:[#allocation116_spill] sm:$0xff] %v8149_v60  ;;  %v8159_v59 = vld [vmem:[%s11716_s6 + $0x158] sm:$0xff]  ;;  %v8164_v62 = vld [vmem:[%s11716_s6 + $0x160] sm:$0xff] }
  0x5b   : > { %12040 = vst [vmem:[#allocation117_spill] sm:$0xff] %v8154_v63  ;;  %12041 = vst [vmem:[#allocation118_spill] sm:$0xff] %v8159_v59  ;;  %v8169_v61 = vld [vmem:[%s11716_s6 + $0x168] sm:$0xff]  ;;  %v8174_v60 = vld [vmem:[%s11716_s6 + $0x170] sm:$0xff] }
  0x5c   : > { %12042 = vst [vmem:[#allocation119_spill] sm:$0xff] %v8164_v62  ;;  %12043 = vst [vmem:[#allocation120_spill] sm:$0xff] %v8169_v61  ;;  %v8179_v63 = vld [vmem:[%s11716_s6 + $0x178] sm:$0xff]  ;;  %v8184_v59 = vld [vmem:[%s11716_s6 + $0x180] sm:$0xff]  ;;  %v7454_v61 = vmov 65535  }
  0x5d   : > { %12044 = vst [vmem:[#allocation121_spill] sm:$0xff] %v8174_v60  ;;  %12045 = vst [vmem:[#allocation122_spill] sm:$0xff] %v8179_v63  ;;  %v8189_v62 = vld [vmem:[%s11716_s6 + $0x188] sm:$0xff]  ;;  %v826_v58 = vsel %vm824_vm0, 4294967295, %v7454_v61  ;;  %v8196_v60 = vld [vmem:[%s11716_s6 + $0x190] sm:$0xff] }
  0x5e   : > { %12046 = vst [vmem:[#allocation123_spill] sm:$0xff] %v8184_v59  ;;  %12047 = vst [vmem:[#allocation124_spill] sm:$0xff] %v8189_v62  ;;  %v8201_v63 = vld [vmem:[%s11716_s6 + $0x198] sm:$0xff]  ;;  %v8206_v59 = vld [vmem:[%s11716_s6 + $0x1a0] sm:$0xff] }
  0x5f   : > { %12048 = vst [vmem:[#allocation125_spill] sm:$0xff] %v8196_v60  ;;  %12049 = vst [vmem:[#allocation126_spill] sm:$0xff] %v8201_v63  ;;  %v8211_v61 = vld [vmem:[%s11716_s6 + $0x1a8] sm:$0xff]  ;;  %v8216_v62 = vld [vmem:[%s11716_s6 + $0x1b0] sm:$0xff] }
  0x60   : > { %12050 = vst [vmem:[#allocation127_spill] sm:$0xff] %v8206_v59  ;;  %12051 = vst [vmem:[#allocation128_spill] sm:$0xff] %v8211_v61  ;;  %v8221_v60 = vld [vmem:[%s11716_s6 + $0x1b8] sm:$0xff]  ;;  %v8226_v63 = vld [vmem:[%s11716_s6 + $0x1c0] sm:$0xff] }
  0x61   : > { %12052 = vst [vmem:[#allocation129_spill] sm:$0xff] %v8216_v62  ;;  %12053 = vst [vmem:[#allocation130_spill] sm:$0xff] %v8221_v60  ;;  %v8231_v59 = vld [vmem:[%s11716_s6 + $0x1c8] sm:$0xff]  ;;  %v8236_v61 = vld [vmem:[%s11716_s6 + $0x1d0] sm:$0xff]  ;;  %v827_v62 = vsel %vm825_vm1, %v826_v58, 0 }
  0x62   : > { %12054 = vst [vmem:[#allocation131_spill] sm:$0xff] %v8226_v63  ;;  %12055 = vst [vmem:[#allocation132_spill] sm:$0xff] %v8231_v59  ;;  %v8244_v60 = vld [vmem:[%s11716_s6 + $0x1d8] sm:$0xff]  ;;  %v8249_v63 = vld [vmem:[%s11716_s6 + $0x1e0] sm:$0xff] }
  0x63   : > { %12056 = vst [vmem:[#allocation133_spill] sm:$0xff] %v8236_v61  ;;  %12058 = vst [vmem:[#allocation134_spill] sm:$0xff] %v8244_v60  ;;  %v8254_v59 = vld [vmem:[%s11716_s6 + $0x1e8] sm:$0xff]  ;;  %v8259_v58 = vld [vmem:[%s11716_s6 + $0x1f0] sm:$0xff] }
  0x64   : > { %12059 = vst [vmem:[#allocation135_spill] sm:$0xff] %v8249_v63  ;;  %12060 = vst [vmem:[#allocation136_spill] sm:$0xff] %v8254_v59  ;;  %v8264_v61 = vld [vmem:[%s11716_s6 + $0x1f8] sm:$0xff]  ;;  %v802_v60 = vld [vmem:[%s12063_s26] sm:$0x7] }
  0x65   : > { %12061 = vst [vmem:[#allocation137_spill] sm:$0xff] %v8259_v58  ;;  %12062 = vst [vmem:[#allocation138_spill] sm:$0xff] %v8264_v61  ;;  %v829_v63 = vand.u32 %v827_v62, %v802_v60  ;;  %v790_v57 = vld [vmem:[%s600_s7] sm:$0xff]  ;;  %v791_v56 = vld [vmem:[%s600_s7 + $0x8] sm:$0xff] }
  0x66   : > { %v792_v55 = vld [vmem:[%s600_s7 + $0x10] sm:$0xff]  ;;  %v798_v59 = vpack.c.bf16 %v791_v56, %v790_v57  ;;  %v793_v54 = vld [vmem:[%s600_s7 + $0x18] sm:$0xff]  ;;  %v794_v53 = vld [vmem:[%s600_s7 + $0x20] sm:$0xff] }
  0x67   : > { %v795_v52 = vld [vmem:[%s600_s7 + $0x28] sm:$0xff]  ;;  %6483 = vmatprep.subr.bf16.mxu0 %v829_v63  ;;  %v799_v58 = vpack.c.bf16 %v793_v54, %v792_v55  ;;  %v796_v61 = vld [vmem:[%s600_s7 + $0x30] sm:$0xff]  ;;  %v797_v60 = vld [vmem:[%s600_s7 + $0x38] sm:$0xff]  ;;  %s12078_s7 = sand.u32 1, %s7408_s30  }
  0x68   : > { %6484 = vmatpush3.bf16.msra.mxu0 %v829_v63  ;;  %6485 = vmatprep.mubr.msk.bf16.mxu0 %vm811_vm2, %v798_v59  ;;  %v800_v51 = vpack.c.bf16 %v795_v52, %v794_v53  ;;  %v801_v62 = vpack.c.bf16 %v797_v60, %v796_v61  ;;  %v6847_v56 = vld [vmem:[%s12064_s23] sm:$0xff]   ;;  %v6848_v54 = vld [vmem:[%s12064_s23 + $0x8] ss:$0 sps:$4 sm:$0x33]   ;;  %v806_v57 = vld [vmem:[%s12065_s2 + $0x18] sm:$0xff]  ;;  %s8386_s27 = scalar_lea.vmem [#allocation2], %s12078_s7 }
  0x69   : > { %6493 = vmatprep.subr.bf16.mxu1 %v6847_v56  ;;  %v941_v52 = vsel %vm824_vm0, %v6848_v54, 0  ;;  %v803_v53 = vld [vmem:[%s12065_s2] sm:$0xff]  ;;  %v804_v61 = vld [vmem:[%s12065_s2 + $0x8] sm:$0xff]  ;;  %v809_v47 = vld [vmem:[%s12065_s2 + $0x30] sm:$0xff] }
  0x6a   : > { %6494 = vmatpush3.bf16.msra.mxu1 %v6847_v56 }
  0x6b   : > { %6486 = vmatmul.mubr.msk.bf16.vlgmr.msra.gmra.mrb[0].mxu0 %vm811_vm2, %v799_v58  ;;  %6685 = vmatprep.subr.msk.bf16.mxu1 %vm824_vm0, %v6848_v54 }
  0x6c   : > { %6489 = vmatprep.mubr.msk.bf16.mxu0 %vm811_vm2, %v800_v51  ;;  %v805_v51 = vld [vmem:[%s12065_s2 + $0x10] sm:$0xff] }
  0x6e   : > { %6496 = vmatpush3.bf16.msra.mxu1 %v941_v52 }
  0x73   : > { %6490 = vmatmul.mubr.msk.bf16.gmra.mrb[4].mxu0 %vm811_vm2, %v801_v62 }
 0x13e   : > { %v6487_v55 = vpop.f32.mrb[0].mxu0 }
 0x13f   : > { %v874_v59 = vadd.f32 %v6487_v55, %v805_v51  ;;  %v865_v63 = vpop.f32.mrb[1].mxu0  ;;  %v807_v51 = vld [vmem:[%s12065_s2 + $0x20] sm:$0xff] }
 0x140   : > { %v866_v58 = vadd.f32 %v865_v63, %v803_v53  ;;  %v6488_v60 = vpop.f32.mrb[2].mxu0  ;;  %v810_v53 = vld [vmem:[%s12065_s2 + $0x38] sm:$0xff] }
 0x141   : > { %v877_v62 = vadd.f32 %v6488_v60, %v806_v57  ;;  %v868_v56 = vpop.f32.mrb[3].mxu0  ;;  %v898_v52 = vmax.f32 %v874_v59, 0.0 }
 0x142   : > { %v869_v54 = vadd.f32 %v868_v56, %v804_v61  ;;  %v896_v49 = vmax.f32 %v866_v58, 0.0  ;;  %v808_v61 = vld [vmem:[%s12065_s2 + $0x28] sm:$0xff] }
 0x143   : > { %v899_v50 = vmax.f32 %v877_v62, 0.0 }
 0x144   : > { %v897_v48 = vmax.f32 %v869_v54, 0.0 }
 0x145   : > { %v905_v46 = vpack.c.bf16 %v899_v50, %v898_v52 }
 0x146   : > { %v6491_v55 = vpop.f32.mrb[4].mxu0  ;;  %v904_v57 = vpack.c.bf16 %v897_v48, %v896_v49  ;;  %v603_v49 = vlaneseq }
 0x147   : > { %v890_v59 = vadd.f32 %v6491_v55, %v809_v47  ;;  %v881_v63 = vpop.f32.mrb[5].mxu0 }
 0x148   : > { %v882_v58 = vadd.f32 %v881_v63, %v807_v51  ;;  %v6492_v60 = vpop.f32.mrb[6].mxu0  ;;  %6497 = vmatprep.mubr.msk.bf16.mxu1 %vm927_vm3, %v904_v57  ;;  %v8309_v51 = vand.u32 127, %v603_v49  ;;  %v12067_v63 = vmov 0 }
 0x149   : > { %v893_v50 = vadd.f32 %v6492_v60, %v810_v53  ;;  %v884_v62 = vpop.f32.mrb[7].mxu0  ;;  %6498 = vmatmul.mubr.msk.bf16.vlgmr.msra.gmra.mrb[0].mxu1 %vm927_vm3, %v905_v46  ;;  %v902_v54 = vmax.f32 %v890_v59, 0.0  ;;  %v7455_v46 = vmov 0  }
 0x14a   : > { %v885_v56 = vadd.f32 %v884_v62, %v808_v61  ;;  %v900_v45 = vmax.f32 %v882_v58, 0.0  ;;  %12066 = vst [vmem:[#allocation139_spill] sm:$0xff] %v8309_v51  ;;  %vm605_vm4 = vcmp.ge.s32.totalorder %v8309_v51, 40  ;;  %vm609_vm5 = vcmp.ge.s32.totalorder %v8309_v51, 80  ;;  %v6175_v58 = vld [vmem:[%s11714_s4] ss:$0 sm:$0xff] }
 0x14b   : > { %v903_v52 = vmax.f32 %v893_v50, 0.0  ;;  %v606_v55 = vsel %vm605_vm4, 1, %v7455_v46  ;;  %v610_v53 = vsel %vm609_vm5, 1, %v7455_v46  ;;  %vm613_vm7 = vcmp.lt.s32.totalorder %v8309_v51, 120 }
 0x14c   : > { %v901_v44 = vmax.f32 %v885_v56, 0.0  ;;  %v607_v57 = vmul.u32 40, %v606_v55  ;;  %v611_v59 = vmul.u32 40, %v610_v53  ;;  %v12070_v61 = vmov 0 }
 0x14d   : > { %v907_v48 = vpack.c.bf16 %v903_v52, %v902_v54  ;;  %v8327_v54 = vshrl.u32 %v603_v49, 7 }
 0x14e   : > { %v906_v47 = vpack.c.bf16 %v901_v44, %v900_v45  ;;  %v608_v44 = vsub.s32 %v8309_v51, %v607_v57 }
 0x14f   : > { %12073 = vst [vmem:[#allocation142_spill] sm:$0xff] %v8327_v54  ;;  %vm1032_vm14 = vcmp.lt.s32.totalorder %v8327_v54, 1  ;;  %v630_v51 = vand.u32 63, %v8327_v54 }
 0x150   : > { %6501 = vmatprep.mubr.msk.bf16.mxu1 %vm927_vm3, %v906_v47  ;;  %v612_v45 = vsub.s32 %v608_v44, %v611_v59  ;;  %v629_v59 = vadd.s32 56, %v8327_v54 }
 0x151   : > { %6502 = vmatmul.mubr.msk.bf16.gmra.mrb[4].mxu1 %vm927_vm3, %v907_v48  ;;  %vm8350_vm15 = vcmp.ge.s32.totalorder %v630_v51, 1 }
 0x152   : > { %vm614_vm8 = vcmp.lt.s32.totalorder %v612_v45, 10  ;;  %vm616_vm9 = vcmp.ge.s32.totalorder %v612_v45, 10  ;;  %vm618_vm10 = vcmp.lt.s32.totalorder %v612_v45, 20  ;;  %v637_v43 = vand.u32 63, %v629_v59  ;;  %v1020_v59 = vld [vmem:[%s11715_s5 + $0x20] sm:$0xff] }
 0x153   : > { %vm8316_vm11 = vmand %vm613_vm7, %vm614_vm8 }
 0x154   : > { %v12068_v63 = vsel %vm8316_vm11, 4294967295, %v12067_v63  ;;  %vm617_vm12 = vmand %vm613_vm7, %vm616_vm9  ;;  %vm8354_vm0 = vcmp.le.s32.totalorder %v637_v43, 62 }
 0x155   : > { %12069 = vst [vmem:[#allocation140_spill] sm:$0xff] %v12068_v63  ;;  %vm8320_vm13 = vmand %vm617_vm12, %vm618_vm10 }
 0x156   : > { %v12071_v61 = vsel %vm8320_vm13, 4294967295, %v12070_v61 }
 0x157   : > { %12072 = vst [vmem:[#allocation141_spill] sm:$0xff] %v12071_v61 }
 0x21c   : > { %v6499_v60 = vpop.f32.mrb[0].mxu1 }
 0x21d   : > { %v986_v50 = vadd.f32 %v6499_v60, %v6175_v58  ;;  %v977_v62 = vpop.f32.mrb[1].mxu1  ;;  %v1019_v60 = vld [vmem:[%s11715_s5 + $0x18] sm:$0xff] }
 0x21e   : > { %v978_v56 = vadd.f32 %v6175_v58, %v977_v62  ;;  %v6500_v52 = vpop.f32.mrb[2].mxu1 }
 0x21f   : > { %v1010_v48 = vmax.f32 %v986_v50, 0.0  ;;  %v989_v47 = vadd.f32 %v6500_v52, %v6175_v58  ;;  %v980_v46 = vpop.f32.mrb[3].mxu1  ;;  %v1017_v50 = vld [vmem:[%s11715_s5 + $0x8] sm:$0xff] }
 0x220   : > { %v1008_v55 = vmax.f32 %v978_v56, 0.0  ;;  %v981_v53 = vadd.f32 %v6175_v58, %v980_v46  ;;  %v1018_v56 = vld [vmem:[%s11715_s5 + $0x10] sm:$0xff] }
 0x221   : > { %v1011_v57 = vmax.f32 %v989_v47, 0.0  ;;  %v1026_v45 = vrot.slane %v1010_v48, 7 }
 0x222   : > { %v1009_v44 = vmax.f32 %v981_v53, 0.0  ;;  %v1024_v49 = vrot.slane %v1008_v55, 7 }
 0x223   : > { %v1027_v62 = vrot.slane %v1011_v57, 7 }
 0x224   : > { %v1025_v52 = vrot.slane %v1009_v44, 7  ;;  %v6503_v47 = vpop.f32.mrb[4].mxu1 }
 0x225   : > { %v1037_v46 = vsel %vm1032_vm14, %v1026_v45, %v1027_v62  ;;  %v1002_v48 = vadd.f32 %v6503_v47, %v6175_v58  ;;  %v993_v53 = vpop.f32.mrb[5].mxu1 }
 0x226   : > { %v1068_v57 = vadd.f32 %v1037_v46, %v1019_v60   ;;  %v1038_v55 = vsel %vm1032_vm14, %v1025_v52, %v1026_v45  ;;  %v1039_v42 = vsel %vm1032_vm14, %v1024_v49, %v1025_v52  ;;  %v994_v41 = vadd.f32 %v6175_v58, %v993_v53  ;;  %v6504_v40 = vpop.f32.mrb[6].mxu1 }
 0x227   : > { %v1066_v39 = vadd.f32 %v1039_v42, %v1017_v50   ;;  %v1067_v44 = vadd.f32 %v1038_v55, %v1018_v56   ;;  %v1014_v38 = vmax.f32 %v1002_v48, 0.0  ;;  %v1005_v37 = vadd.f32 %v6504_v40, %v6175_v58  ;;  %v996_v36 = vpop.f32.mrb[7].mxu1 }
 0x228   : > { %v1012_v35 = vmax.f32 %v994_v41, 0.0  ;;  %v997_v47 = vadd.f32 %v6175_v58, %v996_v36  ;;  %v1016_v36 = vld [vmem:[%s11715_s5] sm:$0xff]  ;;  %v1022_v41 = vld [vmem:[%s11715_s5 + $0x30] sm:$0xff] }
 0x229   : > { %v1015_v34 = vmax.f32 %v1005_v37, 0.0  ;;  %v1030_v45 = vrot.slane %v1014_v38, 7  ;;  %v1021_v38 = vld [vmem:[%s11715_s5 + $0x28] sm:$0xff] }
 0x22a   : > { %v1028_v60 = vrot.slane %v1012_v35, 7  ;;  %v1013_v46 = vmax.f32 %v997_v47, 0.0  ;;  %v1023_v35 = vld [vmem:[%s11715_s5 + $0x38] sm:$0xff] }
 0x22b   : > { %v1031_v37 = vrot.slane %v1015_v34, 7 }
 0x22c   : > { %v1036_v40 = vsel %vm1032_vm14, %v1027_v62, %v1028_v60  ;;  %v1029_v43 = vrot.slane %v1013_v46, 7 }
 0x22d   : > { %v1069_v51 = vadd.f32 %v1036_v40, %v1020_v59   ;;  %v1033_v34 = vsel %vm1032_vm14, %v1030_v45, %v1031_v37  ;;  %v1040_v58 = vsel %vm1032_vm14, %v1031_v37, %v1024_v49 }
 0x22e   : > { %v1057_v62 = vsel %vm8350_vm15, %v1040_v58, 0.0  ;;  %v1064_v50 = vsel %vm8354_vm0, %v1033_v34, 0.0  ;;  %v1034_v56 = vsel %vm1032_vm14, %v1029_v43, %v1030_v45  ;;  %v1035_v52 = vsel %vm1032_vm14, %v1028_v60, %v1029_v43 }
 0x22f   : > { %v1065_v48 = vadd.f32 %v1057_v62, %v1016_v36   ;;  %v1072_v53 = vadd.f32 %v1064_v50, %v1023_v35   ;;  %v1070_v55 = vadd.f32 %v1035_v52, %v1021_v38   ;;  %v1071_v47 = vadd.f32 %v1034_v56, %v1022_v41  }
 0x230 LB: >> { %v12081_v54 = vld [vmem:[#allocation142_spill] sm:$0xff]  ;;  %12082 = vst [vmem:[#allocation143_spill] sm:$0xff] %v7420_v53  ;;  %12083 = vst [vmem:[#allocation144_spill] sm:$0xff] %v7424_v47  ;;  %vm11836_vm1 = vcmask 326656   ;;  %s11771_s0 = smul.u32 20, %s7452_s22  ;;  %s6183_s29 = sshll.u32 %s7452_s22, 1  ;;  %v7428_v55 = vphi %v1070_v55, %v5959_v55   ;;  %v7424_v47 = vphi %v1071_v47, %v5960_v47   ;;  %v7420_v53 = vphi %v1072_v53, %v5961_v53   ;;  %s7452_s22 = sphi %s8404_s22, %s1078_s22   ;;  %v7448_v48 = vphi %v1065_v48, %v12653_v48   ;;  %v7444_v39 = vphi %v1066_v39, %v5955_v39   ;;  %v7440_v44 = vphi %v1067_v44, %v5956_v44   ;;  %v7436_v57 = vphi %v1068_v57, %v5957_v57   ;;  %v7432_v51 = vphi %v1069_v51, %v12652_v51  }
 0x231   : >> { %12084 = vst [vmem:[#allocation145_spill] sm:$0xff] %v7428_v55  ;;  %12085 = vst [vmem:[#allocation146_spill] sm:$0xff] %v7432_v51  ;;  %v1144_v33 = vsel %vm11836_vm1, %v7448_v48, 0.0  ;;  %v1150_v49 = vsel %vm11836_vm1, %v7440_v44, 0.0  ;;  %v1147_v59 = vsel %vm11836_vm1, %v7444_v39, 0.0  ;;  %v1153_v60 = vsel %vm11836_vm1, %v7436_v57, 0.0  ;;  %s1115_s7 = scalar_lea.vmem %s11723_s13, %s6183_s29  ;;  %s1095_s26 = scalar_lea.vmem %s11719_s9, %s7452_s22 }
 0x232   : >> { %12086 = vst [vmem:[#allocation147_spill] sm:$0xff] %v7436_v57  ;;  %12087 = vst [vmem:[#allocation148_spill] sm:$0xff] %v7440_v44  ;;  %1145 = vadd.xlane.f32.xlu0 %v1144_v33  ;;  %1151 = vadd.xlane.f32.xlu1 %v1150_v49  ;;  %v1156_v46 = vsel %vm11836_vm1, %v7432_v51, 0.0  ;;  %v1159_v45 = vsel %vm11836_vm1, %v7428_v55, 0.0  ;;  %v1162_v42 = vsel %vm11836_vm1, %v7424_v47, 0.0  ;;  %v1165_v36 = vsel %vm11836_vm1, %v7420_v53, 0.0  ;;  %s1089_s28 = scalar_lea.vmem %s11718_s8, %s11771_s0  ;;  %s1098_s24 = scalar_lea.vmem %s11720_s10, %s6183_s29 }
 0x233   : >> { %12088 = vst [vmem:[#allocation149_spill] sm:$0xff] %v7444_v39  ;;  %12089 = vst [vmem:[#allocation150_spill] sm:$0xff] %v7448_v48  ;;  %s6382_s25 = smul.u32 80, %s7452_s22  ;;  %vm11835_vm2 = vcmask 1043456   ;;  %v11805_v31 = vmov 2102212464  }
 0x234   : >> { %v12092_v28 = vmov 683565275   ;;  %v11813_v26 = vmov 1326507024   ;;  %s7462_s29 = smov 88   ;;  %v12133_v0 = vld [vmem:[#allocation11_spill] sm:$0xff] }
 0x235   : >> { %s8519_s0 = scalar_lea.vmem %s11724_s14, %s6382_s25  ;;  %v12134_v1 = vld [vmem:[#allocation12_spill] sm:$0xff]  ;;  %v12152_v61 = vld [vmem:[#allocation25_spill] sm:$0xff]  ;;  %s7465_s21 = smov 127  }
 0x236   : >> { %1148 = vadd.xlane.f32.xlu0 %v1147_v59  ;;  %1154 = vadd.xlane.f32.xlu1 %v1153_v60 }
 0x23a   : >> { %1157 = vadd.xlane.f32.xlu0 %v1156_v46  ;;  %1160 = vadd.xlane.f32.xlu1 %v1159_v45 }
 0x23e   : >> { %1163 = vadd.xlane.f32.xlu0 %v1162_v42  ;;  %1166 = vadd.xlane.f32.xlu1 %v1165_v36 }
 0x2bf   : >> { %v1146_v37 = vpop.xlane.xlu0 %1145  ;;  %v1152_v40 = vpop.xlane.xlu1 %1151 }
 0x2c0   : >> { %v1169_v35 = vmul.f32 0.025, %v1146_v37  ;;  %v1171_v38 = vmul.f32 0.025, %v1152_v40 }
 0x2c2   : >> { %v8450_v41 = vsub.f32 %v7448_v48, %v1169_v35  ;;  %v8453_v43 = vsub.f32 %v7440_v44, %v1171_v38 }
 0x2c3   : >> { %v1149_v34 = vpop.xlane.xlu0 %1148  ;;  %v1155_v58 = vpop.xlane.xlu1 %1154 }
 0x2c4   : >> { %v1170_v62 = vmul.f32 0.025, %v1149_v34  ;;  %v1172_v50 = vmul.f32 0.025, %v1155_v58  ;;  %v1185_v56 = vmul.f32 %v8450_v41, %v8450_v41  ;;  %v1187_v52 = vmul.f32 %v8453_v43, %v8453_v43 }
 0x2c6   : >> { %v8460_v33 = vsub.f32 %v7444_v39, %v1170_v62  ;;  %v8463_v49 = vsub.f32 %v7436_v57, %v1172_v50  ;;  %v1193_v59 = vsel %vm11836_vm1, %v1185_v56, 0.0  ;;  %v1199_v45 = vsel %vm11836_vm1, %v1187_v52, 0.0 }
 0x2c7   : >> { %v1158_v60 = vpop.xlane.xlu0 %1157  ;;  %1194 = vadd.xlane.f32.xlu0 %v1193_v59  ;;  %v1161_v46 = vpop.xlane.xlu1 %1160 }
 0x2c8   : >> { %v1173_v42 = vmul.f32 0.025, %v1158_v60  ;;  %v1174_v36 = vmul.f32 0.025, %v1161_v46  ;;  %v1186_v37 = vmul.f32 %v8460_v33, %v8460_v33  ;;  %v1188_v40 = vmul.f32 %v8463_v49, %v8463_v49 }
 0x2ca   : >> { %v8472_v35 = vsub.f32 %v7432_v51, %v1173_v42  ;;  %v8475_v38 = vsub.f32 %v7428_v55, %v1174_v36  ;;  %v1196_v34 = vsel %vm11836_vm1, %v1186_v37, 0.0  ;;  %v1202_v62 = vsel %vm11836_vm1, %v1188_v40, 0.0 }
 0x2cb   : >> { %1200 = vadd.xlane.f32.xlu0 %v1199_v45  ;;  %v1164_v58 = vpop.xlane.xlu0 %1163  ;;  %1197 = vadd.xlane.f32.xlu1 %v1196_v34  ;;  %v1167_v50 = vpop.xlane.xlu1 %1166 }
 0x2cc   : >> { %v1175_v56 = vmul.f32 0.025, %v1164_v58  ;;  %v1189_v52 = vmul.f32 %v8472_v35, %v8472_v35  ;;  %v1176_v59 = vmul.f32 0.025, %v1167_v50  ;;  %v1190_v60 = vmul.f32 %v8475_v38, %v8475_v38  ;;  %v6872_v50 = vld [vmem:[%s1089_s28 + $0x8] sm:$0xff]  }
 0x2ce   : >> { %v8484_v46 = vsub.f32 %v7424_v47, %v1175_v56  ;;  %v1205_v45 = vsel %vm11836_vm1, %v1189_v52, 0.0  ;;  %v8488_v42 = vsub.f32 %v7420_v53, %v1176_v59  ;;  %v1208_v37 = vsel %vm11836_vm1, %v1190_v60, 0.0  ;;  %v1116_v59 = vld [vmem:[%s1115_s7] sm:$0x3]  ;;  %v6873_v60 = vld [vmem:[%s1089_s28 + $0x10] ss:$0 sps:$4 sm:$0xff]  }
 0x2cf   : >> { %1206 = vadd.xlane.f32.xlu0 %v1205_v45  ;;  %1203 = vadd.xlane.f32.xlu1 %v1202_v62  ;;  %v6871_v62 = vld [vmem:[%s1089_s28] sm:$0xff]   ;;  %v8511_v56 = vsub.s32 0, %v12081_v54  ;;  %v8514_v52 = vsub.s32 1, %v12081_v54  ;;  %s6187_s28 = sshll.u32 %s7452_s22, 3  ;;  %s7464_s7 = smov 48  }
 0x2d0   : >> { %v1191_v36 = vmul.f32 %v8484_v46, %v8484_v46  ;;  %v1192_v40 = vmul.f32 %v8488_v42, %v8488_v42  ;;  %6505 = vmatprep.subr.bf16.mxu1 %v6871_v62  ;;  %s8533_s20 = scalar_lea.vmem %s11725_s15, %s6187_s28 }
 0x2d1   : >> { %6506 = vmatpush3.bf16.msra.mxu1 %v6871_v62  ;;  %v8522_v45 = vrot.slane %v1116_v59, %v8511_v56 }
 0x2d2   : >> { %v1211_v34 = vsel %vm11836_vm1, %v1191_v36, 0.0  ;;  %v1214_v58 = vsel %vm11836_vm1, %v1192_v40, 0.0  ;;  %6507 = vmatprep.subr.bf16.mxu1 %v6872_v50  ;;  %v8525_v36 = vrot.slane %v1116_v59, %v8514_v52 }
 0x2d3   : >> { %1212 = vadd.xlane.f32.xlu0 %v1211_v34  ;;  %1209 = vadd.xlane.f32.xlu1 %v1208_v37  ;;  %12090 = vst [vmem:[#allocation151_spill] sm:$0xff] %v8522_v45  ;;  %v1312_v37 = vsel %vm11835_vm2, %v6873_v60, 0 }
 0x2d4   : >> { %12091 = vst [vmem:[#allocation152_spill] sm:$0xff] %v8525_v36 }
 0x2d5   : >> { %6508 = vmatpush3.bf16.msra.mxu1 %v6872_v50 }
 0x2d6   : >> { %6686 = vmatprep.subr.msk.bf16.mxu1 %vm11835_vm2, %v6873_v60 }
 0x2d7   : >> { %1215 = vadd.xlane.f32.xlu1 %v1214_v58 }
 0x2d9   : >> { %6510 = vmatpush3.bf16.msra.mxu1 %v1312_v37 }
 0x354   : >> { %v1195_v40 = vpop.xlane.xlu0 %1194 }
 0x355   : >> { %v1217_v34 = vmul.f32 0.025, %v1195_v40 }
 0x357   : >> { %v1225_v58 = vadd.f32 1e-05, %v1217_v34 }
 0x358   : >> { %v1201_v62 = vpop.xlane.xlu0 %1200  ;;  %v1198_v55 = vpop.xlane.xlu1 %1197 }
 0x359   : >> { %6895 = vrsqrt.f32 %v1225_v58  ;;  %v1219_v53 = vmul.f32 0.025, %v1201_v62  ;;  %v1218_v51 = vmul.f32 0.025, %v1198_v55  ;;  %v1142_v55 = vld [vmem:[%s8533_s20] sm:$0xff] }
 0x35b   : >> { %v1227_v47 = vadd.f32 1e-05, %v1219_v53  ;;  %v1226_v45 = vadd.f32 1e-05, %v1218_v51 }
 0x35c   : >> { %v1207_v39 = vpop.xlane.xlu0 %1206  ;;  %v1204_v59 = vpop.xlane.xlu1 %1203 }
 0x35d   : >> { %6897 = vrsqrt.f32 %v1227_v47  ;;  %v1221_v50 = vmul.f32 0.025, %v1207_v39  ;;  %v1220_v36 = vmul.f32 0.025, %v1204_v59  ;;  %v1252_v59 = vrot.slane %v1142_v55, %v8511_v56 }
 0x35e   : >> { %6899 = vrsqrt.f32 %v1226_v45 }
 0x35f   : >> { %v1229_v60 = vadd.f32 1e-05, %v1221_v50  ;;  %v1228_v37 = vadd.f32 1e-05, %v1220_v36 }
 0x360   : >> { %v1213_v40 = vpop.xlane.xlu0 %1212  ;;  %v1210_v34 = vpop.xlane.xlu1 %1209 }
 0x361   : >> { %6901 = vrsqrt.f32 %v1229_v60  ;;  %v1223_v53 = vmul.f32 0.025, %v1213_v40  ;;  %v1222_v51 = vmul.f32 0.025, %v1210_v34  ;;  %v1264_v60 = vrot.slane %v1142_v55, %v8514_v52 }
 0x362   : >> { %6903 = vrsqrt.f32 %v1228_v37 }
 0x363   : >> { %v6896_v58 = vpop.eup %6895  ;;  %v1231_v47 = vadd.f32 1e-05, %v1223_v53  ;;  %v1230_v39 = vadd.f32 1e-05, %v1222_v51 }
 0x364   : >> { %v1216_v62 = vpop.xlane.xlu1 %1215  ;;  %v1241_v45 = vmul.f32 %v6896_v58, %v8450_v41 }
 0x365   : >> { %6905 = vrsqrt.f32 %v1231_v47  ;;  %v1224_v57 = vmul.f32 0.025, %v1216_v62 }
 0x366   : >> { %6907 = vrsqrt.f32 %v1230_v39  ;;  %v1253_v44 = vmul.f32 %v1252_v59, %v1241_v45 }
 0x367   : >> { %v6898_v50 = vpop.eup %6897  ;;  %v1232_v36 = vadd.f32 1e-05, %v1224_v57 }
 0x368   : >> { %v6900_v48 = vpop.eup %6899  ;;  %v1243_v40 = vmul.f32 %v6898_v50, %v8453_v43  ;;  %v1265_v41 = vadd.f32 %v1264_v60, %v1253_v44 }
 0x369   : >> { %6909 = vrsqrt.f32 %v1232_v36  ;;  %v1242_v37 = vmul.f32 %v6900_v48, %v8460_v33 }
 0x36a   : >> { %v1255_v62 = vmul.f32 %v1252_v59, %v1243_v40 }
 0x36b   : >> { %v6902_v34 = vpop.eup %6901  ;;  %v1254_v53 = vmul.f32 %v1252_v59, %v1242_v37 }
 0x36c   : >> { %v6904_v51 = vpop.eup %6903  ;;  %v1245_v39 = vmul.f32 %v6902_v34, %v8472_v35  ;;  %v1267_v48 = vadd.f32 %v1264_v60, %v1255_v62 }
 0x36d   : >> { %v1266_v58 = vadd.f32 %v1264_v60, %v1254_v53  ;;  %v1244_v47 = vmul.f32 %v6904_v51, %v8463_v49 }
 0x36e   : >> { %v1257_v50 = vmul.f32 %v1252_v59, %v1245_v39 }
 0x36f   : >> { %v6906_v57 = vpop.eup %6905  ;;  %v1273_v54 = vpack.c.bf16 %v1266_v58, %v1265_v41  ;;  %v1256_v45 = vmul.f32 %v1252_v59, %v1244_v47 }
 0x370   : >> { %v6908_v32 = vpop.eup %6907  ;;  %v1247_v55 = vmul.f32 %v6906_v57, %v8484_v46  ;;  %v1269_v40 = vadd.f32 %v1264_v60, %v1257_v50 }
 0x371   : >> { %6511 = vmatprep.mubr.msk.bf16.mxu1 %vm11836_vm1, %v1273_v54  ;;  %v1268_v43 = vadd.f32 %v1264_v60, %v1256_v45  ;;  %v1246_v33 = vmul.f32 %v6908_v32, %v8475_v38  ;;  %v8554_v32 = vld [vmem:[%s1095_s26] ss:$0 sm:$0xff]  ;;  %s12547_s26 = smul.u32 20, %s7452_s22 }
 0x372   : >> { %v1259_v35 = vmul.f32 %v1252_v59, %v1247_v55 }
 0x373   : >> { %v6910_v44 = vpop.eup %6909  ;;  %v1274_v36 = vpack.c.bf16 %v1268_v43, %v1267_v48  ;;  %v1258_v49 = vmul.f32 %v1252_v59, %v1246_v33 }
 0x374   : >> { %v1248_v37 = vmul.f32 %v6910_v44, %v8488_v42  ;;  %v1271_v51 = vadd.f32 %v1264_v60, %v1259_v35 }
 0x375   : >> { %6512 = vmatmul.mubr.msk.bf16.vlgmr.msra.gmra.mrb[0].mxu1 %vm11836_vm1, %v1274_v36  ;;  %v1270_v34 = vadd.f32 %v1264_v60, %v1258_v49 }
 0x376   : >> { %v1260_v53 = vmul.f32 %v1252_v59, %v1248_v37 }
 0x377   : >> { %v1275_v46 = vpack.c.bf16 %v1270_v34, %v1269_v40 }
 0x378   : >> { %v1272_v54 = vadd.f32 %v1264_v60, %v1260_v53 }
 0x379   : >> { %6515 = vmatprep.mubr.msk.bf16.mxu1 %vm11836_vm1, %v1275_v46 }
 0x37a   : >> { %v1276_v41 = vpack.c.bf16 %v1272_v54, %v1271_v51 }
 0x37d   : >> { %6516 = vmatmul.mubr.msk.bf16.gmra.mrb[4].mxu1 %vm11836_vm1, %v1276_v41 }
 0x448   : >> { %v6513_v38 = vpop.f32.mrb[0].mxu1 }
 0x449   : >> { %v8557_v42 = vadd.f32 %v6513_v38, %v8554_v32  ;;  %v1348_v58 = vpop.f32.mrb[1].mxu1 }
 0x44a   : >> { %v8560_v59 = vadd.f32 %v8554_v32, %v1348_v58  ;;  %v6514_v60 = vpop.f32.mrb[2].mxu1 }
 0x44b   : >> { %v11787_v47 = vand.u32 2147483647, %v8557_v42  ;;  %v1588_v62 = vand.u32 2139095040, %v8557_v42  ;;  %v8565_v39 = vadd.f32 %v6514_v60, %v8554_v32  ;;  %v1351_v57 = vpop.f32.mrb[3].mxu1 }
 0x44c   : >> { %v11786_v45 = vand.u32 2147483647, %v8560_v59  ;;  %v1382_v55 = vand.u32 2139095040, %v8560_v59  ;;  %v8578_v41 = vadd.f32 %v8554_v32, %v1351_v57 }
 0x44d   : >> { %v1589_v48 = vshrl.u32 %v1588_v62, 23  ;;  %v1592_v43 = vand.u32 8388607, %v11787_v47  ;;  %v1691_v44 = vand.u32 2139095040, %v8565_v39  ;;  %v11788_v53 = vand.u32 2147483647, %v8565_v39 }
 0x44e   : >> { %v1383_v33 = vshrl.u32 %v1382_v55, 23  ;;  %v1386_v50 = vand.u32 8388607, %v11786_v45  ;;  %v11807_v45 = vmov 2475754826  }
 0x44f   : >> { %v6204_v36 = vadd.s32 4294967169, %v1589_v48  ;;  %v1593_v49 = vor.u32 8388608, %v1592_v43  ;;  %v1692_v35 = vshrl.u32 %v1691_v44, 23  ;;  %v11803_v47 = vmov 2131351028  }
 0x450   : >> { %v6196_v37 = vadd.s32 4294967169, %v1383_v33  ;;  %v8574_v40 = vpop.f32.mrb[4].mxu1  ;;  %v1387_v46 = vor.u32 8388608, %v1386_v50  ;;  %v8590_v50 = vand.u32 8388607, %v11788_v53 }
 0x451   : >> { %v1595_v34 = vadd.s32 1, %v6204_v36  ;;  %v6208_v54 = vadd.s32 4294967169, %v1692_v35  ;;  %v8580_v38 = vpop.f32.mrb[5].mxu1  ;;  %v8584_v62 = vshll.u32 %v1593_v49, 8  ;;  %v11792_v35 = vmov 683565275  }
 0x452   : >> { %v1389_v51 = vadd.s32 1, %v6196_v37  ;;  %v8582_v58 = vpop.f32.mrb[6].mxu1  ;;  %v8594_v44 = vshll.u32 %v1387_v46, 8  ;;  %v11810_v46 = vmov 920167782  }
 0x453   : >> { %vm1596_vm3 = vcmp.gt.s32.totalorder %v1595_v34, 0  ;;  %v8586_v55 = vpop.f32.mrb[7].mxu1  ;;  %v8596_v36 = vadd.s32 1, %v6208_v54 }
 0x454   : >> { %v1597_v60 = vsel %vm1596_vm3, %v1595_v34, 0  ;;  %vm1390_vm4 = vcmp.gt.s32.totalorder %v1389_v51, 0 }
 0x455   : >> { %v1598_v48 = vshrl.u32 %v1597_v60, 5  ;;  %v1599_v43 = vand.u32 31, %v1597_v60  ;;  %v1391_v33 = vsel %vm1390_vm4, %v1389_v51, 0  ;;  %vm1699_vm10 = vcmp.gt.s32.totalorder %v8596_v36, 0 }
 0x456   : >> { %v8592_v57 = vshrl.u32 %v1391_v33, 5  ;;  %v1393_v51 = vand.u32 31, %v1391_v33 }
 0x457   : >> { %v1600_v49 = vsub.s32 32, %v1599_v43  ;;  %v1602_v34 = vshll.u32 %v11792_v35, %v1599_v43  ;;  %v1605_v60 = vshll.u32 %v11807_v45, %v1599_v43  ;;  %v1608_v53 = vshll.u32 %v11803_v47, %v1599_v43 }
 0x458   : >> { %v1611_v30 = vshll.u32 %v11805_v31, %v1599_v43  ;;  %v1614_v54 = vshll.u32 %v11810_v46, %v1599_v43  ;;  %vm1617_vm5 = vcmp.lt.s32.totalorder %v1598_v48, 1  ;;  %vm1618_vm7 = vcmp.lt.s32.totalorder %v1598_v48, 2 }
 0x459   : >> { %v1603_v37 = vshrl.u32 %v11807_v45, %v1600_v49  ;;  %v1606_v29 = vshrl.u32 %v11803_v47, %v1600_v49  ;;  %v1609_v35 = vshrl.u32 %v11805_v31, %v1600_v49  ;;  %v1601_v27 = vshrl.u32 %v12092_v28, %v1600_v49 }
 0x45a   : >> { %v1612_v33 = vshrl.u32 %v11810_v46, %v1600_v49  ;;  %v1615_v25 = vshrl.u32 %v11813_v26, %v1600_v49  ;;  %vm1619_vm8 = vcmp.lt.s32.totalorder %v1598_v48, 3  ;;  %v1394_v43 = vsub.s32 32, %v1393_v51 }
 0x45b   : >> { %v1604_v24 = vor.u32 %v1603_v37, %v1602_v34  ;;  %v1607_v23 = vor.u32 %v1606_v29, %v1605_v60  ;;  %v1610_v22 = vor.u32 %v1609_v35, %v1608_v53  ;;  %vm1620_vm9 = vcmp.lt.s32.totalorder %v1598_v48, 4 }
 0x45c   : >> { %v1613_v21 = vor.u32 %v1612_v33, %v1611_v30  ;;  %v1616_v20 = vor.u32 %v1615_v25, %v1614_v54  ;;  %v1396_v47 = vshll.u32 %v12092_v28, %v1393_v51  ;;  %v12093_v37 = vmov 2475754826  }
 0x45d   : >> { %v1621_v31 = vsel %vm1617_vm5, %v1601_v27, %v1604_v24  ;;  %v1622_v45 = vsel %vm1620_vm9, %v1610_v22, 2102212464  ;;  %v1625_v19 = vsel %vm1617_vm5, %v1604_v24, %v1607_v23  ;;  %v1629_v46 = vsel %vm1617_vm5, %v1607_v23, %v1610_v22 }
 0x45e   : >> { %v1623_v18 = vsel %vm1619_vm8, %v1607_v23, %v1622_v45  ;;  %v1626_v49 = vsel %vm1620_vm9, %v1613_v21, 920167782  ;;  %v1630_v26 = vsel %vm1620_vm9, %v1616_v20, 1326507024  ;;  %v1399_v29 = vshll.u32 %v12093_v37, %v1393_v51 }
 0x45f   : >> { %v1627_v25 = vsel %vm1619_vm8, %v1610_v22, %v1626_v49  ;;  %v1631_v30 = vsel %vm1619_vm8, %v1613_v21, %v1630_v26  ;;  %v1395_v53 = vshrl.u32 %v12092_v28, %v1394_v43  ;;  %v1397_v27 = vshrl.u32 %v12093_v37, %v1394_v43 }
 0x460   : >> { %v1624_v24 = vsel %vm1618_vm7, %v1621_v31, %v1623_v18  ;;  %v1628_v35 = vsel %vm1618_vm7, %v1625_v19, %v1627_v25  ;;  %v1632_v23 = vsel %vm1618_vm7, %v1629_v46, %v1631_v30  ;;  %v12094_v45 = vmov 2131351028  }
 0x461   : >> { %v1400_v20 = vshrl.u32 %v12094_v45, %v1394_v43  ;;  %v8626_v34 = vmul.u32.u64.low %v8584_v62, %v1632_v23  ;;  %v8627_v60 = vmul.u32.u64.high %v8584_v62, %v1632_v23, %v8626_v34  ;;  %v1398_v21 = vor.u32 %v1397_v27, %v1396_v47 }
 0x462   : >> { %v8630_v22 = vmul.u32.u64.low %v8584_v62, %v1628_v35  ;;  %v8631_v54 = vmul.u32.u64.high %v8584_v62, %v1628_v35, %v8630_v22  ;;  %v1402_v33 = vshll.u32 %v12094_v45, %v1393_v51  ;;  %v12095_v18 = vmov 2102212464  }
 0x463   : >> { %v1401_v26 = vor.u32 %v1400_v20, %v1399_v29  ;;  %v1403_v31 = vshrl.u32 %v12095_v18, %v1394_v43  ;;  %v1640_v19 = vmul.u32 %v8584_v62, %v1624_v24  ;;  %v1405_v48 = vshll.u32 %v12095_v18, %v1393_v51 }
 0x464   : >> { %v12096_v46 = vmov 920167782   ;;  %v12097_v25 = vmov 1326507024   ;;  %vm1411_vm12 = vcmp.lt.s32.totalorder %v8592_v57, 1  ;;  %vm1412_vm14 = vcmp.lt.s32.totalorder %v8592_v57, 2 }
 0x465   : >> { %v1406_v49 = vshrl.u32 %v12096_v46, %v1394_v43  ;;  %v1409_v30 = vshrl.u32 %v12097_v25, %v1394_v43  ;;  %v1404_v23 = vor.u32 %v1403_v31, %v1402_v33  ;;  %v1408_v34 = vshll.u32 %v12096_v46, %v1393_v51 }
 0x466   : >> { %vm1642_vm15 = vc.u32 %v8627_v60, %v8630_v22  ;;  %v1643_v47 = vadd.s32 1, %v8631_v54  ;;  %vm1413_vm0 = vcmp.lt.s32.totalorder %v8592_v57, 3  ;;  %vm1414_vm3 = vcmp.lt.s32.totalorder %v8592_v57, 4 }
 0x467   : >> { %v1407_v29 = vor.u32 %v1406_v49, %v1405_v48  ;;  %v1410_v62 = vor.u32 %v1409_v30, %v1408_v34  ;;  %v1415_v27 = vsel %vm1411_vm12, %v1395_v53, %v1398_v21  ;;  %v1419_v43 = vsel %vm1411_vm12, %v1398_v21, %v1401_v26 }
 0x468   : >> { %v1644_v24 = vsel %vm1642_vm15, %v1643_v47, %v8631_v54  ;;  %v1416_v51 = vsel %vm1414_vm3, %v1404_v23, 2102212464  ;;  %v1423_v20 = vsel %vm1411_vm12, %v1401_v26, %v1404_v23  ;;  %v1700_v49 = vsel %vm1699_vm10, %v8596_v36, 0 }
 0x469   : >> { %v1420_v35 = vsel %vm1414_vm3, %v1407_v29, 920167782  ;;  %v1645_v33 = vadd.s32 %v1644_v24, %v1640_v19  ;;  %v1417_v31 = vsel %vm1413_vm0, %v1401_v26, %v1416_v51  ;;  %v1424_v16 = vsel %vm1414_vm3, %v1410_v62, 1326507024 }
 0x46a   : >> { %v1421_v17 = vsel %vm1413_vm0, %v1404_v23, %v1420_v35  ;;  %v1425_v48 = vsel %vm1413_vm0, %v1407_v29, %v1424_v16  ;;  %v12098_v53 = vand.u32 2139095040, %v8578_v41  ;;  %v8669_v36 = vshrl.u32 %v1700_v49, 5 }
 0x46b   : >> { %v1422_v15 = vsel %vm1412_vm14, %v1419_v43, %v1421_v17  ;;  %v1646_v30 = vadd.s32 536870912, %v1645_v33  ;;  %v1426_v54 = vsel %vm1412_vm14, %v1423_v20, %v1425_v48  ;;  %v1418_v17 = vsel %vm1412_vm14, %v1415_v27, %v1417_v31 }
 0x46c   : >> { %v1486_v21 = vshrl.u32 %v12098_v53, 23  ;;  %v8659_v19 = vmul.u32.u64.low %v8594_v44, %v1422_v15  ;;  %v8660_v26 = vmul.u32.u64.high %v8594_v44, %v1422_v15, %v8659_v19  ;;  %v1702_v47 = vand.u32 31, %v1700_v49 }
 0x46d   : >> { %v8666_v16 = vmul.u32.u64.low %v8594_v44, %v1426_v54  ;;  %v8667_v23 = vmul.u32.u64.high %v8594_v44, %v1426_v54, %v8666_v16  ;;  %v8671_v34 = vshrl.u32 %v1646_v30, 30  ;;  %v1696_v29 = vor.u32 8388608, %v8590_v50 }
 0x46e   : >> { %v1434_v43 = vmul.u32 %v8594_v44, %v1418_v17  ;;  %v1437_v57 = vadd.s32 1, %v8660_v26  ;;  %v1703_v27 = vsub.s32 32, %v1702_v47  ;;  %vm1720_vm5 = vcmp.lt.s32.totalorder %v8669_v36, 1 }
 0x46f   : >> { %v1648_v15 = vshll.u32 %v8671_v34, 30  ;;  %vm1436_vm4 = vc.u32 %v8667_v23, %v8659_v19  ;;  %vm1721_vm7 = vcmp.lt.s32.totalorder %v8669_v36, 2  ;;  %v6200_v24 = vadd.s32 4294967169, %v1486_v21 }
 0x470   : >> { %v1438_v50 = vsel %vm1436_vm4, %v1437_v57, %v8660_v26  ;;  %v1705_v35 = vshll.u32 %v12092_v28, %v1702_v47  ;;  %v1708_v20 = vshll.u32 %v12093_v37, %v1702_v47  ;;  %v1706_v31 = vshrl.u32 %v12093_v37, %v1703_v27 }
 0x471   : >> { %v8682_v51 = vsub.s32 %v1645_v33, %v1648_v15  ;;  %v1439_v44 = vadd.s32 %v1438_v50, %v1434_v43  ;;  %v1709_v48 = vshrl.u32 %v12094_v45, %v1703_v27  ;;  %v1711_v49 = vshll.u32 %v12094_v45, %v1702_v47 }
 0x472   : >> { %v1712_v30 = vshrl.u32 %v12095_v18, %v1703_v27  ;;  %v1714_v33 = vshll.u32 %v12095_v18, %v1702_v47  ;;  %v1715_v21 = vshrl.u32 %v12096_v46, %v1703_v27  ;;  %v1707_v26 = vor.u32 %v1706_v31, %v1705_v35 }
 0x473   : >> { %v1651_v53 = vsub.s32 0, %v8682_v51  ;;  %v1440_v54 = vadd.s32 536870912, %v1439_v44  ;;  %v1710_v17 = vor.u32 %v1709_v48, %v1708_v20  ;;  %v1717_v16 = vshll.u32 %v12096_v46, %v1702_v47 }
 0x474   : >> { %v1713_v43 = vor.u32 %v1712_v30, %v1711_v49  ;;  %v1716_v57 = vor.u32 %v1715_v21, %v1714_v33  ;;  %v1718_v50 = vshrl.u32 %v12097_v25, %v1703_v27  ;;  %vm1722_vm8 = vcmp.lt.s32.totalorder %v8669_v36, 3 }
 0x475   : >> { %v6205_v15 = vmin.u32 %v1651_v53, %v8682_v51  ;;  %v8697_v62 = vshrl.u32 %v1440_v54, 30  ;;  %vm1723_vm9 = vcmp.lt.s32.totalorder %v8669_v36, 4  ;;  %v1728_v14 = vsel %vm1720_vm5, %v1707_v26, %v1710_v17 }
 0x476   : >> { %v1719_v35 = vor.u32 %v1718_v50, %v1717_v16  ;;  %v1725_v47 = vsel %vm1723_vm9, %v1713_v43, 2102212464  ;;  %v1729_v20 = vsel %vm1723_vm9, %v1716_v57, 920167782  ;;  %v1704_v48 = vshrl.u32 %v12092_v28, %v1703_v27 }
 0x477   : >> { %v1653_v13 = vclz %v6205_v15  ;;  %v1442_v31 = vshll.u32 %v8697_v62, 30  ;;  %v1730_v49 = vsel %vm1722_vm8, %v1713_v43, %v1729_v20  ;;  %v1492_v53 = vadd.s32 1, %v6200_v24  ;;  %v1099_v20 = vld [vmem:[%s1098_s24] sm:$0x3]  ;;  %s11260_s24 = scalar_lea.vmem %s11721_s11, %s12547_s26 }
 0x478   : >> { %v1731_v33 = vsel %vm1721_vm7, %v1728_v14, %v1730_v49  ;;  %v1732_v21 = vsel %vm1720_vm5, %v1710_v17, %v1713_v43  ;;  %v1736_v54 = vshll.u32 %v1696_v29, 8  ;;  %v1724_v15 = vsel %vm1720_vm5, %v1704_v48, %v1707_v26 }
 0x479   : >> { %v6206_v30 = vadd.s32 4294967294, %v1653_v13  ;;  %v8715_v16 = vsub.s32 %v1439_v44, %v1442_v31  ;;  %v1726_v27 = vsel %vm1722_vm8, %v1710_v17, %v1725_v47  ;;  %v1733_v50 = vsel %vm1723_vm9, %v1719_v35, 1326507024 }
 0x47a   : >> { %v1734_v13 = vsel %vm1722_vm8, %v1716_v57, %v1733_v50  ;;  %v8730_v14 = vmul.u32.u64.low %v1736_v54, %v1731_v33  ;;  %v8731_v29 = vmul.u32.u64.high %v1736_v54, %v1731_v33, %v8730_v14  ;;  %vm1493_vm12 = vcmp.gt.s32.totalorder %v1492_v53, 0 }
 0x47b   : >> { %vm6207_vm10 = vcmp.lt.s32.totalorder %v6206_v30, 0  ;;  %v1445_v44 = vsub.s32 0, %v8715_v16  ;;  %v1735_v26 = vsel %vm1721_vm7, %v1732_v21, %v1734_v13  ;;  %v1641_v17 = vadd.s32 %v8630_v22, %v8627_v60 }
 0x47c   : >> { %v1656_v24 = vsel %vm6207_vm10, 0, %v6206_v30  ;;  %v1494_v47 = vsel %vm1493_vm12, %v1492_v53, 0  ;;  %v1727_v31 = vsel %vm1721_vm7, %v1724_v15, %v1726_v27  ;;  %v1746_v21 = vadd.s32 1, %v8731_v29 }
 0x47d   : >> { %v1657_v43 = vsub.s32 32, %v1656_v24  ;;  %v1661_v35 = vsub.s32 4294967266, %v1656_v24  ;;  %v6197_v57 = vmin.u32 %v1445_v44, %v8715_v16  ;;  %v1496_v50 = vand.u32 31, %v1494_v47 }
 0x47e   : >> { %v8742_v48 = vmul.u32.u64.low %v1736_v54, %v1735_v26  ;;  %v8743_v49 = vmul.u32.u64.high %v1736_v54, %v1735_v26, %v8742_v48  ;;  %v12099_v60 = vand.u32 2147483647, %v8578_v41  ;;  %v8751_v53 = vrot.slane %v1099_v20, %v8511_v56 }
 0x47f   : >> { %v1659_v30 = vshrl.u32 %v1641_v17, %v1657_v43  ;;  %v1662_v33 = vadd.s32 127, %v1661_v35  ;;  %v1447_v13 = vclz %v6197_v57  ;;  %v8754_v44 = vrot.slane %v1099_v20, %v8514_v52 }
 0x480   : >> { %v8748_v22 = vand.u32 8388607, %v12099_v60  ;;  %12100 = vst [vmem:[#allocation153_spill] sm:$0xff] %v8751_v53  ;;  %v1658_v36 = vshll.u32 %v8682_v51, %v1656_v24  ;;  %v1743_v26 = vmul.u32 %v1736_v54, %v1727_v31  ;;  %vm1745_vm14 = vc.u32 %v8743_v49, %v8730_v14 }
 0x481   : >> { %12101 = vst [vmem:[#allocation154_spill] sm:$0xff] %v8754_v44  ;;  %v1663_v15 = vshll.u32 %v1662_v33, 23  ;;  %v6198_v27 = vadd.s32 4294967294, %v1447_v13  ;;  %v8761_v17 = vadd.f32 %v8574_v40, %v8554_v32  ;;  %v1747_v56 = vsel %vm1745_vm14, %v1746_v21, %v8731_v29 }
 0x482   : >> { %v1660_v43 = vor.u32 %v1659_v30, %v1658_v36  ;;  %v1497_v57 = vsub.s32 32, %v1496_v50  ;;  %v1435_v52 = vadd.s32 %v8659_v19, %v8667_v23  ;;  %v1748_v51 = vadd.s32 %v1747_v56, %v1743_v26 }
 0x483   : >> { %v1664_v35 = vor.u32 4788187, %v1663_v15  ;;  %vm6199_vm15 = vcmp.lt.s32.totalorder %v6198_v27, 0  ;;  %v1490_v24 = vor.u32 8388608, %v8748_v22  ;;  %v8767_v20 = vshrl.u32 %v1494_v47, 5 }
 0x484   : >> { %v1450_v54 = vsel %vm6199_vm15, 0, %v6198_v27  ;;  %v1499_v31 = vshll.u32 %v12092_v28, %v1496_v50  ;;  %v1502_v40 = vshll.u32 %v12093_v37, %v1496_v50  ;;  %v1749_v13 = vadd.s32 536870912, %v1748_v51 }
 0x485   : >> { %v1665_v48 = vand.u32 2147483647, %v1664_v35  ;;  %v1451_v30 = vsub.s32 32, %v1450_v54  ;;  %v1455_v33 = vsub.s32 4294967266, %v1450_v54  ;;  %v1667_v29 = vcvt.s32.f32 %v1660_v43 }
 0x486   : >> { %v1500_v21 = vshrl.u32 %v12093_v37, %v1497_v57  ;;  %v1503_v19 = vshrl.u32 %v12094_v45, %v1497_v57  ;;  %v1506_v23 = vshrl.u32 %v12095_v18, %v1497_v57  ;;  %v8774_v36 = vshrl.u32 %v1749_v13, 30 }
 0x487   : >> { %v1453_v60 = vshrl.u32 %v1435_v52, %v1451_v30  ;;  %v1456_v22 = vadd.s32 127, %v1455_v33  ;;  %v1505_v47 = vshll.u32 %v12094_v45, %v1496_v50  ;;  %v1452_v15 = vshll.u32 %v8715_v16, %v1450_v54 }
 0x488   : >> { %v1508_v27 = vshll.u32 %v12095_v18, %v1496_v50  ;;  %v1509_v26 = vshrl.u32 %v12096_v46, %v1497_v57  ;;  %v1512_v43 = vshrl.u32 %v12097_v25, %v1497_v57  ;;  %v1668_v35 = vmul.f32 %v1667_v29, %v1665_v48 }
 0x489   : >> { %v1457_v56 = vshll.u32 %v1456_v22, 23  ;;  %v1751_v12 = vshll.u32 %v8774_v36, 30  ;;  %v1511_v11 = vshll.u32 %v12096_v46, %v1496_v50  ;;  %v1501_v52 = vor.u32 %v1500_v21, %v1499_v31 }
 0x48a   : >> { %v1504_v30 = vor.u32 %v1503_v19, %v1502_v40  ;;  %v1507_v33 = vor.u32 %v1506_v23, %v1505_v47  ;;  %v1510_v13 = vor.u32 %v1509_v26, %v1508_v27  ;;  %v1454_v10 = vor.u32 %v1453_v60, %v1452_v15 }
 0x48b   : >> { %v1458_v9 = vor.u32 4788187, %v1457_v56  ;;  %v8783_v8 = vsub.s32 %v1748_v51, %v1751_v12  ;;  %v1513_v16 = vor.u32 %v1512_v43, %v1511_v11  ;;  %v1498_v54 = vshrl.u32 %v12092_v28, %v1497_v57 }
 0x48c   : >> { %vm1514_vm0 = vcmp.lt.s32.totalorder %v8767_v20, 1  ;;  %vm1515_vm3 = vcmp.lt.s32.totalorder %v8767_v20, 2  ;;  %vm1516_vm4 = vcmp.lt.s32.totalorder %v8767_v20, 3  ;;  %v1669_v48 = vxor.u32 2147483648, %v1668_v35 }
 0x48d   : >> { %v1459_v29 = vand.u32 2147483647, %v1458_v9  ;;  %v1754_v50 = vsub.s32 0, %v8783_v8  ;;  %vm1517_vm5 = vcmp.lt.s32.totalorder %v8767_v20, 4  ;;  %v1522_v40 = vsel %vm1514_vm0, %v1501_v52, %v1504_v30 }
 0x48e   : >> { %v1519_v31 = vsel %vm1517_vm5, %v1507_v33, 2102212464  ;;  %v1523_v21 = vsel %vm1517_vm5, %v1510_v13, 920167782  ;;  %v1526_v12 = vsel %vm1514_vm0, %v1504_v30, %v1507_v33  ;;  %v1461_v51 = vcvt.s32.f32 %v1454_v10 }
 0x48f   : >> { %v6209_v11 = vmin.u32 %v1754_v50, %v8783_v8  ;;  %v1524_v57 = vsel %vm1516_vm4, %v1507_v33, %v1523_v21  ;;  %v1527_v19 = vsel %vm1517_vm5, %v1513_v16, 1326507024  ;;  %v1518_v23 = vsel %vm1514_vm0, %v1498_v54, %v1501_v52 }
 0x490   : >> { %v1525_v60 = vsel %vm1515_vm3, %v1522_v40, %v1524_v57  ;;  %v1528_v9 = vsel %vm1516_vm4, %v1510_v13, %v1527_v19  ;;  %v1530_v22 = vshll.u32 %v1490_v24, 8  ;;  %v1462_v47 = vmul.f32 %v1461_v51, %v1459_v29 }
 0x491   : >> { %v1756_v15 = vclz %v6209_v11  ;;  %v1520_v27 = vsel %vm1516_vm4, %v1504_v30, %v1519_v31  ;;  %v1529_v10 = vsel %vm1515_vm3, %v1526_v12, %v1528_v9  ;;  %v12102_v33 = vand.u32 2147483647, %v8557_v42 }
 0x492   : >> { %v8802_v26 = vmul.u32.u64.low %v1530_v22, %v1529_v10  ;;  %v8803_v43 = vmul.u32.u64.high %v1530_v22, %v1529_v10, %v8802_v26  ;;  %v8805_v56 = vmul.u32.u64.low %v1530_v22, %v1525_v60  ;;  %v8806_v52 = vmul.u32.u64.high %v1530_v22, %v1525_v60, %v8805_v56 }
 0x493   : >> { %vm8811_vm7 = vcmp.le.f32.partialorder %v12102_v33, 0.7853982  ;;  %vm1587_vm8 = vcmp.lt.s32.totalorder %v8557_v42, 0  ;;  %vm1381_vm9 = vcmp.lt.s32.totalorder %v8560_v59, 0  ;;  %v6210_v24 = vadd.s32 4294967294, %v1756_v15 }
 0x494   : >> { %v1671_v30 = vsub.s32 4, %v8671_v34  ;;  %v12105_v16 = vand.u32 2147483647, %v8560_v59  ;;  %v1465_v29 = vsub.s32 4, %v8697_v62  ;;  %vm1690_vm12 = vcmp.lt.s32.totalorder %v8565_v39, 0 }
 0x495   : >> { %v11826_v50 = vand.u32 2147483647, %v8761_v17  ;;  %v2000_v31 = vand.u32 2139095040, %v8761_v17  ;;  %v1670_v40 = vsel %vm1587_vm8, %v1669_v48, %v1668_v35  ;;  %vm6211_vm14 = vcmp.lt.s32.totalorder %v6210_v24, 0 }
 0x496   : >> { %vm8820_vm10 = vcmp.le.f32.partialorder %v12105_v16, 0.7853982  ;;  %v1521_v21 = vsel %vm1515_vm3, %v1518_v23, %v1520_v27  ;;  %v8834_v12 = vadd.f32 %v8554_v32, %v8580_v38  ;;  %v1463_v51 = vxor.u32 2147483648, %v1462_v47 }
 0x497   : >> { %v1744_v11 = vadd.s32 %v8730_v14, %v8743_v49  ;;  %v1759_v57 = vsel %vm6211_vm14, 0, %v6210_v24  ;;  %vm1539_vm15 = vc.u32 %v8803_v43, %v8805_v56  ;;  %v1774_v35 = vsub.s32 4, %v8774_v36 }
 0x498   : >> { %v1760_v19 = vsub.s32 32, %v1759_v57  ;;  %v1764_v60 = vsub.s32 4294967266, %v1759_v57  ;;  %v1540_v48 = vadd.s32 1, %v8806_v52  ;;  %v1673_v20 = vsel %vm8811_vm7, %v8557_v42, %v1670_v40 }
 0x499   : >> { %v1537_v38 = vmul.u32 %v1530_v22, %v1521_v21  ;;  %v2001_v23 = vshrl.u32 %v2000_v31, 23  ;;  %v2004_v9 = vand.u32 8388607, %v11826_v50  ;;  %v1794_v27 = vand.u32 2139095040, %v8834_v12 }
 0x49a   : >> { %v1762_v14 = vshrl.u32 %v1744_v11, %v1760_v19  ;;  %v1765_v49 = vadd.s32 127, %v1764_v60  ;;  %v1541_v15 = vsel %vm1539_vm15, %v1540_v48, %v8806_v52  ;;  %v1464_v10 = vsel %vm1381_vm9, %v1463_v51, %v1462_v47 }
 0x49b   : >> { %v1542_v26 = vadd.s32 %v1541_v15, %v1537_v38  ;;  %v6220_v33 = vadd.s32 4294967169, %v2001_v23  ;;  %v11825_v24 = vand.u32 2147483647, %v8834_v12  ;;  %v8855_v22 = vsel %vm1587_vm8, %v1671_v30, %v8671_v34 }
 0x49c   : >> { %v1761_v16 = vshll.u32 %v8783_v8, %v1759_v57  ;;  %v1766_v31 = vshll.u32 %v1765_v49, 23  ;;  %v1795_v40 = vshrl.u32 %v1794_v27, 23  ;;  %6911 = vcosq.f32 %v1673_v20 }
 0x49d   : >> { %v8861_v52 = vsel %vm1381_vm9, %v1465_v29, %v8697_v62  ;;  %v1543_v47 = vadd.s32 536870912, %v1542_v26  ;;  %v2007_v21 = vadd.s32 1, %v6220_v33  ;;  %v1467_v51 = vsel %vm8820_vm10, %v8560_v59, %v1464_v10 }
 0x49e   : >> { %v1763_v11 = vor.u32 %v1762_v14, %v1761_v16  ;;  %v8869_v34 = vsel %vm1690_vm12, %v1774_v35, %v8774_v36  ;;  %v2005_v8 = vor.u32 8388608, %v2004_v9  ;;  %v1767_v30 = vor.u32 4788187, %v1766_v31 }
 0x49f   : >> { %v8871_v57 = vshrl.u32 %v1543_v47, 30  ;;  %vm2008_vm0 = vcmp.gt.s32.totalorder %v2007_v21, 0  ;;  %v8875_v62 = vand.u32 8388607, %v11825_v24  ;;  %6913 = vsinq.f32 %v1673_v20 }
 0x4a0   : >> { %v2009_v29 = vsel %vm2008_vm0, %v2007_v21, 0  ;;  %v6212_v19 = vadd.s32 4294967169, %v1795_v40  ;;  %v8879_v60 = vadd.f32 %v8582_v58, %v8554_v32  ;;  %6915 = vcosq.f32 %v1467_v51 }
 0x4a1   : >> { %v1545_v36 = vshll.u32 %v8871_v57, 30  ;;  %v2011_v35 = vand.u32 31, %v2009_v29  ;;  %v8884_v48 = vadd.f32 %v8554_v32, %v8586_v55  ;;  %6917 = vsinq.f32 %v1467_v51 }
 0x4a2   : >> { %v1770_v38 = vcvt.s32.f32 %v1763_v11  ;;  %v1538_v23 = vadd.s32 %v8805_v56, %v8803_v43  ;;  %v8888_v20 = vshll.u32 %v2005_v8, 8  ;;  %v1768_v9 = vand.u32 2147483647, %v1767_v30 }
 0x4a3   : >> { %v8890_v14 = vsub.s32 %v1542_v26, %v1545_v36  ;;  %v2012_v58 = vsub.s32 32, %v2011_v35  ;;  %v2010_v15 = vshrl.u32 %v2009_v29, 5  ;;  %v2014_v27 = vshll.u32 %v12092_v28, %v2011_v35 }
 0x4a4   : >> { %v1801_v10 = vadd.s32 1, %v6212_v19  ;;  %v2103_v32 = vand.u32 2139095040, %v8879_v60  ;;  %v2017_v43 = vshll.u32 %v12093_v37, %v2011_v35  ;;  %v2020_v26 = vshll.u32 %v12094_v45, %v2011_v35 }
 0x4a5   : >> { %v1548_v55 = vsub.s32 0, %v8890_v14  ;;  %v2015_v33 = vshrl.u32 %v12093_v37, %v2012_v58  ;;  %v2018_v56 = vshrl.u32 %v12094_v45, %v2012_v58  ;;  %v2021_v16 = vshrl.u32 %v12095_v18, %v2012_v58 }
 0x4a6   : >> { %v2023_v31 = vshll.u32 %v12095_v18, %v2011_v35  ;;  %v2024_v40 = vshrl.u32 %v12096_v46, %v2012_v58  ;;  %v8903_v47 = vpop.eup %6911  ;;  %v8905_v21 = vmul.f32 %v1770_v38, %v1768_v9  ;;  %v2026_v19 = vshll.u32 %v12096_v46, %v2011_v35 }
 0x4a7   : >> { %v6201_v51 = vmin.u32 %v1548_v55, %v8890_v14  ;;  %v2016_v11 = vor.u32 %v2015_v33, %v2014_v27  ;;  %v2019_v8 = vor.u32 %v2018_v56, %v2017_v43  ;;  %v2022_v30 = vor.u32 %v2021_v16, %v2020_v26 }
 0x4a8   : >> { %v2025_v29 = vor.u32 %v2024_v40, %v2023_v31  ;;  %v2027_v36 = vshrl.u32 %v12097_v25, %v2012_v58  ;;  %v2013_v50 = vshrl.u32 %v12092_v28, %v2012_v58  ;;  %vm2029_vm3 = vcmp.lt.s32.totalorder %v2010_v15, 1 }
 0x4a9   : >> { %v1550_v24 = vclz %v6201_v51  ;;  %vm1802_vm4 = vcmp.gt.s32.totalorder %v1801_v10, 0  ;;  %v8911_v49 = vpop.eup %6913  ;;  %vm2030_vm5 = vcmp.lt.s32.totalorder %v2010_v15, 2  ;;  %vm2031_vm8 = vcmp.lt.s32.totalorder %v2010_v15, 3 }
 0x4aa   : >> { %v2028_v7 = vor.u32 %v2027_v36, %v2026_v19  ;;  %vm2032_vm9 = vcmp.lt.s32.totalorder %v2010_v15, 4  ;;  %v8913_v38 = vpop.eup %6915  ;;  %v2037_v55 = vsel %vm2029_vm3, %v2016_v11, %v2019_v8  ;;  %v2033_v43 = vsel %vm2029_vm3, %v2013_v50, %v2016_v11 }
 0x4ab   : >> { %v6202_v9 = vadd.s32 4294967294, %v1550_v24  ;;  %v2034_v27 = vsel %vm2032_vm9, %v2022_v30, 2102212464  ;;  %v2038_v33 = vsel %vm2032_vm9, %v2025_v29, 920167782  ;;  %v8915_v35 = vpop.eup %6917  ;;  %v2041_v26 = vsel %vm2029_vm3, %v2019_v8, %v2022_v30 }
 0x4ac   : >> { %v2039_v56 = vsel %vm2031_vm8, %v2022_v30, %v2038_v33  ;;  %v2042_v58 = vsel %vm2032_vm9, %v2028_v7, 1326507024  ;;  %v2035_v16 = vsel %vm2031_vm8, %v2019_v8, %v2034_v27  ;;  %v2104_v11 = vshrl.u32 %v2103_v32, 23 }
 0x4ad   : >> { %vm6203_vm14 = vcmp.lt.s32.totalorder %v6202_v9, 0  ;;  %v2040_v31 = vsel %vm2030_vm5, %v2037_v55, %v2039_v56  ;;  %v2043_v40 = vsel %vm2031_vm8, %v2025_v29, %v2042_v58  ;;  %v2036_v7 = vsel %vm2030_vm5, %v2033_v43, %v2035_v16 }
 0x4ae   : >> { %v1553_v51 = vsel %vm6203_vm14, 0, %v6202_v9  ;;  %v2044_v19 = vsel %vm2030_vm5, %v2041_v26, %v2043_v40  ;;  %v8920_v36 = vmul.u32.u64.low %v8888_v20, %v2040_v31  ;;  %v8921_v24 = vmul.u32.u64.high %v8888_v20, %v2040_v31, %v8920_v36 }
 0x4af   : >> { %v1554_v6 = vsub.s32 32, %v1553_v51  ;;  %v1558_v5 = vsub.s32 4294967266, %v1553_v51  ;;  %v8927_v8 = vmul.u32.u64.low %v8888_v20, %v2044_v19  ;;  %v8928_v30 = vmul.u32.u64.high %v8888_v20, %v2044_v19, %v8927_v8 }
 0x4b0   : >> { %v1803_v29 = vsel %vm1802_vm4, %v1801_v10, 0  ;;  %v1555_v9 = vshll.u32 %v8890_v14, %v1553_v51  ;;  %v1772_v56 = vxor.u32 2147483648, %v8905_v21  ;;  %v2055_v58 = vadd.s32 1, %v8921_v24 }
 0x4b1   : >> { %v1556_v27 = vshrl.u32 %v1538_v23, %v1554_v6  ;;  %v1559_v55 = vadd.s32 127, %v1558_v5  ;;  %v1805_v33 = vand.u32 31, %v1803_v29  ;;  %v12108_v15 = vor.u32 8388608, %v8875_v62 }
 0x4b2   : >> { %v2052_v31 = vmul.u32 %v8888_v20, %v2036_v7  ;;  %vm2054_vm15 = vc.u32 %v8928_v30, %v8920_v36  ;;  %v1804_v5 = vshrl.u32 %v1803_v29, 5  ;;  %v6224_v23 = vadd.s32 4294967169, %v2104_v11 }
 0x4b3   : >> { %v8937_v32 = vshll.u32 %v12108_v15, 8  ;;  %v1557_v43 = vor.u32 %v1556_v27, %v1555_v9  ;;  %v1560_v16 = vshll.u32 %v1559_v55, 23  ;;  %v1806_v10 = vsub.s32 32, %v1805_v33 }
 0x4b4   : >> { %v1808_v6 = vshll.u32 %v12092_v28, %v1805_v33  ;;  %v2056_v40 = vsel %vm2054_vm15, %v2055_v58, %v8921_v24  ;;  %v1811_v51 = vshll.u32 %v12093_v37, %v1805_v33  ;;  %v1814_v62 = vshll.u32 %v12094_v45, %v1805_v33 }
 0x4b5   : >> { %v1561_v14 = vor.u32 4788187, %v1560_v16  ;;  %vm1484_vm0 = vcmp.lt.s32.totalorder %v8578_v41, 0  ;;  %v2057_v19 = vadd.s32 %v2056_v40, %v2052_v31  ;;  %v1809_v20 = vshrl.u32 %v12093_v37, %v1806_v10 }
 0x4b6   : >> { %v1812_v7 = vshrl.u32 %v12094_v45, %v1806_v10  ;;  %v1815_v8 = vshrl.u32 %v12095_v18, %v1806_v10  ;;  %v1564_v9 = vcvt.s32.f32 %v1557_v43  ;;  %v1817_v11 = vshll.u32 %v12095_v18, %v1805_v33 }
 0x4b7   : >> { %v1562_v29 = vand.u32 2147483647, %v1561_v14  ;;  %v1818_v27 = vshrl.u32 %v12096_v46, %v1806_v10  ;;  %v2058_v24 = vadd.s32 536870912, %v2057_v19  ;;  %v1810_v55 = vor.u32 %v1809_v20, %v1808_v6 }
 0x4b8   : >> { %v1813_v58 = vor.u32 %v1812_v7, %v1811_v51  ;;  %v1816_v15 = vor.u32 %v1815_v8, %v1814_v62  ;;  %v1820_v31 = vshll.u32 %v12096_v46, %v1805_v33  ;;  %v1821_v40 = vshrl.u32 %v12097_v25, %v1806_v10 }
 0x4b9   : >> { %v1565_v16 = vmul.f32 %v1564_v9, %v1562_v29  ;;  %v1819_v26 = vor.u32 %v1818_v27, %v1817_v11  ;;  %v12109_v50 = vand.u32 2147483647, %v8565_v39  ;;  %v8960_v43 = vshrl.u32 %v2058_v24, 30 }
 0x4ba   : >> { %v1807_v14 = vshrl.u32 %v12092_v28, %v1806_v10  ;;  %vm1826_vm4 = vcmp.lt.s32.totalorder %v1804_v5, 4  ;;  %v12112_v6 = vand.u32 2147483647, %v8879_v60  ;;  %v12113_v62 = vand.u32 2147483647, %v8578_v41 }
 0x4bb   : >> { %vm8956_vm3 = vcmp.le.f32.partialorder %v12109_v50, 0.7853982  ;;  %v1566_v20 = vxor.u32 2147483648, %v1565_v16  ;;  %v1822_v7 = vor.u32 %v1821_v40, %v1820_v31  ;;  %vm1823_vm8 = vcmp.lt.s32.totalorder %v1804_v5, 1 }
 0x4bc   : >> { %v2107_v51 = vand.u32 8388607, %v12112_v6  ;;  %vm8967_vm5 = vcmp.le.f32.partialorder %v12113_v62, 0.7853982  ;;  %v1828_v50 = vsel %vm1826_vm4, %v1816_v15, 2102212464  ;;  %v1831_v29 = vsel %vm1823_vm8, %v1810_v55, %v1813_v58 }
 0x4bd   : >> { %v2060_v8 = vshll.u32 %v8960_v43, 30  ;;  %vm1825_vm9 = vcmp.lt.s32.totalorder %v1804_v5, 3  ;;  %v2110_v10 = vadd.s32 1, %v6224_v23  ;;  %v1773_v9 = vsel %vm1690_vm12, %v1772_v56, %v8905_v21 }
 0x4be   : >> { %v1827_v11 = vsel %vm1823_vm8, %v1807_v14, %v1810_v55  ;;  %v1829_v27 = vsel %vm1825_vm9, %v1813_v58, %v1828_v50  ;;  %v1832_v24 = vsel %vm1826_vm4, %v1819_v26, 920167782  ;;  %vm1824_vm14 = vcmp.lt.s32.totalorder %v1804_v5, 2 }
 0x4bf   : >> { %v8978_v6 = vsub.s32 %v2057_v19, %v2060_v8  ;;  %v1833_v31 = vsel %vm1825_vm9, %v1816_v15, %v1832_v24  ;;  %v1835_v40 = vsel %vm1823_vm8, %v1813_v58, %v1816_v15  ;;  %v1567_v62 = vsel %vm1484_vm0, %v1566_v20, %v1565_v16 }
 0x4c0   : >> { %v1834_v3 = vsel %vm1824_vm14, %v1831_v29, %v1833_v31  ;;  %v1836_v23 = vsel %vm1826_vm4, %v1822_v7, 1326507024  ;;  %v2108_v2 = vor.u32 8388608, %v2107_v51  ;;  %v1830_v56 = vsel %vm1824_vm14, %v1827_v11, %v1829_v27 }
 0x4c1   : >> { %v2063_v21 = vsub.s32 0, %v8978_v6  ;;  %v1837_v55 = vsel %vm1825_vm9, %v1819_v26, %v1836_v23  ;;  %vm2111_vm12 = vcmp.gt.s32.totalorder %v2110_v10, 0  ;;  %v9001_v26 = vsel %vm8956_vm3, %v8565_v39, %v1773_v9 }
 0x4c2   : >> { %v1838_v14 = vsel %vm1824_vm14, %v1835_v40, %v1837_v55  ;;  %v8987_v19 = vmul.u32.u64.low %v8937_v32, %v1834_v3  ;;  %v8988_v50 = vmul.u32.u64.high %v8937_v32, %v1834_v3, %v8987_v19  ;;  %v2112_v58 = vsel %vm2111_vm12, %v2110_v10, 0 }
 0x4c3   : >> { %v6221_v15 = vmin.u32 %v2063_v21, %v8978_v6  ;;  %v8993_v16 = vmul.u32.u64.low %v8937_v32, %v1838_v14  ;;  %v8994_v20 = vmul.u32.u64.high %v8937_v32, %v1838_v14, %v8993_v16  ;;  %v8996_v51 = vshrl.u32 %v2112_v58, 5 }
 0x4c4   : >> { %v12116_v5 = vsub.s32 4, %v8871_v57  ;;  %v2114_v7 = vand.u32 31, %v2112_v58  ;;  %v9014_v29 = vsel %vm8967_vm5, %v8578_v41, %v1567_v62  ;;  %v2053_v10 = vadd.s32 %v8920_v36, %v8928_v30 }
 0x4c5   : >> { %v2065_v9 = vclz %v6221_v15  ;;  %v1846_v27 = vmul.u32 %v8937_v32, %v1830_v56  ;;  %v1849_v24 = vadd.s32 1, %v8988_v50  ;;  %v9021_v31 = vshll.u32 %v2108_v2, 8 }
 0x4c6   : >> { %v9008_v3 = vsel %vm1484_vm0, %v12116_v5, %v8871_v57  ;;  %v2115_v57 = vsub.s32 32, %v2114_v7  ;;  %vm1848_vm15 = vc.u32 %v8994_v20, %v8987_v19  ;;  %v2117_v62 = vshll.u32 %v12092_v28, %v2114_v7 }
 0x4c7   : >> { %v6222_v40 = vadd.s32 4294967294, %v2065_v9  ;;  %v2120_v23 = vshll.u32 %v12093_v37, %v2114_v7  ;;  %vm2132_vm0 = vcmp.lt.s32.totalorder %v8996_v51, 1  ;;  %v1850_v36 = vsel %vm1848_vm15, %v1849_v24, %v8988_v50 }
 0x4c8   : >> { %v2118_v30 = vshrl.u32 %v12093_v37, %v2115_v57  ;;  %v2121_v32 = vshrl.u32 %v12094_v45, %v2115_v57  ;;  %v2123_v21 = vshll.u32 %v12094_v45, %v2114_v7  ;;  %v1851_v2 = vadd.s32 %v1850_v36, %v1846_v27 }
 0x4c9   : >> { %vm6223_vm4 = vcmp.lt.s32.totalorder %v6222_v40, 0  ;;  %v2124_v56 = vshrl.u32 %v12095_v18, %v2115_v57  ;;  %v2126_v55 = vshll.u32 %v12095_v18, %v2114_v7  ;;  %v2127_v16 = vshrl.u32 %v12096_v46, %v2115_v57 }
 0x4ca   : >> { %v2068_v14 = vsel %vm6223_vm4, 0, %v6222_v40  ;;  %v2119_v58 = vor.u32 %v2118_v30, %v2117_v62  ;;  %v2122_v15 = vor.u32 %v2121_v32, %v2120_v23  ;;  %v1852_v24 = vadd.s32 536870912, %v1851_v2 }
 0x4cb   : >> { %v2069_v5 = vsub.s32 32, %v2068_v14  ;;  %v2070_v50 = vshll.u32 %v8978_v6, %v2068_v14  ;;  %v2073_v9 = vsub.s32 4294967266, %v2068_v14  ;;  %v2125_v8 = vor.u32 %v2124_v56, %v2123_v21 }
 0x4cc   : >> { %v2128_v11 = vor.u32 %v2127_v16, %v2126_v55  ;;  %v2129_v44 = vshll.u32 %v12096_v46, %v2114_v7  ;;  %v2130_v27 = vshrl.u32 %v12097_v25, %v2115_v57  ;;  %vm1999_vm8 = vcmp.lt.s32.totalorder %v8761_v17, 0 }
 0x4cd   : >> { %v2071_v36 = vshrl.u32 %v2053_v10, %v2069_v5  ;;  %v2074_v53 = vadd.s32 127, %v2073_v9  ;;  %v1853_v40 = vshrl.u32 %v1852_v24, 30  ;;  %vm2135_vm9 = vcmp.lt.s32.totalorder %v8996_v51, 4 }
 0x4ce   : >> { %v2131_v62 = vor.u32 %v2130_v27, %v2129_v44  ;;  %vm2133_vm14 = vcmp.lt.s32.totalorder %v8996_v51, 2  ;;  %vm2134_vm12 = vcmp.lt.s32.totalorder %v8996_v51, 3  ;;  %v2137_v6 = vsel %vm2135_vm9, %v2125_v8, 2102212464 }
 0x4cf   : >> { %v2072_v23 = vor.u32 %v2071_v36, %v2070_v50  ;;  %v2075_v30 = vshll.u32 %v2074_v53, 23  ;;  %v1854_v32 = vshll.u32 %v1853_v40, 30  ;;  %v2116_v7 = vshrl.u32 %v12092_v28, %v2115_v57 }
 0x4d0   : >> { %v2140_v21 = vsel %vm2132_vm0, %v2119_v58, %v2122_v15  ;;  %v2141_v56 = vsel %vm2135_vm9, %v2128_v11, 920167782  ;;  %v2144_v10 = vsel %vm2132_vm0, %v2122_v15, %v2125_v8  ;;  %v2145_v55 = vsel %vm2135_vm9, %v2131_v62, 1326507024 }
 0x4d1   : >> { %v2076_v14 = vor.u32 4788187, %v2075_v30  ;;  %v9047_v44 = vsub.s32 %v1851_v2, %v1854_v32  ;;  %v2136_v16 = vsel %vm2132_vm0, %v2116_v7, %v2119_v58  ;;  %v2138_v53 = vsel %vm2134_vm12, %v2122_v15, %v2137_v6 }
 0x4d2   : >> { %v12117_v5 = vand.u32 2147483647, %v8761_v17  ;;  %v2079_v50 = vcvt.s32.f32 %v2072_v23  ;;  %v2142_v9 = vsel %vm2134_vm12, %v2125_v8, %v2141_v56  ;;  %v2146_v2 = vsel %vm2134_vm12, %v2128_v11, %v2145_v55 }
 0x4d3   : >> { %v1897_v24 = vand.u32 2139095040, %v8884_v48  ;;  %v2077_v27 = vand.u32 2147483647, %v2076_v14  ;;  %vm1793_vm0 = vcmp.lt.s32.totalorder %v8834_v12, 0  ;;  %v1857_v58 = vsub.s32 0, %v9047_v44 }
 0x4d4   : >> { %vm9055_vm15 = vcmp.le.f32.partialorder %v12117_v5, 0.7853982  ;;  %v2143_v15 = vsel %vm2133_vm14, %v2140_v21, %v2142_v9  ;;  %v2147_v36 = vsel %vm2133_vm14, %v2144_v10, %v2146_v2  ;;  %6919 = vcosq.f32 %v9001_v26 }
 0x4d5   : >> { %v9071_v62 = vmul.u32.u64.low %v9021_v31, %v2147_v36  ;;  %v9072_v6 = vmul.u32.u64.high %v9021_v31, %v2147_v36, %v9071_v62  ;;  %v9075_v8 = vmul.u32.u64.low %v9021_v31, %v2143_v15  ;;  %v9076_v11 = vmul.u32.u64.high %v9021_v31, %v2143_v15, %v9075_v8 }
 0x4d6   : >> { %v2080_v23 = vmul.f32 %v2079_v50, %v2077_v27  ;;  %v6213_v30 = vmin.u32 %v1857_v58, %v9047_v44  ;;  %v1898_v32 = vshrl.u32 %v1897_v24, 23  ;;  %6921 = vsinq.f32 %v9001_v26 }
 0x4d7   : >> { %v12120_v7 = vsub.s32 4, %v8960_v43  ;;  %v2139_v56 = vsel %vm2133_vm14, %v2136_v16, %v2138_v53  ;;  %v12121_v10 = vand.u32 2147483647, %v8884_v48  ;;  %6923 = vcosq.f32 %v9014_v29 }
 0x4d8   : >> { %v2081_v14 = vxor.u32 2147483648, %v2080_v23  ;;  %v1859_v5 = vclz %v6213_v30  ;;  %v6216_v50 = vadd.s32 4294967169, %v1898_v32  ;;  %6925 = vsinq.f32 %v9014_v29 }
 0x4d9   : >> { %v9086_v21 = vsel %vm1999_vm8, %v12120_v7, %v8960_v43  ;;  %v1901_v55 = vand.u32 8388607, %v12121_v10  ;;  %v1877_v26 = vsub.s32 4, %v1853_v40  ;;  %vm2157_vm4 = vc.u32 %v9072_v6, %v9075_v8 }
 0x4da   : >> { %v2158_v9 = vadd.s32 1, %v9076_v11  ;;  %v2082_v43 = vsel %vm1999_vm8, %v2081_v14, %v2080_v23  ;;  %v6214_v51 = vadd.s32 4294967294, %v1859_v5  ;;  %v2155_v16 = vmul.u32 %v9021_v31, %v2139_v56 }
 0x4db   : >> { %v1904_v53 = vadd.s32 1, %v6216_v50  ;;  %v1847_v2 = vadd.s32 %v8987_v19, %v8994_v20  ;;  %v1902_v27 = vor.u32 8388608, %v1901_v55  ;;  %v9105_v29 = vsel %vm8811_vm7, 0, %v8855_v22 }
 0x4dc   : >> { %v2159_v24 = vsel %vm2157_vm4, %v2158_v9, %v9076_v11  ;;  %v9110_v58 = vsel %vm9055_vm15, %v8761_v17, %v2082_v43  ;;  %vm6215_vm8 = vcmp.lt.s32.totalorder %v6214_v51, 0  ;;  %v9114_v19 = vsel %vm1793_vm0, %v1877_v26, %v1853_v40 }
 0x4dd   : >> { %v2160_v15 = vadd.s32 %v2159_v24, %v2155_v16  ;;  %vm1905_vm9 = vcmp.gt.s32.totalorder %v1904_v53, 0  ;;  %v1862_v31 = vsel %vm6215_vm8, 0, %v6214_v51  ;;  %v1681_v36 = vxor.u32 2147483648, %v8911_v49 }
 0x4de   : >> { %v1906_v20 = vsel %vm1905_vm9, %v1904_v53, 0  ;;  %v1863_v62 = vsub.s32 32, %v1862_v31  ;;  %v1867_v13 = vsub.s32 4294967266, %v1862_v31  ;;  %v9118_v11 = vand.u32 3, %v9105_v29  ;;  %v9126_v7 = vpop.eup %6919 }
 0x4df   : >> { %v2161_v22 = vadd.s32 536870912, %v2160_v15  ;;  %6927 = vcosq.f32 %v9110_v58  ;;  %v9122_v23 = vadd.s32 %v9075_v8, %v9072_v6  ;;  %v1908_v30 = vand.u32 31, %v1906_v20 }
 0x4e0   : >> { %v9124_v32 = vshll.u32 %v1902_v27, 8  ;;  %v1864_v40 = vshll.u32 %v9047_v44, %v1862_v31  ;;  %v1865_v56 = vshrl.u32 %v1847_v2, %v1863_v62  ;;  %v1868_v10 = vadd.s32 127, %v1867_v13  ;;  %v9131_v14 = vpop.eup %6921 }
 0x4e1   : >> { %v9129_v55 = vshrl.u32 %v2161_v22, 30  ;;  %v1907_v5 = vshrl.u32 %v1906_v20, 5  ;;  %v1909_v50 = vsub.s32 32, %v1908_v30  ;;  %v1911_v26 = vshll.u32 %v12092_v28, %v1908_v30  ;;  %v9135_v8 = vpop.eup %6923 }
 0x4e2   : >> { %v1866_v9 = vor.u32 %v1865_v56, %v1864_v40  ;;  %v1869_v43 = vshll.u32 %v1868_v10, 23  ;;  %v1914_v44 = vshll.u32 %v12093_v37, %v1908_v30  ;;  %v9139_v16 = vpop.eup %6925  ;;  %v1917_v24 = vshll.u32 %v12094_v45, %v1908_v30 }
 0x4e3   : >> { %v2163_v51 = vshll.u32 %v9129_v55, 30  ;;  %v1912_v53 = vshrl.u32 %v12093_v37, %v1909_v50  ;;  %v1915_v2 = vshrl.u32 %v12094_v45, %v1909_v50  ;;  %v1918_v27 = vshrl.u32 %v12095_v18, %v1909_v50 }
 0x4e4   : >> { %v1870_v31 = vor.u32 4788187, %v1869_v43  ;;  %v1910_v62 = vshrl.u32 %v12092_v28, %v1909_v50  ;;  %v9151_v13 = vsel %vm8956_vm3, 0, %v8869_v34  ;;  %v12122_v22 = vand.u32 2147483647, %v8834_v12 }
 0x4e5   : >> { %v9145_v20 = vsub.s32 %v2160_v15, %v2163_v51  ;;  %v1873_v40 = vcvt.s32.f32 %v1866_v9  ;;  %v1913_v45 = vor.u32 %v1912_v53, %v1911_v26  ;;  %v1916_v56 = vor.u32 %v1915_v2, %v1914_v44 }
 0x4e6   : >> { %vm9155_vm7 = vcmp.le.f32.partialorder %v12122_v22, 0.7853982  ;;  %v1919_v10 = vor.u32 %v1918_v27, %v1917_v24  ;;  %v1871_v43 = vand.u32 2147483647, %v1870_v31  ;;  %v1920_v28 = vshll.u32 %v12095_v18, %v1908_v30 }
 0x4e7   : >> { %v2166_v15 = vsub.s32 0, %v9145_v20  ;;  %v1921_v51 = vshrl.u32 %v12096_v46, %v1909_v50  ;;  %v1923_v4 = vshll.u32 %v12096_v46, %v1908_v30  ;;  %v1924_v34 = vshrl.u32 %v12097_v25, %v1909_v50 }
 0x4e8   : >> { %vm1926_vm3 = vcmp.lt.s32.totalorder %v1907_v5, 1  ;;  %vm1928_vm14 = vcmp.lt.s32.totalorder %v1907_v5, 3  ;;  %v1874_v22 = vmul.f32 %v1873_v40, %v1871_v43  ;;  %vm1929_vm12 = vcmp.lt.s32.totalorder %v1907_v5, 4 }
 0x4e9   : >> { %v6225_v6 = vmin.u32 %v2166_v15, %v9145_v20  ;;  %v1922_v9 = vor.u32 %v1921_v51, %v1920_v28  ;;  %v9165_v26 = vpop.eup %6927  ;;  %v1925_v44 = vor.u32 %v1924_v34, %v1923_v4  ;;  %v1930_v53 = vsel %vm1926_vm3, %v1910_v62, %v1913_v45 }
 0x4ea   : >> { %v1931_v2 = vsel %vm1929_vm12, %v1919_v10, 2102212464  ;;  %v1934_v18 = vsel %vm1926_vm3, %v1913_v45, %v1916_v56  ;;  %v1875_v24 = vxor.u32 2147483648, %v1874_v22  ;;  %vm1679_vm4 = vcmp.lt.s32.totalorder %v9118_v11, 2 }
 0x4eb   : >> { %v2168_v27 = vclz %v6225_v6  ;;  %v1932_v46 = vsel %vm1928_vm14, %v1916_v56, %v1931_v2  ;;  %v1935_v25 = vsel %vm1929_vm12, %v1922_v9, 920167782  ;;  %vm1927_vm8 = vcmp.lt.s32.totalorder %v1907_v5, 2 }
 0x4ec   : >> { %v1936_v30 = vsel %vm1928_vm14, %v1919_v10, %v1935_v25  ;;  %v1938_v50 = vsel %vm1926_vm3, %v1916_v56, %v1919_v10  ;;  %v1939_v31 = vsel %vm1929_vm12, %v1925_v44, 1326507024  ;;  %v1876_v40 = vsel %vm1793_vm0, %v1875_v24, %v1874_v22 }
 0x4ed   : >> { %v6226_v62 = vadd.s32 4294967294, %v2168_v27  ;;  %v1937_v43 = vsel %vm1927_vm8, %v1934_v18, %v1936_v30  ;;  %v1940_v45 = vsel %vm1928_vm14, %v1922_v9, %v1939_v31  ;;  %v1933_v15 = vsel %vm1927_vm8, %v1930_v53, %v1932_v46 }
 0x4ee   : >> { %v1941_v6 = vsel %vm1927_vm8, %v1938_v50, %v1940_v45  ;;  %v9177_v28 = vmul.u32.u64.low %v9124_v32, %v1937_v43  ;;  %v9178_v51 = vmul.u32.u64.high %v9124_v32, %v1937_v43, %v9177_v28  ;;  %v9184_v4 = vsel %vm9155_vm7, %v8834_v12, %v1876_v40 }
 0x4ef   : >> { %vm6227_vm9 = vcmp.lt.s32.totalorder %v6226_v62, 0  ;;  %v9187_v56 = vmul.u32.u64.low %v9124_v32, %v1941_v6  ;;  %v9188_v10 = vmul.u32.u64.high %v9124_v32, %v1941_v6, %v9187_v56  ;;  %6929 = vsinq.f32 %v9110_v58 }
 0x4f0   : >> { %v2171_v5 = vsel %vm6227_vm9, 0, %v6226_v62  ;;  %vm1680_vm0 = vcmp.eq.s32.totalorder %v9118_v11, 0  ;;  %vm1683_vm3 = vcmp.eq.s32.totalorder %v9118_v11, 2  ;;  %vm1677_vm14 = vweird.f32 %v8557_v42 }
 0x4f1   : >> { %v2172_v34 = vsub.s32 32, %v2171_v5  ;;  %v2176_v22 = vsub.s32 4294967266, %v2171_v5  ;;  %v1682_v9 = vsel %vm1680_vm0, %v8903_v47, %v1681_v36  ;;  %v12125_v44 = vxor.u32 2147483648, %v8903_v47 }
 0x4f2   : >> { %6931 = vcosq.f32 %v9184_v4  ;;  %v1949_v58 = vmul.u32 %v9124_v32, %v1933_v15  ;;  %v1952_v2 = vadd.s32 1, %v9178_v51  ;;  %v1781_v18 = vand.u32 3, %v9151_v13 }
 0x4f3   : >> { %v1685_v53 = vsel %vm1683_vm3, %v12125_v44, %v8911_v49  ;;  %v2173_v24 = vshll.u32 %v9145_v20, %v2171_v5  ;;  %v2174_v27 = vshrl.u32 %v9122_v23, %v2172_v34  ;;  %v2177_v46 = vadd.s32 127, %v2176_v22 }
 0x4f4   : >> { %vm1951_vm12 = vc.u32 %v9188_v10, %v9177_v28  ;;  %v1686_v30 = vsel %vm1679_vm4, %v1682_v9, %v1685_v53  ;;  %vm1780_vm8 = vweird.f32 %v8565_v39  ;;  %v1784_v32 = vxor.u32 2147483648, %v9131_v14 }
 0x4f5   : >> { %v1953_v25 = vsel %vm1951_vm12, %v1952_v2, %v9178_v51  ;;  %v2175_v50 = vor.u32 %v2174_v27, %v2173_v24  ;;  %v2178_v31 = vshll.u32 %v2177_v46, 23  ;;  %vm1783_vm9 = vcmp.eq.s32.totalorder %v1781_v18, 0 }
 0x4f6   : >> { %v1954_v40 = vadd.s32 %v1953_v25, %v1949_v58  ;;  %vm2102_vm0 = vcmp.lt.s32.totalorder %v8879_v60, 0  ;;  %v1785_v23 = vsel %vm1783_vm9, %v9126_v7, %v1784_v32  ;;  %v1787_v20 = vxor.u32 2147483648, %v9126_v7 }
 0x4f7   : >> { %v2504_v62 = vadd.s32 3, %v9105_v29  ;;  %v2608_v43 = vadd.s32 3, %v9151_v13  ;;  %v2179_v11 = vor.u32 4788187, %v2178_v31  ;;  %vm1786_vm4 = vcmp.eq.s32.totalorder %v1781_v18, 2 }
 0x4f8   : >> { %v1955_v45 = vadd.s32 536870912, %v1954_v40  ;;  %v9221_v15 = vsel %vm8820_vm10, 0, %v8861_v52  ;;  %vm1896_vm3 = vcmp.lt.s32.totalorder %v8884_v48, 0  ;;  %vm1782_vm12 = vcmp.lt.s32.totalorder %v1781_v18, 2 }
 0x4f9   : >> { %v1788_v6 = vsel %vm1786_vm4, %v1787_v20, %v9131_v14  ;;  %v2505_v51 = vand.u32 3, %v2504_v62  ;;  %v2609_v56 = vand.u32 3, %v2608_v43  ;;  %v12126_v5 = vand.u32 2147483647, %v8879_v60  ;;  %v9231_v54 = vpop.eup %6929 }
 0x4fa   : >> { %v2180_v13 = vand.u32 2147483647, %v2179_v11  ;;  %v2182_v34 = vcvt.s32.f32 %v2175_v50  ;;  %v1956_v22 = vshrl.u32 %v1955_v45, 30  ;;  %v1789_v9 = vsel %vm1782_vm12, %v1785_v23, %v1788_v6 }
 0x4fb   : >> { %vm9227_vm9 = vcmp.le.f32.partialorder %v12126_v5, 0.7853982  ;;  %v1687_v52 = vsel %vm1677_vm14, nan, %v1686_v30  ;;  %v1790_v44 = vsel %vm1780_vm8, nan, %v1789_v9  ;;  %vm2507_vm10 = vcmp.eq.s32.totalorder %v2505_v51, 0 }
 0x4fc   : >> { %v1472_v53 = vand.u32 3, %v9221_v15  ;;  %v2183_v58 = vmul.f32 %v2182_v34, %v2180_v13  ;;  %v1957_v2 = vshll.u32 %v1956_v22, 30  ;;  %v2509_v18 = vsel %vm2507_vm10, %v8903_v47, %v1681_v36  ;;  %v9241_v24 = vpop.eup %6931 }
 0x4fd   : >> { %vm2510_vm4 = vcmp.eq.s32.totalorder %v2505_v51, 2  ;;  %v1980_v27 = vsub.s32 4, %v1956_v22  ;;  %vm2506_vm12 = vcmp.lt.s32.totalorder %v2505_v51, 2  ;;  %v12129_v46 = vxor.u32 2147483648, %v8903_v47 }
 0x4fe   : >> { %vm2611_vm6 = vcmp.eq.s32.totalorder %v2609_v56, 0  ;;  %v2184_v30 = vxor.u32 2147483648, %v2183_v58  ;;  %v9246_v50 = vsub.s32 %v1954_v40, %v1957_v2  ;;  %vm2614_vm2 = vcmp.eq.s32.totalorder %v2609_v56, 2 }
 0x4ff   : >> { %v2512_v25 = vsel %vm2510_vm4, %v12129_v46, %v8911_v49  ;;  %vm2610_vm1 = vcmp.lt.s32.totalorder %v2609_v56, 2  ;;  %v2613_v36 = vsel %vm2611_vm6, %v9126_v7, %v1784_v32  ;;  %v2616_v62 = vsel %vm2614_vm2, %v1787_v20, %v9131_v14 }
 0x500   : >> { %v2513_v31 = vsel %vm2506_vm12, %v2509_v18, %v2512_v25  ;;  %v2185_v43 = vsel %vm2102_vm0, %v2184_v30, %v2183_v58  ;;  %v1960_v47 = vsub.s32 0, %v9246_v50  ;;  %v2617_v49 = vsel %vm2610_vm1, %v2613_v36, %v2616_v62 }
 0x501   : >> { %v2514_v23 = vsel %vm1677_vm14, nan, %v2513_v31  ;;  %6933 = vsinq.f32 %v9184_v4  ;;  %v2186_v11 = vsub.s32 4, %v9129_v55  ;;  %v1950_v45 = vadd.s32 %v9177_v28, %v9188_v10 }
 0x502   : >> { %v3039_v40 = vsel %vm8320_vm13, %v2514_v23, %v8557_v42  ;;  %v2618_v7 = vsel %vm1780_vm8, nan, %v2617_v49  ;;  %v6217_v14 = vmin.u32 %v1960_v47, %v9246_v50  ;;  %v9267_v32 = vsel %vm1896_vm3, %v1980_v27, %v1956_v22 }
 0x503   : >> { %v3040_v42 = vsel %vm8320_vm13, %v2618_v7, %v8565_v39  ;;  %vm1471_vm6 = vweird.f32 %v8560_v59  ;;  %v2188_v4 = vsel %vm9227_vm9, %v8879_v60, %v2185_v43  ;;  %v9278_v28 = vsel %vm8316_vm11, %v1687_v52, %v3039_v40 }
 0x504   : >> { %v9282_v10 = vsel %vm8316_vm11, %v1790_v44, %v3040_v42  ;;  %v1475_v20 = vxor.u32 2147483648, %v8915_v35  ;;  %v1962_v6 = vclz %v6217_v14  ;;  %vm1474_vm1 = vcmp.eq.s32.totalorder %v1472_v53, 0 }
 0x505   : >> { %v6854_v39 = vpack.i.bf16 %v9282_v10, %v9278_v28  ;;  %v1478_v51 = vxor.u32 2147483648, %v8913_v38  ;;  %vm1473_vm2 = vcmp.lt.s32.totalorder %v1472_v53, 2  ;;  %vm1477_vm14 = vcmp.eq.s32.totalorder %v1472_v53, 2 }
 0x506   : >> { %v1476_v56 = vsel %vm1474_vm1, %v8913_v38, %v1475_v20  ;;  %v1571_v5 = vsel %vm8967_vm5, 0, %v9008_v3  ;;  %6935 = vcosq.f32 %v2188_v4  ;;  %v6218_v13 = vadd.s32 4294967294, %v1962_v6 }
 0x507   : >> { %6855 = vrot.lane.b32.xlu1 %v6854_v39, %s7462_s29  ;;  %v1479_v34 = vsel %vm1477_vm14, %v1478_v51, %v8915_v35  ;;  %v1575_v22 = vand.u32 3, %v1571_v5  ;;  %v1578_v52 = vxor.u32 2147483648, %v9139_v16  ;;  %v1581_v44 = vxor.u32 2147483648, %v9135_v8 }
 0x508   : >> { %v1480_v9 = vsel %vm1473_vm2, %v1476_v56, %v1479_v34  ;;  %v2296_v58 = vadd.s32 3, %v9221_v15  ;;  %6937 = vsinq.f32 %v2188_v4  ;;  %vm6219_vm8 = vcmp.lt.s32.totalorder %v6218_v13, 0 }
 0x509   : >> { %vm1574_vm10 = vweird.f32 %v8578_v41  ;;  %v2400_v33 = vadd.s32 3, %v1571_v5  ;;  %v1965_v3 = vsel %vm6219_vm8, 0, %v6218_v13  ;;  %v1481_v53 = vsel %vm1471_vm6, nan, %v1480_v9 }
 0x50a   : >> { %v2297_v2 = vand.u32 3, %v2296_v58  ;;  %v1880_v18 = vsel %vm9155_vm7, 0, %v9114_v19  ;;  %v1966_v27 = vsub.s32 32, %v1965_v3  ;;  %v1970_v46 = vsub.s32 4294967266, %v1965_v3 }
 0x50b   : >> { %vm1577_vm5 = vcmp.eq.s32.totalorder %v1575_v22, 0  ;;  %vm1580_vm4 = vcmp.eq.s32.totalorder %v1575_v22, 2  ;;  %v9303_v25 = vpop.eup %6933  ;;  %v12130_v15 = vand.u32 2147483647, %v8884_v48  ;;  %v1967_v31 = vshll.u32 %v9246_v50, %v1965_v3 }
 0x50c   : >> { %v1579_v23 = vsel %vm1577_vm5, %v9135_v8, %v1578_v52  ;;  %v1582_v36 = vsel %vm1580_vm4, %v1581_v44, %v9139_v16  ;;  %vm2299_vm1 = vcmp.eq.s32.totalorder %v2297_v2, 0  ;;  %v1968_v19 = vshrl.u32 %v1950_v45, %v1966_v27 }
 0x50d   : >> { %vm9307_vm12 = vcmp.le.f32.partialorder %v12130_v15, 0.7853982  ;;  %v1971_v37 = vadd.s32 127, %v1970_v46  ;;  %v2301_v62 = vsel %vm2299_vm1, %v8913_v38, %v1475_v20  ;;  %vm2302_vm7 = vcmp.eq.s32.totalorder %v2297_v2, 2 }
 0x50e   : >> { %vm1576_vm2 = vcmp.lt.s32.totalorder %v1575_v22, 2  ;;  %vm2298_vm14 = vcmp.lt.s32.totalorder %v2297_v2, 2  ;;  %v2304_v43 = vsel %vm2302_vm7, %v1478_v51, %v8915_v35  ;;  %v2401_v47 = vand.u32 3, %v2400_v33 }
 0x50f   : >> { %v1969_v49 = vor.u32 %v1968_v19, %v1967_v31  ;;  %v1972_v40 = vshll.u32 %v1971_v37, 23  ;;  %v1583_v7 = vsel %vm1576_vm2, %v1579_v23, %v1582_v36  ;;  %v2305_v14 = vsel %vm2298_vm14, %v2301_v62, %v2304_v43 }
 0x510   : >> { %v2306_v50 = vsel %vm1471_vm6, nan, %v2305_v14  ;;  %vm2403_vm8 = vcmp.eq.s32.totalorder %v2401_v47, 0  ;;  %vm2406_vm5 = vcmp.eq.s32.totalorder %v2401_v47, 2  ;;  %v1884_v42 = vand.u32 3, %v1880_v18  ;;  %v9318_v45 = vpop.eup %6935 }
 0x511   : >> { %v1973_v4 = vor.u32 4788187, %v1972_v40  ;;  %vm2402_vm4 = vcmp.lt.s32.totalorder %v2401_v47, 2  ;;  %v2405_v38 = vsel %vm2403_vm8, %v9135_v8, %v1578_v52  ;;  %v2408_v20 = vsel %vm2406_vm5, %v1581_v44, %v9139_v16 }
 0x512   : >> { %v1584_v35 = vsel %vm1574_vm10, nan, %v1583_v7  ;;  %v2409_v6 = vsel %vm2402_vm4, %v2405_v38, %v2408_v20  ;;  %v3037_v39 = vsel %vm8320_vm13, %v2306_v50, %v8560_v59  ;;  %v1887_v51 = vxor.u32 2147483648, %v9303_v25  ;;  %v9328_v56 = vpop.eup %6937 }
 0x513   : >> { %v1974_v5 = vand.u32 2147483647, %v1973_v4  ;;  %v1976_v13 = vcvt.s32.f32 %v1969_v49  ;;  %v2410_v34 = vsel %vm1574_vm10, nan, %v2409_v6  ;;  %v9334_v8 = vsel %vm8316_vm11, %v1481_v53, %v3037_v39 }
 0x514   : >> { %v3038_v16 = vsel %vm8320_vm13, %v2410_v34, %v8578_v41  ;;  %v9340_v22 = vmul.f32 0.15811388, %v9334_v8  ;;  %vm1886_vm6 = vcmp.eq.s32.totalorder %v1884_v42, 0  ;;  %v1890_v59 = vxor.u32 2147483648, %v9241_v24 }
 0x515   : >> { %v1977_v9 = vmul.f32 %v1976_v13, %v1974_v5  ;;  %v9345_v52 = vsel %vm8316_vm11, %v1584_v35, %v3038_v16  ;;  %vm1889_vm10 = vcmp.eq.s32.totalorder %v1884_v42, 2  ;;  %v1983_v44 = vsel %vm9307_vm12, 0, %v9267_v32 }
 0x516   : >> { %v9351_v58 = vmul.f32 0.15811388, %v9345_v52  ;;  %v6849_v41 = vpack.i.bf16 %v9345_v52, %v9334_v8  ;;  %v1888_v33 = vsel %vm1886_vm6, %v9241_v24, %v1887_v51  ;;  %v1891_v3 = vsel %vm1889_vm10, %v1890_v59, %v9303_v25 }
 0x517   : >> { %v2187_v53 = vsel %vm2102_vm0, %v2186_v11, %v9129_v55  ;;  %v1978_v2 = vxor.u32 2147483648, %v1977_v9  ;;  %vm1885_vm1 = vcmp.lt.s32.totalorder %v1884_v42, 2  ;;  %v2712_v27 = vadd.s32 3, %v1880_v18 }
 0x518   : >> { %6850 = vrot.lane.b32.xlu0 %v6849_v41, %s7462_s29  ;;  %v3235_v32 = vmul.f32 %v9340_v22, %v12133_v0  ;;  %v3236_v46 = vmul.f32 %v9351_v58, %v12134_v1  ;;  %v2816_v15 = vadd.s32 3, %v1983_v44  ;;  %v2086_v31 = vsel %vm9055_vm15, 0, %v9086_v21 }
 0x519   : >> { %v1979_v23 = vsel %vm1896_vm3, %v1978_v2, %v1977_v9  ;;  %v9373_v55 = vmul.f32 0.15811388, %v9278_v28  ;;  %v9376_v11 = vmul.f32 0.15811388, %v9282_v10  ;;  %v1892_v18 = vsel %vm1885_vm1, %v1888_v33, %v1891_v3 }
 0x51a   : >> { %v1982_v36 = vsel %vm9307_vm12, %v8884_v48, %v1979_v23  ;;  %v3323_v19 = vpack.c.bf16 %v3236_v46, %v3235_v32  ;;  %v9381_v37 = vand.u32 3, %v1983_v44  ;;  %v2713_v62 = vand.u32 3, %v2712_v27  ;;  %v12136_v44 = vld [vmem:[#allocation153_spill] sm:$0xff] }
 0x51b   : >> { %6939 = vcosq.f32 %v1982_v36  ;;  %v9383_v57 = vand.u32 3, %v2816_v15  ;;  %v2090_v21 = vand.u32 3, %v2086_v31  ;;  %v2093_v43 = vxor.u32 2147483648, %v9231_v54 }
 0x51c   : >> { %6941 = vsinq.f32 %v1982_v36  ;;  %vm12135_vm15 = vcmask 326656   ;;  %vm1883_vm0 = vweird.f32 %v8834_v12  ;;  %vm2715_vm3 = vcmp.eq.s32.totalorder %v2713_v62, 0 }
 0x51d   : >> { %6525 = vmatprep.mubr.msk.bf16.mxu1 %vm12135_vm15, %v3323_v19  ;;  %vm2718_vm7 = vcmp.eq.s32.totalorder %v2713_v62, 2  ;;  %v1893_v47 = vsel %vm1883_vm0, nan, %v1892_v18  ;;  %vm2714_vm2 = vcmp.lt.s32.totalorder %v2713_v62, 2  ;;  %v2717_v30 = vsel %vm2715_vm3, %v9241_v24, %v1887_v51 }
 0x51e   : >> { %v2720_v49 = vsel %vm2718_vm7, %v1890_v59, %v9303_v25  ;;  %vm2089_vm12 = vweird.f32 %v8761_v17  ;;  %vm2091_vm14 = vcmp.lt.s32.totalorder %v2090_v21, 2  ;;  %vm2092_vm8 = vcmp.eq.s32.totalorder %v2090_v21, 0 }
 0x51f   : >> { %v2721_v40 = vsel %vm2714_vm2, %v2717_v30, %v2720_v49  ;;  %vm1992_vm5 = vcmp.eq.s32.totalorder %v9381_v37, 2  ;;  %vm2822_vm4 = vcmp.eq.s32.totalorder %v9383_v57, 2  ;;  %v2094_v14 = vsel %vm2092_vm8, %v9165_v26, %v2093_v43 }
 0x520   : >> { %v2722_v7 = vsel %vm1883_vm0, nan, %v2721_v40  ;;  %vm2095_vm6 = vcmp.eq.s32.totalorder %v2090_v21, 2  ;;  %v2096_v50 = vxor.u32 2147483648, %v9165_v26  ;;  %vm1989_vm10 = vcmp.eq.s32.totalorder %v9381_v37, 0 }
 0x521   : >> { %vm2819_vm1 = vcmp.eq.s32.totalorder %v9383_v57, 0  ;;  %v3041_v24 = vsel %vm8320_vm13, %v2722_v7, %v8834_v12  ;;  %v2189_v25 = vsel %vm9227_vm9, 0, %v2187_v53  ;;  %vm2192_vm15 = vweird.f32 %v8879_v60 }
 0x522   : >> { %v2196_v42 = vxor.u32 2147483648, %v9328_v56  ;;  %vm1988_vm0 = vcmp.lt.s32.totalorder %v9381_v37, 2  ;;  %vm2818_vm3 = vcmp.lt.s32.totalorder %v9383_v57, 2  ;;  %v9408_v4 = vsel %vm8316_vm11, %v1893_v47, %v3041_v24 }
 0x523   : >> { %v2097_v38 = vsel %vm2095_vm6, %v2096_v50, %v9231_v54  ;;  %v2193_v20 = vand.u32 3, %v2189_v25  ;;  %v2199_v12 = vxor.u32 2147483648, %v9318_v45  ;;  %vm1986_vm7 = vweird.f32 %v8884_v48 }
 0x524   : >> { %v9414_v29 = vmul.f32 0.15811388, %v9408_v4  ;;  %v2098_v35 = vsel %vm2091_vm14, %v2094_v14, %v2097_v38  ;;  %v2920_v6 = vadd.s32 3, %v2086_v31  ;;  %v3024_v39 = vadd.s32 3, %v2189_v25 }
 0x525   : >> { %v2099_v51 = vsel %vm2089_vm12, nan, %v2098_v35  ;;  %vm2194_vm9 = vcmp.lt.s32.totalorder %v2193_v20, 2  ;;  %vm2195_vm2 = vcmp.eq.s32.totalorder %v2193_v20, 0  ;;  %vm2198_vm8 = vcmp.eq.s32.totalorder %v2193_v20, 2  ;;  %v6940_v59 = vpop.eup %6939 }
 0x526   : >> { %v2197_v5 = vsel %vm2195_vm2, %v9318_v45, %v2196_v42  ;;  %v2200_v13 = vsel %vm2198_vm8, %v2199_v12, %v9328_v56  ;;  %v2921_v34 = vand.u32 3, %v2920_v6  ;;  %v3025_v16 = vand.u32 3, %v3024_v39  ;;  %v6942_v53 = vpop.eup %6941 }
 0x527   : >> { %v2201_v9 = vsel %vm2194_vm9, %v2197_v5, %v2200_v13  ;;  %v9423_v41 = vmul.f32 %v12136_v44, %v9334_v8  ;;  %v9427_v33 = vmul.f32 %v12136_v44, %v9345_v52  ;;  %v9431_v3 = vmul.f32 %v12136_v44, %v9278_v28 }
 0x528   : >> { %v1993_v2 = vxor.u32 2147483648, %v6940_v59  ;;  %v2202_v27 = vsel %vm2192_vm15, nan, %v2201_v9  ;;  %vm2922_vm14 = vcmp.lt.s32.totalorder %v2921_v34, 2  ;;  %vm2923_vm6 = vcmp.eq.s32.totalorder %v2921_v34, 0  ;;  %v12164_v9 = vld [vmem:[#allocation32_spill] sm:$0xff] }
 0x529   : >> { %v1990_v32 = vxor.u32 2147483648, %v6942_v53  ;;  %v2925_v46 = vsel %vm2923_vm6, %v9165_v26, %v2093_v43  ;;  %vm2926_vm9 = vcmp.eq.s32.totalorder %v2921_v34, 2  ;;  %vm3026_vm2 = vcmp.lt.s32.totalorder %v3025_v16, 2 }
 0x52a   : >> { %v1994_v15 = vsel %vm1992_vm5, %v1993_v2, %v6942_v53  ;;  %v2824_v31 = vsel %vm2822_vm4, %v1993_v2, %v6942_v53  ;;  %v2928_v23 = vsel %vm2926_vm9, %v2096_v50, %v9231_v54  ;;  %vm3027_vm8 = vcmp.eq.s32.totalorder %v3025_v16, 0  ;;  %v12140_v2 = vld [vmem:[#allocation13_spill] sm:$0xff]  ;;  %v12151_v53 = vld [vmem:[#allocation24_spill] sm:$0xff] }
 0x52b   : >> { %v1991_v18 = vsel %vm1989_vm10, %v6940_v59, %v1990_v32  ;;  %v2821_v36 = vsel %vm2819_vm1, %v6940_v59, %v1990_v32  ;;  %v2929_v19 = vsel %vm2922_vm14, %v2925_v46, %v2928_v23  ;;  %v3029_v26 = vsel %vm3027_vm8, %v9318_v45, %v2196_v42  ;;  %v12141_v32 = vld [vmem:[#allocation14_spill] sm:$0xff]  ;;  %v12143_v23 = vld [vmem:[#allocation16_spill] sm:$0xff]  ;;  %v12158_v59 = vld [vmem:[#allocation29_spill] sm:$0xff] }
 0x52c   : >> { %v1995_v62 = vsel %vm1988_vm0, %v1991_v18, %v1994_v15  ;;  %v2825_v21 = vsel %vm2818_vm3, %v2821_v36, %v2824_v31  ;;  %v2930_v43 = vsel %vm2089_vm12, nan, %v2929_v19  ;;  %vm3030_vm5 = vcmp.eq.s32.totalorder %v3025_v16, 2  ;;  %v12142_v15 = vld [vmem:[#allocation15_spill] sm:$0xff]  ;;  %v12144_v36 = vld [vmem:[#allocation17_spill] sm:$0xff] }
 0x52d   : >> { %v1996_v54 = vsel %vm1986_vm7, nan, %v1995_v62  ;;  %v2826_v47 = vsel %vm1986_vm7, nan, %v2825_v21  ;;  %v3032_v30 = vsel %vm3030_vm5, %v2199_v12, %v9328_v56  ;;  %v3043_v45 = vsel %vm8320_vm13, %v2930_v43, %v8761_v17  ;;  %v12146_v21 = vld [vmem:[#allocation19_spill] sm:$0xff] }
 0x52e   : >> { %v3042_v37 = vsel %vm8320_vm13, %v2826_v47, %v8884_v48  ;;  %v3033_v57 = vsel %vm3026_vm2, %v3029_v26, %v3032_v30  ;;  %v9466_v49 = vsel %vm8316_vm11, %v2099_v51, %v3043_v45  ;;  %v9470_v40 = vmul.f32 %v12136_v44, %v9282_v10  ;;  %v12138_v48 = vld [vmem:[#allocation154_spill] sm:$0xff] }
 0x52f   : >> { %12137 = vst [vmem:[#allocation153_spill] sm:$0xff] %v9466_v49  ;;  %v9474_v56 = vsel %vm8316_vm11, %v1996_v54, %v3042_v37  ;;  %v3034_v17 = vsel %vm2192_vm15, nan, %v3033_v57  ;;  %v9479_v7 = vmul.f32 0.15811388, %v9466_v49  ;;  %v9483_v14 = vmul.f32 %v12138_v48, %v9334_v8  ;;  %v12145_v26 = vld [vmem:[#allocation18_spill] sm:$0xff]  ;;  %v12147_v54 = vld [vmem:[#allocation20_spill] sm:$0xff] }
 0x530   : >> { %v9486_v50 = vmul.f32 0.15811388, %v9474_v56  ;;  %v6859_v24 = vpack.i.bf16 %v9474_v56, %v9408_v4  ;;  %v3044_v25 = vsel %vm8320_vm13, %v3034_v17, %v8879_v60  ;;  %v9495_v42 = vmul.f32 %v12138_v48, %v9345_v52  ;;  %v12148_v37 = vld [vmem:[#allocation21_spill] sm:$0xff]  ;;  %v12149_v17 = vld [vmem:[#allocation22_spill] sm:$0xff] }
 0x531   : >> { %v9499_v38 = vsel %vm8316_vm11, %v2202_v27, %v3044_v25  ;;  %v9503_v20 = vmul.f32 %v12138_v48, %v9282_v10  ;;  %v9507_v12 = vmul.f32 %v12136_v44, %v9408_v4  ;;  %v9511_v35 = vmul.f32 %v12136_v44, %v9474_v56  ;;  %v12154_v25 = vld [vmem:[#allocation27_spill] sm:$0xff] }
 0x532   : >> { %12139 = vst [vmem:[#allocation154_spill] sm:$0xff] %v9499_v38  ;;  %6860 = vrot.lane.b32.xlu1 %v6859_v24, %s7462_s29  ;;  %v6864_v60 = vpack.i.bf16 %v9499_v38, %v9466_v49  ;;  %v9517_v6 = vmul.f32 0.15811388, %v9499_v38  ;;  %v9521_v39 = vmul.f32 %v12136_v44, %v9466_v49  ;;  %v9525_v51 = vmul.f32 %v12136_v44, %v9499_v38 }
 0x533   : >> { %v9529_v5 = vmul.f32 %v12138_v48, %v9408_v4  ;;  %v9533_v13 = vmul.f32 %v12138_v48, %v9474_v56  ;;  %v9537_v34 = vmul.f32 %v12138_v48, %v9466_v49  ;;  %v9541_v16 = vmul.f32 %v12138_v48, %v9499_v38  ;;  %v12367_v38 = vld [vmem:[#allocation92_spill] sm:$0xff] }
 0x534   : >> { %v9549_v44 = vmul.f32 %v12138_v48, %v9278_v28  ;;  %v9555_v27 = vmul.f32 %v9373_v55, %v12140_v2  ;;  %v9559_v46 = vmul.f32 %v9376_v11, %v12141_v32  ;;  %v9563_v31 = vmul.f32 %v9414_v29, %v12142_v15 }
 0x535   : >> { %v9567_v18 = vmul.f32 %v9486_v50, %v12143_v23  ;;  %v9572_v19 = vmul.f32 %v9479_v7, %v12144_v36  ;;  %v9576_v62 = vmul.f32 %v9517_v6, %v12145_v26  ;;  %v9580_v43 = vmul.f32 %v9340_v22, %v12146_v21  ;;  %v12153_v23 = vld [vmem:[#allocation26_spill] sm:$0xff] }
 0x536   : >> { %6865 = vrot.lane.b32.xlu1 %v6864_v60, %s7462_s29  ;;  %v9584_v47 = vmul.f32 %v9351_v58, %v12147_v54  ;;  %v9592_v57 = vmul.f32 %v9373_v55, %v12148_v37  ;;  %v9596_v48 = vmul.f32 %v9376_v11, %v12149_v17  ;;  %v12150_v60 = vld [vmem:[#allocation23_spill] sm:$0xff]  ;;  %v9608_v45 = vmul.f32 %v9486_v50, %v12151_v53  ;;  %v12156_v53 = vld [vmem:[#allocation28_spill] sm:$0xff]  ;;  %v12168_v21 = vld [vmem:[#allocation34_spill] sm:$0xff] }
 0x537   : >> { %v9604_v30 = vmul.f32 %v9414_v29, %v12150_v60  ;;  %v9614_v63 = vmul.f32 %v9479_v7, %v12152_v61  ;;  %v9618_v24 = vmul.f32 %v9517_v6, %v12153_v23  ;;  %v9622_v26 = vmul.f32 %v9340_v22, %v12154_v25  ;;  %v12160_v61 = vld [vmem:[#allocation30_spill] sm:$0xff]  ;;  %v12162_v25 = vld [vmem:[#allocation31_spill] sm:$0xff]  ;;  %v12172_v17 = vld [vmem:[#allocation36_spill] sm:$0xff] }
 0x538   : >> { %v9628_v15 = vmul.f32 %v9351_v58, %v12156_v53  ;;  %v9632_v36 = vmul.f32 %v9373_v55, %v12158_v59  ;;  %v9636_v54 = vmul.f32 %v9376_v11, %v12160_v61  ;;  %v9642_v1 = vmul.f32 %v9414_v29, %v12162_v25  ;;  %v12166_v53 = vld [vmem:[#allocation33_spill] sm:$0xff]  ;;  %v12170_v25 = vld [vmem:[#allocation35_spill] sm:$0xff]  ;;  %v12176_v61 = vld [vmem:[#allocation38_spill] sm:$0xff] }
 0x539   : >> { %12155 = vst [vmem:[#allocation155_spill] sm:$0xff] %v9622_v26  ;;  %v9646_v60 = vmul.f32 %v9486_v50, %v12164_v9  ;;  %v9650_v32 = vmul.f32 %v9479_v7, %v12166_v53  ;;  %v9658_v23 = vmul.f32 %v9517_v6, %v12168_v21  ;;  %v9662_v0 = vmul.f32 %v9340_v22, %v12170_v25  ;;  %v12174_v37 = vld [vmem:[#allocation37_spill] sm:$0xff]  ;;  %v12178_v25 = vld [vmem:[#allocation39_spill] sm:$0xff]  ;;  %v12180_v9 = vld [vmem:[#allocation40_spill] sm:$0xff] }
 0x53a   : >> { %12157 = vst [vmem:[#allocation156_spill] sm:$0xff] %v9628_v15  ;;  %12159 = vst [vmem:[#allocation157_spill] sm:$0xff] %v9632_v36  ;;  %v9668_v53 = vmul.f32 %v9351_v58, %v12172_v17  ;;  %v9672_v59 = vmul.f32 %v9373_v55, %v12174_v37  ;;  %v9676_v2 = vmul.f32 %v9376_v11, %v12176_v61  ;;  %v12182_v17 = vld [vmem:[#allocation41_spill] sm:$0xff]  ;;  %v12191_v61 = vld [vmem:[#allocation46_spill] sm:$0xff]  ;;  %vm12239_vm12 = vcmask 1043456  }
 0x53b   : >> { %12161 = vst [vmem:[#allocation158_spill] sm:$0xff] %v9636_v54  ;;  %12163 = vst [vmem:[#allocation159_spill] sm:$0xff] %v9642_v1  ;;  %v9682_v36 = vmul.f32 %v9414_v29, %v12178_v25  ;;  %v9686_v1 = vmul.f32 %v9486_v50, %v12180_v9  ;;  %v12184_v54 = vld [vmem:[#allocation42_spill] sm:$0xff]  ;;  %v12186_v25 = vld [vmem:[#allocation43_spill] sm:$0xff]  ;;  %vm12242_vm10 = vcmask 326656  }
 0x53c   : >> { %12165 = vst [vmem:[#allocation160_spill] sm:$0xff] %v9646_v60  ;;  %12167 = vst [vmem:[#allocation161_spill] sm:$0xff] %v9650_v32  ;;  %v9690_v60 = vmul.f32 %v9479_v7, %v12182_v17  ;;  %v9698_v21 = vmul.f32 %v9517_v6, %v12184_v54  ;;  %v9702_v32 = vmul.f32 %v9340_v22, %v12186_v25  ;;  %v12189_v26 = vld [vmem:[#allocation45_spill] sm:$0xff]  ;;  %v12193_v25 = vld [vmem:[#allocation47_spill] sm:$0xff] }
 0x53d   : >> { %12169 = vst [vmem:[#allocation162_spill] sm:$0xff] %v9658_v23  ;;  %12171 = vst [vmem:[#allocation163_spill] sm:$0xff] %v9662_v0  ;;  %v12188_v23 = vld [vmem:[#allocation44_spill] sm:$0xff]  ;;  %v9712_v37 = vmul.f32 %v9373_v55, %v12189_v26  ;;  %v12199_v0 = vld [vmem:[#allocation50_spill] sm:$0xff] }
 0x53e   : >> { %12173 = vst [vmem:[#allocation164_spill] sm:$0xff] %v9668_v53  ;;  %12175 = vst [vmem:[#allocation165_spill] sm:$0xff] %v9672_v59  ;;  %v9708_v17 = vmul.f32 %v9351_v58, %v12188_v23  ;;  %v9716_v59 = vmul.f32 %v9376_v11, %v12191_v61  ;;  %v12195_v9 = vld [vmem:[#allocation48_spill] sm:$0xff]  ;;  %v12197_v23 = vld [vmem:[#allocation49_spill] sm:$0xff]  ;;  %v9738_v54 = vmul.f32 %v9517_v6, %v12199_v0 }
 0x53f   : >> { %12177 = vst [vmem:[#allocation166_spill] sm:$0xff] %v9676_v2  ;;  %12179 = vst [vmem:[#allocation167_spill] sm:$0xff] %v9682_v36  ;;  %v9722_v2 = vmul.f32 %v9414_v29, %v12193_v25  ;;  %v9726_v36 = vmul.f32 %v9486_v50, %v12195_v9  ;;  %v12201_v25 = vld [vmem:[#allocation51_spill] sm:$0xff]  ;;  %v12205_v53 = vld [vmem:[#allocation53_spill] sm:$0xff] }
 0x540   : >> { %12181 = vst [vmem:[#allocation168_spill] sm:$0xff] %v9686_v1  ;;  %12183 = vst [vmem:[#allocation169_spill] sm:$0xff] %v9690_v60  ;;  %v9730_v1 = vmul.f32 %v9479_v7, %v12197_v23  ;;  %v9742_v60 = vmul.f32 %v9340_v22, %v12201_v25  ;;  %v9752_v26 = vmul.f32 %v9373_v55, %v12205_v53  ;;  %v12207_v61 = vld [vmem:[#allocation54_spill] sm:$0xff]  ;;  %v12209_v25 = vld [vmem:[#allocation55_spill] sm:$0xff] }
 0x541   : >> { %12185 = vst [vmem:[#allocation170_spill] sm:$0xff] %v9698_v21  ;;  %12187 = vst [vmem:[#allocation171_spill] sm:$0xff] %v9702_v32  ;;  %v12203_v21 = vld [vmem:[#allocation52_spill] sm:$0xff]  ;;  %v12219_v32 = vld [vmem:[#allocation61_spill] sm:$0xff] }
 0x542   : >> { %12190 = vst [vmem:[#allocation172_spill] sm:$0xff] %v9712_v37  ;;  %12192 = vst [vmem:[#allocation173_spill] sm:$0xff] %v9716_v59  ;;  %v9748_v23 = vmul.f32 %v9351_v58, %v12203_v21  ;;  %v9756_v37 = vmul.f32 %v9376_v11, %v12207_v61  ;;  %v9762_v59 = vmul.f32 %v9414_v29, %v12209_v25  ;;  %v12211_v9 = vld [vmem:[#allocation56_spill] sm:$0xff]  ;;  %v12213_v21 = vld [vmem:[#allocation57_spill] sm:$0xff] }
 0x543   : >> { %12194 = vst [vmem:[#allocation174_spill] sm:$0xff] %v9722_v2  ;;  %12196 = vst [vmem:[#allocation175_spill] sm:$0xff] %v9726_v36  ;;  %v9766_v2 = vmul.f32 %v9486_v50, %v12211_v9  ;;  %v9770_v15 = vmul.f32 %v9479_v7, %v12213_v21  ;;  %v12215_v36 = vld [vmem:[#allocation58_spill] sm:$0xff]  ;;  %v12217_v25 = vld [vmem:[#allocation59_spill] sm:$0xff]  ;;  %v9792_v53 = vmul.f32 %v9373_v55, %v12219_v32 }
 0x544   : >> { %12198 = vst [vmem:[#allocation176_spill] sm:$0xff] %v9730_v1  ;;  %12200 = vst [vmem:[#allocation177_spill] sm:$0xff] %v9738_v54  ;;  %v9778_v0 = vmul.f32 %v9517_v6, %v12215_v36  ;;  %v9782_v1 = vmul.f32 %v9340_v22, %v12217_v25  ;;  %v12218_v54 = vld [vmem:[#allocation60_spill] sm:$0xff]  ;;  %v12221_v61 = vld [vmem:[#allocation62_spill] sm:$0xff] }
 0x545   : >> { %12202 = vst [vmem:[#allocation178_spill] sm:$0xff] %v9742_v60  ;;  %12204 = vst [vmem:[#allocation179_spill] sm:$0xff] %v9748_v23  ;;  %v9788_v21 = vmul.f32 %v9351_v58, %v12218_v54  ;;  %v12222_v25 = vld [vmem:[#allocation63_spill] sm:$0xff]  ;;  %v12224_v9 = vld [vmem:[#allocation64_spill] sm:$0xff] }
 0x546   : >> { %12206 = vst [vmem:[#allocation180_spill] sm:$0xff] %v9752_v26  ;;  %12208 = vst [vmem:[#allocation181_spill] sm:$0xff] %v9756_v37  ;;  %v9796_v26 = vmul.f32 %v9376_v11, %v12221_v61  ;;  %v9802_v37 = vmul.f32 %v9414_v29, %v12222_v25  ;;  %v12225_v54 = vld [vmem:[#allocation65_spill] sm:$0xff]  ;;  %v12226_v60 = vld [vmem:[#allocation66_spill] sm:$0xff] }
 0x547   : >> { %12210 = vst [vmem:[#allocation182_spill] sm:$0xff] %v9762_v59  ;;  %12212 = vst [vmem:[#allocation183_spill] sm:$0xff] %v9766_v2  ;;  %v9806_v59 = vmul.f32 %v9486_v50, %v12224_v9  ;;  %v9810_v2 = vmul.f32 %v9479_v7, %v12225_v54  ;;  %v9818_v36 = vmul.f32 %v9517_v6, %v12226_v60  ;;  %v12227_v25 = vld [vmem:[#allocation67_spill] sm:$0xff]  ;;  %v12229_v23 = vld [vmem:[#allocation69_spill] sm:$0xff] }
 0x548   : >> { %12214 = vst [vmem:[#allocation184_spill] sm:$0xff] %v9770_v15  ;;  %12216 = vst [vmem:[#allocation185_spill] sm:$0xff] %v9778_v0  ;;  %v9822_v15 = vmul.f32 %v9340_v22, %v12227_v25  ;;  %v12228_v0 = vld [vmem:[#allocation68_spill] sm:$0xff]  ;;  %v9832_v32 = vmul.f32 %v9373_v55, %v12229_v23  ;;  %v12230_v61 = vld [vmem:[#allocation70_spill] sm:$0xff] }
 0x549   : >> { %12220 = vst [vmem:[#allocation186_spill] sm:$0xff] %v9792_v53  ;;  %12223 = vst [vmem:[#allocation187_spill] sm:$0xff] %v9802_v37  ;;  %v9828_v54 = vmul.f32 %v9351_v58, %v12228_v0  ;;  %v9836_v53 = vmul.f32 %v9376_v11, %v12230_v61  ;;  %v12231_v22 = vld [vmem:[#allocation71_spill] sm:$0xff]  ;;  %v12232_v9 = vld [vmem:[#allocation72_spill] sm:$0xff] }
 0x54a   : >> { %v9842_v25 = vmul.f32 %v9414_v29, %v12231_v22  ;;  %v9846_v37 = vmul.f32 %v9486_v50, %v12232_v9  ;;  %v12233_v58 = vld [vmem:[#allocation73_spill] sm:$0xff]  ;;  %v12234_v61 = vld [vmem:[#allocation74_spill] sm:$0xff]  ;;  %vm12240_vm4 = vmmov %vm12239_vm12 }
 0x54b   : >> { %v9850_v0 = vmul.f32 %v9479_v7, %v12233_v58  ;;  %v9858_v60 = vmul.f32 %v9517_v6, %v12234_v61  ;;  %vm12244_vm1 = vmmov %vm12242_vm10  ;;  %v12357_v22 = vld [vmem:[#allocation88_spill] sm:$0xff]  ;;  %v12362_v23 = vld [vmem:[#allocation94_spill] sm:$0xff] }
 0x54c   : >> { %vm12246_vm15 = vmmov %vm12244_vm1 }
 0x54d   : >> { %vm12248_vm0 = vmmov %vm12244_vm1 }
 0x54e   : >> { %vm12250_vm3 = vmmov %vm12248_vm0 }
 0x54f   : >> { %vm12252_vm7 = vmmov %vm12248_vm0 }
 0x550   : >> { %vm12254_vm14 = vmmov %vm12248_vm0 }
 0x551   : >> { %vm12258_vm6 = vmmov %vm12248_vm0 }
 0x552   : >> { %vm12262_vm9 = vmmov %vm12248_vm0 }
 0x553   : >> { %vm12266_vm2 = vmmov %vm12248_vm0 }
 0x554   : >> { %vm12270_vm8 = vmmov %vm12248_vm0 }
 0x555   : >> { %vm12274_vm5 = vmmov %vm12248_vm0 }
 0x55a   : >> { %3067 = vadd.xlane.f32.xlu1 %v9423_v41 }
 0x55e   : >> { %3069 = vadd.xlane.f32.xlu1 %v9427_v33 }
 0x562   : >> { %3071 = vadd.xlane.f32.xlu1 %v9431_v3 }
 0x566   : >> { %3073 = vadd.xlane.f32.xlu1 %v9470_v40 }
 0x56a   : >> { %3155 = vadd.xlane.f32.xlu1 %v9483_v14 }
 0x56e   : >> { %3157 = vadd.xlane.f32.xlu1 %v9495_v42 }
 0x572   : >> { %3161 = vadd.xlane.f32.xlu1 %v9503_v20  ;;  %v11874_v20 = vmov 0  }
 0x573   : >> { %6869 = vset.pattern.permute.xlu1 %v11874_v20 }
 0x576   : >> { %3075 = vadd.xlane.f32.xlu1 %v9507_v12  ;;  %v12235_v12 = vpack.c.bf16 %v9282_v10, %v9278_v28  ;;  %v12237_v28 = vld [vmem:[#allocation142_spill] sm:$0xff] }
 0x577   : >> { %v3085_v10 = vsub.s32 6, %v12237_v28 }
 0x579   : >> { %v6856_v40 = vpop.permute.xlu1 %6855 }
 0x57a   : >> { %3077 = vadd.xlane.f32.xlu1 %v9511_v35  ;;  %v6857_v14 = vunpack.i.l.bf16 %v6856_v40  ;;  %v6858_v42 = vunpack.i.h.bf16 %v6856_v40 }
 0x57e   : >> { %3079 = vadd.xlane.f32.xlu1 %v9521_v39  ;;  %v12236_v39 = vpack.c.bf16 %v9474_v56, %v9408_v4 }
 0x582   : >> { %3081 = vadd.xlane.f32.xlu1 %v9525_v51 }
 0x586   : >> { %3163 = vadd.xlane.f32.xlu1 %v9529_v5 }
 0x58a   : >> { %3165 = vadd.xlane.f32.xlu1 %v9533_v13  ;;  %v6851_v41 = vpop.permute.xlu0 %6850 }
 0x58b   : >> { %v6852_v33 = vunpack.i.l.bf16 %v6851_v41  ;;  %v6853_v3 = vunpack.i.h.bf16 %v6851_v41  ;;  %v7311_v41 = vld [vmem:[%s8533_s20] sm:$0xff] }
 0x58d   : >> { %3387 = vxpose.xlu0.b32.start [1/8] (short) (narrow) %v6852_v33, 40  ;;  %v9896_v33 = vrot.slane %v7311_v41, %v3085_v10 }
 0x58e   : >> { %3167 = vadd.xlane.f32.xlu1 %v9537_v34 }
 0x591   : >> { %3388 = vxpose.xlu0.b32.cont [2/8] (short) (narrow) %v6853_v3, 40 }
 0x592   : >> { %3169 = vadd.xlane.f32.xlu1 %v9541_v16 }
 0x595   : >> { %3389 = vxpose.xlu0.b32.cont [3/8] (short) (narrow) %v6857_v14, 40 }
 0x599   : >> { %3390 = vxpose.xlu0.b32.cont [4/8] (short) (narrow) %v6858_v42, 40 }
 0x5a3   : >> { %4759 = vrot.lane.b32.xlu1 %v12235_v12, %s7464_s7 }
 0x5a4   : >> { %v6861_v35 = vpop.permute.xlu1 %6860 }
 0x5a5   : >> { %v6862_v6 = vunpack.i.l.bf16 %v6861_v35  ;;  %v6863_v51 = vunpack.i.h.bf16 %v6861_v35 }
 0x5a7   : >> { %4761 = vrot.lane.b32.xlu1 %v12236_v39, %s7464_s7  ;;  %3391 = vxpose.xlu0.b32.cont [5/8] (short) (narrow) %v6862_v6, 40 }
 0x5a8   : >> { %v6866_v5 = vpop.permute.xlu1 %6865 }
 0x5a9   : >> { %v6867_v13 = vunpack.i.l.bf16 %v6866_v5  ;;  %v6868_v34 = vunpack.i.h.bf16 %v6866_v5 }
 0x5ab   : >> { %3392 = vxpose.xlu0.b32.cont [6/8] (short) (narrow) %v6863_v51, 40 }
 0x5af   : >> { %3393 = vxpose.xlu0.b32.cont [7/8] (short) (narrow) %v6867_v13, 40 }
 0x5b3   : >> { %3394 = vxpose.xlu0.b32.end [8/8] (short) (narrow) %v6868_v34, 40 }
 0x5dc   : >> { %6870 = vset.pattern.permute.xlu0 %v11874_v20 }
 0x5e0   : >> { %3159 = vadd.xlane.f32.xlu0 %v9549_v44  ;;  %v12238_v44 = vpack.c.bf16 %v9345_v52, %v9334_v8 }
 0x5e7   : >> { %v9893_v16 = vpop.xlane.xlu1 %3067 }
 0x5eb   : >> { %v3070_v4 = vpop.xlane.xlu1 %3069 }
 0x5ec   : >> { %v3088_v56 = vadd.f32 %v9896_v33, %v3070_v4 }
 0x5ee   : >> { %v6261_v3 = vmul.f32 -1.442695, %v3088_v56 }
 0x5ef   : >> { %v3072_v40 = vpop.xlane.xlu1 %3071 }
 0x5f0   : >> { %6943 = vpow2.f32 %v6261_v3  ;;  %v3089_v14 = vadd.f32 %v9896_v33, %v3072_v40 }
 0x5f2   : >> { %v6262_v42 = vmul.f32 -1.442695, %v3089_v14 }
 0x5f3   : >> { %v9900_v12 = vpop.xlane.xlu1 %3073 }
 0x5f4   : >> { %6945 = vpow2.f32 %v6262_v42 }
 0x5f6   : >> { %4757 = vrot.lane.b32.xlu0 %v12238_v44, %s7464_s7 }
 0x5f7   : >> { %v9906_v35 = vpop.xlane.xlu1 %3155 }
 0x5fa   : >> { %v6944_v6 = vpop.eup %6943 }
 0x5fb   : >> { %v3120_v39 = vadd.f32 1.0, %v6944_v6  ;;  %v9908_v51 = vpop.xlane.xlu1 %3157 }
 0x5fd   : >> { %6947 = vrcp.f32 %v3120_v39 }
 0x5fe   : >> { %v6946_v5 = vpop.eup %6945 }
 0x5ff   : >> { %v3121_v13 = vadd.f32 1.0, %v6946_v5  ;;  %v9910_v34 = vpop.xlane.xlu1 %3161 }
 0x601   : >> { %6949 = vrcp.f32 %v3121_v13 }
 0x603   : >> { %v9912_v10 = vpop.xlane.xlu1 %3075 }
 0x607   : >> { %v6948_v41 = vpop.eup %6947  ;;  %v9914_v4 = vpop.xlane.xlu1 %3077 }
 0x608   : >> { %3429 = vperm.xlu0 %6870, %v6948_v41  }
 0x60b   : >> { %v6950_v8 = vpop.eup %6949  ;;  %v9916_v52 = vpop.xlane.xlu1 %3079 }
 0x60c   : >> { %3434 = vperm.xlu1 %6869, %v6950_v8  }
 0x60f   : >> { %v3082_v56 = vpop.xlane.xlu1 %3081 }
 0x610   : >> { %v3094_v3 = vadd.f32 %v9896_v33, %v3082_v56 }
 0x612   : >> { %v6267_v40 = vmul.f32 -1.442695, %v3094_v3 }
 0x613   : >> { %v9919_v14 = vpop.xlane.xlu1 %3163 }
 0x614   : >> { %6951 = vpow2.f32 %v6267_v40 }
 0x617   : >> { %v3166_v42 = vpop.xlane.xlu1 %3165  ;;  %v3403_v44 = vpop.trf.xlu0 }
 0x618   : >> { %v3176_v6 = vadd.f32 %v3166_v42, %v9896_v33 }
 0x61a   : >> { %v6273_v7 = vmul.f32 -1.442695, %v3176_v6 }
 0x61b   : >> { %v9922_v39 = vpop.xlane.xlu1 %3167  ;;  %v3404_v5 = vpop.trf.xlu0 }
 0x61c   : >> { %v3419_v13 = vpack.c.bf16 %v3404_v5, %v3403_v44 }
 0x61e   : >> { %v6952_v41 = vpop.eup %6951  ;;  %6519 = vmatprep.subr.bf16.mxu1 %v3419_v13 }
 0x61f   : >> { %v3126_v29 = vadd.f32 1.0, %v6952_v41  ;;  %v3170_v8 = vpop.xlane.xlu1 %3169  ;;  %v3405_v50 = vpop.trf.xlu0  ;;  %6520 = vmatpush3.bf16.msra.mxu1 %v3419_v13  ;;  %v12247_v41 = vpack.c.bf16 %v9584_v47, %v9580_v43  ;;  %v12256_v43 = vld [vmem:[#allocation155_spill] sm:$0xff] }
 0x620   : >> { %v3178_v56 = vadd.f32 %v3170_v8, %v9896_v33 }
 0x621   : >> { %6953 = vrcp.f32 %v3126_v29 }
 0x622   : >> { %v6275_v3 = vmul.f32 -1.442695, %v3178_v56  ;;  %6955 = vpow2.f32 %v6273_v7  ;;  %v12241_v7 = vpack.c.bf16 %v9559_v46, %v9555_v27  ;;  %v12249_v46 = vpack.c.bf16 %v9596_v48, %v9592_v57  ;;  %v12259_v57 = vld [vmem:[#allocation158_spill] sm:$0xff]  ;;  %v12260_v48 = vld [vmem:[#allocation157_spill] sm:$0xff] }
 0x623   : >> { %v3406_v40 = vpop.trf.xlu0  ;;  %v12261_v8 = vpack.c.bf16 %v12259_v57, %v12260_v48  ;;  %v12291_v57 = vld [vmem:[#allocation172_spill] sm:$0xff] }
 0x624   : >> { %6957 = vpow2.f32 %v6275_v3  ;;  %v3420_v11 = vpack.c.bf16 %v3406_v40, %v3405_v50  ;;  %v12267_v3 = vld [vmem:[#allocation162_spill] sm:$0xff]  ;;  %v12268_v40 = vld [vmem:[#allocation161_spill] sm:$0xff] }
 0x626   : >> { %6521 = vmatprep.subr.bf16.mxu1 %v3420_v11 }
 0x627   : >> { %6522 = vmatpush3.bf16.msra.mxu1 %v3420_v11  ;;  %v3407_v42 = vpop.trf.xlu0  ;;  %v12243_v11 = vpack.c.bf16 %v9567_v18, %v9563_v31  ;;  %v12251_v18 = vpack.c.bf16 %v9608_v45, %v9604_v30  ;;  %v12263_v30 = vld [vmem:[#allocation160_spill] sm:$0xff]  ;;  %v12264_v45 = vld [vmem:[#allocation159_spill] sm:$0xff] }
 0x628   : >> { %v3421_v55 = vpack.c.bf16 %v3407_v42, %v3407_v42  ;;  %v12265_v56 = vpack.c.bf16 %v12263_v30, %v12264_v45  ;;  %v12272_v42 = vld [vmem:[#allocation163_spill] sm:$0xff]  ;;  %v12295_v30 = vld [vmem:[#allocation174_spill] sm:$0xff] }
 0x62a   : >> { %6687 = vmatprep.subr.msk.bf16.mxu1 %vm12239_vm12, %v3421_v55  ;;  %v3655_v44 = vsel %vm12240_vm4, %v3421_v55, 0  ;;  %v12245_v55 = vpack.c.bf16 %v9576_v62, %v9572_v19  ;;  %v12253_v19 = vpack.c.bf16 %v9618_v24, %v9614_v63  ;;  %v12255_v62 = vld [vmem:[#allocation156_spill] sm:$0xff]  ;;  %v12269_v63 = vpack.c.bf16 %v12267_v3, %v12268_v40  ;;  %vm12278_vm12 = vmmov %vm12248_vm0 }
 0x62b   : >> { %v6954_v6 = vpop.eup %6953  ;;  %6524 = vmatpush3.bf16.msra.mxu1 %v3655_v44  ;;  %v12257_v47 = vpack.c.bf16 %v12255_v62, %v12256_v43  ;;  %v12271_v24 = vld [vmem:[#allocation164_spill] sm:$0xff]  ;;  %vm12282_vm4 = vmmov %vm12248_vm0  ;;  %v3171_v62 = vadd.f32 %v9906_v35, %v9896_v33  ;;  %v3090_v3 = vadd.f32 %v9896_v33, %v9900_v12  ;;  %v3172_v12 = vadd.f32 %v9908_v51, %v9896_v33 }
 0x62c   : >> { %3459 = vperm.xlu0 %6870, %v6954_v6   ;;  %5877 = vmatprep.subr.bf16.mxu1 %v11874_v20  ;;  %v6956_v5 = vpop.eup %6955  ;;  %v12273_v44 = vpack.c.bf16 %v12271_v24, %v12272_v42  ;;  %v12275_v6 = vld [vmem:[#allocation166_spill] sm:$0xff]  ;;  %v12297_v24 = vld [vmem:[#allocation177_spill] sm:$0xff]  ;;  %v12298_v42 = vld [vmem:[#allocation176_spill] sm:$0xff] }
 0x62d   : >> { %v3208_v13 = vadd.f32 1.0, %v6956_v5  ;;  %v12276_v5 = vld [vmem:[#allocation165_spill] sm:$0xff]  ;;  %v6268_v35 = vmul.f32 -1.442695, %v3171_v62  ;;  %v6263_v40 = vmul.f32 -1.442695, %v3090_v3  ;;  %v12317_v3 = vpack.c.bf16 %v9788_v21, %v9782_v1 }
 0x62e   : >> { %v6958_v29 = vpop.eup %6957  ;;  %6526 = vmatmul.mubr.msk.bf16.vlgmr.msra.gmra.mrb[8].mxu1 %vm12242_vm10, %v12241_v7  ;;  %v12279_v7 = vld [vmem:[#allocation168_spill] sm:$0xff]  ;;  %vm12286_vm10 = vmmov %vm12248_vm0  ;;  %v12310_v62 = vld [vmem:[#allocation182_spill] sm:$0xff] }
 0x62f   : >> { %v3210_v50 = vadd.f32 1.0, %v6958_v29  ;;  %6529 = vmatprep.mubr.msk.bf16.mxu1 %vm12244_vm1, %v12243_v11  ;;  %v12277_v29 = vpack.c.bf16 %v12275_v6, %v12276_v5  ;;  %vm12289_vm1 = vmmov %vm12248_vm0  ;;  %v12301_v5 = vld [vmem:[#allocation179_spill] sm:$0xff]  ;;  %v12319_v21 = vld [vmem:[#allocation186_spill] sm:$0xff] }
 0x631   : >> { %6959 = vrcp.f32 %v3210_v50  ;;  %v12280_v50 = vld [vmem:[#allocation167_spill] sm:$0xff] }
 0x632   : >> { %6961 = vrcp.f32 %v3208_v13  ;;  %v12281_v11 = vpack.c.bf16 %v12279_v7, %v12280_v50  ;;  %v12283_v13 = vld [vmem:[#allocation170_spill] sm:$0xff] }
 0x636   : >> { %6530 = vmatmul.mubr.msk.bf16.gmra.mrb[12].mxu1 %vm12246_vm15, %v12245_v55  ;;  %v12284_v55 = vld [vmem:[#allocation169_spill] sm:$0xff]  ;;  %vm12293_vm15 = vmmov %vm12248_vm0 }
 0x637   : >> { %6533 = vmatprep.mubr.msk.bf16.mxu1 %vm12248_vm0, %v12247_v41  ;;  %v12285_v41 = vpack.c.bf16 %v12283_v13, %v12284_v55  ;;  %v6269_v55 = vmul.f32 -1.442695, %v3172_v12 }
 0x63b   : >> { %v6960_v27 = vpop.eup %6959 }
 0x63c   : >> { %3321 = vrot.lane.b32.xlu0 %v6960_v27, %s7465_s21  ;;  %v6962_v31 = vpop.eup %6961  ;;  %v12287_v27 = vld [vmem:[#allocation171_spill] sm:$0xff] }
 0x63e   : >> { %6534 = vmatmul.mubr.msk.bf16.gmra.mrb[16].mxu1 %vm12250_vm3, %v12249_v46  ;;  %v12288_v46 = vpack.c.bf16 %v9708_v17, %v12287_v27  ;;  %vm12300_vm3 = vmmov %vm12248_vm0  ;;  %v12305_v27 = vld [vmem:[#allocation181_spill] sm:$0xff] }
 0x63f   : >> { %6537 = vmatprep.mubr.msk.bf16.mxu1 %vm12252_vm7, %v12251_v18  ;;  %vm12304_vm7 = vmmov %vm12248_vm0 }
 0x640   : >> { %3317 = vrot.lane.b32.xlu0 %v6962_v31, %s7465_s21  ;;  %v3087_v31 = vadd.f32 %v9896_v33, %v9893_v16  ;;  %v4760_v16 = vpop.permute.xlu1 %4759 }
 0x642   : >> { %v6260_v18 = vmul.f32 -1.442695, %v3087_v31 }
 0x644   : >> { %6963 = vpow2.f32 %v6260_v18  ;;  %v4762_v6 = vpop.permute.xlu1 %4761 }
 0x646   : >> { %6538 = vmatmul.mubr.msk.bf16.gmra.mrb[20].mxu1 %vm12254_vm14, %v12253_v19  ;;  %vm12308_vm14 = vmmov %vm12248_vm0 }
 0x647   : >> { %6541 = vmatprep.mubr.msk.bf16.mxu1 %vm12258_vm6, %v12257_v47  ;;  %v12290_v47 = vld [vmem:[#allocation173_spill] sm:$0xff]  ;;  %vm12312_vm6 = vmmov %vm12248_vm0 }
 0x648   : >> { %v12292_v48 = vpack.c.bf16 %v12290_v47, %v12291_v57  ;;  %v3177_v57 = vadd.f32 %v9922_v39, %v9896_v33 }
 0x64e   : >> { %6542 = vmatmul.mubr.msk.bf16.gmra.mrb[24].mxu1 %vm12262_vm9, %v12261_v8  ;;  %v12294_v8 = vld [vmem:[#allocation175_spill] sm:$0xff]  ;;  %vm12316_vm9 = vmmov %vm12248_vm0 }
 0x64f   : >> { %6545 = vmatprep.mubr.msk.bf16.mxu1 %vm12266_vm2, %v12265_v56  ;;  %v12296_v17 = vpack.c.bf16 %v12294_v8, %v12295_v30  ;;  %v3091_v8 = vadd.f32 %v9896_v33, %v9912_v10  ;;  %v6274_v30 = vmul.f32 -1.442695, %v3177_v57  ;;  %vm12318_vm2 = vmmov %vm12248_vm0  ;;  %v3175_v10 = vadd.f32 %v9919_v14, %v9896_v33  ;;  %v12322_v14 = vld [vmem:[#allocation187_spill] sm:$0xff] }
 0x651   : >> { %v6272_v1 = vmul.f32 -1.442695, %v3175_v10 }
 0x656   : >> { %6546 = vmatmul.mubr.msk.bf16.gmra.mrb[28].mxu1 %vm12270_vm8, %v12269_v63  ;;  %v3174_v63 = vadd.f32 %v9910_v34, %v9896_v33  ;;  %vm12321_vm8 = vmmov %vm12248_vm0 }
 0x657   : >> { %6549 = vmatprep.mubr.msk.bf16.mxu1 %vm12274_vm5, %v12273_v44  ;;  %v12299_v44 = vpack.c.bf16 %v12297_v24, %v12298_v42  ;;  %vm12324_vm5 = vmmov %vm12248_vm0 }
 0x658   : >> { %v6271_v50 = vmul.f32 -1.442695, %v3174_v63 }
 0x65e   : >> { %6550 = vmatmul.mubr.msk.bf16.gmra.mrb[32].mxu1 %vm12278_vm12, %v12277_v29  ;;  %v12302_v29 = vld [vmem:[#allocation178_spill] sm:$0xff]  ;;  %vm12326_vm12 = vmmov %vm12248_vm0 }
 0x65f   : >> { %6553 = vmatprep.mubr.msk.bf16.mxu1 %vm12282_vm4, %v12281_v11  ;;  %v12303_v7 = vpack.c.bf16 %v12301_v5, %v12302_v29  ;;  %v6964_v11 = vpop.eup %6963  ;;  %v12323_v29 = vpack.c.bf16 %v9806_v59, %v12322_v14  ;;  %vm12328_vm4 = vmmov %vm12248_vm0 }
 0x660   : >> { %v3119_v18 = vadd.f32 1.0, %v6964_v11  ;;  %v12325_v11 = vpack.c.bf16 %v9818_v36, %v9810_v2  ;;  %v12329_v2 = vpack.c.bf16 %v9836_v53, %v9832_v32  ;;  %v12333_v32 = vpack.c.bf16 %v9858_v60, %v9850_v0 }
 0x666   : >> { %6554 = vmatmul.mubr.msk.bf16.gmra.mrb[36].mxu1 %vm12286_vm10, %v12285_v41  ;;  %v3093_v41 = vadd.f32 %v9896_v33, %v9916_v52  ;;  %vm12330_vm10 = vmmov %vm12248_vm0 }
 0x667   : >> { %6557 = vmatprep.mubr.msk.bf16.mxu1 %vm12289_vm1, %v12288_v46  ;;  %v12306_v46 = vld [vmem:[#allocation180_spill] sm:$0xff]  ;;  %vm12332_vm1 = vmmov %vm12248_vm0 }
 0x668   : >> { %v12307_v31 = vpack.c.bf16 %v12305_v27, %v12306_v46  ;;  %v6266_v47 = vmul.f32 -1.442695, %v3093_v41 }
 0x66d   : >> { %v3160_v19 = vpop.xlane.xlu0 %3159 }
 0x66e   : >> { %v3173_v43 = vadd.f32 %v3160_v19, %v9896_v33  ;;  %6558 = vmatmul.mubr.msk.bf16.gmra.mrb[40].mxu1 %vm12293_vm15, %v12292_v48  ;;  %v12309_v19 = vld [vmem:[#allocation183_spill] sm:$0xff]  ;;  %vm12334_vm15 = vmmov %vm12248_vm0 }
 0x66f   : >> { %6561 = vmatprep.mubr.msk.bf16.mxu1 %vm12248_vm0, %v12296_v17  ;;  %v12311_v51 = vpack.c.bf16 %v12309_v19, %v12310_v62  ;;  %v12313_v17 = vld [vmem:[#allocation185_spill] sm:$0xff] }
 0x670   : >> { %v6270_v45 = vmul.f32 -1.442695, %v3173_v43 }
 0x671   : >> { %v4758_v56 = vpop.permute.xlu0 %4757 }
 0x672   : >> { %6965 = vpow2.f32 %v6270_v45  ;;  %6589 = vmatprep.subr.bf16.mxu0 %v4758_v56  ;;  %v12314_v45 = vld [vmem:[#allocation184_spill] sm:$0xff] }
 0x673   : >> { %6590 = vmatpush3.bf16.msra.mxu0 %v4758_v56  ;;  %6967 = vpow2.f32 %v6268_v35 }
 0x674   : >> { %6591 = vmatprep.subr.bf16.mxu0 %v4760_v16  ;;  %6969 = vpow2.f32 %v6263_v40  ;;  %v6264_v40 = vmul.f32 -1.442695, %v3091_v8 }
 0x675   : >> { %6971 = vpow2.f32 %v6271_v50 }
 0x676   : >> { %6562 = vmatmul.mubr.msk.bf16.gmra.mrb[44].mxu1 %vm12300_vm3, %v12299_v44  ;;  %v3092_v44 = vadd.f32 %v9896_v33, %v9914_v4  ;;  %vm4012_vm3 = vcmask 523264  }
 0x677   : >> { %6565 = vmatprep.mubr.msk.bf16.mxu1 %vm12304_vm7, %v12303_v7  ;;  %6592 = vmatpush3.bf16.msra.mxu0 %v4760_v16  ;;  %v12315_v16 = vpack.c.bf16 %v12313_v17, %v12314_v45 }
 0x678   : >> { %6593 = vmatprep.subr.bf16.mxu0 %v4762_v6  ;;  %v6265_v50 = vmul.f32 -1.442695, %v3092_v44 }
 0x67b   : >> { %6594 = vmatpush3.bf16.msra.mxu0 %v4762_v6  ;;  %v12320_v6 = vpack.c.bf16 %v9796_v26, %v12319_v21 }
 0x67c   : >> { %v6966_v34 = vpop.eup %6965 }
 0x67d   : >> { %v3205_v13 = vadd.f32 1.0, %v6966_v34  ;;  %v6968_v43 = vpop.eup %6967  ;;  %v12327_v34 = vpack.c.bf16 %v9828_v54, %v9822_v15  ;;  %v12331_v15 = vpack.c.bf16 %v9846_v37, %v9842_v25 }
 0x67e   : >> { %6566 = vmatmul.mubr.msk.bf16.gmra.mrb[48].mxu1 %vm12308_vm14, %v12307_v31  ;;  %v3203_v52 = vadd.f32 1.0, %v6968_v43  ;;  %v6970_v48 = vpop.eup %6969 }
 0x67f   : >> { %6973 = vrcp.f32 %v3205_v13  ;;  %6569 = vmatprep.mubr.msk.bf16.mxu1 %vm12312_vm6, %v12311_v51  ;;  %v3122_v56 = vadd.f32 1.0, %v6970_v48  ;;  %v6972_v39 = vpop.eup %6971 }
 0x680   : >> { %6975 = vpow2.f32 %v6269_v55  ;;  %v3206_v63 = vadd.f32 1.0, %v6972_v39 }
 0x681   : >> { %6977 = vrcp.f32 %v3119_v18 }
 0x682   : >> { %6979 = vpow2.f32 %v6266_v47 }
 0x683   : >> { %6981 = vrcp.f32 %v3203_v52 }
 0x684   : >> { %6983 = vpow2.f32 %v6274_v30 }
 0x685   : >> { %6985 = vrcp.f32 %v3122_v56 }
 0x686   : >> { %6570 = vmatmul.mubr.msk.bf16.gmra.mrb[52].mxu1 %vm12316_vm9, %v12315_v16  ;;  %6987 = vpow2.f32 %v6264_v40 }
 0x687   : >> { %6573 = vmatprep.mubr.msk.bf16.mxu1 %vm12318_vm2, %v12317_v3  ;;  %6989 = vrcp.f32 %v3206_v63  ;;  %v10087_v60 = vpop.permute.xlu0 %3429 }
 0x688   : >> { %6991 = vpow2.f32 %v6272_v1 }
 0x689   : >> { %v6974_v35 = vpop.eup %6973 }
 0x68a   : >> { %3311 = vrot.lane.b32.xlu1 %v6974_v35, %s7465_s21  ;;  %v6976_v24 = vpop.eup %6975 }
 0x68b   : >> { %v6978_v42 = vpop.eup %6977  ;;  %v3204_v5 = vadd.f32 1.0, %v6976_v24  ;;  %v10081_v25 = vpop.permute.xlu1 %3434 }
 0x68c   : >> { %v6980_v7 = vpop.eup %6979 }
 0x68d   : >> { %v6982_v12 = vpop.eup %6981  ;;  %6993 = vrcp.f32 %v3204_v5  ;;  %v3125_v33 = vadd.f32 1.0, %v6980_v7 }
 0x68e   : >> { %6574 = vmatmul.mubr.msk.bf16.gmra.mrb[56].mxu1 %vm12321_vm8, %v12320_v6  ;;  %3424 = vperm.xlu1 %6869, %v6978_v42   ;;  %v6984_v4 = vpop.eup %6983  ;;  %6995 = vpow2.f32 %v6265_v50 }
 0x68f   : >> { %6577 = vmatprep.mubr.msk.bf16.mxu1 %vm12324_vm5, %v12323_v29  ;;  %v6986_v26 = vpop.eup %6985  ;;  %6997 = vrcp.f32 %v3125_v33  ;;  %v3209_v59 = vadd.f32 1.0, %v6984_v4 }
 0x690   : >> { %v6988_v13 = vpop.eup %6987 }
 0x691   : >> { %v6990_v55 = vpop.eup %6989  ;;  %v3123_v41 = vadd.f32 1.0, %v6988_v13  ;;  %6999 = vrcp.f32 %v3209_v59 }
 0x692   : >> { %3307 = vrot.lane.b32.xlu1 %v6982_v12, %s7465_s21  ;;  %v6992_v27 = vpop.eup %6991 }
 0x693   : >> { %7001 = vrcp.f32 %v3123_v41  ;;  %v3207_v36 = vadd.f32 1.0, %v6992_v27  ;;  %v12335_v27 = vld [vmem:[#allocation77_spill] sm:$0xff] }
 0x695   : >> { %7003 = vrcp.f32 %v3207_v36 }
 0x696   : >> { %6578 = vmatmul.mubr.msk.bf16.gmra.mrb[60].mxu1 %vm12326_vm12, %v12325_v11  ;;  %3439 = vperm.xlu1 %6869, %v6986_v26  }
 0x697   : >> { %6581 = vmatprep.mubr.msk.bf16.mxu1 %vm12328_vm4, %v12327_v34  ;;  %v6994_v46 = vpop.eup %6993 }
 0x698   : >> { %v6996_v54 = vpop.eup %6995 }
 0x699   : >> { %v6998_v31 = vpop.eup %6997  ;;  %v3124_v18 = vadd.f32 1.0, %v6996_v54 }
 0x69a   : >> { %3313 = vrot.lane.b32.xlu1 %v6990_v55, %s7465_s21 }
 0x69b   : >> { %v7000_v19 = vpop.eup %6999  ;;  %7005 = vrcp.f32 %v3124_v18  ;;  %v12337_v18 = vld [vmem:[#allocation139_spill] sm:$0xff] }
 0x69c   : >> { %vm12338_vm0 = vcmp.lt.s32.totalorder %v12337_v18, 63 }
 0x69d   : >> { %v7002_v53 = vpop.eup %7001  ;;  %vm12340_vm7 = vmmov %vm12338_vm0 }
 0x69e   : >> { %6582 = vmatmul.mubr.msk.bf16.gmra.mrb[64].mxu1 %vm12330_vm10, %v12329_v2  ;;  %3309 = vrot.lane.b32.xlu1 %v6994_v46, %s7465_s21  ;;  %v3496_v46 = vmul.f32 %v10081_v25, %v12335_v27  ;;  %vm12343_vm14 = vmmov %vm12338_vm0 }
 0x69f   : >> { %6585 = vmatprep.mubr.msk.bf16.mxu1 %vm12332_vm1, %v12331_v15  ;;  %v7004_v62 = vpop.eup %7003  ;;  %v12336_v15 = vld [vmem:[#allocation75_spill] sm:$0xff]  ;;  %vm12345_vm6 = vmmov %vm12338_vm0 }
 0x6a0   : >> { %vm12348_vm9 = vmmov %vm12338_vm0 }
 0x6a1   : >> { %vm12350_vm2 = vmmov %vm12338_vm0 }
 0x6a2   : >> { %3454 = vperm.xlu1 %6869, %v6998_v31   ;;  %vm12353_vm8 = vmmov %vm12338_vm0 }
 0x6a3   : >> { %vm12355_vm5 = vmmov %vm12338_vm0 }
 0x6a4   : >> { %vm12358_vm12 = vmmov %vm12338_vm0 }
 0x6a5   : >> { %v7006_v37 = vpop.eup %7005  ;;  %vm12359_vm4 = vmmov %vm12338_vm0 }
 0x6a6   : >> { %6586 = vmatmul.mubr.msk.bf16.gmra.mrb[68].mxu1 %vm12334_vm15, %v12333_v32  ;;  %3319 = vrot.lane.b32.xlu1 %v7000_v19, %s7465_s21  ;;  %vm12363_vm10 = vmmov %vm12338_vm0 }
 0x6a7   : >> { %vm12364_vm1 = vmmov %vm12338_vm0 }
 0x6a8   : >> { %vm12368_vm15 = vmmov %vm12338_vm0 }
 0x6aa   : >> { %3444 = vperm.xlu1 %6869, %v7002_v53  }
 0x6ab   : >> { %v10091_v30 = vpop.permute.xlu0 %3459 }
 0x6ae   : >> { %3315 = vrot.lane.b32.xlu1 %v7004_v62, %s7465_s21  ;;  %v12339_v62 = vld [vmem:[#allocation79_spill] sm:$0xff] }
 0x6af   : >> { %v3322_v3 = vpop.permute.xlu0 %3321 }
 0x6b2   : >> { %3449 = vperm.xlu1 %6869, %v7006_v37  }
 0x6b3   : >> { %v3318_v63 = vpop.permute.xlu0 %3317 }
 0x6fc   : >> { %v3312_v51 = vpop.permute.xlu1 %3311 }
 0x6fd   : >> { %3471 = vperm.xlu1 %6869, %v3312_v51  }
 0x701   : >> { %v6527_v43 = vpop.f32.mrb[8].mxu1 }
 0x702   : >> { %v3691_v47 = vpop.f32.mrb[9].mxu1  ;;  %v3700_v36 = vadd.f32 %v6527_v43, %v3496_v46 }
 0x703   : >> { %v10083_v57 = vpop.f32.mrb[10].mxu1 }
 0x704   : >> { %v10085_v0 = vpop.f32.mrb[11].mxu1  ;;  %v10149_v19 = vsel %vm12338_vm0, %v3700_v36, -1e+30 }
 0x705   : >> { %v4019_v43 = vsel %vm4012_vm3, %v10149_v19, -inf }
 0x709   : >> { %v10089_v52 = vpop.f32.mrb[12].mxu1 }
 0x70a   : >> { %v3707_v48 = vpop.f32.mrb[13].mxu1 }
 0x70b   : >> { %v6532_v8 = vpop.f32.mrb[14].mxu1 }
 0x70c   : >> { %v10093_v17 = vpop.f32.mrb[15].mxu1 }
 0x70d   : >> { %v10095_v45 = vpop.permute.xlu1 %3424 }
 0x70e   : >> { %v3494_v54 = vmul.f32 %v10095_v45, %v12336_v15 }
 0x710   : >> { %v3692_v53 = vadd.f32 %v3691_v47, %v3494_v54 }
 0x711   : >> { %v10097_v16 = vpop.f32.mrb[16].mxu1  ;;  %v3308_v56 = vpop.permute.xlu1 %3307 }
 0x712   : >> { %v10099_v39 = vpop.f32.mrb[17].mxu1  ;;  %3463 = vperm.xlu1 %6869, %v3308_v56  }
 0x713   : >> { %v6536_v35 = vpop.f32.mrb[18].mxu1 }
 0x714   : >> { %v10101_v40 = vpop.f32.mrb[19].mxu1 }
 0x715   : >> { %v10103_v10 = vpop.permute.xlu1 %3439 }
 0x716   : >> { %3491 = vperm.xlu1 %6869, %v3322_v3   ;;  %v10163_v3 = vsel %vm12340_vm7, %v3692_v53, -1e+30  ;;  %vm12373_vm7 = vmmov %vm12338_vm0 }
 0x719   : >> { %v10105_v24 = vpop.f32.mrb[20].mxu1  ;;  %v3314_v42 = vpop.permute.xlu1 %3313 }
 0x71a   : >> { %v10107_v44 = vpop.f32.mrb[21].mxu1  ;;  %3475 = vperm.xlu0 %6870, %v3314_v42   ;;  %3483 = vperm.xlu1 %6869, %v3318_v63   ;;  %v12341_v42 = vld [vmem:[#allocation82_spill] sm:$0xff] }
 0x71b   : >> { %v10109_v1 = vpop.f32.mrb[22].mxu1 }
 0x71c   : >> { %v10111_v21 = vpop.f32.mrb[23].mxu1 }
 0x71d   : >> { %v3310_v6 = vpop.permute.xlu1 %3309 }
 0x71e   : >> { %3467 = vperm.xlu0 %6870, %v3310_v6   ;;  %v3501_v6 = vmul.f32 %v10091_v30, %v12341_v42 }
 0x720   : >> { %v3719_v46 = vadd.f32 %v6532_v8, %v3501_v6 }
 0x721   : >> { %v10113_v5 = vpop.f32.mrb[24].mxu1  ;;  %v10115_v14 = vpop.permute.xlu1 %3454 }
 0x722   : >> { %v10117_v29 = vpop.f32.mrb[25].mxu1  ;;  %v10190_v8 = vsel %vm12345_vm6, %v3719_v46, -1e+30  ;;  %vm12378_vm6 = vmmov %vm12338_vm0 }
 0x723   : >> { %v10119_v7 = vpop.f32.mrb[26].mxu1  ;;  %v4034_v28 = vsel %vm4012_vm3, %v10190_v8, -inf }
 0x724   : >> { %v10121_v12 = vpop.f32.mrb[27].mxu1 }
 0x725   : >> { %v3320_v50 = vpop.permute.xlu1 %3319 }
 0x726   : >> { %3487 = vperm.xlu0 %6870, %v3320_v50   ;;  %v4013_v50 = vsel %vm4012_vm3, %v10163_v3, -inf }
 0x729   : >> { %v10123_v33 = vpop.f32.mrb[28].mxu1  ;;  %v10125_v4 = vpop.permute.xlu1 %3444 }
 0x72a   : >> { %v10127_v26 = vpop.f32.mrb[29].mxu1  ;;  %v3498_v37 = vmul.f32 %v10125_v4, %v12339_v62 }
 0x72b   : >> { %v10129_v11 = vpop.f32.mrb[30].mxu1 }
 0x72c   : >> { %v10131_v59 = vpop.f32.mrb[31].mxu1  ;;  %v3708_v63 = vadd.f32 %v3707_v48, %v3498_v37  ;;  %v12344_v48 = vld [vmem:[#allocation86_spill] sm:$0xff] }
 0x72d   : >> { %v3316_v34 = vpop.permute.xlu1 %3315  ;;  %v3505_v54 = vmul.f32 %v10103_v10, %v12344_v48 }
 0x72e   : >> { %3479 = vperm.xlu0 %6870, %v3316_v34   ;;  %v12342_v34 = vld [vmem:[#allocation78_spill] sm:$0xff]  ;;  %v10177_v15 = vsel %vm12343_vm14, %v3708_v63, -1e+30  ;;  %v12346_v63 = vld [vmem:[#allocation76_spill] sm:$0xff]  ;;  %vm12375_vm14 = vmmov %vm12338_vm0 }
 0x72f   : >> { %v3497_v27 = vmul.f32 %v10103_v10, %v12342_v34  ;;  %v4025_v37 = vsel %vm4012_vm3, %v10177_v15, -inf  ;;  %v3735_v42 = vadd.f32 %v6536_v35, %v3505_v54  ;;  %v3495_v6 = vmul.f32 %v10087_v60, %v12346_v63 }
 0x731   : >> { %v10133_v13 = vpop.f32.mrb[32].mxu1  ;;  %v3695_v48 = vadd.f32 %v10085_v0, %v3495_v6  ;;  %v10208_v54 = vpop.permute.xlu1 %3449  ;;  %v10214_v0 = vsel %vm12350_vm2, %v3735_v42, -1e+30  ;;  %v12352_v6 = vld [vmem:[#allocation90_spill] sm:$0xff]  ;;  %vm12383_vm2 = vmmov %vm12338_vm0 }
 0x732   : >> { %v10135_v55 = vpop.f32.mrb[33].mxu1  ;;  %12351 = vst [vmem:[#allocation156_spill] sm:$0xff] %v10214_v0 }
 0x733   : >> { %v10137_v41 = vpop.f32.mrb[34].mxu1 }
 0x734   : >> { %v10141_v2 = vpop.f32.mrb[35].mxu1 }
 0x739   : >> { %v10145_v31 = vpop.f32.mrb[36].mxu1 }
 0x73a   : >> { %v10151_v32 = vpop.f32.mrb[37].mxu1 }
 0x73b   : >> { %v10155_v51 = vpop.f32.mrb[38].mxu1 }
 0x73c   : >> { %v10157_v56 = vpop.f32.mrb[39].mxu1 }
 0x73e   : >> { %4020 = vmax.xlane.f32.xlu1 %v4019_v43  ;;  %v3703_v43 = vadd.f32 %v10083_v57, %v3497_v27  ;;  %v12349_v27 = vld [vmem:[#allocation81_spill] sm:$0xff] }
 0x73f   : >> { %v3500_v35 = vmul.f32 %v10115_v14, %v12349_v27 }
 0x740   : >> { %v10203_v57 = vsel %vm12348_vm9, %v3703_v43, -1e+30  ;;  %v3509_v43 = vmul.f32 %v10091_v30, %v12352_v6  ;;  %vm12379_vm9 = vmmov %vm12338_vm0 }
 0x741   : >> { %v10167_v47 = vpop.f32.mrb[40].mxu1  ;;  %v4022_v27 = vsel %vm4012_vm3, %v10203_v57, -inf  ;;  %v3716_v42 = vadd.f32 %v10089_v52, %v3500_v35 }
 0x742   : >> { %v10173_v36 = vpop.f32.mrb[41].mxu1  ;;  %4014 = vmax.xlane.f32.xlu1 %v4013_v50  ;;  %v12347_v50 = vld [vmem:[#allocation84_spill] sm:$0xff]  ;;  %v3751_v61 = vadd.f32 %v10109_v1, %v3509_v43 }
 0x743   : >> { %v10181_v53 = vpop.f32.mrb[42].mxu1  ;;  %v3503_v34 = vmul.f32 %v10087_v60, %v12347_v50  ;;  %v10248_v35 = vsel %vm12358_vm12, %v3716_v42, -1e+30  ;;  %v3513_v42 = vmul.f32 %v10103_v10, %v12362_v23  ;;  %vm12389_vm12 = vmmov %vm12338_vm0 }
 0x744   : >> { %v10183_v62 = vpop.f32.mrb[43].mxu1  ;;  %v10253_v1 = vsel %vm12359_vm4, %v3751_v61, -1e+30  ;;  %vm12393_vm4 = vmmov %vm12338_vm0 }
 0x745   : >> { %v3727_v46 = vadd.f32 %v10101_v40, %v3503_v34  ;;  %v10226_v40 = vsel %vm12353_vm8, %v3695_v48, -1e+30  ;;  %v12354_v34 = vld [vmem:[#allocation80_spill] sm:$0xff]  ;;  %v3507_v48 = vmul.f32 %v10208_v54, %v12357_v22  ;;  %12360 = vst [vmem:[#allocation158_spill] sm:$0xff] %v10253_v1  ;;  %vm12384_vm8 = vmmov %vm12338_vm0 }
 0x746   : >> { %4026 = vmax.xlane.f32.xlu1 %v4025_v37  ;;  %v3499_v9 = vmul.f32 %v10208_v54, %v12354_v34 }
 0x747   : >> { %v10235_v6 = vsel %vm12355_vm5, %v3727_v46, -1e+30  ;;  %v3743_v43 = vadd.f32 %v10111_v21, %v3507_v48  ;;  %v3767_v48 = vadd.f32 %v10119_v7, %v3513_v42  ;;  %vm12388_vm5 = vmmov %vm12338_vm0 }
 0x748   : >> { %12356 = vst [vmem:[#allocation155_spill] sm:$0xff] %v10235_v6  ;;  %v4040_v52 = vsel %vm4012_vm3, %v10235_v6, -inf  ;;  %v3711_v46 = vadd.f32 %v10093_v17, %v3499_v9  ;;  %v4031_v9 = vsel %vm4012_vm3, %v10248_v35, -inf  ;;  %v4058_v17 = vsel %vm4012_vm3, %v10253_v1, -inf }
 0x749   : >> { %v10197_v20 = vpop.f32.mrb[44].mxu1  ;;  %v10278_v23 = vsel %vm12364_vm1, %v3743_v43, -1e+30  ;;  %vm12398_vm1 = vmmov %vm12338_vm0 }
 0x74a   : >> { %v10210_v37 = vpop.f32.mrb[45].mxu1  ;;  %4035 = vmax.xlane.f32.xlu1 %v4034_v28  ;;  %v4046_v28 = vsel %vm4012_vm3, %v10214_v0, -inf  ;;  %v10273_v21 = vsel %vm12363_vm10, %v3711_v46, -1e+30  ;;  %12365 = vst [vmem:[#allocation157_spill] sm:$0xff] %v10278_v23  ;;  %v4052_v43 = vsel %vm4012_vm3, %v10278_v23, -inf  ;;  %vm12395_vm10 = vmmov %vm12338_vm0 }
 0x74b   : >> { %v10216_v63 = vpop.f32.mrb[46].mxu1  ;;  %v12377_v0 = vld [vmem:[#allocation96_spill] sm:$0xff] }
 0x74c   : >> { %v10220_v50 = vpop.f32.mrb[47].mxu1 }
 0x74d   : >> { %4023 = vmax.xlane.f32.xlu0 %v4022_v27  ;;  %v4016_v27 = vsel %vm4012_vm3, %v10226_v40, -inf }
 0x74e   : >> { %4047 = vmax.xlane.f32.xlu1 %v4046_v28  ;;  %v12361_v28 = vld [vmem:[#allocation85_spill] sm:$0xff] }
 0x74f   : >> { %v3504_v34 = vmul.f32 %v10081_v25, %v12361_v28 }
 0x751   : >> { %v10242_v58 = vpop.f32.mrb[48].mxu1  ;;  %4017 = vmax.xlane.f32.xlu0 %v4016_v27  ;;  %v3732_v61 = vadd.f32 %v10097_v16, %v3504_v34  ;;  %v3511_v16 = vmul.f32 %v10087_v60, %v12367_v38  ;;  %v4028_v34 = vsel %vm4012_vm3, %v10273_v21, -inf  ;;  %v10299_v38 = vsel %vm12338_vm0, %v3767_v48, -1e+30 }
 0x752   : >> { %v10255_v22 = vpop.f32.mrb[49].mxu1  ;;  %4041 = vmax.xlane.f32.xlu1 %v4040_v52  ;;  %v12366_v52 = vld [vmem:[#allocation83_spill] sm:$0xff]  ;;  %12371 = vst [vmem:[#allocation159_spill] sm:$0xff] %v10299_v38 }
 0x753   : >> { %v10260_v27 = vpop.f32.mrb[50].mxu1  ;;  %v3502_v28 = vmul.f32 %v10095_v45, %v12366_v52  ;;  %v10288_v46 = vsel %vm12368_vm15, %v3732_v61, -1e+30  ;;  %v3759_v52 = vadd.f32 %v10121_v12, %v3511_v16  ;;  %v4070_v12 = vsel %vm4012_vm3, %v10299_v38, -inf  ;;  %v12374_v16 = vld [vmem:[#allocation87_spill] sm:$0xff]  ;;  %vm12399_vm15 = vmmov %vm12338_vm0 }
 0x754   : >> { %v10264_v49 = vpop.f32.mrb[51].mxu1  ;;  %12369 = vst [vmem:[#allocation160_spill] sm:$0xff] %v10288_v46  ;;  %v4043_v23 = vsel %vm4012_vm3, %v10288_v46, -inf }
 0x755   : >> { %4032 = vmax.xlane.f32.xlu0 %v4031_v9  ;;  %v3724_v7 = vadd.f32 %v10099_v39, %v3502_v28  ;;  %v12370_v9 = vld [vmem:[#allocation89_spill] sm:$0xff]  ;;  %v12372_v39 = vld [vmem:[#allocation98_spill] sm:$0xff] }
 0x756   : >> { %4059 = vmax.xlane.f32.xlu1 %v4058_v17  ;;  %v3508_v17 = vmul.f32 %v10115_v14, %v12370_v9  ;;  %v3517_v28 = vmul.f32 %v10091_v30, %v12372_v39  ;;  %v10323_v39 = vsel %vm12375_vm14, %v3759_v52, -1e+30  ;;  %vm12405_vm14 = vmmov %vm12338_vm0 }
 0x757   : >> { %v10314_v9 = vsel %vm12373_vm7, %v3724_v7, -1e+30  ;;  %12376 = vst [vmem:[#allocation162_spill] sm:$0xff] %v10323_v39  ;;  %v3515_v7 = vmul.f32 %v10208_v54, %v12377_v0  ;;  %vm12402_vm7 = vmmov %vm12338_vm0 }
 0x758   : >> { %v3748_v48 = vadd.f32 %v10105_v24, %v3508_v17  ;;  %v3783_v6 = vadd.f32 %v10129_v11, %v3517_v28  ;;  %v4064_v24 = vsel %vm4012_vm3, %v10323_v39, -inf  ;;  %v12382_v39 = vld [vmem:[#allocation102_spill] sm:$0xff] }
 0x759   : >> { %v10291_v42 = vpop.f32.mrb[52].mxu1  ;;  %4029 = vmax.xlane.f32.xlu0 %v4028_v34  ;;  %v3775_v28 = vadd.f32 %v10131_v59, %v3515_v7 }
 0x75a   : >> { %v10302_v1 = vpop.f32.mrb[53].mxu1  ;;  %4053 = vmax.xlane.f32.xlu1 %v4052_v43  ;;  %v3506_v43 = vmul.f32 %v10125_v4, %v12374_v16  ;;  %v10336_v17 = vsel %vm12378_vm6, %v3748_v48, -1e+30  ;;  %v10341_v11 = vsel %vm12379_vm9, %v3783_v6, -1e+30  ;;  %v3521_v48 = vmul.f32 %v10103_v10, %v12382_v39  ;;  %v12386_v39 = vld [vmem:[#allocation91_spill] sm:$0xff]  ;;  %vm12408_vm6 = vmmov %vm12338_vm0 }
 0x75b   : >> { %v10304_v61 = vpop.f32.mrb[54].mxu1  ;;  %12380 = vst [vmem:[#allocation161_spill] sm:$0xff] %v10341_v11  ;;  %v10366_v10 = vsel %vm12384_vm8, %v3775_v28, -1e+30  ;;  %vm12410_vm9 = vmmov %vm12338_vm0 }
 0x75c   : >> { %v10308_v34 = vpop.f32.mrb[55].mxu1  ;;  %v3740_v52 = vadd.f32 %v10107_v44, %v3506_v43  ;;  %v4055_v44 = vsel %vm4012_vm3, %v10336_v17, -inf  ;;  %v4082_v43 = vsel %vm4012_vm3, %v10341_v11, -inf  ;;  %v3799_v7 = vadd.f32 %v10137_v41, %v3521_v48  ;;  %12385 = vst [vmem:[#allocation164_spill] sm:$0xff] %v10366_v10  ;;  %vm12414_vm8 = vmmov %vm12338_vm0 }
 0x75d   : >> { %4044 = vmax.xlane.f32.xlu0 %v4043_v23  ;;  %v4037_v23 = vsel %vm4012_vm3, %v10314_v9, -inf  ;;  %v4076_v28 = vsel %vm4012_vm3, %v10366_v10, -inf  ;;  %v12397_v10 = vld [vmem:[#allocation104_spill] sm:$0xff] }
 0x75e   : >> { %4071 = vmax.xlane.f32.xlu1 %v4070_v12  ;;  %v12381_v12 = vld [vmem:[#allocation93_spill] sm:$0xff]  ;;  %v10361_v59 = vsel %vm12383_vm2, %v3740_v52, -1e+30  ;;  %vm12413_vm2 = vmmov %vm12338_vm0 }
 0x75f   : >> { %v3512_v16 = vmul.f32 %v10081_v25, %v12381_v12  ;;  %v12387_v12 = vld [vmem:[#allocation100_spill] sm:$0xff] }
 0x761   : >> { %v10330_v46 = vpop.f32.mrb[56].mxu1  ;;  %4038 = vmax.xlane.f32.xlu0 %v4037_v23  ;;  %v3764_v6 = vadd.f32 %v10113_v5, %v3512_v16  ;;  %v3519_v5 = vmul.f32 %v10087_v60, %v12387_v12  ;;  %v4049_v16 = vsel %vm4012_vm3, %v10361_v59, -inf }
 0x762   : >> { %v10343_v0 = vpop.f32.mrb[57].mxu1  ;;  %4065 = vmax.xlane.f32.xlu1 %v4064_v24  ;;  %v3510_v24 = vmul.f32 %v10095_v45, %v12386_v39  ;;  %v12391_v39 = vld [vmem:[#allocation97_spill] sm:$0xff] }
 0x763   : >> { %v10348_v23 = vpop.f32.mrb[58].mxu1  ;;  %v10376_v52 = vsel %vm12388_vm5, %v3764_v6, -1e+30  ;;  %v3791_v60 = vadd.f32 %v10141_v2, %v3519_v5  ;;  %v3516_v6 = vmul.f32 %v10115_v14, %v12391_v39  ;;  %v12394_v5 = vld [vmem:[#allocation95_spill] sm:$0xff]  ;;  %vm12417_vm5 = vmmov %vm12338_vm0 }
 0x764   : >> { %v10352_v38 = vpop.f32.mrb[59].mxu1  ;;  %v3756_v41 = vadd.f32 %v10117_v29, %v3510_v24  ;;  %v12392_v29 = vld [vmem:[#allocation106_spill] sm:$0xff]  ;;  %v4067_v11 = vsel %vm4012_vm3, %v10376_v52, -inf }
 0x765   : >> { %4056 = vmax.xlane.f32.xlu0 %v4055_v44  ;;  %v10385_v44 = vsel %vm12389_vm12, %v3799_v7, -1e+30  ;;  %v3525_v24 = vmul.f32 %v10091_v30, %v12392_v29  ;;  %v3780_v2 = vadd.f32 %v10123_v33, %v3516_v6  ;;  %v10411_v30 = vsel %vm12395_vm10, %v3791_v60, -1e+30  ;;  %vm12421_vm12 = vmmov %vm12338_vm0 }
 0x766   : >> { %4083 = vmax.xlane.f32.xlu1 %v4082_v43  ;;  %12390 = vst [vmem:[#allocation163_spill] sm:$0xff] %v10385_v44  ;;  %v10402_v7 = vsel %vm12393_vm4, %v3756_v41, -1e+30  ;;  %v4094_v39 = vsel %vm4012_vm3, %v10385_v44, -inf  ;;  %12396 = vst [vmem:[#allocation166_spill] sm:$0xff] %v10411_v30  ;;  %v3523_v41 = vmul.f32 %v10208_v54, %v12397_v10  ;;  %v4088_v60 = vsel %vm4012_vm3, %v10411_v30, -inf }
 0x767   : >> { %v3815_v29 = vadd.f32 %v10155_v51, %v3525_v24  ;;  %v4061_v33 = vsel %vm4012_vm3, %v10402_v7, -inf  ;;  %v10420_v6 = vsel %vm12398_vm1, %v3780_v2, -1e+30  ;;  %v12401_v24 = vld [vmem:[#allocation101_spill] sm:$0xff]  ;;  %v12423_v30 = vld [vmem:[#allocation108_spill] sm:$0xff]  ;;  %vm12425_vm4 = vmmov %vm12338_vm0 }
 0x768   : >> { %v3807_v54 = vadd.f32 %v10157_v56, %v3523_v41  ;;  %v3520_v2 = vmul.f32 %v10081_v25, %v12401_v24  ;;  %v12404_v41 = vld [vmem:[#allocation99_spill] sm:$0xff]  ;;  %vm12427_vm10 = vmmov %vm12338_vm0 }
 0x769   : >> { %v10379_v48 = vpop.f32.mrb[60].mxu1  ;;  %4050 = vmax.xlane.f32.xlu0 %v4049_v16  ;;  %v10429_v51 = vsel %vm12399_vm15, %v3815_v29, -1e+30  ;;  %vm12431_vm1 = vmmov %vm12338_vm0 }
 0x76a   : >> { %v10388_v43 = vpop.f32.mrb[61].mxu1  ;;  %4077 = vmax.xlane.f32.xlu1 %v4076_v28  ;;  %v3514_v28 = vmul.f32 %v10125_v4, %v12394_v5  ;;  %12400 = vst [vmem:[#allocation165_spill] sm:$0xff] %v10429_v51  ;;  %v3796_v29 = vadd.f32 %v10133_v13, %v3520_v2  ;;  %v4106_v56 = vsel %vm4012_vm3, %v10429_v51, -inf  ;;  %v10451_v25 = vsel %vm12402_vm7, %v3807_v54, -1e+30  ;;  %vm12434_vm15 = vmmov %vm12338_vm0 }
 0x76b   : >> { %v10392_v12 = vpop.f32.mrb[62].mxu1  ;;  %12403 = vst [vmem:[#allocation168_spill] sm:$0xff] %v10451_v25  ;;  %v4100_v54 = vsel %vm4012_vm3, %v10451_v25, -inf  ;;  %vm12440_vm7 = vmmov %vm12338_vm0 }
 0x76c   : >> { %v10396_v16 = vpop.f32.mrb[63].mxu1 }
 0x76d   : >> { %4068 = vmax.xlane.f32.xlu0 %v4067_v11  ;;  %v3772_v11 = vadd.f32 %v10127_v26, %v3514_v28  ;;  %v4079_v28 = vsel %vm4012_vm3, %v10420_v6, -inf }
 0x76e   : >> { %4095 = vmax.xlane.f32.xlu1 %v4094_v39 }
 0x771   : >> { %v10423_v5 = vpop.f32.mrb[64].mxu1  ;;  %4062 = vmax.xlane.f32.xlu0 %v4061_v33  ;;  %v10444_v33 = vsel %vm12338_vm0, %v3772_v11, -1e+30  ;;  %v10459_v11 = vsel %vm12405_vm14, %v3796_v29, -1e+30  ;;  %vm12442_vm14 = vmmov %vm12338_vm0 }
 0x772   : >> { %v10432_v10 = vpop.f32.mrb[65].mxu1  ;;  %4089 = vmax.xlane.f32.xlu1 %v4088_v60  ;;  %v3518_v60 = vmul.f32 %v10095_v45, %v12404_v41  ;;  %v4073_v24 = vsel %vm4012_vm3, %v10444_v33, -inf  ;;  %v4091_v29 = vsel %vm4012_vm3, %v10459_v11, -inf }
 0x773   : >> { %v10436_v39 = vpop.f32.mrb[66].mxu1 }
 0x774   : >> { %v10438_v26 = vpop.f32.mrb[67].mxu1  ;;  %v3788_v13 = vadd.f32 %v10135_v55, %v3518_v60 }
 0x775   : >> { %4080 = vmax.xlane.f32.xlu0 %v4079_v28 }
 0x776   : >> { %4107 = vmax.xlane.f32.xlu1 %v4106_v56  ;;  %v12407_v56 = vld [vmem:[#allocation105_spill] sm:$0xff]  ;;  %v10478_v55 = vsel %vm12408_vm6, %v3788_v13, -1e+30  ;;  %vm12444_vm6 = vmmov %vm12338_vm0 }
 0x777   : >> { %v3524_v45 = vmul.f32 %v10115_v14, %v12407_v56  ;;  %v4085_v14 = vsel %vm4012_vm3, %v10478_v55, -inf  ;;  %v12412_v13 = vld [vmem:[#allocation109_spill] sm:$0xff] }
 0x779   : >> { %v10462_v2 = vpop.f32.mrb[68].mxu1  ;;  %4074 = vmax.xlane.f32.xlu0 %v4073_v24  ;;  %v3812_v60 = vadd.f32 %v10145_v31, %v3524_v45 }
 0x77a   : >> { %v10466_v28 = vpop.f32.mrb[69].mxu1  ;;  %4101 = vmax.xlane.f32.xlu1 %v4100_v54  ;;  %v12409_v54 = vld [vmem:[#allocation103_spill] sm:$0xff] }
 0x77b   : >> { %12406 = vst [vmem:[#allocation167_spill] sm:$0xff] %v10466_v28  ;;  %v10470_v41 = vpop.f32.mrb[70].mxu1  ;;  %v3522_v28 = vmul.f32 %v10125_v4, %v12409_v54  ;;  %v10489_v56 = vsel %vm12410_vm9, %v3812_v60, -1e+30  ;;  %v12416_v54 = vld [vmem:[#allocation107_spill] sm:$0xff]  ;;  %vm12445_vm9 = vmmov %vm12338_vm0 }
 0x77c   : >> { %v10472_v51 = vpop.f32.mrb[71].mxu1  ;;  %v10481_v24 = vpop.permute.xlu1 %3471  ;;  %12411 = vst [vmem:[#allocation170_spill] sm:$0xff] %v10489_v56  ;;  %v4103_v31 = vsel %vm4012_vm3, %v10489_v56, -inf }
 0x77d   : >> { %4092 = vmax.xlane.f32.xlu0 %v4091_v29  ;;  %v3804_v25 = vadd.f32 %v10151_v32, %v3522_v28  ;;  %v3528_v44 = vmul.f32 %v10481_v24, %v12412_v13 }
 0x77f   : >> { %v10498_v45 = vsel %vm12413_vm2, %v3804_v25, -1e+30  ;;  %v3828_v4 = vadd.f32 %v10167_v47, %v3528_v44  ;;  %vm12447_vm2 = vmmov %vm12338_vm0 }
 0x780   : >> { %v4097_v29 = vsel %vm4012_vm3, %v10498_v45, -inf }
 0x781   : >> { %4086 = vmax.xlane.f32.xlu0 %v4085_v14  ;;  %v10505_v32 = vsel %vm12414_vm8, %v3828_v4, -1e+30  ;;  %v12419_v4 = vld [vmem:[#allocation110_spill] sm:$0xff]  ;;  %vm12448_vm8 = vmmov %vm12338_vm0 }
 0x782   : >> { %12415 = vst [vmem:[#allocation169_spill] sm:$0xff] %v10505_v32  ;;  %v4115_v28 = vsel %vm4012_vm3, %v10505_v32, -inf }
 0x785   : >> { %4104 = vmax.xlane.f32.xlu0 %v4103_v31 }
 0x789   : >> { %4098 = vmax.xlane.f32.xlu0 %v4097_v29 }
 0x78d   : >> { %4116 = vmax.xlane.f32.xlu0 %v4115_v28 }
 0x791   : >> { %v10509_v60 = vpop.permute.xlu1 %3463 }
 0x792   : >> { %v3526_v25 = vmul.f32 %v10509_v60, %v12416_v54  ;;  %v12420_v54 = vld [vmem:[#allocation114_spill] sm:$0xff] }
 0x794   : >> { %v3820_v14 = vadd.f32 %v10173_v36, %v3526_v25 }
 0x795   : >> { %v10518_v44 = vpop.permute.xlu1 %3491 }
 0x796   : >> { %v10516_v47 = vsel %vm12417_vm5, %v3820_v14, -1e+30  ;;  %v3533_v36 = vmul.f32 %v10518_v44, %v12420_v54  ;;  %vm12451_vm5 = vmmov %vm12338_vm0 }
 0x797   : >> { %12418 = vst [vmem:[#allocation171_spill] sm:$0xff] %v10516_v47  ;;  %v4109_v13 = vsel %vm4012_vm3, %v10516_v47, -inf }
 0x798   : >> { %4110 = vmax.xlane.f32.xlu0 %v4109_v13 }
 0x799   : >> { %v10522_v31 = vpop.permute.xlu0 %3475  ;;  %v10529_v25 = vpop.permute.xlu1 %3483 }
 0x79a   : >> { %v3529_v29 = vmul.f32 %v10522_v31, %v12419_v4  ;;  %v3847_v4 = vadd.f32 %v10216_v63, %v3533_v36 }
 0x79c   : >> { %v3831_v28 = vadd.f32 %v10181_v53, %v3529_v29  ;;  %v12424_v29 = vld [vmem:[#allocation112_spill] sm:$0xff] }
 0x79d   : >> { %v10531_v14 = vpop.permute.xlu0 %3467  ;;  %v3531_v54 = vmul.f32 %v10529_v25, %v12424_v29 }
 0x79e   : >> { %v10535_v32 = vsel %vm12421_vm12, %v3831_v28, -1e+30  ;;  %v3527_v13 = vmul.f32 %v10531_v14, %v12423_v30  ;;  %v10553_v30 = vsel %vm12427_vm10, %v3847_v4, -1e+30  ;;  %vm12453_vm12 = vmmov %vm12338_vm0 }
 0x79f   : >> { %12422 = vst [vmem:[#allocation173_spill] sm:$0xff] %v10535_v32  ;;  %v4118_v47 = vsel %vm4012_vm3, %v10535_v32, -inf  ;;  %12428 = vst [vmem:[#allocation175_spill] sm:$0xff] %v10553_v30 }
 0x7a0   : >> { %4119 = vmax.xlane.f32.xlu1 %v4118_v47  ;;  %v3823_v53 = vadd.f32 %v10183_v62, %v3527_v13  ;;  %v3839_v47 = vadd.f32 %v10220_v50, %v3531_v54  ;;  %v12429_v62 = vld [vmem:[#allocation118_spill] sm:$0xff]  ;;  %v12430_v13 = vld [vmem:[#allocation113_spill] sm:$0xff]  ;;  %v12433_v54 = vld [vmem:[#allocation116_spill] sm:$0xff] }
 0x7a1   : >> { %v3537_v63 = vmul.f32 %v10522_v31, %v12429_v62  ;;  %v3535_v62 = vmul.f32 %v10531_v14, %v12433_v54  ;;  %v12438_v54 = vld [vmem:[#allocation111_spill] sm:$0xff]  ;;  %vm12457_vm10 = vmmov %vm12338_vm0 }
 0x7a2   : >> { %v10547_v56 = vsel %vm12425_vm4, %v3823_v53, -1e+30  ;;  %v4130_v53 = vsel %vm4012_vm3, %v10553_v30, -inf  ;;  %v12435_v30 = vld [vmem:[#allocation117_spill] sm:$0xff]  ;;  %vm12456_vm4 = vmmov %vm12338_vm0 }
 0x7a3   : >> { %12426 = vst [vmem:[#allocation172_spill] sm:$0xff] %v10547_v56  ;;  %v4112_v28 = vsel %vm4012_vm3, %v10547_v56, -inf  ;;  %v3863_v50 = vadd.f32 %v10260_v27, %v3537_v63  ;;  %v3855_v27 = vadd.f32 %v10264_v49, %v3535_v62  ;;  %v12437_v63 = vld [vmem:[#allocation122_spill] sm:$0xff] }
 0x7a4   : >> { %4113 = vmax.xlane.f32.xlu1 %v4112_v28  ;;  %v10566_v28 = vsel %vm12431_vm1, %v3839_v47, -1e+30  ;;  %v3536_v47 = vmul.f32 %v10481_v24, %v12435_v30  ;;  %vm12459_vm1 = vmmov %vm12338_vm0 }
 0x7a5   : >> { %v10558_v36 = vpop.permute.xlu0 %3487  ;;  %12432 = vst [vmem:[#allocation174_spill] sm:$0xff] %v10566_v28  ;;  %v10600_v49 = vsel %vm12440_vm7, %v3855_v27, -1e+30  ;;  %v12443_v27 = vld [vmem:[#allocation126_spill] sm:$0xff]  ;;  %vm12465_vm7 = vmmov %vm12338_vm0 }
 0x7a6   : >> { %v3532_v29 = vmul.f32 %v10558_v36, %v12430_v13  ;;  %v4124_v13 = vsel %vm4012_vm3, %v10566_v28, -inf  ;;  %v3860_v30 = vadd.f32 %v10242_v58, %v3536_v47  ;;  %v4136_v58 = vsel %vm4012_vm3, %v10600_v49, -inf }
 0x7a8   : >> { %4131 = vmax.xlane.f32.xlu1 %v4130_v53  ;;  %v3844_v4 = vadd.f32 %v10197_v20, %v3532_v29  ;;  %v10584_v20 = vsel %vm12338_vm0, %v3863_v50, -1e+30  ;;  %v3541_v29 = vmul.f32 %v10518_v44, %v12437_v63  ;;  %v12441_v63 = vld [vmem:[#allocation120_spill] sm:$0xff] }
 0x7a9   : >> { %12436 = vst [vmem:[#allocation177_spill] sm:$0xff] %v10584_v20  ;;  %v4142_v56 = vsel %vm4012_vm3, %v10584_v20, -inf }
 0x7aa   : >> { %v10574_v32 = vsel %vm12434_vm15, %v3844_v4, -1e+30  ;;  %v3879_v62 = vadd.f32 %v10304_v61, %v3541_v29  ;;  %vm12460_vm15 = vmmov %vm12338_vm0 }
 0x7ab   : >> { %v4127_v53 = vsel %vm4012_vm3, %v10574_v32, -inf }
 0x7ac   : >> { %4125 = vmax.xlane.f32.xlu1 %v4124_v13  ;;  %4128 = vmax.xlane.f32.xlu0 %v4127_v53  ;;  %v12439_v13 = vld [vmem:[#allocation115_spill] sm:$0xff]  ;;  %v10619_v61 = vsel %vm12444_vm6, %v3879_v62, -1e+30  ;;  %vm12467_vm6 = vmmov %vm12338_vm0 }
 0x7ad   : >> { %v10589_v4 = vpop.permute.xlu0 %3479  ;;  %v3534_v53 = vmul.f32 %v10509_v60, %v12439_v13  ;;  %v12446_v13 = vld [vmem:[#allocation121_spill] sm:$0xff] }
 0x7ae   : >> { %v3530_v28 = vmul.f32 %v10589_v4, %v12438_v54  ;;  %v3539_v54 = vmul.f32 %v10529_v25, %v12441_v63 }
 0x7af   : >> { %v3852_v47 = vadd.f32 %v10255_v22, %v3534_v53  ;;  %v4154_v22 = vsel %vm4012_vm3, %v10619_v61, -inf }
 0x7b0   : >> { %4143 = vmax.xlane.f32.xlu1 %v4142_v56  ;;  %v3836_v50 = vadd.f32 %v10210_v37, %v3530_v28  ;;  %v3545_v37 = vmul.f32 %v10522_v31, %v12443_v27  ;;  %v10623_v28 = vsel %vm12445_vm9, %v3860_v30, -1e+30  ;;  %v3871_v29 = vadd.f32 %v10308_v34, %v3539_v54  ;;  %v12449_v54 = vld [vmem:[#allocation124_spill] sm:$0xff]  ;;  %vm12469_vm9 = vmmov %vm12338_vm0 }
 0x7b1   : >> { %v4139_v53 = vsel %vm4012_vm3, %v10623_v28, -inf  ;;  %v10634_v63 = vsel %vm12447_vm2, %v3852_v47, -1e+30  ;;  %vm12470_vm2 = vmmov %vm12338_vm0 }
 0x7b2   : >> { %v10608_v20 = vsel %vm12442_vm14, %v3836_v50, -1e+30  ;;  %v3540_v50 = vmul.f32 %v10558_v36, %v12446_v13  ;;  %v3895_v62 = vadd.f32 %v10348_v23, %v3545_v37  ;;  %v10639_v34 = vsel %vm12448_vm8, %v3871_v29, -1e+30  ;;  %v12452_v29 = vld [vmem:[#allocation125_spill] sm:$0xff]  ;;  %vm12466_vm14 = vmmov %vm12338_vm0 }
 0x7b3   : >> { %v4121_v56 = vsel %vm4012_vm3, %v10608_v20, -inf  ;;  %v4148_v47 = vsel %vm4012_vm3, %v10639_v34, -inf  ;;  %v4133_v23 = vsel %vm4012_vm3, %v10634_v63, -inf  ;;  %v3544_v13 = vmul.f32 %v10481_v24, %v12452_v29  ;;  %vm12472_vm8 = vmmov %vm12338_vm0 }
 0x7b4   : >> { %4137 = vmax.xlane.f32.xlu1 %v4136_v58  ;;  %4122 = vmax.xlane.f32.xlu0 %v4121_v56  ;;  %v3876_v30 = vadd.f32 %v10291_v42, %v3540_v50  ;;  %v3543_v58 = vmul.f32 %v10531_v14, %v12449_v54  ;;  %v12450_v56 = vld [vmem:[#allocation119_spill] sm:$0xff]  ;;  %v10652_v37 = vsel %vm12451_vm5, %v3895_v62, -1e+30  ;;  %vm12473_vm5 = vmmov %vm12338_vm0 }
 0x7b5   : >> { %v3538_v27 = vmul.f32 %v10589_v4, %v12450_v56  ;;  %v4166_v62 = vsel %vm4012_vm3, %v10652_v37, -inf }
 0x7b6   : >> { %v10658_v42 = vsel %vm12453_vm12, %v3876_v30, -1e+30  ;;  %v3887_v50 = vadd.f32 %v10352_v38, %v3543_v58  ;;  %v12458_v58 = vld [vmem:[#allocation127_spill] sm:$0xff]  ;;  %vm12481_vm12 = vmmov %vm12338_vm0 }
 0x7b7   : >> { %v4151_v56 = vsel %vm4012_vm3, %v10658_v42, -inf }
 0x7b8   : >> { %4155 = vmax.xlane.f32.xlu1 %v4154_v22  ;;  %4140 = vmax.xlane.f32.xlu0 %v4139_v53  ;;  %v3868_v22 = vadd.f32 %v10302_v1, %v3538_v27  ;;  %v12454_v53 = vld [vmem:[#allocation129_spill] sm:$0xff]  ;;  %v10673_v38 = vsel %vm12456_vm4, %v3887_v50, -1e+30  ;;  %v3546_v27 = vmul.f32 %v10589_v4, %v12458_v58  ;;  %vm12484_vm4 = vmmov %vm12338_vm0 }
 0x7b9   : >> { %v3548_v54 = vmul.f32 %v10558_v36, %v12454_v53 }
 0x7ba   : >> { %v10677_v1 = vsel %vm12457_vm10, %v3868_v22, -1e+30  ;;  %v3900_v22 = vadd.f32 %v10388_v43, %v3546_v27  ;;  %vm12487_vm10 = vmmov %vm12338_vm0 }
 0x7bb   : >> { %v3908_v30 = vadd.f32 %v10379_v48, %v3548_v54  ;;  %v12461_v54 = vld [vmem:[#allocation128_spill] sm:$0xff] }
 0x7bc   : >> { %4149 = vmax.xlane.f32.xlu1 %v4148_v47  ;;  %4134 = vmax.xlane.f32.xlu0 %v4133_v23  ;;  %v3892_v47 = vadd.f32 %v10330_v46, %v3544_v13  ;;  %v12455_v23 = vld [vmem:[#allocation123_spill] sm:$0xff]  ;;  %v4160_v46 = vsel %vm4012_vm3, %v10673_v38, -inf  ;;  %v4145_v13 = vsel %vm4012_vm3, %v10677_v1, -inf  ;;  %v10710_v43 = vsel %vm12338_vm0, %v3900_v22, -1e+30 }
 0x7bd   : >> { %v3542_v29 = vmul.f32 %v10509_v60, %v12455_v23  ;;  %v10693_v48 = vsel %vm12460_vm15, %v3908_v30, -1e+30  ;;  %vm12548_vm15 = vcmask 1043456  }
 0x7be   : >> { %v10688_v53 = vsel %vm12459_vm1, %v3892_v47, -1e+30  ;;  %v4175_v47 = vsel %vm4012_vm3, %v10693_v48, -inf  ;;  %vm12511_vm1 = vmmov %vm12338_vm0 }
 0x7bf   : >> { %v3884_v50 = vadd.f32 %v10343_v0, %v3542_v29  ;;  %v4163_v0 = vsel %vm4012_vm3, %v10688_v53, -inf  ;;  %v12463_v29 = vld [vmem:[#allocation131_spill] sm:$0xff]  ;;  %vm12549_vm0 = vmmov %vm12548_vm15 }
 0x7c0   : >> { %4167 = vmax.xlane.f32.xlu1 %v4166_v62  ;;  %4152 = vmax.xlane.f32.xlu0 %v4151_v56  ;;  %v3547_v62 = vmul.f32 %v10529_v25, %v12461_v54  ;;  %v12462_v56 = vld [vmem:[#allocation130_spill] sm:$0xff]  ;;  %v3550_v58 = vmul.f32 %v10509_v60, %v12463_v29  ;;  %v4169_v60 = vsel %vm4012_vm3, %v10710_v43, -inf }
 0x7c1   : >> { %v3549_v23 = vmul.f32 %v10518_v44, %v12462_v56  ;;  %v10714_v27 = vsel %vm12465_vm7, %v3884_v50, -1e+30  ;;  %v12468_v50 = vld [vmem:[#allocation134_spill] sm:$0xff] }
 0x7c3   : >> { %v3911_v54 = vadd.f32 %v10392_v12, %v3549_v23 }
 0x7c4   : >> { %4161 = vmax.xlane.f32.xlu1 %v4160_v46  ;;  %4146 = vmax.xlane.f32.xlu0 %v4145_v13  ;;  %v12464_v46 = vld [vmem:[#allocation133_spill] sm:$0xff]  ;;  %v3903_v13 = vadd.f32 %v10396_v16, %v3547_v62  ;;  %v3553_v62 = vmul.f32 %v10522_v31, %v12468_v50 }
 0x7c5   : >> { %v3552_v30 = vmul.f32 %v10481_v24, %v12464_v46  ;;  %v4157_v24 = vsel %vm4012_vm3, %v10714_v27, -inf  ;;  %v10731_v12 = vsel %vm12467_vm6, %v3911_v54, -1e+30 }
 0x7c6   : >> { %v10727_v16 = vsel %vm12466_vm14, %v3903_v13, -1e+30  ;;  %v3927_v31 = vadd.f32 %v10436_v39, %v3553_v62 }
 0x7c7   : >> { %v3924_v22 = vadd.f32 %v10423_v5, %v3552_v30  ;;  %v4172_v5 = vsel %vm4012_vm3, %v10727_v16, -inf  ;;  %v12471_v30 = vld [vmem:[#allocation132_spill] sm:$0xff] }
 0x7c8   : >> { %4176 = vmax.xlane.f32.xlu1 %v4175_v47  ;;  %4164 = vmax.xlane.f32.xlu0 %v4163_v0  ;;  %v3916_v47 = vadd.f32 %v10432_v10, %v3550_v58  ;;  %v3551_v13 = vmul.f32 %v10531_v14, %v12471_v30 }
 0x7c9   : >> { %v10741_v10 = vsel %vm12469_vm9, %v3924_v22, -1e+30 }
 0x7ca   : >> { %v10746_v46 = vsel %vm12470_vm2, %v3916_v47, -1e+30  ;;  %v3919_v39 = vadd.f32 %v10438_v26, %v3551_v13 }
 0x7cb   : >> { %v4021_v56 = vpop.xlane.xlu1 %4020 }
 0x7cc   : >> { %v4207_v0 = vsub.f32 %v10149_v19, %v4021_v56  ;;  %4170 = vmax.xlane.f32.xlu1 %v4169_v60  ;;  %4158 = vmax.xlane.f32.xlu0 %v4157_v24  ;;  %v4178_v19 = vsel %vm4012_vm3, %v10731_v12, -inf  ;;  %v4181_v56 = vsel %vm4012_vm3, %v10746_v46, -inf  ;;  %v4187_v60 = vsel %vm4012_vm3, %v10741_v10, -inf }
 0x7cd   : >> { %v10757_v24 = vsel %vm12472_vm8, %v3927_v31, -1e+30  ;;  %v10764_v47 = vsel %vm12473_vm5, %v3919_v39, -1e+30 }
 0x7ce   : >> { %v4273_v23 = vmul.f32 1.442695, %v4207_v0  ;;  %v4190_v14 = vsel %vm4012_vm3, %v10757_v24, -inf  ;;  %v4184_v62 = vsel %vm4012_vm3, %v10764_v47, -inf }
 0x7cf   : >> { %v4015_v29 = vpop.xlane.xlu1 %4014 }
 0x7d0   : >> { %v4205_v58 = vsub.f32 %v10163_v3, %v4015_v29  ;;  %4173 = vmax.xlane.f32.xlu1 %v4172_v5  ;;  %4179 = vmax.xlane.f32.xlu0 %v4178_v19  ;;  %7007 = vpow2.f32 %v4273_v23 }
 0x7d2   : >> { %v4269_v54 = vmul.f32 1.442695, %v4205_v58 }
 0x7d3   : >> { %v4027_v3 = vpop.xlane.xlu1 %4026 }
 0x7d4   : >> { %4182 = vmax.xlane.f32.xlu1 %v4181_v56  ;;  %4188 = vmax.xlane.f32.xlu0 %v4187_v60  ;;  %7009 = vpow2.f32 %v4269_v54 }
 0x7d7   : >> { %v4036_v22 = vpop.xlane.xlu1 %4035 }
 0x7d8   : >> { %4191 = vmax.xlane.f32.xlu0 %v4190_v14  ;;  %v4212_v26 = vsub.f32 %v10190_v8, %v4036_v22 }
 0x7da   : >> { %v4024_v0 = vpop.xlane.xlu0 %4023  ;;  %v10769_v23 = vpop.eup %7007  ;;  %v4283_v30 = vmul.f32 1.442695, %v4212_v26 }
 0x7db   : >> { %v4208_v50 = vsub.f32 %v10203_v57, %v4024_v0  ;;  %v4403_v58 = vsel %vm4012_vm3, %v10769_v23, 0.0  ;;  %v4209_v57 = vsub.f32 %v10177_v15, %v4027_v3  ;;  %v4048_v60 = vpop.xlane.xlu1 %4047 }
 0x7dc   : >> { %4185 = vmax.xlane.f32.xlu0 %v4184_v62  ;;  %v12474_v62 = vld [vmem:[#allocation160_spill] sm:$0xff] }
 0x7dd   : >> { %v4275_v29 = vmul.f32 1.442695, %v4208_v50 }
 0x7de   : >> { %v4018_v5 = vpop.xlane.xlu0 %4017  ;;  %v10775_v31 = vpop.eup %7009 }
 0x7df   : >> { %7011 = vpow2.f32 %v4275_v29  ;;  %v4206_v19 = vsub.f32 %v10226_v40, %v4018_v5  ;;  %v4397_v8 = vsel %vm4012_vm3, %v10775_v31, 0.0  ;;  %v4277_v40 = vmul.f32 1.442695, %v4209_v57  ;;  %v4042_v3 = vpop.xlane.xlu1 %4041  ;;  %v12475_v5 = vld [vmem:[#allocation156_spill] sm:$0xff] }
 0x7e0   : >> { %4404 = vadd.xlane.f32.xlu0 %v4403_v58 }
 0x7e1   : >> { %v4271_v13 = vmul.f32 1.442695, %v4206_v19  ;;  %v4216_v19 = vsub.f32 %v12475_v5, %v4048_v60 }
 0x7e2   : >> { %v4033_v54 = vpop.xlane.xlu0 %4032 }
 0x7e3   : >> { %7013 = vpow2.f32 %v4271_v13  ;;  %v4211_v56 = vsub.f32 %v10248_v35, %v4033_v54  ;;  %v4060_v54 = vpop.xlane.xlu1 %4059 }
 0x7e4   : >> { %4398 = vadd.xlane.f32.xlu0 %v4397_v8  ;;  %7015 = vpow2.f32 %v4283_v30  ;;  %v4291_v8 = vmul.f32 1.442695, %v4216_v19 }
 0x7e5   : >> { %v4281_v39 = vmul.f32 1.442695, %v4211_v56 }
 0x7e6   : >> { %v4030_v14 = vpop.xlane.xlu0 %4029 }
 0x7e7   : >> { %7017 = vpow2.f32 %v4281_v39  ;;  %v4210_v22 = vsub.f32 %v10273_v21, %v4030_v14  ;;  %v4054_v19 = vpop.xlane.xlu1 %4053 }
 0x7e8   : >> { %7019 = vpow2.f32 %v4277_v40  ;;  %v12476_v40 = vld [vmem:[#allocation155_spill] sm:$0xff] }
 0x7e9   : >> { %v10782_v0 = vpop.eup %7011  ;;  %v4279_v15 = vmul.f32 1.442695, %v4210_v22  ;;  %v4214_v39 = vsub.f32 %v12476_v40, %v4042_v3  ;;  %v12477_v3 = vld [vmem:[#allocation158_spill] sm:$0xff]  ;;  %v12478_v40 = vld [vmem:[#allocation157_spill] sm:$0xff] }
 0x7ea   : >> { %v4045_v50 = vpop.xlane.xlu0 %4044  ;;  %v4406_v35 = vsel %vm4012_vm3, %v10782_v0, 0.0 }
 0x7eb   : >> { %7021 = vpow2.f32 %v4279_v15  ;;  %v4215_v26 = vsub.f32 %v12474_v62, %v4045_v50  ;;  %4407 = vadd.xlane.f32.xlu1 %v4406_v35  ;;  %v4287_v62 = vmul.f32 1.442695, %v4214_v39 }
 0x7ed   : >> { %v10787_v29 = vpop.eup %7013  ;;  %v4289_v58 = vmul.f32 1.442695, %v4215_v26  ;;  %v4220_v26 = vsub.f32 %v12477_v3, %v4060_v54  ;;  %v4218_v54 = vsub.f32 %v12478_v40, %v4054_v19  ;;  %v12479_v3 = vld [vmem:[#allocation136_spill] sm:$0xff]  ;;  %v12480_v40 = vld [vmem:[#allocation137_spill] sm:$0xff] }
 0x7ee   : >> { %v4039_v57 = vpop.xlane.xlu0 %4038  ;;  %v4400_v21 = vsel %vm4012_vm3, %v10787_v29, 0.0  ;;  %v10792_v30 = vpop.eup %7015 }
 0x7ef   : >> { %7023 = vpow2.f32 %v4289_v58  ;;  %v4213_v13 = vsub.f32 %v10314_v9, %v4039_v57  ;;  %4401 = vadd.xlane.f32.xlu1 %v4400_v21  ;;  %v4418_v60 = vsel %vm4012_vm3, %v10792_v30, 0.0 }
 0x7f1   : >> { %v10795_v56 = vpop.eup %7017  ;;  %v4285_v14 = vmul.f32 1.442695, %v4213_v13 }
 0x7f2   : >> { %v4057_v22 = vpop.xlane.xlu0 %4056  ;;  %v4415_v15 = vsel %vm4012_vm3, %v10795_v56, 0.0  ;;  %v10802_v50 = vpop.eup %7019 }
 0x7f3   : >> { %7025 = vpow2.f32 %v4285_v14  ;;  %v4219_v9 = vsub.f32 %v10336_v17, %v4057_v22  ;;  %4419 = vadd.xlane.f32.xlu1 %v4418_v60  ;;  %4416 = vadd.xlane.f32.xlu0 %v4415_v15  ;;  %v4409_v57 = vsel %vm4012_vm3, %v10802_v50, 0.0  ;;  %v4295_v15 = vmul.f32 1.442695, %v4218_v54 }
 0x7f4   : >> { %7027 = vpow2.f32 %v4291_v8  ;;  %v4299_v8 = vmul.f32 1.442695, %v4220_v26  ;;  %v3555_v26 = vmul.f32 %v10529_v25, %v12479_v3  ;;  %v3556_v25 = vmul.f32 %v10558_v36, %v12480_v40 }
 0x7f5   : >> { %v10805_v35 = vpop.eup %7021  ;;  %v4297_v5 = vmul.f32 1.442695, %v4219_v9 }
 0x7f6   : >> { %v4051_v58 = vpop.xlane.xlu0 %4050  ;;  %v4412_v21 = vsel %vm4012_vm3, %v10805_v35, 0.0  ;;  %v3940_v36 = vadd.f32 %v10462_v2, %v3556_v25  ;;  %v12486_v25 = vld [vmem:[#allocation162_spill] sm:$0xff] }
 0x7f7   : >> { %7029 = vpow2.f32 %v4297_v5  ;;  %v4217_v17 = vsub.f32 %v10361_v59, %v4051_v58  ;;  %4410 = vadd.xlane.f32.xlu0 %v4409_v57  ;;  %4413 = vadd.xlane.f32.xlu1 %v4412_v21 }
 0x7f8   : >> { %7031 = vpow2.f32 %v4287_v62  ;;  %v4072_v62 = vpop.xlane.xlu1 %4071  ;;  %v10863_v2 = vsel %vm12484_vm4, %v3940_v36, -1e+30 }
 0x7f9   : >> { %v10813_v13 = vpop.eup %7023  ;;  %v4293_v39 = vmul.f32 1.442695, %v4217_v17  ;;  %12485 = vst [vmem:[#allocation176_spill] sm:$0xff] %v10863_v2 }
 0x7fa   : >> { %v4069_v14 = vpop.xlane.xlu0 %4068  ;;  %v4427_v22 = vsel %vm4012_vm3, %v10813_v13, 0.0 }
 0x7fb   : >> { %7033 = vpow2.f32 %v4293_v39  ;;  %4428 = vadd.xlane.f32.xlu1 %v4427_v22  ;;  %v4223_v58 = vsub.f32 %v10376_v52, %v4069_v14 }
 0x7fc   : >> { %7035 = vpow2.f32 %v4299_v8  ;;  %v3935_v8 = vadd.f32 %v10472_v51, %v3555_v26  ;;  %v4066_v39 = vpop.xlane.xlu1 %4065  ;;  %v12482_v26 = vld [vmem:[#allocation138_spill] sm:$0xff] }
 0x7fd   : >> { %v10818_v60 = vpop.eup %7025  ;;  %7037 = vpow2.f32 %v4295_v15  ;;  %v4305_v22 = vmul.f32 1.442695, %v4223_v58 }
 0x7fe   : >> { %v4421_v59 = vsel %vm4012_vm3, %v10818_v60, 0.0  ;;  %v10822_v9 = vpop.eup %7027  ;;  %v4063_v5 = vpop.xlane.xlu0 %4062  ;;  %v10849_v51 = vsel %vm12481_vm12, %v3935_v8, -1e+30 }
 0x7ff   : >> { %4422 = vadd.xlane.f32.xlu1 %v4421_v59  ;;  %v4430_v57 = vsel %vm4012_vm3, %v10822_v9, 0.0  ;;  %v4221_v52 = vsub.f32 %v10402_v7, %v4063_v5  ;;  %v3557_v7 = vmul.f32 %v10518_v44, %v12482_v26  ;;  %v12483_v5 = vld [vmem:[#allocation159_spill] sm:$0xff]  ;;  %7039 = vpow2.f32 %v4305_v22 }
 0x800   : >> { %v4224_v58 = vsub.f32 %v12483_v5, %v4072_v62  ;;  %v4222_v22 = vsub.f32 %v12486_v25, %v4066_v39 }
 0x801   : >> { %v10826_v19 = vpop.eup %7029  ;;  %v3943_v44 = vadd.f32 %v10470_v41, %v3557_v7 }
 0x802   : >> { %v4439_v21 = vsel %vm4012_vm3, %v10826_v19, 0.0  ;;  %v10833_v17 = vpop.eup %7031  ;;  %v4081_v14 = vpop.xlane.xlu0 %4080  ;;  %v4307_v8 = vmul.f32 1.442695, %v4224_v58  ;;  %v4303_v36 = vmul.f32 1.442695, %v4222_v22 }
 0x803   : >> { %4431 = vadd.xlane.f32.xlu1 %v4430_v57  ;;  %4440 = vadd.xlane.f32.xlu0 %v4439_v21  ;;  %v4424_v15 = vsel %vm4012_vm3, %v10833_v17, 0.0  ;;  %v4301_v57 = vmul.f32 1.442695, %v4221_v52  ;;  %v4196_v21 = vsel %vm4012_vm3, %v10849_v51, -inf  ;;  %v4199_v52 = vsel %vm4012_vm3, %v10863_v2, -inf }
 0x804   : >> { %v10873_v5 = vsel %vm12487_vm10, %v3943_v44, -1e+30  ;;  %v4227_v7 = vsub.f32 %v10420_v6, %v4081_v14  ;;  %v12490_v14 = vld [vmem:[#allocation164_spill] sm:$0xff] }
 0x805   : >> { %v10838_v54 = vpop.eup %7033  ;;  %7041 = vpow2.f32 %v4301_v57  ;;  %v4202_v39 = vsel %vm4012_vm3, %v10873_v5, -inf }
 0x806   : >> { %v4433_v59 = vsel %vm4012_vm3, %v10838_v54, 0.0  ;;  %v10845_v3 = vpop.eup %7035  ;;  %v4075_v62 = vpop.xlane.xlu0 %4074  ;;  %7043 = vpow2.f32 %v4307_v8 }
 0x807   : >> { %4425 = vadd.xlane.f32.xlu1 %v4424_v15  ;;  %4434 = vadd.xlane.f32.xlu0 %v4433_v59  ;;  %v4442_v40 = vsel %vm4012_vm3, %v10845_v3, 0.0  ;;  %v10859_v15 = vpop.eup %7037  ;;  %v4084_v59 = vpop.xlane.xlu1 %4083  ;;  %7045 = vpow2.f32 %v4303_v36 }
 0x808   : >> { %v4436_v26 = vsel %vm4012_vm3, %v10859_v15, 0.0 }
 0x809   : >> { %v10878_v57 = vpop.eup %7039 }
 0x80a   : >> { %v4093_v58 = vpop.xlane.xlu0 %4092  ;;  %12488 = vst [vmem:[#allocation179_spill] sm:$0xff] %v10878_v57  ;;  %v4451_v44 = vsel %vm4012_vm3, %v10878_v57, 0.0 }
 0x80b   : >> { %4197 = vmax.xlane.f32.xlu1 %v4196_v21  ;;  %4443 = vadd.xlane.f32.xlu0 %v4442_v40  ;;  %v4078_v41 = vpop.xlane.xlu1 %4077  ;;  %v4313_v21 = vmul.f32 1.442695, %v4227_v7  ;;  %v4225_v40 = vsub.f32 %v10444_v33, %v4075_v62  ;;  %v12492_v33 = vld [vmem:[#allocation161_spill] sm:$0xff] }
 0x80c   : >> { %v4226_v22 = vsub.f32 %v12490_v14, %v4078_v41  ;;  %v4228_v62 = vsub.f32 %v12492_v33, %v4084_v59  ;;  %v12495_v33 = vld [vmem:[#allocation154_spill] sm:$0xff] }
 0x80d   : >> { %7047 = vpow2.f32 %v4313_v21 }
 0x80e   : >> { %v4087_v6 = vpop.xlane.xlu0 %4086  ;;  %v4311_v7 = vmul.f32 1.442695, %v4226_v22  ;;  %v4315_v41 = vmul.f32 1.442695, %v4228_v62 }
 0x80f   : >> { %4200 = vmax.xlane.f32.xlu1 %v4199_v52  ;;  %4437 = vadd.xlane.f32.xlu0 %v4436_v26  ;;  %v10883_v25 = vpop.eup %7041  ;;  %v10885_v8 = vpop.xlane.xlu1 %4095  ;;  %v4309_v52 = vmul.f32 1.442695, %v4225_v40  ;;  %v4229_v21 = vsub.f32 %v10478_v55, %v4087_v6 }
 0x810   : >> { %12489 = vst [vmem:[#allocation178_spill] sm:$0xff] %v10883_v25  ;;  %v4445_v26 = vsel %vm4012_vm3, %v10883_v25, 0.0  ;;  %v10890_v36 = vpop.eup %7043 }
 0x811   : >> { %12491 = vst [vmem:[#allocation181_spill] sm:$0xff] %v10890_v36  ;;  %7049 = vpow2.f32 %v4309_v52  ;;  %v10895_v57 = vpop.eup %7045  ;;  %v4231_v52 = vsub.f32 %v10459_v11, %v4093_v58 }
 0x812   : >> { %v4105_v2 = vpop.xlane.xlu0 %4104  ;;  %12493 = vst [vmem:[#allocation180_spill] sm:$0xff] %v10895_v57  ;;  %7051 = vpow2.f32 %v4311_v7  ;;  %v4448_v40 = vsel %vm4012_vm3, %v10895_v57, 0.0  ;;  %v12502_v57 = vld [vmem:[#allocation166_spill] sm:$0xff] }
 0x813   : >> { %4203 = vmax.xlane.f32.xlu1 %v4202_v39  ;;  %v4090_v39 = vpop.xlane.xlu1 %4089  ;;  %7053 = vpow2.f32 %v4315_v41 }
 0x816   : >> { %v4099_v22 = vpop.xlane.xlu0 %4098 }
 0x817   : >> { %4452 = vadd.xlane.f32.xlu1 %v4451_v44  ;;  %v4454_v44 = vsel %vm4012_vm3, %v10890_v36, 0.0  ;;  %v10900_v14 = vpop.eup %7047  ;;  %v10902_v59 = vpop.xlane.xlu1 %4107  ;;  %v4321_v36 = vmul.f32 1.442695, %v4231_v52 }
 0x818   : >> { %12494 = vst [vmem:[#allocation183_spill] sm:$0xff] %v10900_v14  ;;  %v4463_v55 = vsel %vm4012_vm3, %v10900_v14, 0.0 }
 0x81a   : >> { %v4117_v41 = vpop.xlane.xlu0 %4116 }
 0x81b   : >> { %4446 = vadd.xlane.f32.xlu1 %v4445_v26  ;;  %v4317_v26 = vmul.f32 1.442695, %v4229_v21  ;;  %v10911_v6 = vpop.eup %7049  ;;  %v4102_v7 = vpop.xlane.xlu1 %4101  ;;  %v12500_v21 = vld [vmem:[#allocation170_spill] sm:$0xff] }
 0x81c   : >> { %12498 = vst [vmem:[#allocation182_spill] sm:$0xff] %v10911_v6  ;;  %v4457_v11 = vsel %vm4012_vm3, %v10911_v6, 0.0  ;;  %v10916_v58 = vpop.eup %7051 }
 0x81d   : >> { %7055 = vpow2.f32 %v4317_v26  ;;  %12499 = vst [vmem:[#allocation185_spill] sm:$0xff] %v10916_v58  ;;  %v4460_v52 = vsel %vm4012_vm3, %v10916_v58, 0.0  ;;  %v10923_v26 = vpop.eup %7053 }
 0x81e   : >> { %7057 = vpow2.f32 %v4321_v36 }
 0x81f   : >> { %4455 = vadd.xlane.f32.xlu1 %v4454_v44  ;;  %v12496_v44 = vld [vmem:[#allocation153_spill] sm:$0xff] }
 0x820   : >> { %v12497_v62 = vpack.c.bf16 %v12495_v33, %v12496_v44  ;;  %v4235_v33 = vsub.f32 %v12500_v21, %v4105_v2  ;;  %v4466_v2 = vsel %vm4012_vm3, %v10923_v26, 0.0 }
 0x823   : >> { %4449 = vadd.xlane.f32.xlu1 %v4448_v40  ;;  %v4233_v40 = vsub.f32 %v10498_v45, %v4099_v22  ;;  %v4329_v45 = vmul.f32 1.442695, %v4235_v33  ;;  %v12501_v22 = vld [vmem:[#allocation171_spill] sm:$0xff] }
 0x824   : >> { %v12505_v33 = vld [vmem:[#allocation163_spill] sm:$0xff] }
 0x825   : >> { %4763 = vrot.lane.b32.xlu0 %v12497_v62, %s7464_s7  ;;  %v4325_v44 = vmul.f32 1.442695, %v4233_v40  ;;  %v4111_v14 = vpop.xlane.xlu0 %4110  ;;  %v12504_v40 = vld [vmem:[#allocation169_spill] sm:$0xff] }
 0x826   : >> { %v4239_v21 = vsub.f32 %v12504_v40, %v4117_v41 }
 0x827   : >> { %4464 = vadd.xlane.f32.xlu1 %v4463_v55  ;;  %7059 = vpow2.f32 %v4325_v44  ;;  %v4237_v55 = vsub.f32 %v12501_v22, %v4111_v14  ;;  %v10929_v36 = vpop.eup %7055  ;;  %v4232_v44 = vsub.f32 %v12505_v33, %v10885_v8  ;;  %v12506_v22 = vld [vmem:[#allocation135_spill] sm:$0xff] }
 0x828   : >> { %12503 = vst [vmem:[#allocation184_spill] sm:$0xff] %v10929_v36  ;;  %7061 = vpow2.f32 %v4329_v45  ;;  %v4469_v14 = vsel %vm4012_vm3, %v10929_v36, 0.0  ;;  %v12508_v33 = vld [vmem:[#allocation167_spill] sm:$0xff] }
 0x829   : >> { %v4333_v58 = vmul.f32 1.442695, %v4237_v55  ;;  %v4323_v45 = vmul.f32 1.442695, %v4232_v44  ;;  %v12507_v55 = vld [vmem:[#allocation168_spill] sm:$0xff] }
 0x82a   : >> { %v4234_v40 = vsub.f32 %v12507_v55, %v4102_v7 }
 0x82b   : >> { %4458 = vadd.xlane.f32.xlu1 %v4457_v11  ;;  %v4230_v11 = vsub.f32 %v12502_v57, %v4090_v39  ;;  %v10938_v57 = vpop.eup %7057  ;;  %v4337_v39 = vmul.f32 1.442695, %v4239_v21  ;;  %7063 = vpow2.f32 %v4333_v58  ;;  %v12509_v21 = vld [vmem:[#allocation165_spill] sm:$0xff] }
 0x82c   : >> { %v4475_v8 = vsel %vm4012_vm3, %v10938_v57, 0.0  ;;  %v4236_v36 = vsub.f32 %v12509_v21, %v10902_v59  ;;  %v4327_v44 = vmul.f32 1.442695, %v4234_v40 }
 0x82d   : >> { %v10919_v62 = vpop.xlane.xlu1 %4119 }
 0x82f   : >> { %4461 = vadd.xlane.f32.xlu1 %v4460_v52  ;;  %v4319_v52 = vmul.f32 1.442695, %v4230_v11 }
 0x831   : >> { %v4114_v6 = vpop.xlane.xlu1 %4113  ;;  %7065 = vpow2.f32 %v4319_v52  ;;  %v10947_v11 = vpop.eup %7059 }
 0x832   : >> { %7067 = vpow2.f32 %v4337_v39  ;;  %v4481_v7 = vsel %vm4012_vm3, %v10947_v11, 0.0  ;;  %v10956_v52 = vpop.eup %7061  ;;  %v4331_v39 = vmul.f32 1.442695, %v4236_v36 }
 0x833   : >> { %4467 = vadd.xlane.f32.xlu1 %v4466_v2  ;;  %v3554_v2 = vmul.f32 %v10589_v4, %v12506_v22  ;;  %7069 = vpow2.f32 %v4323_v45  ;;  %12510 = vst [vmem:[#allocation186_spill] sm:$0xff] %v10956_v52 }
 0x834   : >> { %7071 = vpow2.f32 %v4327_v44 }
 0x835   : >> { %v10932_v25 = vpop.xlane.xlu1 %4131  ;;  %v10969_v21 = vpop.eup %7063  ;;  %7073 = vpow2.f32 %v4331_v39 }
 0x836   : >> { %12513 = vst [vmem:[#allocation187_spill] sm:$0xff] %v10969_v21 }
 0x837   : >> { %4470 = vadd.xlane.f32.xlu1 %v4469_v14  ;;  %v3932_v14 = vadd.f32 %v12508_v33, %v3554_v2  ;;  %v4487_v33 = vsel %vm4012_vm3, %v10956_v52, 0.0 }
 0x839   : >> { %v10942_v41 = vpop.xlane.xlu1 %4125  ;;  %v4129_v4 = vpop.xlane.xlu0 %4128  ;;  %v10960_v22 = vsel %vm12511_vm1, %v3932_v14, -1e+30 }
 0x83a   : >> { %v4243_v2 = vsub.f32 %v10574_v32, %v4129_v4  ;;  %v4193_v14 = vsel %vm4012_vm3, %v10960_v22, -inf }
 0x83b   : >> { %4476 = vadd.xlane.f32.xlu1 %v4475_v8  ;;  %v12512_v8 = vld [vmem:[#allocation172_spill] sm:$0xff]  ;;  %v10973_v36 = vpop.eup %7065 }
 0x83c   : >> { %v4238_v45 = vsub.f32 %v12512_v8, %v4114_v6  ;;  %v4345_v4 = vmul.f32 1.442695, %v4243_v2  ;;  %v10977_v6 = vpop.eup %7067 }
 0x83d   : >> { %v10952_v58 = vpop.xlane.xlu1 %4143  ;;  %12514 = vst [vmem:[#allocation160_spill] sm:$0xff] %v10977_v6 }
 0x83e   : >> { %v4335_v8 = vmul.f32 1.442695, %v4238_v45 }
 0x83f   : >> { %4482 = vadd.xlane.f32.xlu1 %v4481_v7 }
 0x841   : >> { %v10963_v55 = vpop.xlane.xlu1 %4137  ;;  %v4123_v59 = vpop.xlane.xlu0 %4122 }
 0x842   : >> { %v4241_v40 = vsub.f32 %v10608_v20, %v4123_v59  ;;  %v12515_v20 = vld [vmem:[#allocation173_spill] sm:$0xff] }
 0x843   : >> { %4488 = vadd.xlane.f32.xlu1 %v4487_v33  ;;  %v4240_v59 = vsub.f32 %v12515_v20, %v10919_v62  ;;  %v4493_v33 = vsel %vm4012_vm3, %v10969_v21, 0.0  ;;  %v4499_v62 = vsel %vm4012_vm3, %v10977_v6, 0.0 }
 0x844   : >> { %v4341_v32 = vmul.f32 1.442695, %v4241_v40  ;;  %4194 = vmax.xlane.f32.xlu0 %v4193_v14  ;;  %v4472_v40 = vsel %vm4012_vm3, %v10973_v36, 0.0  ;;  %v10985_v14 = vpop.eup %7069 }
 0x845   : >> { %v10975_v7 = vpop.xlane.xlu1 %4155  ;;  %v4141_v44 = vpop.xlane.xlu0 %4140  ;;  %v4339_v45 = vmul.f32 1.442695, %v4240_v59 }
 0x846   : >> { %7075 = vpow2.f32 %v4341_v32  ;;  %v4247_v2 = vsub.f32 %v10623_v28, %v4141_v44  ;;  %v12516_v32 = vld [vmem:[#allocation174_spill] sm:$0xff]  ;;  %v12517_v44 = vld [vmem:[#allocation175_spill] sm:$0xff] }
 0x847   : >> { %4494 = vadd.xlane.f32.xlu1 %v4493_v33  ;;  %7077 = vpow2.f32 %v4345_v4  ;;  %v4242_v20 = vsub.f32 %v12516_v32, %v10942_v41  ;;  %v10997_v4 = vpop.eup %7071  ;;  %v4244_v21 = vsub.f32 %v12517_v44, %v10932_v25 }
 0x848   : >> { %4473 = vadd.xlane.f32.xlu0 %v4472_v40  ;;  %7079 = vpow2.f32 %v4335_v8  ;;  %v4478_v40 = vsel %vm4012_vm3, %v10985_v14, 0.0  ;;  %v4353_v52 = vmul.f32 1.442695, %v4247_v2  ;;  %v11005_v41 = vpop.eup %7073 }
 0x849   : >> { %v10988_v18 = vpop.xlane.xlu1 %4149  ;;  %v4135_v39 = vpop.xlane.xlu0 %4134  ;;  %7081 = vpow2.f32 %v4339_v45  ;;  %v4343_v8 = vmul.f32 1.442695, %v4242_v20  ;;  %v4246_v45 = vsub.f32 %v10600_v49, %v10963_v55 }
 0x84a   : >> { %v4245_v33 = vsub.f32 %v10634_v63, %v4135_v39  ;;  %v4484_v63 = vsel %vm4012_vm3, %v10997_v4, 0.0 }
 0x84b   : >> { %4500 = vadd.xlane.f32.xlu1 %v4499_v62  ;;  %v4347_v62 = vmul.f32 1.442695, %v4244_v21 }
 0x84c   : >> { %v4349_v28 = vmul.f32 1.442695, %v4245_v33  ;;  %4479 = vadd.xlane.f32.xlu0 %v4478_v40 }
 0x84d   : >> { %v11001_v6 = vpop.xlane.xlu1 %4167  ;;  %v4153_v59 = vpop.xlane.xlu0 %4152 }
 0x84e   : >> { %7083 = vpow2.f32 %v4349_v28  ;;  %v4251_v32 = vsub.f32 %v10658_v42, %v4153_v59  ;;  %v12518_v28 = vld [vmem:[#allocation177_spill] sm:$0xff] }
 0x84f   : >> { %7085 = vpow2.f32 %v4353_v52  ;;  %v4490_v52 = vsel %vm4012_vm3, %v11005_v41, 0.0  ;;  %v4248_v44 = vsub.f32 %v12518_v28, %v10952_v58 }
 0x850   : >> { %4485 = vadd.xlane.f32.xlu0 %v4484_v63  ;;  %v11007_v39 = vpop.eup %7075  ;;  %7087 = vpow2.f32 %v4343_v8  ;;  %v4361_v59 = vmul.f32 1.442695, %v4251_v32 }
 0x851   : >> { %v11010_v25 = vpop.xlane.xlu1 %4161  ;;  %v4147_v2 = vpop.xlane.xlu0 %4146  ;;  %v4505_v33 = vsel %vm4012_vm3, %v11007_v39, 0.0  ;;  %7089 = vpow2.f32 %v4347_v62 }
 0x852   : >> { %v4249_v20 = vsub.f32 %v10677_v1, %v4147_v2  ;;  %v11017_v40 = vpop.eup %7077  ;;  %4506 = vadd.xlane.f32.xlu1 %v4505_v33  ;;  %v4351_v1 = vmul.f32 1.442695, %v4246_v45  ;;  %v4355_v33 = vmul.f32 1.442695, %v4248_v44  ;;  %v4250_v45 = vsub.f32 %v10639_v34, %v10988_v18 }
 0x853   : >> { %v11021_v21 = vpop.eup %7079  ;;  %v4511_v8 = vsel %vm4012_vm3, %v11017_v40, 0.0  ;;  %v4252_v34 = vsub.f32 %v10619_v61, %v10975_v7  ;;  %v4254_v7 = vsub.f32 %v10673_v38, %v11010_v25  ;;  %v4256_v38 = vsub.f32 %v10652_v37, %v11001_v6 }
 0x854   : >> { %v4357_v42 = vmul.f32 1.442695, %v4249_v20  ;;  %4491 = vadd.xlane.f32.xlu0 %v4490_v52  ;;  %v4496_v63 = vsel %vm4012_vm3, %v11021_v21, 0.0  ;;  %v11029_v2 = vpop.eup %7081 }
 0x855   : >> { %v4177_v49 = vpop.xlane.xlu1 %4176  ;;  %v4165_v55 = vpop.xlane.xlu0 %4164  ;;  %v4502_v44 = vsel %vm4012_vm3, %v11029_v2, 0.0  ;;  %v4363_v61 = vmul.f32 1.442695, %v4252_v34  ;;  %v4367_v25 = vmul.f32 1.442695, %v4254_v7 }
 0x856   : >> { %7091 = vpow2.f32 %v4357_v42  ;;  %4512 = vadd.xlane.f32.xlu1 %v4511_v8  ;;  %v4255_v58 = vsub.f32 %v10688_v53, %v4165_v55 }
 0x857   : >> { %7093 = vpow2.f32 %v4361_v59 }
 0x858   : >> { %4497 = vadd.xlane.f32.xlu0 %v4496_v63  ;;  %v11031_v20 = vpop.eup %7083  ;;  %7095 = vpow2.f32 %v4351_v1  ;;  %v4369_v55 = vmul.f32 1.442695, %v4255_v58  ;;  %v4259_v58 = vsub.f32 %v10693_v48, %v4177_v49 }
 0x859   : >> { %v4171_v32 = vpop.xlane.xlu1 %4170  ;;  %v4159_v62 = vpop.xlane.xlu0 %4158  ;;  %v4517_v42 = vsel %vm4012_vm3, %v11031_v20, 0.0  ;;  %7097 = vpow2.f32 %v4355_v33 }
 0x85a   : >> { %v4253_v52 = vsub.f32 %v10714_v27, %v4159_v62  ;;  %v11039_v28 = vpop.eup %7085  ;;  %4518 = vadd.xlane.f32.xlu1 %v4517_v42  ;;  %v4257_v1 = vsub.f32 %v10710_v43, %v4171_v32  ;;  %v4359_v27 = vmul.f32 1.442695, %v4250_v45  ;;  %v4377_v48 = vmul.f32 1.442695, %v4259_v58 }
 0x85b   : >> { %v11043_v59 = vpop.eup %7087  ;;  %v4523_v63 = vsel %vm4012_vm3, %v11039_v28, 0.0 }
 0x85c   : >> { %v4365_v53 = vmul.f32 1.442695, %v4253_v52  ;;  %4503 = vadd.xlane.f32.xlu0 %v4502_v44  ;;  %v4508_v62 = vsel %vm4012_vm3, %v11043_v59, 0.0  ;;  %v11054_v52 = vpop.eup %7089  ;;  %v4373_v33 = vmul.f32 1.442695, %v4257_v1 }
 0x85d   : >> { %v4174_v8 = vpop.xlane.xlu1 %4173  ;;  %v11046_v18 = vpop.xlane.xlu0 %4179 }
 0x85e   : >> { %7099 = vpow2.f32 %v4365_v53  ;;  %4524 = vadd.xlane.f32.xlu1 %v4523_v63  ;;  %v4514_v53 = vsel %vm4012_vm3, %v11054_v52, 0.0  ;;  %v4258_v37 = vsub.f32 %v10727_v16, %v4174_v8  ;;  %v4260_v16 = vsub.f32 %v10731_v12, %v11046_v18 }
 0x85f   : >> { %7101 = vpow2.f32 %v4369_v55 }
 0x860   : >> { %4509 = vadd.xlane.f32.xlu0 %v4508_v62  ;;  %v11056_v43 = vpop.eup %7091  ;;  %7103 = vpow2.f32 %v4359_v27 }
 0x861   : >> { %v4189_v32 = vpop.xlane.xlu0 %4188  ;;  %v4183_v45 = vpop.xlane.xlu1 %4182  ;;  %v4529_v42 = vsel %vm4012_vm3, %v11056_v43, 0.0  ;;  %7105 = vpow2.f32 %v4373_v33  ;;  %v4371_v33 = vmul.f32 1.442695, %v4256_v38  ;;  %v4379_v38 = vmul.f32 1.442695, %v4260_v16 }
 0x862   : >> { %v11063_v44 = vpop.eup %7093  ;;  %4530 = vadd.xlane.f32.xlu1 %v4529_v42  ;;  %v4261_v49 = vsub.f32 %v10746_v46, %v4183_v45  ;;  %7107 = vpow2.f32 %v4363_v61  ;;  %v4263_v58 = vsub.f32 %v10741_v10, %v4189_v32  ;;  %v4375_v10 = vmul.f32 1.442695, %v4258_v37 }
 0x863   : >> { %v11067_v63 = vpop.eup %7095  ;;  %v4535_v1 = vsel %vm4012_vm3, %v11063_v44, 0.0  ;;  %7109 = vpow2.f32 %v4377_v48 }
 0x864   : >> { %4515 = vadd.xlane.f32.xlu0 %v4514_v53  ;;  %v4520_v34 = vsel %vm4012_vm3, %v11067_v63, 0.0  ;;  %v11076_v27 = vpop.eup %7097  ;;  %v4381_v46 = vmul.f32 1.442695, %v4261_v49  ;;  %7111 = vpow2.f32 %v4367_v25  ;;  %v4385_v53 = vmul.f32 1.442695, %v4263_v58 }
 0x865   : >> { %v4192_v55 = vpop.xlane.xlu0 %4191  ;;  %v4526_v7 = vsel %vm4012_vm3, %v11076_v27, 0.0 }
 0x866   : >> { %4536 = vadd.xlane.f32.xlu1 %v4535_v1  ;;  %7113 = vpow2.f32 %v4381_v46  ;;  %v4264_v58 = vsub.f32 %v10757_v24, %v4192_v55 }
 0x867   : >> { %7115 = vpow2.f32 %v4371_v33 }
 0x868   : >> { %4521 = vadd.xlane.f32.xlu0 %v4520_v34  ;;  %v11078_v62 = vpop.eup %7099  ;;  %7117 = vpow2.f32 %v4385_v53 }
 0x869   : >> { %v4541_v6 = vsel %vm4012_vm3, %v11078_v62, 0.0  ;;  %v11084_v61 = vpop.eup %7101  ;;  %v4186_v42 = vpop.xlane.xlu0 %4185  ;;  %7119 = vpow2.f32 %v4375_v10  ;;  %v4387_v10 = vmul.f32 1.442695, %v4264_v58 }
 0x86a   : >> { %4542 = vadd.xlane.f32.xlu1 %v4541_v6  ;;  %v11088_v45 = vpop.eup %7103  ;;  %v4547_v8 = vsel %vm4012_vm3, %v11084_v61, 0.0  ;;  %v4262_v25 = vsub.f32 %v10764_v47, %v4186_v42  ;;  %7121 = vpow2.f32 %v4379_v38 }
 0x86b   : >> { %v11094_v32 = vpop.eup %7105  ;;  %v4532_v48 = vsel %vm4012_vm3, %v11088_v45, 0.0 }
 0x86c   : >> { %4527 = vadd.xlane.f32.xlu0 %v4526_v7  ;;  %12519 = vst [vmem:[#allocation156_spill] sm:$0xff] %v11094_v32  ;;  %v11098_v49 = vpop.eup %7107  ;;  %v4553_v12 = vsel %vm4012_vm3, %v11094_v32, 0.0  ;;  %v4383_v33 = vmul.f32 1.442695, %v4262_v25 }
 0x86d   : >> { %v4405_v1 = vpop.xlane.xlu0 %4404  ;;  %v11103_v18 = vpop.eup %7109  ;;  %v4538_v34 = vsel %vm4012_vm3, %v11098_v49, 0.0 }
 0x86e   : >> { %4548 = vadd.xlane.f32.xlu1 %v4547_v8  ;;  %12520 = vst [vmem:[#allocation155_spill] sm:$0xff] %v11103_v18  ;;  %v11107_v46 = vpop.eup %7111  ;;  %v4559_v47 = vsel %vm4012_vm3, %v11103_v18, 0.0  ;;  %7123 = vpow2.f32 %v4383_v33 }
 0x86f   : >> { %v4544_v6 = vsel %vm4012_vm3, %v11107_v46, 0.0 }
 0x870   : >> { %4533 = vadd.xlane.f32.xlu0 %v4532_v48  ;;  %v11112_v37 = vpop.eup %7113 }
 0x871   : >> { %12521 = vst [vmem:[#allocation158_spill] sm:$0xff] %v11112_v37  ;;  %v11116_v7 = vpop.eup %7115  ;;  %v4399_v42 = vpop.xlane.xlu0 %4398  ;;  %v4565_v24 = vsel %vm4012_vm3, %v11112_v37, 0.0 }
 0x872   : >> { %4554 = vadd.xlane.f32.xlu1 %v4553_v12  ;;  %v11120_v55 = vpop.eup %7117  ;;  %7125 = vrcp.f32 %v4399_v42  ;;  %v4550_v16 = vsel %vm4012_vm3, %v11116_v7, 0.0 }
 0x873   : >> { %12522 = vst [vmem:[#allocation157_spill] sm:$0xff] %v11120_v55  ;;  %v11124_v8 = vpop.eup %7119  ;;  %v4571_v38 = vsel %vm4012_vm3, %v11120_v55, 0.0 }
 0x874   : >> { %4539 = vadd.xlane.f32.xlu0 %v4538_v34  ;;  %12523 = vst [vmem:[#allocation159_spill] sm:$0xff] %v11124_v8  ;;  %v4556_v25 = vsel %vm4012_vm3, %v11124_v8, 0.0  ;;  %v11130_v12 = vpop.eup %7121 }
 0x875   : >> { %12524 = vst [vmem:[#allocation162_spill] sm:$0xff] %v11130_v12  ;;  %v4562_v58 = vsel %vm4012_vm3, %v11130_v12, 0.0 }
 0x876   : >> { %4560 = vadd.xlane.f32.xlu1 %v4559_v47 }
 0x878   : >> { %v4408_v53 = vpop.xlane.xlu1 %4407  ;;  %4545 = vadd.xlane.f32.xlu0 %v4544_v6  ;;  %v11134_v33 = vpop.eup %7123 }
 0x879   : >> { %12525 = vst [vmem:[#allocation164_spill] sm:$0xff] %v11134_v33 }
 0x87a   : >> { %4566 = vadd.xlane.f32.xlu1 %v4565_v24  ;;  %v4568_v24 = vsel %vm4012_vm3, %v11134_v33, 0.0 }
 0x87c   : >> { %v4402_v48 = vpop.xlane.xlu1 %4401  ;;  %4551 = vadd.xlane.f32.xlu0 %v4550_v16  ;;  %v7126_v6 = vpop.eup %7125 }
 0x87d   : >> { %7127 = vrcp.f32 %v4402_v48 }
 0x87e   : >> { %7129 = vpow2.f32 %v4387_v10  ;;  %4572 = vadd.xlane.f32.xlu1 %v4571_v38  ;;  %v4653_v38 = vmul.f32 %v7126_v6, %v10775_v31 }
 0x87f   : >> { %7131 = vrcp.f32 %v4408_v53 }
 0x880   : >> { %v4420_v34 = vpop.xlane.xlu1 %4419  ;;  %4557 = vadd.xlane.f32.xlu0 %v4556_v25  ;;  %v4417_v42 = vpop.xlane.xlu0 %4416 }
 0x884   : >> { %v4414_v47 = vpop.xlane.xlu1 %4413  ;;  %4563 = vadd.xlane.f32.xlu0 %v4562_v58  ;;  %v4411_v12 = vpop.xlane.xlu0 %4410 }
 0x885   : >> { %7133 = vrcp.f32 %v4414_v47 }
 0x886   : >> { %7135 = vrcp.f32 %v4411_v12 }
 0x887   : >> { %v7128_v10 = vpop.eup %7127  ;;  %7137 = vrcp.f32 %v4405_v1 }
 0x888   : >> { %v11138_v16 = vpop.eup %7129  ;;  %v4429_v48 = vpop.xlane.xlu1 %4428  ;;  %4569 = vadd.xlane.f32.xlu0 %v4568_v24  ;;  %v4654_v25 = vmul.f32 %v7128_v10, %v10787_v29  ;;  %7139 = vrcp.f32 %v4420_v34 }
 0x889   : >> { %12526 = vst [vmem:[#allocation161_spill] sm:$0xff] %v11138_v16  ;;  %v4574_v37 = vsel %vm4012_vm3, %v11138_v16, 0.0  ;;  %7141 = vrcp.f32 %v4417_v42  ;;  %v7132_v10 = vpop.eup %7131 }
 0x88a   : >> { %v4717_v55 = vpack.c.bf16 %v4654_v25, %v4653_v38  ;;  %v4656_v1 = vmul.f32 %v7132_v10, %v10782_v0 }
 0x88c   : >> { %v4423_v58 = vpop.xlane.xlu1 %4422  ;;  %4575 = vadd.xlane.f32.xlu0 %v4574_v37  ;;  %6597 = vmatprep.mubr.msk.bf16.mxu0 %vm4012_vm3, %v4717_v55 }
 0x88f   : >> { %v7134_v37 = vpop.eup %7133 }
 0x890   : >> { %v4432_v18 = vpop.xlane.xlu1 %4431  ;;  %v4441_v8 = vpop.xlane.xlu0 %4440 }
 0x891   : >> { %v7136_v53 = vpop.eup %7135 }
 0x892   : >> { %v7138_v12 = vpop.eup %7137  ;;  %v4657_v34 = vmul.f32 %v7136_v53, %v10802_v50 }
 0x894   : >> { %v4426_v24 = vpop.xlane.xlu1 %4425  ;;  %v4435_v33 = vpop.xlane.xlu0 %4434 }
 0x895   : >> { %7143 = vrcp.f32 %v4426_v24  ;;  %v7140_v24 = vpop.eup %7139 }
 0x896   : >> { %7145 = vrcp.f32 %v4423_v58  ;;  %v4655_v58 = vmul.f32 %v7138_v12, %v10769_v23 }
 0x898   : >> { %v4198_v31 = vpop.xlane.xlu1 %4197  ;;  %v4444_v6 = vpop.xlane.xlu0 %4443 }
 0x899   : >> { %v4266_v29 = vsub.f32 %v10849_v51, %v4198_v31  ;;  %v4658_v51 = vmul.f32 %v7134_v37, %v10805_v35 }
 0x89b   : >> { %v4391_v38 = vmul.f32 1.442695, %v4266_v29  ;;  %v4718_v29 = vpack.c.bf16 %v4656_v1, %v4655_v58  ;;  %v4719_v10 = vpack.c.bf16 %v4658_v51, %v4657_v34 }
 0x89c   : >> { %v11146_v55 = vpop.xlane.xlu1 %4200  ;;  %v4438_v25 = vpop.xlane.xlu0 %4437 }
 0x89d   : >> { %7147 = vpow2.f32 %v4391_v38  ;;  %v7142_v38 = vpop.eup %7141 }
 0x89e   : >> { %7149 = vrcp.f32 %v4429_v48  ;;  %v4659_v23 = vmul.f32 %v7142_v38, %v10795_v56 }
 0x89f   : >> { %7151 = vrcp.f32 %v4432_v18  ;;  %v7144_v32 = vpop.eup %7143 }
 0x8a0   : >> { %v4204_v47 = vpop.xlane.xlu1 %4203  ;;  %v4764_v16 = vpop.permute.xlu0 %4763  ;;  %7153 = vrcp.f32 %v4438_v25 }
 0x8a1   : >> { %v4268_v42 = vsub.f32 %v10873_v5, %v4204_v47  ;;  %6595 = vmatprep.subr.bf16.mxu0 %v4764_v16  ;;  %7155 = vrcp.f32 %v4435_v33  ;;  %v7146_v50 = vpop.eup %7145  ;;  %v4660_v5 = vmul.f32 %v7140_v24, %v10792_v30  ;;  %v4662_v33 = vmul.f32 %v7144_v32, %v10833_v17 }
 0x8a2   : >> { %6596 = vmatpush3.bf16.msra.mxu0 %v4764_v16  ;;  %v4661_v48 = vmul.f32 %v7146_v50, %v10818_v60 }
 0x8a3   : >> { %v4395_v31 = vmul.f32 1.442695, %v4268_v42  ;;  %v4720_v25 = vpack.c.bf16 %v4660_v5, %v4659_v23  ;;  %v12527_v23 = vld [vmem:[#allocation178_spill] sm:$0xff]  ;;  %v12528_v5 = vld [vmem:[#allocation180_spill] sm:$0xff] }
 0x8a4   : >> { %v4453_v0 = vpop.xlane.xlu1 %4452  ;;  %v4721_v1 = vpack.c.bf16 %v4662_v33, %v4661_v48 }
 0x8a5   : >> { %7157 = vpow2.f32 %v4395_v31  ;;  %6598 = vmatmul.mubr.msk.bf16.vlgmr.msra.gmra.mrb[0].mxu0 %vm4012_vm3, %v4718_v29 }
 0x8a6   : >> { %6601 = vmatprep.mubr.msk.bf16.mxu0 %vm4012_vm3, %v4719_v10  ;;  %7159 = vrcp.f32 %v4444_v6 }
 0x8a7   : >> { %v11155_v35 = vpop.eup %7147  ;;  %7161 = vrcp.f32 %v4441_v8 }
 0x8a8   : >> { %v4447_v18 = vpop.xlane.xlu1 %4446  ;;  %v4580_v16 = vsel %vm4012_vm3, %v11155_v35, 0.0  ;;  %v7150_v37 = vpop.eup %7149 }
 0x8a9   : >> { %4581 = vadd.xlane.f32.xlu0 %v4580_v16  ;;  %v7152_v53 = vpop.eup %7151  ;;  %7163 = vrcp.f32 %v4447_v18  ;;  %v4663_v8 = vmul.f32 %v7150_v37, %v10813_v13 }
 0x8aa   : >> { %v7154_v47 = vpop.eup %7153  ;;  %v4664_v17 = vmul.f32 %v7152_v53, %v10822_v9 }
 0x8ab   : >> { %v7156_v30 = vpop.eup %7155  ;;  %v4666_v6 = vmul.f32 %v7154_v47, %v10859_v15 }
 0x8ac   : >> { %v4456_v12 = vpop.xlane.xlu1 %4455  ;;  %v4665_v34 = vmul.f32 %v7156_v30, %v10838_v54  ;;  %v4722_v51 = vpack.c.bf16 %v4664_v17, %v4663_v8  ;;  %v12531_v17 = vld [vmem:[#allocation182_spill] sm:$0xff] }
 0x8ad   : >> { %6602 = vmatmul.mubr.msk.bf16.gmra.mrb[4].mxu0 %vm4012_vm3, %v4720_v25 }
 0x8ae   : >> { %6605 = vmatprep.mubr.msk.bf16.mxu0 %vm4012_vm3, %v4721_v1  ;;  %v4723_v24 = vpack.c.bf16 %v4666_v6, %v4665_v34 }
 0x8af   : >> { %v11165_v56 = vpop.eup %7157 }
 0x8b0   : >> { %v4450_v32 = vpop.xlane.xlu1 %4449  ;;  %v4586_v60 = vsel %vm4012_vm3, %v11165_v56, 0.0  ;;  %v7160_v42 = vpop.eup %7159 }
 0x8b1   : >> { %7165 = vrcp.f32 %v4450_v32  ;;  %4587 = vadd.xlane.f32.xlu0 %v4586_v60  ;;  %v7162_v9 = vpop.eup %7161  ;;  %v4668_v31 = vmul.f32 %v7160_v42, %v10845_v3  ;;  %v12529_v3 = vld [vmem:[#allocation181_spill] sm:$0xff]  ;;  %v12533_v42 = vld [vmem:[#allocation176_spill] sm:$0xff] }
 0x8b2   : >> { %7167 = vrcp.f32 %v4456_v12  ;;  %v4667_v38 = vmul.f32 %v7162_v9, %v10826_v19  ;;  %v12530_v19 = vld [vmem:[#allocation179_spill] sm:$0xff]  ;;  %v12532_v60 = vld [vmem:[#allocation185_spill] sm:$0xff] }
 0x8b3   : >> { %7169 = vrcp.f32 %v4453_v0  ;;  %v7164_v29 = vpop.eup %7163  ;;  %v12534_v9 = vld [vmem:[#allocation183_spill] sm:$0xff] }
 0x8b4   : >> { %v4465_v58 = vpop.xlane.xlu1 %4464  ;;  %v4724_v10 = vpack.c.bf16 %v4668_v31, %v4667_v38  ;;  %v4669_v0 = vmul.f32 %v7164_v29, %v12527_v23 }
 0x8b5   : >> { %6606 = vmatmul.mubr.msk.bf16.gmra.mrb[8].mxu0 %vm4012_vm3, %v4722_v51 }
 0x8b6   : >> { %6609 = vmatprep.mubr.msk.bf16.mxu0 %vm4012_vm3, %v4723_v24 }
 0x8b8   : >> { %v4459_v15 = vpop.xlane.xlu1 %4458 }
 0x8b9   : >> { %7171 = vrcp.f32 %v4459_v15 }
 0x8bb   : >> { %v7166_v13 = vpop.eup %7165 }
 0x8bc   : >> { %v7168_v54 = vpop.eup %7167  ;;  %v4462_v50 = vpop.xlane.xlu1 %4461  ;;  %v4670_v18 = vmul.f32 %v7166_v13, %v12528_v5 }
 0x8bd   : >> { %7173 = vrcp.f32 %v4462_v50  ;;  %6610 = vmatmul.mubr.msk.bf16.gmra.mrb[12].mxu0 %vm4012_vm3, %v4724_v10  ;;  %v7170_v16 = vpop.eup %7169  ;;  %v4672_v48 = vmul.f32 %v7168_v54, %v12529_v3 }
 0x8be   : >> { %v4725_v33 = vpack.c.bf16 %v4670_v18, %v4669_v0  ;;  %7175 = vrcp.f32 %v4465_v58  ;;  %v4671_v25 = vmul.f32 %v7170_v16, %v12530_v19  ;;  %v4267_v58 = vsub.f32 %v12533_v42, %v11146_v55 }
 0x8c0   : >> { %v4468_v37 = vpop.xlane.xlu1 %4467  ;;  %6613 = vmatprep.mubr.msk.bf16.mxu0 %vm4012_vm3, %v4725_v33  ;;  %v4726_v53 = vpack.c.bf16 %v4672_v48, %v4671_v25  ;;  %v4393_v38 = vmul.f32 1.442695, %v4267_v58  ;;  %v12535_v25 = vld [vmem:[#allocation184_spill] sm:$0xff] }
 0x8c1   : >> { %7177 = vrcp.f32 %v4468_v37 }
 0x8c2   : >> { %7179 = vpow2.f32 %v4393_v38 }
 0x8c3   : >> { %v7172_v1 = vpop.eup %7171 }
 0x8c4   : >> { %v4471_v12 = vpop.xlane.xlu1 %4470  ;;  %v4673_v32 = vmul.f32 %v7172_v1, %v12531_v17 }
 0x8c5   : >> { %6614 = vmatmul.mubr.msk.bf16.gmra.mrb[16].mxu0 %vm4012_vm3, %v4726_v53  ;;  %7181 = vrcp.f32 %v4471_v12 }
 0x8c7   : >> { %v7174_v47 = vpop.eup %7173 }
 0x8c8   : >> { %v4477_v30 = vpop.xlane.xlu1 %4476  ;;  %v4674_v6 = vmul.f32 %v7174_v47, %v12532_v60  ;;  %v7176_v8 = vpop.eup %7175 }
 0x8c9   : >> { %v4675_v31 = vmul.f32 %v7176_v8, %v12534_v9 }
 0x8ca   : >> { %v4727_v34 = vpack.c.bf16 %v4674_v6, %v4673_v32 }
 0x8cb   : >> { %v7178_v51 = vpop.eup %7177 }
 0x8cc   : >> { %v4483_v24 = vpop.xlane.xlu1 %4482  ;;  %6617 = vmatprep.mubr.msk.bf16.mxu0 %vm4012_vm3, %v4727_v34  ;;  %v4676_v15 = vmul.f32 %v7178_v51, %v10923_v26  ;;  %v11193_v18 = vpop.eup %7179 }
 0x8cd   : >> { %v4583_v32 = vsel %vm4012_vm3, %v11193_v18, 0.0 }
 0x8ce   : >> { %v4728_v29 = vpack.c.bf16 %v4676_v15, %v4675_v31 }
 0x8cf   : >> { %v7182_v16 = vpop.eup %7181 }
 0x8d0   : >> { %v4489_v13 = vpop.xlane.xlu1 %4488  ;;  %6618 = vmatmul.mubr.msk.bf16.gmra.mrb[20].mxu0 %vm4012_vm3, %v4728_v29  ;;  %v4677_v53 = vmul.f32 %v7182_v16, %v12535_v25  ;;  %v12536_v29 = vld [vmem:[#allocation186_spill] sm:$0xff] }
 0x8d1   : >> { %v4195_v10 = vpop.xlane.xlu0 %4194 }
 0x8d2   : >> { %v4265_v54 = vsub.f32 %v10960_v22, %v4195_v10 }
 0x8d4   : >> { %v4389_v50 = vmul.f32 1.442695, %v4265_v54  ;;  %v4495_v55 = vpop.xlane.xlu1 %4494 }
 0x8d5   : >> { %v4474_v23 = vpop.xlane.xlu0 %4473 }
 0x8d6   : >> { %7183 = vpow2.f32 %v4389_v50 }
 0x8d7   : >> { %7185 = vrcp.f32 %v4474_v23  ;;  %v12537_v23 = vld [vmem:[#allocation187_spill] sm:$0xff] }
 0x8d8   : >> { %7187 = vrcp.f32 %v4477_v30  ;;  %v4501_v26 = vpop.xlane.xlu1 %4500 }
 0x8d9   : >> { %v4480_v0 = vpop.xlane.xlu0 %4479 }
 0x8da   : >> { %7189 = vrcp.f32 %v4480_v0 }
 0x8db   : >> { %7191 = vrcp.f32 %v4483_v24 }
 0x8dd   : >> { %v4486_v5 = vpop.xlane.xlu0 %4485 }
 0x8de   : >> { %7193 = vrcp.f32 %v4486_v5 }
 0x8df   : >> { %7195 = vrcp.f32 %v4489_v13  ;;  %v4507_v22 = vpop.xlane.xlu1 %4506 }
 0x8e0   : >> { %v11195_v33 = vpop.eup %7183 }
 0x8e1   : >> { %v7186_v3 = vpop.eup %7185  ;;  %v4492_v48 = vpop.xlane.xlu0 %4491  ;;  %v4577_v37 = vsel %vm4012_vm3, %v11195_v33, 0.0 }
 0x8e2   : >> { %v7188_v19 = vpop.eup %7187  ;;  %7197 = vrcp.f32 %v4492_v48  ;;  %4578 = vadd.xlane.f32.xlu1 %v4577_v37  ;;  %v4678_v12 = vmul.f32 %v7186_v3, %v10973_v36  ;;  %v12538_v3 = vld [vmem:[#allocation160_spill] sm:$0xff] }
 0x8e3   : >> { %7199 = vrcp.f32 %v4495_v55  ;;  %v4513_v47 = vpop.xlane.xlu1 %4512  ;;  %v4679_v60 = vmul.f32 %v7188_v19, %v10938_v57 }
 0x8e4   : >> { %v7190_v1 = vpop.eup %7189  ;;  %v4729_v30 = vpack.c.bf16 %v4678_v12, %v4677_v53 }
 0x8e5   : >> { %v4498_v17 = vpop.xlane.xlu0 %4497  ;;  %v4680_v6 = vmul.f32 %v7190_v1, %v10985_v14  ;;  %v7192_v8 = vpop.eup %7191 }
 0x8e6   : >> { %6621 = vmatprep.mubr.msk.bf16.mxu0 %vm4012_vm3, %v4729_v30  ;;  %7201 = vrcp.f32 %v4498_v17  ;;  %4584 = vadd.xlane.f32.xlu1 %v4583_v32  ;;  %v4681_v58 = vmul.f32 %v7192_v8, %v10947_v11 }
 0x8e7   : >> { %v4730_v34 = vpack.c.bf16 %v4680_v6, %v4679_v60  ;;  %7203 = vrcp.f32 %v4501_v26  ;;  %v4519_v36 = vpop.xlane.xlu1 %4518 }
 0x8e8   : >> { %v7194_v51 = vpop.eup %7193 }
 0x8e9   : >> { %6622 = vmatmul.mubr.msk.bf16.gmra.mrb[24].mxu0 %vm4012_vm3, %v4730_v34  ;;  %v4504_v42 = vpop.xlane.xlu0 %4503  ;;  %v4682_v24 = vmul.f32 %v7194_v51, %v10997_v4  ;;  %v7196_v9 = vpop.eup %7195 }
 0x8ea   : >> { %7205 = vrcp.f32 %v4504_v42  ;;  %v4683_v38 = vmul.f32 %v7196_v9, %v12536_v29 }
 0x8eb   : >> { %v4731_v57 = vpack.c.bf16 %v4682_v24, %v4681_v58  ;;  %7207 = vrcp.f32 %v4507_v22  ;;  %v4525_v31 = vpop.xlane.xlu1 %4524 }
 0x8ec   : >> { %v7198_v14 = vpop.eup %7197 }
 0x8ed   : >> { %6625 = vmatprep.mubr.msk.bf16.mxu0 %vm4012_vm3, %v4731_v57  ;;  %v4510_v15 = vpop.xlane.xlu0 %4509  ;;  %v4684_v13 = vmul.f32 %v7198_v14, %v11005_v41  ;;  %v7200_v10 = vpop.eup %7199 }
 0x8ee   : >> { %7209 = vrcp.f32 %v4510_v15  ;;  %v4685_v55 = vmul.f32 %v7200_v10, %v12537_v23 }
 0x8ef   : >> { %v4732_v54 = vpack.c.bf16 %v4684_v13, %v4683_v38  ;;  %7211 = vrcp.f32 %v4513_v47  ;;  %v4531_v11 = vpop.xlane.xlu1 %4530 }
 0x8f0   : >> { %v7202_v50 = vpop.eup %7201 }
 0x8f1   : >> { %6626 = vmatmul.mubr.msk.bf16.gmra.mrb[28].mxu0 %vm4012_vm3, %v4732_v54  ;;  %v4516_v4 = vpop.xlane.xlu0 %4515  ;;  %v4686_v0 = vmul.f32 %v7202_v50, %v11021_v21  ;;  %v7204_v26 = vpop.eup %7203 }
 0x8f2   : >> { %7213 = vrcp.f32 %v4516_v4  ;;  %v4687_v48 = vmul.f32 %v7204_v26, %v12538_v3 }
 0x8f3   : >> { %v4733_v5 = vpack.c.bf16 %v4686_v0, %v4685_v55  ;;  %7215 = vrcp.f32 %v4519_v36  ;;  %v4537_v22 = vpop.xlane.xlu1 %4536 }
 0x8f4   : >> { %v7206_v16 = vpop.eup %7205 }
 0x8f5   : >> { %6629 = vmatprep.mubr.msk.bf16.mxu0 %vm4012_vm3, %v4733_v5  ;;  %v4522_v41 = vpop.xlane.xlu0 %4521  ;;  %v4688_v37 = vmul.f32 %v7206_v16, %v11029_v2  ;;  %v7208_v19 = vpop.eup %7207 }
 0x8f6   : >> { %7217 = vrcp.f32 %v4522_v41  ;;  %v4689_v1 = vmul.f32 %v7208_v19, %v11007_v39 }
 0x8f7   : >> { %v4734_v25 = vpack.c.bf16 %v4688_v37, %v4687_v48  ;;  %7219 = vrcp.f32 %v4525_v31  ;;  %v4543_v12 = vpop.xlane.xlu1 %4542 }
 0x8f8   : >> { %v7210_v53 = vpop.eup %7209 }
 0x8f9   : >> { %6630 = vmatmul.mubr.msk.bf16.gmra.mrb[32].mxu0 %vm4012_vm3, %v4734_v25  ;;  %v4528_v21 = vpop.xlane.xlu0 %4527  ;;  %v4690_v47 = vmul.f32 %v7210_v53, %v11043_v59  ;;  %v7212_v30 = vpop.eup %7211  ;;  %v12540_v53 = vld [vmem:[#allocation159_spill] sm:$0xff] }
 0x8fa   : >> { %7221 = vrcp.f32 %v4528_v21  ;;  %v4691_v6 = vmul.f32 %v7212_v30, %v11017_v40  ;;  %v12542_v30 = vld [vmem:[#allocation162_spill] sm:$0xff] }
 0x8fb   : >> { %v4735_v17 = vpack.c.bf16 %v4690_v47, %v4689_v1  ;;  %7223 = vrcp.f32 %v4531_v11  ;;  %v4549_v60 = vpop.xlane.xlu1 %4548 }
 0x8fc   : >> { %v7214_v32 = vpop.eup %7213 }
 0x8fd   : >> { %6633 = vmatprep.mubr.msk.bf16.mxu0 %vm4012_vm3, %v4735_v17  ;;  %v4534_v2 = vpop.xlane.xlu0 %4533  ;;  %v4692_v8 = vmul.f32 %v7214_v32, %v11054_v52  ;;  %v7216_v34 = vpop.eup %7215 }
 0x8fe   : >> { %7225 = vrcp.f32 %v4534_v2  ;;  %v4693_v59 = vmul.f32 %v7216_v34, %v11031_v20  ;;  %v12544_v34 = vld [vmem:[#allocation164_spill] sm:$0xff] }
 0x8ff   : >> { %v4736_v51 = vpack.c.bf16 %v4692_v8, %v4691_v6  ;;  %7227 = vrcp.f32 %v4537_v22  ;;  %v4555_v24 = vpop.xlane.xlu1 %4554  ;;  %v12543_v6 = vld [vmem:[#allocation158_spill] sm:$0xff] }
 0x900   : >> { %v7218_v36 = vpop.eup %7217 }
 0x901   : >> { %6634 = vmatmul.mubr.msk.bf16.gmra.mrb[36].mxu0 %vm4012_vm3, %v4736_v51  ;;  %v4540_v39 = vpop.xlane.xlu0 %4539  ;;  %v4694_v42 = vmul.f32 %v7218_v36, %v11067_v63  ;;  %v7220_v58 = vpop.eup %7219 }
 0x902   : >> { %7229 = vrcp.f32 %v4540_v39  ;;  %v4695_v52 = vmul.f32 %v7220_v58, %v11039_v28 }
 0x903   : >> { %v4737_v9 = vpack.c.bf16 %v4694_v42, %v4693_v59  ;;  %7231 = vrcp.f32 %v4543_v12  ;;  %v4561_v20 = vpop.xlane.xlu1 %4560  ;;  %v12545_v42 = vld [vmem:[#allocation157_spill] sm:$0xff] }
 0x904   : >> { %v7222_v57 = vpop.eup %7221 }
 0x905   : >> { %6637 = vmatprep.mubr.msk.bf16.mxu0 %vm4012_vm3, %v4737_v9  ;;  %v4546_v40 = vpop.xlane.xlu0 %4545  ;;  %v4696_v14 = vmul.f32 %v7222_v57, %v11076_v27  ;;  %v7224_v31 = vpop.eup %7223 }
 0x906   : >> { %7233 = vrcp.f32 %v4546_v40  ;;  %v4697_v38 = vmul.f32 %v7224_v31, %v11056_v43  ;;  %v6874_v40 = vld [vmem:[%s11260_s24] sm:$0xff]  }
 0x907   : >> { %v4738_v15 = vpack.c.bf16 %v4696_v14, %v4695_v52  ;;  %7235 = vrcp.f32 %v4549_v60  ;;  %v4567_v23 = vpop.xlane.xlu1 %4566  ;;  %6661 = vmatprep.subr.bf16.mxu0 %v6874_v40 }
 0x908   : >> { %v7226_v29 = vpop.eup %7225  ;;  %6662 = vmatpush3.bf16.msra.mxu0 %v6874_v40  ;;  %v12563_v40 = vld [vmem:[#allocation26_spill] sm:$0xff] }
 0x909   : >> { %6638 = vmatmul.mubr.msk.bf16.gmra.mrb[40].mxu0 %vm4012_vm3, %v4738_v15  ;;  %v4552_v63 = vpop.xlane.xlu0 %4551  ;;  %v4698_v13 = vmul.f32 %v7226_v29, %v11088_v45  ;;  %v7228_v10 = vpop.eup %7227 }
 0x90a   : >> { %7237 = vrcp.f32 %v4552_v63  ;;  %v4699_v27 = vmul.f32 %v7228_v10, %v11063_v44  ;;  %v6875_v10 = vld [vmem:[%s11260_s24 + $0x8] sm:$0xff]  }
 0x90b   : >> { %v4739_v54 = vpack.c.bf16 %v4698_v13, %v4697_v38  ;;  %7239 = vrcp.f32 %v4555_v24  ;;  %v4573_v44 = vpop.xlane.xlu1 %4572  ;;  %v12546_v24 = vld [vmem:[#allocation161_spill] sm:$0xff]  ;;  %6663 = vmatprep.subr.bf16.mxu0 %v6875_v10 }
 0x90c   : >> { %v7230_v50 = vpop.eup %7229  ;;  %6664 = vmatpush3.bf16.msra.mxu0 %v6875_v10 }
 0x90d   : >> { %6641 = vmatprep.mubr.msk.bf16.mxu0 %vm4012_vm3, %v4739_v54  ;;  %v4558_v28 = vpop.xlane.xlu0 %4557  ;;  %v4700_v11 = vmul.f32 %v7230_v50, %v11098_v49  ;;  %v7232_v4 = vpop.eup %7231 }
 0x90e   : >> { %7241 = vrcp.f32 %v4558_v28  ;;  %v4701_v45 = vmul.f32 %v7232_v4, %v11078_v62 }
 0x90f   : >> { %v4740_v55 = vpack.c.bf16 %v4700_v11, %v4699_v27  ;;  %7243 = vrcp.f32 %v4561_v20 }
 0x910   : >> { %v7234_v0 = vpop.eup %7233 }
 0x911   : >> { %6642 = vmatmul.mubr.msk.bf16.gmra.mrb[44].mxu0 %vm4012_vm3, %v4740_v55  ;;  %v4564_v43 = vpop.xlane.xlu0 %4563  ;;  %v4702_v26 = vmul.f32 %v7234_v0, %v11107_v46  ;;  %v7236_v5 = vpop.eup %7235  ;;  %v12539_v46 = vld [vmem:[#allocation156_spill] sm:$0xff] }
 0x912   : >> { %7245 = vrcp.f32 %v4564_v43  ;;  %v4703_v41 = vmul.f32 %v7236_v5, %v11084_v61  ;;  %v12541_v61 = vld [vmem:[#allocation155_spill] sm:$0xff] }
 0x913   : >> { %v4741_v16 = vpack.c.bf16 %v4702_v26, %v4701_v45  ;;  %7247 = vrcp.f32 %v4567_v23 }
 0x914   : >> { %v7238_v22 = vpop.eup %7237 }
 0x915   : >> { %6645 = vmatprep.mubr.msk.bf16.mxu0 %vm4012_vm3, %v4741_v16  ;;  %v4570_v49 = vpop.xlane.xlu0 %4569  ;;  %v4704_v3 = vmul.f32 %v7238_v22, %v11116_v7  ;;  %v7240_v48 = vpop.eup %7239  ;;  %v12550_v22 = vld [vmem:[#allocation13_spill] sm:$0xff] }
 0x916   : >> { %7249 = vrcp.f32 %v4570_v49  ;;  %v4705_v25 = vmul.f32 %v7240_v48, %v12539_v46  ;;  %v12551_v49 = vld [vmem:[#allocation21_spill] sm:$0xff]  ;;  %v12553_v48 = vld [vmem:[#allocation19_spill] sm:$0xff] }
 0x917   : >> { %v4742_v37 = vpack.c.bf16 %v4704_v3, %v4703_v41  ;;  %7251 = vrcp.f32 %v4573_v44 }
 0x918   : >> { %v7242_v19 = vpop.eup %7241 }
 0x919   : >> { %6646 = vmatmul.mubr.msk.bf16.gmra.mrb[48].mxu0 %vm4012_vm3, %v4742_v37  ;;  %v4576_v62 = vpop.xlane.xlu0 %4575  ;;  %v4706_v12 = vmul.f32 %v7242_v19, %v12540_v53  ;;  %v7244_v21 = vpop.eup %7243  ;;  %v12555_v53 = vld [vmem:[#allocation22_spill] sm:$0xff] }
 0x91a   : >> { %7253 = vrcp.f32 %v4576_v62  ;;  %v4707_v7 = vmul.f32 %v7244_v21, %v12541_v61  ;;  %v12554_v62 = vld [vmem:[#allocation14_spill] sm:$0xff] }
 0x91b   : >> { %v4743_v1 = vpack.c.bf16 %v4706_v12, %v4705_v25 }
 0x91c   : >> { %v7246_v47 = vpop.eup %7245 }
 0x91d   : >> { %6649 = vmatprep.mubr.msk.bf16.mxu0 %vm4012_vm3, %v4743_v1  ;;  %v4708_v17 = vmul.f32 %v7246_v47, %v12542_v30  ;;  %v7248_v32 = vpop.eup %7247  ;;  %v12556_v1 = vld [vmem:[#allocation12_spill] sm:$0xff] }
 0x91e   : >> { %v4709_v8 = vmul.f32 %v7248_v32, %v12543_v6 }
 0x91f   : >> { %v4744_v60 = vpack.c.bf16 %v4708_v17, %v4707_v7  ;;  %v12557_v7 = vld [vmem:[#allocation20_spill] sm:$0xff] }
 0x920   : >> { %v7250_v2 = vpop.eup %7249 }
 0x921   : >> { %6650 = vmatmul.mubr.msk.bf16.gmra.mrb[52].mxu0 %vm4012_vm3, %v4744_v60  ;;  %v4710_v51 = vmul.f32 %v7250_v2, %v12544_v34  ;;  %v7252_v36 = vpop.eup %7251  ;;  %v12558_v2 = vld [vmem:[#allocation17_spill] sm:$0xff] }
 0x922   : >> { %v4711_v58 = vmul.f32 %v7252_v36, %v12545_v42  ;;  %v12560_v36 = vld [vmem:[#allocation15_spill] sm:$0xff] }
 0x923   : >> { %v4745_v39 = vpack.c.bf16 %v4710_v51, %v4709_v8  ;;  %v12559_v8 = vld [vmem:[#allocation25_spill] sm:$0xff] }
 0x924   : >> { %v7254_v59 = vpop.eup %7253 }
 0x925   : >> { %6653 = vmatprep.mubr.msk.bf16.mxu0 %vm4012_vm3, %v4745_v39  ;;  %v4712_v9 = vmul.f32 %v7254_v59, %v12546_v24  ;;  %v12561_v59 = vld [vmem:[#allocation23_spill] sm:$0xff]  ;;  %v12562_v24 = vld [vmem:[#allocation18_spill] sm:$0xff] }
 0x927   : >> { %v4746_v57 = vpack.c.bf16 %v4712_v9, %v4711_v58 }
 0x929   : >> { %6654 = vmatmul.mubr.msk.bf16.gmra.mrb[56].mxu0 %vm4012_vm3, %v4746_v57 }
 0x936   : >> { %v4582_v52 = vpop.xlane.xlu0 %4581 }
 0x937   : >> { %7255 = vrcp.f32 %v4582_v52 }
 0x93e   : >> { %v4588_v14 = vpop.xlane.xlu0 %4587 }
 0x941   : >> { %v7256_v29 = vpop.eup %7255 }
 0x942   : >> { %v4714_v28 = vmul.f32 %v7256_v29, %v11155_v35 }
 0x96f   : >> { %v4579_v31 = vpop.xlane.xlu1 %4578 }
 0x970   : >> { %7257 = vrcp.f32 %v4579_v31  ;;  %v12564_v31 = vld [vmem:[#allocation16_spill] sm:$0xff] }
 0x971   : >> { %7259 = vrcp.f32 %v4588_v14 }
 0x973   : >> { %v4585_v15 = vpop.xlane.xlu1 %4584 }
 0x974   : >> { %7261 = vrcp.f32 %v4585_v15 }
 0x978   : >> { %v6599_v20 = vpop.f32.mrb[0].mxu0 }
 0x979   : >> { %v4899_v63 = vpop.f32.mrb[1].mxu0  ;;  %v5156_v44 = vmul.f32 %v6599_v20, %v12550_v22  ;;  %v12565_v20 = vld [vmem:[#allocation24_spill] sm:$0xff]  ;;  %v12570_v22 = vld [vmem:[#allocation33_spill] sm:$0xff] }
 0x97a   : >> { %v7258_v38 = vpop.eup %7257  ;;  %v6600_v13 = vpop.f32.mrb[2].mxu0 }
 0x97b   : >> { %v4902_v54 = vpop.f32.mrb[3].mxu0  ;;  %v4713_v50 = vmul.f32 %v7258_v38, %v11195_v33  ;;  %v7260_v27 = vpop.eup %7259  ;;  %v6876_v33 = vld [vmem:[%s11260_s24 + $0x10] ss:$0 sps:$4 sm:$0xff]   ;;  %v5157_v46 = vmul.f32 %v6600_v13, %v12554_v62 }
 0x97c   : >> { %v4716_v55 = vmul.f32 %v7260_v27, %v11165_v56  ;;  %6688 = vmatprep.subr.msk.bf16.mxu0 %vm12548_vm15, %v6876_v33  ;;  %v5306_v35 = vsel %vm12549_vm0, %v6876_v33, 0  ;;  %v12552_v56 = vld [vmem:[#allocation11_spill] sm:$0xff]  ;;  %v5155_v47 = vmul.f32 %v4902_v54, %v12556_v1  ;;  %v12566_v54 = vld [vmem:[#allocation29_spill] sm:$0xff] }
 0x97d   : >> { %v4747_v11 = vpack.c.bf16 %v4714_v28, %v4713_v50  ;;  %6666 = vmatpush3.bf16.msra.mxu0 %v5306_v35  ;;  %v5154_v3 = vmul.f32 %v4899_v63, %v12552_v56  ;;  %v12567_v27 = vld [vmem:[#allocation27_spill] sm:$0xff]  ;;  %v12574_v1 = vld [vmem:[#allocation37_spill] sm:$0xff] }
 0x97e   : >> { %v7262_v4 = vpop.eup %7261 }
 0x97f   : >> { %6657 = vmatprep.mubr.msk.bf16.mxu0 %vm4012_vm3, %v4747_v11  ;;  %v4715_v23 = vmul.f32 %v7262_v4, %v11193_v18 }
 0x980   : >> { %v6603_v0 = vpop.f32.mrb[4].mxu0 }
 0x981   : >> { %v4915_v43 = vpop.f32.mrb[5].mxu0  ;;  %v4748_v45 = vpack.c.bf16 %v4716_v55, %v4715_v23  ;;  %v5160_v6 = vmul.f32 %v6603_v0, %v12558_v2  ;;  %v12568_v55 = vld [vmem:[#allocation30_spill] sm:$0xff] }
 0x982   : >> { %v6604_v26 = vpop.f32.mrb[6].mxu0  ;;  %v5158_v39 = vmul.f32 %v4915_v43, %v12560_v36 }
 0x983   : >> { %v4918_v5 = vpop.f32.mrb[7].mxu0  ;;  %6658 = vmatmul.mubr.msk.bf16.gmra.mrb[60].mxu0 %vm4012_vm3, %v4748_v45  ;;  %v5161_v9 = vmul.f32 %v6604_v26, %v12562_v24  ;;  %v12569_v26 = vld [vmem:[#allocation28_spill] sm:$0xff]  ;;  %vm12610_vm3 = vcmask 326656  }
 0x984   : >> { %v5159_v15 = vmul.f32 %v4918_v5, %v12564_v31  ;;  %vm12611_vm7 = vmmov %vm12610_vm3 }
 0x985   : >> { %vm12616_vm14 = vmmov %vm12610_vm3 }
 0x986   : >> { %vm12617_vm6 = vmmov %vm12610_vm3 }
 0x987   : >> { %vm12624_vm9 = vmmov %vm12610_vm3 }
 0x988   : >> { %v6607_v16 = vpop.f32.mrb[8].mxu0  ;;  %vm12625_vm2 = vmmov %vm12610_vm3 }
 0x989   : >> { %v5164_v18 = vmul.f32 %v6607_v16, %v12551_v49  ;;  %v4931_v41 = vpop.f32.mrb[9].mxu0  ;;  %vm12626_vm8 = vmmov %vm12625_vm2 }
 0x98a   : >> { %v5162_v37 = vmul.f32 %v4931_v41, %v12553_v48  ;;  %v6608_v19 = vpop.f32.mrb[10].mxu0  ;;  %v12572_v48 = vld [vmem:[#allocation34_spill] sm:$0xff]  ;;  %vm12627_vm5 = vmmov %vm12625_vm2 }
 0x98b   : >> { %v5220_v25 = vadd.f32 %v5164_v18, %v5156_v44  ;;  %v5165_v12 = vmul.f32 %v6608_v19, %v12555_v53  ;;  %v4934_v21 = vpop.f32.mrb[11].mxu0  ;;  %v12571_v18 = vld [vmem:[#allocation31_spill] sm:$0xff]  ;;  %vm12632_vm12 = vmmov %vm12625_vm2 }
 0x98c   : >> { %v5218_v61 = vadd.f32 %v5162_v37, %v5154_v3  ;;  %v5163_v30 = vmul.f32 %v4934_v21, %v12557_v7  ;;  %v12575_v7 = vld [vmem:[#allocation35_spill] sm:$0xff]  ;;  %vm12633_vm4 = vmmov %vm12625_vm2 }
 0x98d   : >> { %v5221_v17 = vadd.f32 %v5165_v12, %v5157_v46  ;;  %v12573_v46 = vld [vmem:[#allocation32_spill] sm:$0xff]  ;;  %vm12634_vm10 = vmmov %vm12625_vm2 }
 0x98e   : >> { %v5219_v32 = vadd.f32 %v5163_v30, %v5155_v47  ;;  %vm12635_vm1 = vmmov %vm12625_vm2 }
 0x98f   : >> { %vm12636_vm15 = vmmov %vm12635_vm1 }
 0x990   : >> { %v6611_v60 = vpop.f32.mrb[12].mxu0  ;;  %vm12637_vm0 = vmmov %vm12635_vm1 }
 0x991   : >> { %v5168_v34 = vmul.f32 %v6611_v60, %v12559_v8  ;;  %v4947_v51 = vpop.f32.mrb[13].mxu0  ;;  %v12576_v60 = vld [vmem:[#allocation38_spill] sm:$0xff] }
 0x992   : >> { %v5166_v42 = vmul.f32 %v4947_v51, %v12561_v59  ;;  %v6612_v58 = vpop.f32.mrb[14].mxu0 }
 0x993   : >> { %v5224_v57 = vadd.f32 %v5168_v34, %v5160_v6  ;;  %v5169_v52 = vmul.f32 %v6612_v58, %v12563_v40  ;;  %v4950_v14 = vpop.f32.mrb[15].mxu0  ;;  %v12577_v34 = vld [vmem:[#allocation36_spill] sm:$0xff] }
 0x994   : >> { %v5222_v29 = vadd.f32 %v5166_v42, %v5158_v39  ;;  %v5167_v63 = vmul.f32 %v4950_v14, %v12565_v20  ;;  %v12578_v42 = vld [vmem:[#allocation41_spill] sm:$0xff]  ;;  %v12580_v14 = vld [vmem:[#allocation42_spill] sm:$0xff]  ;;  %v12581_v20 = vld [vmem:[#allocation40_spill] sm:$0xff] }
 0x995   : >> { %v5225_v38 = vadd.f32 %v5169_v52, %v5161_v9  ;;  %v12579_v9 = vld [vmem:[#allocation39_spill] sm:$0xff] }
 0x996   : >> { %v5223_v13 = vadd.f32 %v5167_v63, %v5159_v15 }
 0x998   : >> { %v6615_v10 = vpop.f32.mrb[16].mxu0 }
 0x999   : >> { %v5172_v50 = vmul.f32 %v6615_v10, %v12566_v54  ;;  %v4963_v28 = vpop.f32.mrb[17].mxu0  ;;  %v12582_v54 = vld [vmem:[#allocation45_spill] sm:$0xff] }
 0x99a   : >> { %v5170_v11 = vmul.f32 %v4963_v28, %v12567_v27  ;;  %v6616_v4 = vpop.f32.mrb[18].mxu0  ;;  %v12583_v27 = vld [vmem:[#allocation43_spill] sm:$0xff] }
 0x99b   : >> { %v5228_v23 = vadd.f32 %v5220_v25, %v5172_v50  ;;  %v5173_v0 = vmul.f32 %v6616_v4, %v12568_v55  ;;  %v4966_v43 = vpop.f32.mrb[19].mxu0  ;;  %v12584_v55 = vld [vmem:[#allocation46_spill] sm:$0xff] }
 0x99c   : >> { %v5226_v45 = vadd.f32 %v5218_v61, %v5170_v11  ;;  %v5171_v33 = vmul.f32 %v4966_v43, %v12569_v26  ;;  %v12585_v26 = vld [vmem:[#allocation44_spill] sm:$0xff] }
 0x99d   : >> { %v5229_v5 = vadd.f32 %v5221_v17, %v5173_v0 }
 0x99e   : >> { %v5227_v35 = vadd.f32 %v5219_v32, %v5171_v33 }
 0x9a3   : >> { %v6619_v16 = vpop.f32.mrb[20].mxu0 }
 0x9a4   : >> { %v5176_v44 = vmul.f32 %v6619_v16, %v12570_v22  ;;  %v4979_v49 = vpop.f32.mrb[21].mxu0  ;;  %v12586_v22 = vld [vmem:[#allocation49_spill] sm:$0xff] }
 0x9a5   : >> { %v5174_v41 = vmul.f32 %v4979_v49, %v12571_v18  ;;  %v6620_v56 = vpop.f32.mrb[22].mxu0  ;;  %v12587_v18 = vld [vmem:[#allocation47_spill] sm:$0xff] }
 0x9a6   : >> { %v5232_v3 = vadd.f32 %v5224_v57, %v5176_v44  ;;  %v5177_v37 = vmul.f32 %v6620_v56, %v12572_v48  ;;  %v4982_v19 = vpop.f32.mrb[23].mxu0  ;;  %v12588_v48 = vld [vmem:[#allocation50_spill] sm:$0xff] }
 0x9a7   : >> { %v5230_v62 = vadd.f32 %v5222_v29, %v5174_v41  ;;  %v5175_v25 = vmul.f32 %v4982_v19, %v12573_v46  ;;  %v12589_v46 = vld [vmem:[#allocation48_spill] sm:$0xff] }
 0x9a8   : >> { %v5233_v53 = vadd.f32 %v5225_v38, %v5177_v37 }
 0x9a9   : >> { %v5231_v12 = vadd.f32 %v5223_v13, %v5175_v25 }
 0x9bc   : >> { %v6623_v21 = vpop.f32.mrb[24].mxu0 }
 0x9bd   : >> { %v5180_v47 = vmul.f32 %v6623_v21, %v12574_v1  ;;  %v4995_v61 = vpop.f32.mrb[25].mxu0  ;;  %v12590_v1 = vld [vmem:[#allocation53_spill] sm:$0xff] }
 0x9be   : >> { %v5178_v30 = vmul.f32 %v4995_v61, %v12575_v7  ;;  %v6624_v17 = vpop.f32.mrb[26].mxu0  ;;  %v12591_v7 = vld [vmem:[#allocation51_spill] sm:$0xff] }
 0x9bf   : >> { %v5236_v32 = vadd.f32 %v5228_v23, %v5180_v47  ;;  %v5181_v2 = vmul.f32 %v6624_v17, %v12576_v60  ;;  %v4998_v6 = vpop.f32.mrb[27].mxu0  ;;  %v12592_v60 = vld [vmem:[#allocation54_spill] sm:$0xff] }
 0x9c0   : >> { %v5234_v8 = vadd.f32 %v5226_v45, %v5178_v30  ;;  %v5179_v51 = vmul.f32 %v4998_v6, %v12577_v34  ;;  %v12593_v34 = vld [vmem:[#allocation52_spill] sm:$0xff] }
 0x9c1   : >> { %v5237_v36 = vadd.f32 %v5229_v5, %v5181_v2 }
 0x9c2   : >> { %v5235_v39 = vadd.f32 %v5227_v35, %v5179_v51 }
 0x9c4   : >> { %v6627_v59 = vpop.f32.mrb[28].mxu0 }
 0x9c5   : >> { %v5184_v58 = vmul.f32 %v6627_v59, %v12578_v42  ;;  %v5011_v24 = vpop.f32.mrb[29].mxu0  ;;  %v12594_v42 = vld [vmem:[#allocation57_spill] sm:$0xff] }
 0x9c6   : >> { %v5182_v57 = vmul.f32 %v5011_v24, %v12579_v9  ;;  %v6628_v40 = vpop.f32.mrb[30].mxu0  ;;  %v12595_v9 = vld [vmem:[#allocation55_spill] sm:$0xff] }
 0x9c7   : >> { %v5240_v52 = vadd.f32 %v5232_v3, %v5184_v58  ;;  %v5185_v31 = vmul.f32 %v6628_v40, %v12580_v14  ;;  %v5014_v15 = vpop.f32.mrb[31].mxu0  ;;  %v12596_v14 = vld [vmem:[#allocation58_spill] sm:$0xff] }
 0x9c8   : >> { %v5238_v29 = vadd.f32 %v5230_v62, %v5182_v57  ;;  %v5183_v63 = vmul.f32 %v5014_v15, %v12581_v20  ;;  %v12597_v20 = vld [vmem:[#allocation56_spill] sm:$0xff] }
 0x9c9   : >> { %v5241_v38 = vadd.f32 %v5233_v53, %v5185_v31 }
 0x9ca   : >> { %v5239_v13 = vadd.f32 %v5231_v12, %v5183_v63 }
 0x9cc   : >> { %v6631_v10 = vpop.f32.mrb[32].mxu0 }
 0x9cd   : >> { %v5188_v50 = vmul.f32 %v6631_v10, %v12582_v54  ;;  %v5027_v28 = vpop.f32.mrb[33].mxu0  ;;  %v12598_v54 = vld [vmem:[#allocation61_spill] sm:$0xff] }
 0x9ce   : >> { %v5186_v11 = vmul.f32 %v5027_v28, %v12583_v27  ;;  %v6632_v4 = vpop.f32.mrb[34].mxu0  ;;  %v12599_v27 = vld [vmem:[#allocation59_spill] sm:$0xff] }
 0x9cf   : >> { %v5244_v23 = vadd.f32 %v5236_v32, %v5188_v50  ;;  %v5189_v0 = vmul.f32 %v6632_v4, %v12584_v55  ;;  %v5030_v43 = vpop.f32.mrb[35].mxu0  ;;  %v12600_v55 = vld [vmem:[#allocation62_spill] sm:$0xff] }
 0x9d0   : >> { %v5242_v45 = vadd.f32 %v5234_v8, %v5186_v11  ;;  %v5187_v33 = vmul.f32 %v5030_v43, %v12585_v26  ;;  %v12601_v26 = vld [vmem:[#allocation60_spill] sm:$0xff] }
 0x9d1   : >> { %v5245_v5 = vadd.f32 %v5237_v36, %v5189_v0 }
 0x9d2   : >> { %v5243_v35 = vadd.f32 %v5235_v39, %v5187_v33 }
 0x9d4   : >> { %v6635_v16 = vpop.f32.mrb[36].mxu0 }
 0x9d5   : >> { %v5192_v44 = vmul.f32 %v6635_v16, %v12586_v22  ;;  %v5043_v49 = vpop.f32.mrb[37].mxu0  ;;  %v12602_v22 = vld [vmem:[#allocation65_spill] sm:$0xff] }
 0x9d6   : >> { %v5190_v41 = vmul.f32 %v5043_v49, %v12587_v18  ;;  %v6636_v56 = vpop.f32.mrb[38].mxu0  ;;  %v12603_v18 = vld [vmem:[#allocation63_spill] sm:$0xff] }
 0x9d7   : >> { %v5248_v3 = vadd.f32 %v5240_v52, %v5192_v44  ;;  %v5193_v37 = vmul.f32 %v6636_v56, %v12588_v48  ;;  %v5046_v19 = vpop.f32.mrb[39].mxu0  ;;  %v12604_v48 = vld [vmem:[#allocation66_spill] sm:$0xff] }
 0x9d8   : >> { %v5246_v62 = vadd.f32 %v5238_v29, %v5190_v41  ;;  %v5191_v25 = vmul.f32 %v5046_v19, %v12589_v46  ;;  %v12605_v46 = vld [vmem:[#allocation64_spill] sm:$0xff] }
 0x9d9   : >> { %v5249_v53 = vadd.f32 %v5241_v38, %v5193_v37 }
 0x9da   : >> { %v5247_v12 = vadd.f32 %v5239_v13, %v5191_v25 }
 0x9dc   : >> { %v6639_v21 = vpop.f32.mrb[40].mxu0 }
 0x9dd   : >> { %v5196_v47 = vmul.f32 %v6639_v21, %v12590_v1  ;;  %v5059_v61 = vpop.f32.mrb[41].mxu0  ;;  %v12606_v1 = vld [vmem:[#allocation69_spill] sm:$0xff] }
 0x9de   : >> { %v5194_v30 = vmul.f32 %v5059_v61, %v12591_v7  ;;  %v6640_v17 = vpop.f32.mrb[42].mxu0  ;;  %v12607_v7 = vld [vmem:[#allocation67_spill] sm:$0xff] }
 0x9df   : >> { %v5252_v32 = vadd.f32 %v5244_v23, %v5196_v47  ;;  %v5197_v2 = vmul.f32 %v6640_v17, %v12592_v60  ;;  %v5062_v6 = vpop.f32.mrb[43].mxu0  ;;  %v12608_v60 = vld [vmem:[#allocation70_spill] sm:$0xff] }
 0x9e0   : >> { %v5250_v8 = vadd.f32 %v5242_v45, %v5194_v30  ;;  %v5195_v51 = vmul.f32 %v5062_v6, %v12593_v34  ;;  %v12609_v34 = vld [vmem:[#allocation68_spill] sm:$0xff] }
 0x9e1   : >> { %v5253_v36 = vadd.f32 %v5245_v5, %v5197_v2 }
 0x9e2   : >> { %v5251_v39 = vadd.f32 %v5243_v35, %v5195_v51 }
 0x9e4   : >> { %v6643_v59 = vpop.f32.mrb[44].mxu0 }
 0x9e5   : >> { %v5200_v58 = vmul.f32 %v6643_v59, %v12594_v42  ;;  %v5075_v24 = vpop.f32.mrb[45].mxu0 }
 0x9e6   : >> { %v5198_v57 = vmul.f32 %v5075_v24, %v12595_v9  ;;  %v6644_v40 = vpop.f32.mrb[46].mxu0  ;;  %v12612_v24 = vld [vmem:[#allocation73_spill] sm:$0xff] }
 0x9e7   : >> { %v5256_v52 = vadd.f32 %v5248_v3, %v5200_v58  ;;  %v5201_v31 = vmul.f32 %v6644_v40, %v12596_v14  ;;  %v5078_v15 = vpop.f32.mrb[47].mxu0  ;;  %v12613_v40 = vld [vmem:[#allocation71_spill] sm:$0xff] }
 0x9e8   : >> { %v5254_v29 = vadd.f32 %v5246_v62, %v5198_v57  ;;  %v5199_v63 = vmul.f32 %v5078_v15, %v12597_v20  ;;  %v12614_v15 = vld [vmem:[#allocation74_spill] sm:$0xff] }
 0x9e9   : >> { %v5257_v38 = vadd.f32 %v5249_v53, %v5201_v31 }
 0x9ea   : >> { %v5255_v13 = vadd.f32 %v5247_v12, %v5199_v63 }
 0x9ec   : >> { %v6647_v10 = vpop.f32.mrb[48].mxu0 }
 0x9ed   : >> { %v5204_v50 = vmul.f32 %v6647_v10, %v12598_v54  ;;  %v5091_v28 = vpop.f32.mrb[49].mxu0 }
 0x9ee   : >> { %v5202_v11 = vmul.f32 %v5091_v28, %v12599_v27  ;;  %v6648_v4 = vpop.f32.mrb[50].mxu0  ;;  %v12618_v27 = vmov 0  }
 0x9ef   : >> { %v5260_v23 = vadd.f32 %v5252_v32, %v5204_v50  ;;  %v5205_v0 = vmul.f32 %v6648_v4, %v12600_v55  ;;  %v5094_v43 = vpop.f32.mrb[51].mxu0  ;;  %v11344_v55 = vld [vmem:[%s8533_s20] sm:$0xff]  ;;  %s6381_s20 = smul.u32 40, %s7452_s22  ;;  %s1078_s22 = sadd.s32 1, %s7452_s22  }
 0x9f0   : >> { %v5258_v45 = vadd.f32 %v5250_v8, %v5202_v11  ;;  %v5203_v33 = vmul.f32 %v5094_v43, %v12601_v26  ;;  %v12619_v11 = vld [vmem:[#allocation142_spill] sm:$0xff]  ;;  %p1075_p11 = scmp.ge.s32.totalorder %s1078_s22, 6  }
 0x9f1   : >> { %v5261_v5 = vadd.f32 %v5253_v36, %v5205_v0  ;;  %v5383_v4 = vsub.s32 4, %v12619_v11  ;;  %s1109_s21 = scalar_lea.vmem %s11722_s12, %s6381_s20  ;;  %vm12654_vm11 = vcmask (%p1075_p11), 1043456   ;;  %vm12655_vm13 = vcmask (%p1075_p11), 326656   ;;  %s6376_s22 = sshll.u32 (%p1075_p11), %s7590_s1, 4 }
 0x9f2   : >> { %v5259_v35 = vadd.f32 %v5251_v39, %v5203_v33  ;;  %v12621_v33 = vld [vmem:[#allocation150_spill] sm:$0xff]  ;;  %s6066_s28 = sshll.u32 (%p1075_p11), %s8386_s27, 4  ;;  %s11665_s20 = scalar_lea.hbm (%p1075_p11), %s11729_s19, %s6376_s22  ;;  %s11667_s28 = int_to_ptr.vmem [resolvable:$true] %s6066_s28 }
 0x9f3   : >> { %v5384_v0 = vrot.slane %v11344_v55, %v5383_v4  ;;  %s12656_s29 = sand.u32 (%p1075_p11), 1, %s7408_s30   ;;  %s7318_s7 = scalar_lea.vmem (%p1075_p11), %s11667_s28, 16 }
 0x9f4   : >> { %v6651_v16 = vpop.f32.mrb[52].mxu0  ;;  %s6054_s1 = scalar_lea.sflag (%p1075_p11), [#allocation3], %s12656_s29  ;;  %p7319_p12 = scmp.ne.s32.totalorder (%p1075_p11), %s11667_s28, %s7318_s7 }
 0x9f5   : >> { %v5208_v44 = vmul.f32 %v6651_v16, %v12602_v22  ;;  %v5107_v49 = vpop.f32.mrb[53].mxu0 }
 0x9f6   : >> { %v5206_v41 = vmul.f32 %v5107_v49, %v12603_v18  ;;  %v6652_v56 = vpop.f32.mrb[54].mxu0  ;;  %v12623_v18 = vld [vmem:[#allocation149_spill] sm:$0xff]  ;;  %p7320_p13 = pnand (%p1075_p11), %p7319_p12, %p7607_p5 }
 0x9f7   : >> { %v5264_v3 = vadd.f32 %v5256_v52, %v5208_v44  ;;  %v5209_v37 = vmul.f32 %v6652_v56, %v12604_v48  ;;  %v5110_v19 = vpop.f32.mrb[55].mxu0  ;;  %v12622_v44 = vld [vmem:[#allocation147_spill] sm:$0xff] }
 0x9f8   : >> { %v5262_v62 = vadd.f32 %v5254_v29, %v5206_v41  ;;  %v5207_v25 = vmul.f32 %v5110_v19, %v12605_v46  ;;  %p7321_p0 = pneg (%p1075_p11), %p7320_p13 }
 0x9f9   : >> { %v5265_v53 = vadd.f32 %v5257_v38, %v5209_v37  ;;  %v12615_v38 = vld [vmem:[#allocation72_spill] sm:$0xff] }
 0x9fa   : >> { %v5263_v12 = vadd.f32 %v5255_v13, %v5207_v25 }
 0x9fc   : >> { %v6655_v21 = vpop.f32.mrb[56].mxu0 }
 0x9fd   : >> { %v5212_v47 = vmul.f32 %v6655_v21, %v12606_v1  ;;  %v5123_v61 = vpop.f32.mrb[57].mxu0  ;;  %v12629_v1 = vld [vmem:[#allocation146_spill] sm:$0xff] }
 0x9fe   : >> { %v5210_v30 = vmul.f32 %v5123_v61, %v12607_v7  ;;  %v6656_v17 = vpop.f32.mrb[58].mxu0 }
 0x9ff   : >> { %v5268_v32 = vadd.f32 %v5260_v23, %v5212_v47  ;;  %v5213_v2 = vmul.f32 %v6656_v17, %v12608_v60  ;;  %v5126_v6 = vpop.f32.mrb[59].mxu0  ;;  %v12630_v17 = vld [vmem:[#allocation143_spill] sm:$0xff]  ;;  %v12631_v60 = vld [vmem:[#allocation145_spill] sm:$0xff] }
 0xa00   : >> { %v5266_v8 = vadd.f32 %v5258_v45, %v5210_v30  ;;  %v5211_v51 = vmul.f32 %v5126_v6, %v12609_v34  ;;  %v12620_v45 = vld [vmem:[#allocation148_spill] sm:$0xff] }
 0xa01   : >> { %v5269_v36 = vadd.f32 %v5261_v5, %v5213_v2 }
 0xa02   : >> { %v5267_v39 = vadd.f32 %v5259_v35, %v5211_v51 }
 0xa03   : >> { %v5275_v59 = vpack.c.bf16 %v5269_v36, %v5268_v32 }
 0xa04   : >> { %v5274_v42 = vpack.c.bf16 %v5267_v39, %v5266_v8 }
 0xa06   : >> { %6667 = vmatprep.mubr.msk.bf16.mxu0 %vm12610_vm3, %v5274_v42  ;;  %vm12638_vm3 = vmmov %vm12637_vm0 }
 0xa07   : >> { %6668 = vmatmul.mubr.msk.bf16.vlgmr.msra.gmra.mrb[64].mxu0 %vm12611_vm7, %v5275_v59  ;;  %vm12639_vm7 = vmmov %vm12637_vm0 }
 0xa56   : >> { %v6659_v58 = vpop.f32.mrb[60].mxu0 }
 0xa57   : >> { %v5216_v9 = vmul.f32 %v6659_v58, %v12612_v24  ;;  %v5139_v57 = vpop.f32.mrb[61].mxu0 }
 0xa58   : >> { %v5214_v52 = vmul.f32 %v5139_v57, %v12613_v40  ;;  %v6660_v14 = vpop.f32.mrb[62].mxu0 }
 0xa59   : >> { %v5272_v31 = vadd.f32 %v5264_v3, %v5216_v9  ;;  %v5217_v29 = vmul.f32 %v6660_v14, %v12614_v15  ;;  %v5142_v20 = vpop.f32.mrb[63].mxu0 }
 0xa5a   : >> { %v5270_v63 = vadd.f32 %v5262_v62, %v5214_v52  ;;  %v5215_v13 = vmul.f32 %v5142_v20, %v12615_v38 }
 0xa5b   : >> { %v5273_v10 = vadd.f32 %v5265_v53, %v5217_v29 }
 0xa5c   : >> { %v5271_v54 = vadd.f32 %v5263_v12, %v5215_v13  ;;  %v12628_v12 = vld [vmem:[#allocation144_spill] sm:$0xff] }
 0xa5d   : >> { %v5277_v50 = vpack.c.bf16 %v5273_v10, %v5272_v31 }
 0xa5e   : >> { %v5276_v28 = vpack.c.bf16 %v5271_v54, %v5270_v63 }
 0xa60   : >> { %6671 = vmatprep.mubr.msk.bf16.mxu0 %vm12616_vm14, %v5276_v28  ;;  %vm12640_vm14 = vcmask 1043456  }
 0xa61   : >> { %6672 = vmatmul.mubr.msk.bf16.gmra.mrb[68].mxu0 %vm12617_vm6, %v5277_v50  ;;  %vm12641_vm6 = vmmov %vm12640_vm14 }
 0xa62   : >> { %5611 = vmatprep.mubr.bf16.mxu0 %v12618_v27 }
 0xada   : >> { %v6669_v23 = vpop.f32.mrb[64].mxu0 }
 0xadb   : >> { %v5342_v43 = vpop.f32.mrb[65].mxu0  ;;  %v5375_v26 = vadd.f32 %v12620_v45, %v6669_v23  ;;  %v6877_v23 = vld [vmem:[%s1109_s21] ss:$8 sps:$4 sm:$0xff]  }
 0xadc   : >> { %v5373_v5 = vadd.f32 %v12621_v33, %v5342_v43  ;;  %v6670_v35 = vpop.f32.mrb[66].mxu0  ;;  %v6882_v43 = vld [vmem:[%s1109_s21 + $0x14] ss:$8 sps:$4 sm:$0xff]   ;;  %v1114_v45 = vld [vmem:[%s1109_s21 + $0x20] sm:$0xff] }
 0xadd   : >> { %v5345_v16 = vpop.f32.mrb[67].mxu0  ;;  %v5376_v49 = vadd.f32 %v12622_v44, %v6670_v35  ;;  %v11353_v56 = vadd.f32 %v5384_v0, %v5375_v26  ;;  %v6880_v26 = vld [vmem:[%s1109_s21 + $0x10] ss:$8 sps:$4 sm:$0xff]   ;;  %v6352_v33 = vcombine.high %v1114_v45, %v1114_v45 }
 0xade   : >> { %v11349_v22 = vadd.f32 %v5384_v0, %v5373_v5  ;;  %v5374_v41 = vadd.f32 %v12623_v18, %v5345_v16  ;;  %v6351_v5 = vcombine.low %v1114_v45, %v1114_v45 }
 0xadf   : >> { %v11359_v37 = vadd.f32 %v5384_v0, %v5376_v49  ;;  %v5399_v62 = vsel %vm12626_vm8, %v11353_v56, 0.0  ;;  %vm12644_vm8 = vmmov %vm12637_vm0 }
 0xae0   : >> { %v11355_v3 = vadd.f32 %v5384_v0, %v5374_v41  ;;  %v5393_v48 = vsel %vm12624_vm9, %v11349_v22, 0.0  ;;  %v5574_v35 = vsel %vm12641_vm6, %v6351_v5, 0  ;;  %vm12642_vm9 = vmmov %vm12637_vm0 }
 0xae1   : >> { %5394 = vadd.xlane.f32.xlu1 %v5393_v48  ;;  %v5402_v46 = vsel %vm12627_vm5, %v11359_v37, 0.0  ;;  %vm12645_vm5 = vmmov %vm12637_vm0 }
 0xae2   : >> { %v5396_v19 = vsel %vm12625_vm2, %v11355_v3, 0.0  ;;  %vm12643_vm2 = vmmov %vm12637_vm0 }
 0xae3   : >> { %5397 = vadd.xlane.f32.xlu0 %v5396_v19 }
 0xae5   : >> { %5400 = vadd.xlane.f32.xlu1 %v5399_v62 }
 0xae7   : >> { %5403 = vadd.xlane.f32.xlu0 %v5402_v46 }
 0xb34   : >> { %v6673_v25 = vpop.f32.mrb[68].mxu0 }
 0xb35   : >> { %v5358_v53 = vpop.f32.mrb[69].mxu0  ;;  %v5379_v21 = vadd.f32 %v12628_v12, %v6673_v25 }
 0xb36   : >> { %v5377_v47 = vadd.f32 %v12629_v1, %v5358_v53  ;;  %v6674_v61 = vpop.f32.mrb[70].mxu0 }
 0xb37   : >> { %v5361_v7 = vpop.f32.mrb[71].mxu0  ;;  %v5380_v32 = vadd.f32 %v12630_v17, %v6674_v61  ;;  %v11373_v6 = vadd.f32 %v5384_v0, %v5379_v21 }
 0xb38   : >> { %v11369_v30 = vadd.f32 %v5384_v0, %v5377_v47  ;;  %v5378_v2 = vadd.f32 %v12631_v60, %v5361_v7 }
 0xb39   : >> { %v11379_v51 = vadd.f32 %v5384_v0, %v5380_v32  ;;  %v5411_v39 = vsel %vm12634_vm10, %v11373_v6, 0.0  ;;  %vm12648_vm10 = vmmov %vm12637_vm0 }
 0xb3a   : >> { %v11375_v8 = vadd.f32 %v5384_v0, %v5378_v2  ;;  %v5405_v34 = vsel %vm12632_vm12, %v11369_v30, 0.0  ;;  %v6879_v0 = vld [vmem:[%s1109_s21 + $0x4] ss:$8 sps:$4 sm:$0xff]   ;;  %vm12646_vm12 = vmmov %vm12637_vm0  ;;  %s7468_s21 = smov (%p1075_p11), [#allocation2]  }
 0xb3b   : >> { %5406 = vadd.xlane.f32.xlu1 %v5405_v34  ;;  %v5414_v59 = vsel %vm12635_vm1, %v11379_v51, 0.0  ;;  %5579 = vmatprep.subr.bf16.mxu0 %v6879_v0  ;;  %v6885_v2 = vld [vmem:[%s8519_s0] sm:$0xff]   ;;  %v6886_v34 = vld [vmem:[%s8519_s0 + $0x8] sm:$0xff]   ;;  %vm12649_vm1 = vmmov %vm12637_vm0 }
 0xb3c   : >> { %v5408_v36 = vsel %vm12633_vm4, %v11375_v8, 0.0  ;;  %5580 = vmatpush1.bf16.msra.mxu0 %v6877_v23  ;;  %5878 = vmatpush1.bf16.msra.mxu1 %v6885_v2  ;;  %vm12647_vm4 = vmmov %vm12637_vm0 }
 0xb3d   : >> { %5409 = vadd.xlane.f32.xlu0 %v5408_v36  ;;  %5581 = vmatprep.subr.bf16.mxu0 %v6882_v43 }
 0xb3e   : >> { %5879 = vmatprep.subr.bf16.mxu1 %v12618_v27 }
 0xb3f   : >> { %5412 = vadd.xlane.f32.xlu1 %v5411_v39 }
 0xb40   : >> { %5582 = vmatpush1.bf16.msra.mxu0 %v6880_v26  ;;  %5880 = vmatpush1.bf16.msra.mxu1 %v6886_v34 }
 0xb41   : >> { %5415 = vadd.xlane.f32.xlu0 %v5414_v59  ;;  %6353 = vmatprep.subr.msk.bf16.mxu0 %vm12640_vm14, %v6352_v33 }
 0xb42   : >> { %5881 = vmatprep.subr.bf16.mxu1 %v12618_v27 }
 0xb44   : >> { %5584 = vmatpush1.bf16.msra.mxu0 %v5574_v35 }
 0xb6e   : >> { %v5395_v42 = vpop.xlane.xlu1 %5394 }
 0xb6f   : >> { %v5417_v58 = vmul.f32 0.025, %v5395_v42 }
 0xb70   : >> { %v5398_v24 = vpop.xlane.xlu0 %5397 }
 0xb71   : >> { %v11388_v9 = vsub.f32 %v11349_v22, %v5417_v58  ;;  %v5418_v57 = vmul.f32 0.025, %v5398_v24 }
 0xb72   : >> { %v5401_v40 = vpop.xlane.xlu1 %5400 }
 0xb73   : >> { %v11391_v52 = vsub.f32 %v11355_v3, %v5418_v57  ;;  %v5419_v14 = vmul.f32 0.025, %v5401_v40  ;;  %v5433_v31 = vmul.f32 %v11388_v9, %v11388_v9 }
 0xb74   : >> { %v5404_v15 = vpop.xlane.xlu0 %5403 }
 0xb75   : >> { %v11396_v29 = vsub.f32 %v11353_v56, %v5419_v14  ;;  %v5420_v20 = vmul.f32 0.025, %v5404_v15  ;;  %v5441_v63 = vsel %vm12636_vm15, %v5433_v31, 0.0  ;;  %v5434_v38 = vmul.f32 %v11391_v52, %v11391_v52 }
 0xb76   : >> { %5442 = vadd.xlane.f32.xlu1 %v5441_v63  ;;  %v5499_v63 = vsub.s32 2, %v12619_v11  ;;  %vm5864_vm15 = vcmask 261120  }
 0xb77   : >> { %v11402_v13 = vsub.f32 %v11359_v37, %v5420_v20  ;;  %v5444_v10 = vsel %vm12637_vm0, %v5434_v38, 0.0  ;;  %v5435_v54 = vmul.f32 %v11396_v29, %v11396_v29  ;;  %vm5964_vm0 = vcmask (%p1075_p11), 319488  }
 0xb78   : >> { %5445 = vadd.xlane.f32.xlu0 %v5444_v10  ;;  %v5500_v38 = vrot.slane %v11344_v55, %v5499_v63  ;;  %v5511_v10 = vsub.s32 3, %v12619_v11 }
 0xb79   : >> { %v5447_v50 = vsel %vm12638_vm3, %v5435_v54, 0.0  ;;  %v5436_v28 = vmul.f32 %v11402_v13, %v11402_v13  ;;  %vm7467_vm3 = vmmov (%p1075_p11), 0  }
 0xb7a   : >> { %5448 = vadd.xlane.f32.xlu1 %v5447_v50 }
 0xb7b   : >> { %v5450_v4 = vsel %vm12639_vm7, %v5436_v28, 0.0  ;;  %vm6051_vm7 = vcmask (%p1075_p11), 24576  }
 0xb7c   : >> { %5451 = vadd.xlane.f32.xlu0 %v5450_v4  ;;  %v5512_v4 = vrot.slane %v11344_v55, %v5511_v10  ;;  %v6889_v10 = vld [vmem:[%s8519_s0 + $0x20] sm:$0xff]  }
 0xbc8   : >> { %v5407_v16 = vpop.xlane.xlu1 %5406 }
 0xbc9   : >> { %v5421_v44 = vmul.f32 0.025, %v5407_v16 }
 0xbca   : >> { %v5410_v49 = vpop.xlane.xlu0 %5409 }
 0xbcb   : >> { %v11418_v18 = vsub.f32 %v11369_v30, %v5421_v44  ;;  %v5422_v41 = vmul.f32 0.025, %v5410_v49 }
 0xbcc   : >> { %v5413_v48 = vpop.xlane.xlu1 %5412 }
 0xbcd   : >> { %v11421_v19 = vsub.f32 %v11375_v8, %v5422_v41  ;;  %v5423_v62 = vmul.f32 0.025, %v5413_v48  ;;  %v5437_v46 = vmul.f32 %v11418_v18, %v11418_v18 }
 0xbce   : >> { %v5416_v25 = vpop.xlane.xlu0 %5415 }
 0xbcf   : >> { %v11426_v53 = vsub.f32 %v11373_v6, %v5423_v62  ;;  %v5424_v12 = vmul.f32 0.025, %v5416_v25  ;;  %v5453_v21 = vsel %vm12642_vm9, %v5437_v46, 0.0  ;;  %v5438_v1 = vmul.f32 %v11421_v19, %v11421_v19 }
 0xbd0   : >> { %5454 = vadd.xlane.f32.xlu1 %v5453_v21 }
 0xbd1   : >> { %v11432_v47 = vsub.f32 %v11379_v51, %v5424_v12  ;;  %v5456_v61 = vsel %vm12643_vm2, %v5438_v1, 0.0  ;;  %v5439_v7 = vmul.f32 %v11426_v53, %v11426_v53 }
 0xbd2   : >> { %5457 = vadd.xlane.f32.xlu0 %v5456_v61 }
 0xbd3   : >> { %v5459_v17 = vsel %vm12644_vm8, %v5439_v7, 0.0  ;;  %v5440_v32 = vmul.f32 %v11432_v47, %v11432_v47 }
 0xbd4   : >> { %5460 = vadd.xlane.f32.xlu1 %v5459_v17 }
 0xbd5   : >> { %v5462_v60 = vsel %vm12645_vm5, %v5440_v32, 0.0 }
 0xbd6   : >> { %5463 = vadd.xlane.f32.xlu0 %v5462_v60 }
 0xc03   : >> { %v5443_v36 = vpop.xlane.xlu1 %5442 }
 0xc04   : >> { %v5465_v39 = vmul.f32 0.025, %v5443_v36 }
 0xc05   : >> { %v5446_v59 = vpop.xlane.xlu0 %5445 }
 0xc06   : >> { %v5473_v42 = vadd.f32 1e-05, %v5465_v39  ;;  %v5466_v58 = vmul.f32 0.025, %v5446_v59 }
 0xc07   : >> { %v5449_v24 = vpop.xlane.xlu1 %5448 }
 0xc08   : >> { %7263 = vrsqrt.f32 %v5473_v42  ;;  %v5474_v57 = vadd.f32 1e-05, %v5466_v58  ;;  %v5467_v40 = vmul.f32 0.025, %v5449_v24 }
 0xc09   : >> { %v5452_v14 = vpop.xlane.xlu0 %5451 }
 0xc0a   : >> { %7265 = vrsqrt.f32 %v5474_v57  ;;  %v5475_v31 = vadd.f32 1e-05, %v5467_v40  ;;  %v5468_v15 = vmul.f32 0.025, %v5452_v14 }
 0xc0c   : >> { %7267 = vrsqrt.f32 %v5475_v31  ;;  %v5476_v20 = vadd.f32 1e-05, %v5468_v15 }
 0xc0e   : >> { %7269 = vrsqrt.f32 %v5476_v20 }
 0xc12   : >> { %v7264_v54 = vpop.eup %7263 }
 0xc13   : >> { %v5489_v50 = vmul.f32 %v7264_v54, %v11388_v9  ;;  %v6891_v54 = vld [vmem:[%s8519_s0 + $0x30] sm:$0xff]  }
 0xc14   : >> { %v7266_v28 = vpop.eup %7265 }
 0xc15   : >> { %v5501_v23 = vmul.f32 %v5500_v38, %v5489_v50  ;;  %v5490_v0 = vmul.f32 %v7266_v28, %v11391_v52  ;;  %v6892_v50 = vld [vmem:[%s8519_s0 + $0x38] sm:$0xff]   ;;  %v6893_v28 = vld [vmem:[%s8519_s0 + $0x40] sm:$0xff]  }
 0xc16   : >> { %v7268_v43 = vpop.eup %7267 }
 0xc17   : >> { %v5502_v45 = vmul.f32 %v5500_v38, %v5490_v0  ;;  %v5513_v33 = vadd.f32 %v5512_v4, %v5501_v23  ;;  %v5491_v35 = vmul.f32 %v7268_v43, %v11396_v29  ;;  %v12650_v0 = vld [vmem:[#allocation151_spill] sm:$0xff] }
 0xc18   : >> { %v7270_v26 = vpop.eup %7269 }
 0xc19   : >> { %v5514_v5 = vadd.f32 %v5512_v4, %v5502_v45  ;;  %v5492_v16 = vmul.f32 %v7270_v26, %v11402_v13  ;;  %v5503_v9 = vmul.f32 %v5500_v38, %v5491_v35  ;;  %v12651_v26 = vld [vmem:[#allocation152_spill] sm:$0xff] }
 0xc1b   : >> { %v5521_v44 = vpack.c.bf16 %v5514_v5, %v5513_v33  ;;  %v5504_v49 = vmul.f32 %v5500_v38, %v5492_v16  ;;  %v5515_v48 = vadd.f32 %v5512_v4, %v5503_v9 }
 0xc1d   : >> { %6354 = vmatmul.mubr.msk.bf16.vlgmr.msra.gmra.mrb[72].mxu0 %vm12646_vm12, %v5521_v44  ;;  %v5516_v41 = vadd.f32 %v5512_v4, %v5504_v49 }
 0xc1e   : >> { %5621 = vmatprep.mubr.bf16.mxu0 %v12618_v27 }
 0xc1f   : >> { %v5522_v62 = vpack.c.bf16 %v5516_v41, %v5515_v48 }
 0xc25   : >> { %6355 = vmatmul.mubr.msk.bf16.gmra.mrb[76].mxu0 %vm12647_vm4, %v5522_v62 }
 0xc26   : >> { %5631 = vmatprep.mubr.bf16.mxu0 %v12618_v27 }
 0xc5d   : >> { %v5455_v52 = vpop.xlane.xlu1 %5454 }
 0xc5e   : >> { %v5469_v46 = vmul.f32 0.025, %v5455_v52 }
 0xc5f   : >> { %v5458_v25 = vpop.xlane.xlu0 %5457 }
 0xc60   : >> { %v5477_v29 = vadd.f32 1e-05, %v5469_v46  ;;  %v5470_v12 = vmul.f32 0.025, %v5458_v25 }
 0xc61   : >> { %v5461_v13 = vpop.xlane.xlu1 %5460 }
 0xc62   : >> { %7271 = vrsqrt.f32 %v5477_v29  ;;  %v5478_v21 = vadd.f32 1e-05, %v5470_v12  ;;  %v5471_v1 = vmul.f32 0.025, %v5461_v13 }
 0xc63   : >> { %v5464_v61 = vpop.xlane.xlu0 %5463 }
 0xc64   : >> { %7273 = vrsqrt.f32 %v5478_v21  ;;  %v5479_v7 = vadd.f32 1e-05, %v5471_v1  ;;  %v5472_v17 = vmul.f32 0.025, %v5464_v61 }
 0xc66   : >> { %7275 = vrsqrt.f32 %v5479_v7  ;;  %v5480_v32 = vadd.f32 1e-05, %v5472_v17 }
 0xc68   : >> { %7277 = vrsqrt.f32 %v5480_v32 }
 0xc6c   : >> { %v7272_v60 = vpop.eup %7271 }
 0xc6d   : >> { %v5493_v2 = vmul.f32 %v7272_v60, %v11418_v18 }
 0xc6e   : >> { %v7274_v34 = vpop.eup %7273 }
 0xc6f   : >> { %v5494_v36 = vmul.f32 %v7274_v34, %v11421_v19  ;;  %v5505_v39 = vmul.f32 %v5500_v38, %v5493_v2 }
 0xc70   : >> { %v7276_v59 = vpop.eup %7275 }
 0xc71   : >> { %v5506_v42 = vmul.f32 %v5500_v38, %v5494_v36  ;;  %v5495_v24 = vmul.f32 %v7276_v59, %v11426_v53  ;;  %v5517_v40 = vadd.f32 %v5512_v4, %v5505_v39  ;;  %v6887_v53 = vld [vmem:[%s8519_s0 + $0x10] sm:$0xff]  }
 0xc72   : >> { %v7278_v58 = vpop.eup %7277  ;;  %5882 = vmatpush1.bf16.msra.mxu1 %v6887_v53 }
 0xc73   : >> { %v5496_v57 = vmul.f32 %v7278_v58, %v11432_v47  ;;  %v5518_v14 = vadd.f32 %v5512_v4, %v5506_v42  ;;  %v5507_v18 = vmul.f32 %v5500_v38, %v5495_v24  ;;  %5883 = vmatprep.subr.bf16.mxu1 %v12618_v27  ;;  %v6888_v47 = vld [vmem:[%s8519_s0 + $0x18] sm:$0xff]  }
 0xc75   : >> { %v5523_v31 = vpack.c.bf16 %v5518_v14, %v5517_v40  ;;  %v5508_v15 = vmul.f32 %v5500_v38, %v5496_v57  ;;  %v5519_v20 = vadd.f32 %v5512_v4, %v5507_v18  ;;  %v6890_v38 = vld [vmem:[%s8519_s0 + $0x28] sm:$0xff]  }
 0xc76   : >> { %5884 = vmatpush1.bf16.msra.mxu1 %v6888_v47 }
 0xc77   : >> { %6356 = vmatmul.mubr.msk.bf16.gmra.mrb[80].mxu0 %vm12648_vm10, %v5523_v31  ;;  %v5520_v19 = vadd.f32 %v5512_v4, %v5508_v15  ;;  %5885 = vmatprep.subr.bf16.mxu1 %v12618_v27  ;;  %v6894_v4 = vld [vmem:[%s8519_s0 + $0x48] sm:$0xff]   ;;  %s7322_s0 = sshll.u32 (%p1075_p11), %s7468_s21, 4  ;;  %s7323_s0 = int_to_ptr.vmem [resolvable:$false] %s7322_s0 }
 0xc78   : >> { %5641 = vmatprep.mubr.bf16.mxu0 %v12618_v27  ;;  %s7324_s26 = scalar_lea.vmem (%p1075_p11), %s7323_s0, 32  ;;  %p7325_p1 = scmp.lt.s32.totalorder (%p1075_p11), %s11667_s28, %s7323_s0 }
 0xc79   : >> { %v5524_v63 = vpack.c.bf16 %v5520_v19, %v5519_v20  ;;  %p7326_p2 = scmp.lt.s32.totalorder (%p1075_p11), %s7324_s26, %s7318_s7 }
 0xc7a   : >> { %5886 = vmatpush1.bf16.msra.mxu1 %v6889_v10 }
 0xc7b   : >> { %5887 = vmatprep.subr.bf16.mxu1 %v12618_v27  ;;  %p7327_p3 = por (%p1075_p11), %p7326_p2, %p7325_p1 }
 0xc7d   : > { %p7328_p4 = pnand (%p1075_p11), %p7327_p3, %p7321_p0 }
 0xc7e   : >> { %5888 = vmatpush1.bf16.msra.mxu1 %v6890_v38 }
 0xc7f   : >> { %6357 = vmatmul.mubr.msk.bf16.gmra.mrb[84].mxu0 %vm12649_vm1, %v5524_v63  ;;  %5889 = vmatprep.subr.bf16.mxu1 %v12618_v27 }
 0xc82   : >> { %5890 = vmatpush1.bf16.msra.mxu1 %v6891_v54 }
 0xc83   : >> { %5891 = vmatprep.subr.bf16.mxu1 %v12618_v27 }
 0xc86   : >> { %5892 = vmatpush1.bf16.msra.mxu1 %v6892_v50 }
 0xc87   : >> { %5893 = vmatprep.subr.bf16.mxu1 %v12618_v27 }
 0xc8a   : >> { %5894 = vmatpush1.bf16.msra.mxu1 %v6893_v28 }
 0xc8b   : >> { %5895 = vmatprep.subr.bf16.mxu1 %v12618_v27 }
 0xc8e   : >> { %5896 = vmatpush1.bf16.msra.mxu1 %v6894_v4 }
 0xcf0   : >> { %v5613_v23 = vpop.f32.mrb[72].mxu0 }
 0xcf1   : >> { %v11480_v43 = vadd.f32 %v5613_v23, %v12650_v0  ;;  %v5615_v45 = vpop.f32.mrb[73].mxu0 }
 0xcf2   : >> { %v11483_v33 = vadd.f32 %v5615_v45, %v12651_v26  ;;  %v5617_v5 = vpop.f32.mrb[74].mxu0 }
 0xcf3   : >> { %v5652_v35 = vmul.f32 %v11480_v43, %v11480_v43  ;;  %v11488_v16 = vadd.f32 %v5617_v5, %v12650_v0  ;;  %v5619_v44 = vpop.f32.mrb[75].mxu0 }
 0xcf4   : >> { %v5653_v27 = vmul.f32 %v11483_v33, %v11483_v33  ;;  %v11493_v49 = vadd.f32 %v5619_v44, %v12651_v26 }
 0xcf5   : >> { %v5668_v9 = vmul.f32 %v5652_v35, %v11480_v43  ;;  %v5654_v41 = vmul.f32 %v11488_v16, %v11488_v16 }
 0xcf6   : >> { %v5669_v48 = vmul.f32 %v5653_v27, %v11483_v33  ;;  %v5655_v62 = vmul.f32 %v11493_v49, %v11493_v49 }
 0xcf7   : >> { %v5684_v52 = vmul.f32 0.044715, %v5668_v9  ;;  %v5670_v46 = vmul.f32 %v5654_v41, %v11488_v16 }
 0xcf8   : >> { %v5685_v25 = vmul.f32 0.044715, %v5669_v48  ;;  %v5671_v29 = vmul.f32 %v5655_v62, %v11493_v49  ;;  %v5623_v12 = vpop.f32.mrb[76].mxu0 }
 0xcf9   : >> { %v5700_v13 = vadd.f32 %v5684_v52, %v11480_v43  ;;  %v5686_v21 = vmul.f32 0.044715, %v5670_v46  ;;  %v11505_v1 = vadd.f32 %v5623_v12, %v12650_v0  ;;  %v5625_v61 = vpop.f32.mrb[77].mxu0 }
 0xcfa   : >> { %v5701_v7 = vadd.f32 %v5685_v25, %v11483_v33  ;;  %v5687_v17 = vmul.f32 0.044715, %v5671_v29  ;;  %v11509_v32 = vadd.f32 %v5625_v61, %v12651_v26  ;;  %v5627_v60 = vpop.f32.mrb[78].mxu0 }
 0xcfb   : >> { %v5716_v2 = vmul.f32 0.7978846, %v5700_v13  ;;  %v5702_v34 = vadd.f32 %v5686_v21, %v11488_v16  ;;  %v5656_v36 = vmul.f32 %v11505_v1, %v11505_v1  ;;  %v11515_v39 = vadd.f32 %v5627_v60, %v12650_v0  ;;  %v5629_v59 = vpop.f32.mrb[79].mxu0 }
 0xcfc   : >> { %v5717_v42 = vmul.f32 0.7978846, %v5701_v7  ;;  %v5703_v58 = vadd.f32 %v5687_v17, %v11493_v49  ;;  %v5657_v24 = vmul.f32 %v11509_v32, %v11509_v32  ;;  %v11521_v57 = vadd.f32 %v5629_v59, %v12651_v26 }
 0xcfd   : >> { %7279 = vtanh.f32 %v5716_v2  ;;  %v5718_v40 = vmul.f32 0.7978846, %v5702_v34  ;;  %v5672_v14 = vmul.f32 %v5656_v36, %v11505_v1  ;;  %v5658_v31 = vmul.f32 %v11515_v39, %v11515_v39 }
 0xcfe   : >> { %7281 = vtanh.f32 %v5717_v42  ;;  %v5719_v15 = vmul.f32 0.7978846, %v5703_v58  ;;  %v5673_v18 = vmul.f32 %v5657_v24, %v11509_v32  ;;  %v5659_v19 = vmul.f32 %v11521_v57, %v11521_v57 }
 0xcff   : >> { %7283 = vtanh.f32 %v5718_v40  ;;  %v5688_v20 = vmul.f32 0.044715, %v5672_v14  ;;  %v5674_v63 = vmul.f32 %v5658_v31, %v11515_v39 }
 0xd00   : >> { %7285 = vtanh.f32 %v5719_v15  ;;  %v5689_v53 = vmul.f32 0.044715, %v5673_v18  ;;  %v5675_v47 = vmul.f32 %v5659_v19, %v11521_v57 }
 0xd01   : >> { %v5704_v10 = vadd.f32 %v5688_v20, %v11505_v1  ;;  %v5690_v38 = vmul.f32 0.044715, %v5674_v63 }
 0xd02   : >> { %v5705_v54 = vadd.f32 %v5689_v53, %v11509_v32  ;;  %v5691_v50 = vmul.f32 0.044715, %v5675_v47 }
 0xd03   : >> { %v5720_v28 = vmul.f32 0.7978846, %v5704_v10  ;;  %v5706_v4 = vadd.f32 %v5690_v38, %v11515_v39 }
 0xd04   : >> { %v5721_v23 = vmul.f32 0.7978846, %v5705_v54  ;;  %v5707_v45 = vadd.f32 %v5691_v50, %v11521_v57 }
 0xd05   : >> { %7287 = vtanh.f32 %v5720_v28  ;;  %v5722_v5 = vmul.f32 0.7978846, %v5706_v4 }
 0xd06   : >> { %7289 = vtanh.f32 %v5721_v23  ;;  %v5723_v35 = vmul.f32 0.7978846, %v5707_v45 }
 0xd07   : >> { %v7280_v44 = vpop.eup %7279  ;;  %7291 = vtanh.f32 %v5722_v5 }
 0xd08   : >> { %v7282_v27 = vpop.eup %7281  ;;  %v5748_v9 = vadd.f32 1.0, %v7280_v44  ;;  %7293 = vtanh.f32 %v5723_v35 }
 0xd09   : >> { %v7284_v41 = vpop.eup %7283  ;;  %v5749_v48 = vadd.f32 1.0, %v7282_v27 }
 0xd0a   : >> { %v7286_v62 = vpop.eup %7285  ;;  %v5764_v52 = vmul.f32 0.5, %v5748_v9  ;;  %v5750_v46 = vadd.f32 1.0, %v7284_v41 }
 0xd0b   : >> { %v5765_v25 = vmul.f32 0.5, %v5749_v48  ;;  %v5751_v29 = vadd.f32 1.0, %v7286_v62 }
 0xd0c   : >> { %v5766_v12 = vmul.f32 0.5, %v5750_v46  ;;  %v5780_v21 = vmul.f32 %v5764_v52, %v11480_v43 }
 0xd0d   : >> { %v5767_v13 = vmul.f32 0.5, %v5751_v29  ;;  %v5781_v17 = vmul.f32 %v5765_v25, %v11483_v33 }
 0xd0e   : >> { %v5782_v61 = vmul.f32 %v5766_v12, %v11488_v16 }
 0xd0f   : >> { %v7288_v7 = vpop.eup %7287  ;;  %v5783_v60 = vmul.f32 %v5767_v13, %v11493_v49 }
 0xd10   : >> { %v7290_v2 = vpop.eup %7289  ;;  %v5796_v34 = vpack.c.bf16 %v5782_v61, %v5780_v21  ;;  %v5752_v36 = vadd.f32 1.0, %v7288_v7 }
 0xd11   : >> { %v7292_v59 = vpop.eup %7291  ;;  %v5753_v42 = vadd.f32 1.0, %v7290_v2  ;;  %v5797_v58 = vpack.c.bf16 %v5783_v60, %v5781_v17 }
 0xd12   : >> { %v7294_v24 = vpop.eup %7293  ;;  %v5754_v40 = vadd.f32 1.0, %v7292_v59  ;;  %v5768_v14 = vmul.f32 0.5, %v5752_v36 }
 0xd13   : >> { %v5769_v31 = vmul.f32 0.5, %v5753_v42  ;;  %v5755_v15 = vadd.f32 1.0, %v7294_v24  ;;  %6368 = vmatprep.mubr.msk.bf16.mxu1 %vm5864_vm15, %v5797_v58 }
 0xd14   : >> { %5910 = vmatmul.mubr.bf16.vlgmr.msra.gmra.mrb[72].mxu1 %v5796_v34  ;;  %v5770_v43 = vmul.f32 0.5, %v5754_v40  ;;  %v5784_v33 = vmul.f32 %v5768_v14, %v11505_v1 }
 0xd15   : >> { %v5771_v16 = vmul.f32 0.5, %v5755_v15  ;;  %v5785_v18 = vmul.f32 %v5769_v31, %v11509_v32 }
 0xd16   : >> { %v5786_v49 = vmul.f32 %v5770_v43, %v11515_v39 }
 0xd17   : >> { %v5787_v19 = vmul.f32 %v5771_v16, %v11521_v57 }
 0xd18   : >> { %v5798_v20 = vpack.c.bf16 %v5786_v49, %v5784_v33 }
 0xd19   : >> { %v5799_v63 = vpack.c.bf16 %v5787_v19, %v5785_v18 }
 0xd1b   : >> { %6369 = vmatprep.mubr.msk.bf16.mxu1 %vm5864_vm15, %v5799_v63 }
 0xd1c   : >> { %5918 = vmatmul.mubr.bf16.gmra.mrb[76].mxu1 %v5798_v20 }
 0xd4a   : >> { %v5633_v53 = vpop.f32.mrb[80].mxu0 }
 0xd4b   : >> { %v11546_v47 = vadd.f32 %v5633_v53, %v12650_v0  ;;  %v5635_v10 = vpop.f32.mrb[81].mxu0 }
 0xd4c   : >> { %v11549_v38 = vadd.f32 %v5635_v10, %v12651_v26  ;;  %v5637_v1 = vpop.f32.mrb[82].mxu0 }
 0xd4d   : >> { %v5660_v39 = vmul.f32 %v11546_v47, %v11546_v47  ;;  %v11554_v32 = vadd.f32 %v5637_v1, %v12650_v0  ;;  %v5639_v57 = vpop.f32.mrb[83].mxu0 }
 0xd4e   : >> { %v5661_v54 = vmul.f32 %v11549_v38, %v11549_v38  ;;  %v11559_v50 = vadd.f32 %v5639_v57, %v12651_v26 }
 0xd4f   : >> { %v5676_v28 = vmul.f32 %v5660_v39, %v11546_v47  ;;  %v5662_v4 = vmul.f32 %v11554_v32, %v11554_v32 }
 0xd50   : >> { %v5677_v23 = vmul.f32 %v5661_v54, %v11549_v38  ;;  %v5663_v45 = vmul.f32 %v11559_v50, %v11559_v50 }
 0xd51   : >> { %v5692_v5 = vmul.f32 0.044715, %v5676_v28  ;;  %v5678_v35 = vmul.f32 %v5662_v4, %v11554_v32 }
 0xd52   : >> { %v5693_v44 = vmul.f32 0.044715, %v5677_v23  ;;  %v5679_v27 = vmul.f32 %v5663_v45, %v11559_v50  ;;  %v5643_v9 = vpop.f32.mrb[84].mxu0 }
 0xd53   : >> { %v5708_v41 = vadd.f32 %v5692_v5, %v11546_v47  ;;  %v5694_v48 = vmul.f32 0.044715, %v5678_v35  ;;  %v11571_v62 = vadd.f32 %v5643_v9, %v12650_v0  ;;  %v5645_v52 = vpop.f32.mrb[85].mxu0 }
 0xd54   : >> { %v5709_v46 = vadd.f32 %v5693_v44, %v11549_v38  ;;  %v5695_v25 = vmul.f32 0.044715, %v5679_v27  ;;  %v11575_v29 = vadd.f32 %v5645_v52, %v12651_v26  ;;  %v5647_v12 = vpop.f32.mrb[86].mxu0 }
 0xd55   : >> { %v5724_v13 = vmul.f32 0.7978846, %v5708_v41  ;;  %v5710_v21 = vadd.f32 %v5694_v48, %v11554_v32  ;;  %v5664_v61 = vmul.f32 %v11571_v62, %v11571_v62  ;;  %v11581_v7 = vadd.f32 %v5647_v12, %v12650_v0  ;;  %v5649_v17 = vpop.f32.mrb[87].mxu0 }
 0xd56   : >> { %v5725_v60 = vmul.f32 0.7978846, %v5709_v46  ;;  %v5711_v2 = vadd.f32 %v5695_v25, %v11559_v50  ;;  %v5665_v34 = vmul.f32 %v11575_v29, %v11575_v29  ;;  %v11587_v36 = vadd.f32 %v5649_v17, %v12651_v26 }
 0xd57   : >> { %7295 = vtanh.f32 %v5724_v13  ;;  %v5726_v59 = vmul.f32 0.7978846, %v5710_v21  ;;  %v5680_v42 = vmul.f32 %v5664_v61, %v11571_v62  ;;  %v5666_v58 = vmul.f32 %v11581_v7, %v11581_v7 }
 0xd58   : >> { %7297 = vtanh.f32 %v5725_v60  ;;  %v5727_v0 = vmul.f32 0.7978846, %v5711_v2  ;;  %v5681_v24 = vmul.f32 %v5665_v34, %v11575_v29  ;;  %v5667_v40 = vmul.f32 %v11587_v36, %v11587_v36 }
 0xd59   : >> { %7299 = vtanh.f32 %v5726_v59  ;;  %v5696_v14 = vmul.f32 0.044715, %v5680_v42  ;;  %v5682_v31 = vmul.f32 %v5666_v58, %v11581_v7 }
 0xd5a   : >> { %7301 = vtanh.f32 %v5727_v0  ;;  %v5697_v26 = vmul.f32 0.044715, %v5681_v24  ;;  %v5683_v15 = vmul.f32 %v5667_v40, %v11587_v36 }
 0xd5b   : >> { %v5712_v43 = vadd.f32 %v5696_v14, %v11571_v62  ;;  %v5698_v16 = vmul.f32 0.044715, %v5682_v31  ;;  %v5952_v14 = vsub.s32 5, %v12619_v11 }
 0xd5c   : >> { %v5713_v33 = vadd.f32 %v5697_v26, %v11575_v29  ;;  %v5699_v49 = vmul.f32 0.044715, %v5683_v15 }
 0xd5d   : >> { %v5728_v18 = vmul.f32 0.7978846, %v5712_v43  ;;  %v5714_v19 = vadd.f32 %v5698_v16, %v11581_v7  ;;  %v5953_v31 = vrot.slane %v11344_v55, %v5952_v14 }
 0xd5e   : >> { %v5729_v20 = vmul.f32 0.7978846, %v5713_v33  ;;  %v5715_v63 = vadd.f32 %v5699_v49, %v11587_v36 }
 0xd5f   : >> { %7303 = vtanh.f32 %v5728_v18  ;;  %v5730_v53 = vmul.f32 0.7978846, %v5714_v19 }
 0xd60   : >> { %7305 = vtanh.f32 %v5729_v20  ;;  %v5731_v10 = vmul.f32 0.7978846, %v5715_v63 }
 0xd61   : >> { %v7296_v1 = vpop.eup %7295  ;;  %7307 = vtanh.f32 %v5730_v53 }
 0xd62   : >> { %v7298_v39 = vpop.eup %7297  ;;  %7309 = vtanh.f32 %v5731_v10  ;;  %v5756_v57 = vadd.f32 1.0, %v7296_v1 }
 0xd63   : >> { %v7300_v54 = vpop.eup %7299  ;;  %v5757_v28 = vadd.f32 1.0, %v7298_v39 }
 0xd64   : >> { %v7302_v4 = vpop.eup %7301  ;;  %v5758_v23 = vadd.f32 1.0, %v7300_v54  ;;  %v5772_v45 = vmul.f32 0.5, %v5756_v57 }
 0xd65   : >> { %v5773_v5 = vmul.f32 0.5, %v5757_v28  ;;  %v5759_v35 = vadd.f32 1.0, %v7302_v4 }
 0xd66   : >> { %v5774_v44 = vmul.f32 0.5, %v5758_v23  ;;  %v5788_v9 = vmul.f32 %v5772_v45, %v11546_v47 }
 0xd67   : >> { %v5775_v27 = vmul.f32 0.5, %v5759_v35  ;;  %v5789_v52 = vmul.f32 %v5773_v5, %v11549_v38  ;;  %v7313_v35 = vld [vmem:[%s11727_s17] sm:$0xff] (%p1075_p11)  }
 0xd68   : >> { %v5790_v41 = vmul.f32 %v5774_v44, %v11554_v32 }
 0xd69   : >> { %v7304_v48 = vpop.eup %7303  ;;  %v5791_v46 = vmul.f32 %v5775_v27, %v11559_v50  ;;  %v7466_v27 = vmov (%p1075_p11), 0.0  }
 0xd6a   : >> { %v7306_v25 = vpop.eup %7305  ;;  %v5800_v12 = vpack.c.bf16 %v5790_v41, %v5788_v9  ;;  %v5760_v13 = vadd.f32 1.0, %v7304_v48  ;;  %6675 = vmatprep.subr.bf16.mxu0 (%p1075_p11), %v7466_v27  ;;  %6681 = vmatprep.mubr.msk.bf16.mxu0 (%p1075_p11), %vm7467_vm3, %v7466_v27 }
 0xd6b   : >> { %v7308_v21 = vpop.eup %7307  ;;  %v5761_v61 = vadd.f32 1.0, %v7306_v25  ;;  %v5801_v17 = vpack.c.bf16 %v5791_v46, %v5789_v52  ;;  %6676 = vmatpush3.bf16.msra.mxu0 (%p1075_p11), %v7313_v35  ;;  %v5962_v52 = vld [vmem:[%s11726_s16] sm:$0x1] (%p1075_p11)  ;;  %v5963_v25 = vld [vmem:[%s11726_s16 + $0x1] sm:$0x1] (%p1075_p11) }
 0xd6c   : >> { %v7310_v60 = vpop.eup %7309  ;;  %v5762_v2 = vadd.f32 1.0, %v7308_v21  ;;  %v5776_v34 = vmul.f32 0.5, %v5760_v13  ;;  %6677 = vmatprep.subr.bf16.mxu0 (%p1075_p11), %v7466_v27 }
 0xd6d   : >> { %v5777_v59 = vmul.f32 0.5, %v5761_v61  ;;  %v5763_v42 = vadd.f32 1.0, %v7310_v60  ;;  %6370 = vmatprep.mubr.msk.bf16.mxu1 %vm5864_vm15, %v5801_v17  ;;  %v5987_v61 = vld [vmem:[%s11728_s18] sm:$0x1] (%p1075_p11) }
 0xd6e   : >> { %5926 = vmatmul.mubr.bf16.gmra.mrb[80].mxu1 %v5800_v12  ;;  %v5778_v47 = vmul.f32 0.5, %v5762_v2  ;;  %v5792_v38 = vmul.f32 %v5776_v34, %v11571_v62 }
 0xd6f   : >> { %v5779_v32 = vmul.f32 0.5, %v5763_v42  ;;  %v5793_v58 = vmul.f32 %v5777_v59, %v11575_v29 }
 0xd70   : >> { %v5794_v50 = vmul.f32 %v5778_v47, %v11581_v7 }
 0xd71   : >> { %v5795_v0 = vmul.f32 %v5779_v32, %v11587_v36 }
 0xd72   : >> { %v5802_v24 = vpack.c.bf16 %v5794_v50, %v5792_v38 }
 0xd73   : >> { %v5803_v40 = vpack.c.bf16 %v5795_v0, %v5793_v58 }
 0xd75   : >> { %6371 = vmatprep.mubr.msk.bf16.mxu1 %vm5864_vm15, %v5803_v40 }
 0xd76   : >> { %5934 = vmatmul.mubr.bf16.gmra.mrb[84].mxu1 %v5802_v24 }
 0xde7   : >> { %v5911_v26 = vpop.f32.mrb[72].mxu1 }
 0xde8   : >> { %v5942_v15 = vadd.f32 %v5911_v26, %v11349_v22  ;;  %v5913_v43 = vpop.f32.mrb[73].mxu1 }
 0xde9   : >> { %v5914_v62 = vpop.f32.mrb[74].mxu1 }
 0xdea   : >> { %v5954_v16 = vadd.f32 %v5953_v31, %v5942_v15   ;;  %v5943_v7 = vadd.f32 %v5914_v62, %v11355_v3  ;;  %v5916_v29 = vpop.f32.mrb[75].mxu1 }
 0xdec   : >> { %v5955_v39 = vadd.f32 %v5953_v31, %v5943_v7   ;;  %v12653_v48 = vmov %v5954_v16 }
 0xded   : > { %v7315_v39 = vld [vmem:[%s11727_s17 + $0x10] ss:$0 sps:$4 sm:$0xff] (%p1075_p11)  }
 0xdef   : >> { %v5919_v36 = vpop.f32.mrb[76].mxu1 }
 0xdf0   : >> { %v5944_v33 = vadd.f32 %v5919_v36, %v11353_v56  ;;  %v5921_v49 = vpop.f32.mrb[77].mxu1 }
 0xdf1   : >> { %v5922_v18 = vpop.f32.mrb[78].mxu1 }
 0xdf2   : >> { %v5956_v44 = vadd.f32 %v5953_v31, %v5944_v33   ;;  %v5945_v11 = vadd.f32 %v5922_v18, %v11359_v37  ;;  %v5924_v19 = vpop.f32.mrb[79].mxu1 }
 0xdf4   : >> { %v5957_v57 = vadd.f32 %v5953_v31, %v5945_v11  }
 0xdf5   : > { %v6009_v57 = vsel (%p1075_p11), %vm12654_vm11, %v7315_v39, 0 }
 0xe41   : >> { %v5927_v55 = vpop.f32.mrb[80].mxu1 }
 0xe42   : >> { %v5946_v22 = vadd.f32 %v5927_v55, %v11369_v30  ;;  %v5929_v20 = vpop.f32.mrb[81].mxu1  ;;  %v5965_v30 = vsel (%p1075_p11), %vm5964_vm0, %v5954_v16, 0.0 }
 0xe43   : >> { %v5930_v63 = vpop.f32.mrb[82].mxu1  ;;  %5966 = vadd.xlane.f32.xlu0 (%p1075_p11), %v5965_v30 }
 0xe44   : >> { %v5958_v10 = vadd.f32 %v5953_v31, %v5946_v22   ;;  %v5947_v3 = vadd.f32 %v5930_v63, %v11375_v8  ;;  %v5932_v53 = vpop.f32.mrb[83].mxu1 }
 0xe46   : >> { %v5959_v55 = vadd.f32 %v5953_v31, %v5947_v3  }
 0xe48   : > { %1077 = sbr.rel (!%p1075_p11) target bundleno = 560 (0x230), region = 146 }
 0xe49   : >> { %v5935_v1 = vpop.f32.mrb[84].mxu1 }
 0xe4a   : >> { %v5948_v56 = vadd.f32 %v5935_v1, %v11373_v6  ;;  %v5937_v54 = vpop.f32.mrb[85].mxu1 }
 0xe4b   : >> { %v5938_v28 = vpop.f32.mrb[86].mxu1 }
 0xe4c   : >> { %v5960_v47 = vadd.f32 %v5953_v31, %v5948_v56   ;;  %v5949_v37 = vadd.f32 %v5938_v28, %v11379_v51  ;;  %v5940_v4 = vpop.f32.mrb[87].mxu1  ;;  %v12652_v51 = vmov %v5958_v10 }
 0xe4d   : > { %v7314_v51 = vld [vmem:[%s11727_s17 + $0x8] sm:$0xff] (%p1075_p11)  }
 0xe4e   : >> { %v5961_v53 = vadd.f32 %v5953_v31, %v5949_v37   ;;  %6678 = vmatpush3.bf16.msra.mxu0 (%p1075_p11), %v7314_v51 }
 0xe4f   : > { %6679 = vmatprep.subr.bf16.mxu0 %v7466_v27 }
 0xe52   : > { %6680 = vmatpush3.bf16.msra.mxu0 %v6009_v57 }
 0xed0   : > { %v5967_v6 = vpop.xlane.xlu0 %5966 }
 0xed1   : > { %v5969_v8 = vmul.f32 0.025, %v5967_v6 }
 0xed3   : > { %v5970_v23 = vsub.f32 %v5954_v16, %v5969_v8 }
 0xed5   : > { %v5971_v45 = vmul.f32 %v5970_v23, %v5970_v23 }
 0xed7   : > { %v5972_v5 = vsel %vm5964_vm0, %v5971_v45, 0.0 }
 0xed8   : > { %5973 = vadd.xlane.f32.xlu0 %v5972_v5 }
 0xf65   : > { %v5974_v44 = vpop.xlane.xlu0 %5973 }
 0xf66   : > { %v5975_v9 = vmul.f32 0.025, %v5974_v44 }
 0xf68   : > { %v5976_v41 = vadd.f32 1e-05, %v5975_v9 }
 0xf6a   : > { %7316 = vrsqrt.f32 %v5976_v41 }
 0xf74   : > { %v7317_v48 = vpop.eup %7316 }
 0xf75   : > { %v5978_v46 = vmul.f32 %v7317_v48, %v5970_v23 }
 0xf77   : > { %v5979_v12 = vmul.f32 %v5978_v46, %v5962_v52 }
 0xf79   : > { %v5980_v13 = vadd.f32 %v5979_v12, %v5963_v25 }
 0xf7b   : > { %v5981_v21 = vpack.c.bf16 %v5980_v13, %v5980_v13 }
 0xf7d   : > { %6682 = vmatmul.mubr.msk.bf16.vlgmr.msra.gmra.mrb[0].mxu0 %vm12655_vm13, %v5981_v21 }
0x1050   : > { %v6045_v17 = vpop.f32.mrb[0].mxu0 }
0x1051   : > { %v6046_v60 = vadd.f32 %v6045_v17, %v5987_v61  ;;  %v6683_v2 = vpop.f32.mrb[1].mxu0 }
0x1052   : > { %v6048_v34 = vpop.f32.mrb[2].mxu0 }
0x1053   : > { %6052 = vst.msk [vmem:[%s8386_s27] sm:$0x1] %vm6051_vm7, %v6046_v60  ;;  %v6684_v59 = vpop.f32.mrb[3].mxu0 }
0x1054   : > { %7331 = shalt.err (!%p7328_p4)
}
0x1055   : > { %s7332_s27 = scalar_lea.hbm %s11665_s20, 16  ;;  %s7336_s24 = scalar_lea.hbm %s11729_s19, 32 }
0x1056   : > { %p7333_p7 = scmp.ne.s32.totalorder %s11665_s20, %s7332_s27  ;;  %p7337_p10 = scmp.lt.u32.totalorder %s11665_s20, %s11729_s19 }
0x1057   : > { %p7338_p11 = scmp.lt.u32.totalorder %s7336_s24, %s7332_s27  ;;  %p7340_p13 = scmp.lt.u32.totalorder %s7332_s27, %s11665_s20 }
0x1058   : > { %p7334_p8 = pnand %p7333_p7, %p7607_p5 }
0x1059   : > { %p7339_p12 = por %p7338_p11, %p7337_p10 }
0x105a   : > { %p7335_p9 = pneg %p7334_p8 }
0x105b   : > { %p7341_p0 = por %p7340_p13, %p7339_p12 }
0x105d   : > { %p7342_p1 = pnand %p7341_p0, %p7335_p9 }
0x105f   : > { %7345 = shalt.err (!%p7342_p1)
}
0x1060   : > { %6721 = dma.vmem_to_hbm [thread:$0]  (%p7607_p5), %s11667_s28, 16, %s11665_s20, %s6054_s1  }
0x1061 PF: > { %s12657_s7 = sld [smem:[#allocation7_spill]]  ;;  %s12658_s0 = sld [smem:[#allocation5_spill]] }
0x1067   : > { %p6727_p2 = scmp.ge.s32.totalorder %s12657_s7, 2  ;;  %s6078_s22 = sand.u32 1, %s12658_s0  }
0x1068   : > { %s6079_s25 = scalar_lea.sflag [#allocation3], %s6078_s22 }
0x1069   : > { %p6724_p3 = pnand %p6727_p2, %p7611_p6 }
0x106b   : > { %7399 = dma.done.wait (!%p6724_p3), %s6079_s25, 16  }
0x106c   : > { %7401 = vsyncadd (!%p6724_p3), %s6079_s25, 4294967280  ;;  %s12660_s21 = sld [smem:[#allocation8_spill]]  ;;  %s12661_s27 = sld [smem:[#allocation6_spill]] }
0x106d   : > { %s12662_s20 = sld [smem:[#allocation9_spill]]  ;;  %s12663_s0 = smov %s7408_s30 }
0x1072   : > { %p29_p4 = scmp.ge.s32.totalorder %s12660_s21, 4   ;;  %s12664_s30 = smov %s12661_s27 }
0x1074   :  { %31 = sbr.rel (!%p29_p4) target bundleno = 9 (0x9), region = 157 }
0x107b   :  { %6083 = vsyncpa [#allocation3], 1 }
0x107c   :  { %6085 = vsyncpa [#allocation3 + $0x1], 1 }

</bundles_post_ra>
